<compile_context>
chip_gen: v6e
topology: v6e:2x2x1
jax: 0.10.0
libtpu: 0.0.40
codegen_flags: <defaults>
</compile_context>

<pallas_src>
import math
import functools

import numpy as np
import jax
import jax.numpy as jnp
from jax.experimental import pallas as pl
from jax.experimental.pallas import tpu as pltpu


# ----------------------------------------------------------------------------
# Tiling helper: largest lane tile that divides Nt, is a multiple of 128 and
# <= cap; prefers >=2 tiles when Nt >= 1024 so both v7x TensorCores get work.
# ----------------------------------------------------------------------------
def _pick_tile(Nt, cap=2048):
    if Nt < 256 or Nt % 128 != 0:
        return Nt
    upper = min(cap, Nt // 2 if Nt >= 1024 else Nt)
    upper -= upper % 128
    for cand in range(upper, 127, -128):
        if Nt % cand == 0:
            return cand
    return Nt


# ----------------------------------------------------------------------------
# Pallas kernels
# ----------------------------------------------------------------------------
def _convmm_kernel(p_ref, w_ref, o_ref, *, activation):
    """Fused conv-as-matmul step (bias folded into the matmul).

    p_ref: (Kc+1, sp) bf16 im2col patches (+ constant-1 row), lanes = B*Ho*Wo
    w_ref: (Cout, Kc+1) bf16 weights (+ bias column, BN scale pre-folded)
    o_ref: (Cout, sp)   output tile, channel rows, lane-dense spatial
    """
    acc = jnp.dot(w_ref[...], p_ref[...], preferred_element_type=jnp.float32)
    if activation == "relu":
        acc = jnp.maximum(acc, 0.0)
    elif activation == "sigmoid":
        z = jnp.exp(-jnp.abs(acc))                 # safe: exp of non-positive arg
        acc = jnp.where(acc >= 0, 1.0 / (1.0 + z), z / (1.0 + z))
    o_ref[...] = acc.astype(o_ref.dtype)


def _maps_kernel(p_ref, w_ref, t_ref, probs_ref, def_ref):
    """7x7 `maps` conv + channel softmax + TPS-weighted deformation, fused.

    p_ref: (Kc+1, sp) bf16      w_ref: (Kp1, Kc+1) bf16
    t_ref: (2, Kp1, sp) f32     probs_ref: (Kp1, sp) f32   def_ref: (2, sp) f32
    """
    logits = jnp.dot(w_ref[...], p_ref[...], preferred_element_type=jnp.float32)
    m = jnp.max(logits, axis=0, keepdims=True)          # XLU cross-sublane reduce
    e = jnp.exp(logits - m)
    s = jnp.sum(e, axis=0, keepdims=True)
    probs = e * pl.reciprocal(s, approx=True)            # EUP
    probs_ref[...] = probs
    t = t_ref[...]                                        # (2, Kp1, sp)
    d0 = jnp.sum(t[0] * probs, axis=0, keepdims=True)
    d1 = jnp.sum(t[1] * probs, axis=0, keepdims=True)
    def_ref[...] = jnp.concatenate([d0, d1], axis=0)


def _blur_kernel(x_ref, gvt_ref, gh_ref, o_ref, *, C):
    """Separable depthwise Gaussian blur + stride-4 decimation (2 small matmuls).

    x_ref:   (1, C, Hp, Wp) f32 padded image
    gvt_ref: (Hd, Hp) f32 vertical taps (decimation fused)
    gh_ref:  (Wp, Wd) f32 horizontal taps (decimation fused)
    o_ref:   (1, C*Hd, Wd) f32
    """
    gvt = gvt_ref[...]
    rows = []
    for c in range(C):                                   # tiny static loop (C=3)
        rows.append(jnp.dot(gvt, x_ref[0, c], preferred_element_type=jnp.float32))
    v = jnp.concatenate(rows, axis=0)                    # (C*Hd, Wp)
    o_ref[0] = jnp.dot(v, gh_ref[...], preferred_element_type=jnp.float32)


# ----------------------------------------------------------------------------
# Wrapper-side im2col (batch folded into the lane axis; cheap XLA slicing).
# Column ordering matches W.reshape(Cout, Cin*K*K): row index = c*K*K + kh*K + kw.
# ----------------------------------------------------------------------------
def _im2col_bfolded(x, K, padding):
    B, C, H, W = x.shape
    xp = jnp.pad(x, ((0, 0), (0, 0), (padding, padding), (padding, padding)))
    Hp, Wp = H + 2 * padding, W + 2 * padding
    Ho, Wo = Hp - K + 1, Wp - K + 1
    cols = []
    for kh in range(K):
        for kw in range(K):
            cols.append(xp[:, :, kh:kh + Ho, kw:kw + Wo])      # (B, C, Ho, Wo)
    pat = jnp.stack(cols, axis=2)                              # (B, C, K*K, Ho, Wo)
    pat = jnp.transpose(pat, (1, 2, 0, 3, 4))                  # (C, K*K, B, Ho, Wo)
    return pat.reshape(C * K * K, B * Ho * Wo), Ho, Wo


def conv2d_pallas(x, w_mat, *, K, padding, activation="none", out_dtype=jnp.float32):
    """Conv2d with fused affine (bias in w_mat) + activation.

    x:     (B, Cin, H, W)   (any float dtype; cast to bf16 before im2col)
    w_mat: (Cout, Cin*K*K + 1) bf16 (last column is the bias / BN shift)
    Returns (B, Cout, Ho, Wo) in `out_dtype`.
    """
    B = x.shape[0]
    Cout = w_mat.shape[0]
    pat, Ho, Wo = _im2col_bfolded(x.astype(jnp.bfloat16), K, padding)
    Nt = B * Ho * Wo
    pat = jnp.concatenate([pat, jnp.ones((1, Nt), jnp.bfloat16)], axis=0)
    Kc1 = pat.shape[0]

    sp = _pick_tile(Nt, cap=2048)
    n_sp = Nt // sp

    kernel = functools.partial(_convmm_kernel, activation=activation)
    out = pl.pallas_call(
        kernel,
        out_shape=jax.ShapeDtypeStruct((Cout, Nt), out_dtype),
        grid=(n_sp,),
        in_specs=[
            pl.BlockSpec((Kc1, sp), lambda s: (0, s)),
            pl.BlockSpec((Cout, Kc1), lambda s: (0, 0)),
        ],
        out_specs=pl.BlockSpec((Cout, sp), lambda s: (0, s)),
        compiler_params=pltpu.CompilerParams(
            dimension_semantics=("parallel",),
            vmem_limit_bytes=32 * 1024 * 1024),
    )(pat, w_mat)
    out = out.reshape(Cout, B, Ho, Wo)
    return jnp.transpose(out, (1, 0, 2, 3))


def maps_softmax_deform_pallas(x, w_mat, trans_lane, Kp1, *, K, padding):
    """x: (B, Cin, H, W); trans_lane: (2, Kp1, B*H*W) f32 (xy-major, batch in lanes)."""
    B = x.shape[0]
    pat, Ho, Wo = _im2col_bfolded(x.astype(jnp.bfloat16), K, padding)
    Nt = B * Ho * Wo
    pat = jnp.concatenate([pat, jnp.ones((1, Nt), jnp.bfloat16)], axis=0)
    Kc1 = pat.shape[0]

    sp = _pick_tile(Nt, cap=1024)          # keep VMEM bounded at higher resolutions
    n_sp = Nt // sp

    probs, deform = pl.pallas_call(
        _maps_kernel,
        out_shape=(jax.ShapeDtypeStruct((Kp1, Nt), jnp.float32),
                   jax.ShapeDtypeStruct((2, Nt), jnp.float32)),
        grid=(n_sp,),
        in_specs=[
            pl.BlockSpec((Kc1, sp), lambda s: (0, s)),
            pl.BlockSpec((Kp1, Kc1), lambda s: (0, 0)),
            pl.BlockSpec((2, Kp1, sp), lambda s: (0, 0, s)),
        ],
        out_specs=(pl.BlockSpec((Kp1, sp), lambda s: (0, s)),
                   pl.BlockSpec((2, sp), lambda s: (0, s))),
        compiler_params=pltpu.CompilerParams(
            dimension_semantics=("parallel",),
            vmem_limit_bytes=32 * 1024 * 1024),
    )(pat, w_mat, trans_lane.astype(jnp.float32))
    return probs, deform, (Ho, Wo)


def _tap_matrix(g1, n_out, n_pad, stride):
    """(n_out, n_pad) matrix: row i has the 1-D kernel placed at cols stride*i..."""
    ks = g1.shape[0]
    idx = jnp.arange(n_pad)[None, :] - stride * jnp.arange(n_out)[:, None]
    valid = (idx >= 0) & (idx < ks)
    return jnp.where(valid, g1[jnp.clip(idx, 0, ks - 1)], 0.0).astype(jnp.float32)


def antialias_down_pallas(x, g1, *, ks, pad, stride):
    """AntiAliasInterpolation2d: separable Gaussian blur + nearest stride decimation."""
    B, C, H, W = x.shape
    Hp, Wp = H + 2 * pad, W + 2 * pad
    Hd = (Hp - ks) // stride + 1
    Wd = (Wp - ks) // stride + 1
    gvt = _tap_matrix(g1, Hd, Hp, stride)            # (Hd, Hp)
    gh = _tap_matrix(g1, Wd, Wp, stride).T           # (Wp, Wd)
    xp = jnp.pad(x, ((0, 0), (0, 0), (pad, pad), (pad, pad))).astype(jnp.float32)

    kernel = functools.partial(_blur_kernel, C=C)
    out = pl.pallas_call(
        kernel,
        out_shape=jax.ShapeDtypeStruct((B, C * Hd, Wd), jnp.float32),
        grid=(B,),
        in_specs=[
            pl.BlockSpec((1, C, Hp, Wp), lambda b: (b, 0, 0, 0)),
            pl.BlockSpec((Hd, Hp), lambda b: (0, 0)),
            pl.BlockSpec((Wp, Wd), lambda b: (0, 0)),
        ],
        out_specs=pl.BlockSpec((1, C * Hd, Wd), lambda b: (b, 0, 0)),
        compiler_params=pltpu.CompilerParams(
            dimension_semantics=("parallel",),
            vmem_limit_bytes=32 * 1024 * 1024),
    )(xp, gvt, gh)
    return out.reshape(B, C, Hd, Wd)


# ----------------------------------------------------------------------------
# Plain-JAX glue (heatmaps, TPS solve, grid_sample, pool/upsample)
# ----------------------------------------------------------------------------
def make_coordinate_grid(h, w):
    x = 2.0 * (jnp.arange(w, dtype=jnp.float32) / (w - 1)) - 1.0
    y = 2.0 * (jnp.arange(h, dtype=jnp.float32) / (h - 1)) - 1.0
    xx = jnp.tile(x[None, :], (h, 1))
    yy = jnp.tile(y[:, None], (1, w))
    return jnp.stack([xx, yy], axis=2)            # (h, w, 2), [..., 0]=x


def kp2gaussian(kp, h, w, kp_variance):
    grid = make_coordinate_grid(h, w)             # (h, w, 2)
    diff = grid[None, None] - kp[:, :, None, None, :]
    return jnp.exp(-0.5 * jnp.sum(diff ** 2, axis=-1) / kp_variance)


def create_heatmap_representations(source, kp_driving, kp_source, kp_variance):
    bs, _, h, w = source.shape
    gd = kp2gaussian(kp_driving, h, w, kp_variance)
    gs = kp2gaussian(kp_source, h, w, kp_variance)
    heatmap = gd - gs
    zeros = jnp.zeros((bs, 1, h, w), heatmap.dtype)
    return jnp.concatenate([zeros, heatmap], axis=1)


def tps_params(kp_1, kp_2):
    bs, num_tps, n, _ = kp_1.shape
    diff = kp_1[:, :, :, None, :] - kp_1[:, :, None, :, :]
    K = jnp.sum(diff ** 2, axis=4)
    K = K * jnp.log(K + 1e-9)
    one1 = jnp.ones((bs, num_tps, n, 1), kp_1.dtype)
    kp_1p = jnp.concatenate([kp_1, one1], axis=3)
    P = jnp.concatenate([kp_1p, jnp.zeros((bs, num_tps, 3, 3), kp_1.dtype)], axis=2)
    L = jnp.concatenate([K, jnp.transpose(kp_1p, (0, 1, 3, 2))], axis=2)
    L = jnp.concatenate([L, P], axis=3)
    Y = jnp.concatenate([kp_2, jnp.zeros((bs, num_tps, 3, 2), kp_1.dtype)], axis=2)
    L = L + jnp.eye(n + 3, dtype=kp_1.dtype) * 0.01
    # TODO(synk): 8x8 batched matrix inverse stays in plain JAX (no Pallas equivalent).
    param = jnp.matmul(jnp.linalg.inv(L), Y)
    theta = jnp.transpose(param[:, :, n:, :], (0, 1, 3, 2))   # (bs, K, 2, 3)
    return theta, kp_1, param[:, :, :n, :]


def tps_warp(theta, control_points, control_params, coordinates):
    bs, num_tps = theta.shape[0], theta.shape[1]
    coords_t = jnp.transpose(coordinates, (0, 2, 1))                      # (1, 2, HW)
    transformed = jnp.matmul(theta[:, :, :, :2], coords_t) + theta[:, :, :, 2:]
    distances = (coordinates.reshape(coordinates.shape[0], 1, 1, -1, 2)
                 - control_points.reshape(bs, num_tps, -1, 1, 2))
    result = jnp.sum(distances ** 2, axis=-1)
    result = result * jnp.log(result + 1e-9)
    result = jnp.matmul(jnp.transpose(result, (0, 1, 3, 2)), control_params)
    return jnp.transpose(transformed, (0, 1, 3, 2)) + result              # (bs, K, HW, 2)


def create_transformations(source, kp_driving, kp_source, num_tps):
    bs, _, h, w = source.shape
    kp_1 = kp_driving.reshape(bs, -1, 5, 2)
    kp_2 = kp_source.reshape(bs, -1, 5, 2)
    theta, cps, cpar = tps_params(kp_1, kp_2)
    grid = make_coordinate_grid(h, w).reshape(1, h * w, 2)
    driving_to_source = tps_warp(theta, cps, cpar, grid).reshape(bs, num_tps, h, w, 2)
    identity = jnp.broadcast_to(make_coordinate_grid(h, w).reshape(1, 1, h, w, 2),
                                (bs, 1, h, w, 2))
    # TODO(synk): bg_param affine path omitted (forward called with bg_param=None).
    return jnp.concatenate([identity, driving_to_source], axis=1)


def grid_sample_bilinear(img, grid):
    """F.grid_sample(align_corners=True, mode='bilinear', padding='zeros')
    -- matches the reference, which explicitly passes align_corners=True."""
    # TODO(synk): data-dependent gather stays in plain JAX (no clean BlockSpec mapping).
    N, C, H, W = img.shape
    ix = (grid[..., 0] + 1.0) * (W - 1) / 2.0
    iy = (grid[..., 1] + 1.0) * (H - 1) / 2.0
    ix0, iy0 = jnp.floor(ix), jnp.floor(iy)
    ix1, iy1 = ix0 + 1.0, iy0 + 1.0
    wx1, wy1 = ix - ix0, iy - iy0
    wx0, wy0 = 1.0 - wx1, 1.0 - wy1

    def corner(xf, yf):
        inb = ((xf >= 0) & (xf <= W - 1) & (yf >= 0) & (yf <= H - 1)).astype(img.dtype)
        xi = jnp.clip(xf, 0, W - 1).astype(jnp.int32)
        yi = jnp.clip(yf, 0, H - 1).astype(jnp.int32)
        vals = jax.vmap(lambda im, yy, xx: im[:, yy, xx])(img, yi, xi)     # (N,C,Hg,Wg)
        return vals * inb[:, None, :, :]

    v00, v01 = corner(ix0, iy0), corner(ix1, iy0)
    v10, v11 = corner(ix0, iy1), corner(ix1, iy1)
    wx0e, wx1e = wx0[:, None], wx1[:, None]
    wy0e, wy1e = wy0[:, None], wy1[:, None]
    return wy0e * (wx0e * v00 + wx1e * v01) + wy1e * (wx0e * v10 + wx1e * v11)


def create_deformed_source_image(source, transformations, num_tps):
    bs, C, h, w = source.shape
    Kp1 = num_tps + 1
    src_rep = jnp.broadcast_to(source[:, None], (bs, Kp1, C, h, w)).reshape(bs * Kp1, C, h, w)
    grid = transformations.reshape(bs * Kp1, h, w, 2)
    deformed = grid_sample_bilinear(src_rep, grid)
    return deformed.reshape(bs, Kp1, C, h, w)


def avg_pool2(x):
    # TODO(synk): could be fused into the preceding conv epilogue; kept as a tiny
    # XLA op (it fuses with the next layer's im2col gather).
    B, C, H, W = x.shape
    return x.reshape(B, C, H // 2, 2, W // 2, 2).mean(axis=(3, 5))


def upsample2(x):
    # Nearest x2 upsample; XLA fuses the repeat into the following im2col gather.
    return jnp.repeat(jnp.repeat(x, 2, axis=2), 2, axis=3)


# ----------------------------------------------------------------------------
# Module configuration / parameter init (synthetic, deterministic)
# ----------------------------------------------------------------------------
def build_config(block_expansion=16, num_blocks=2, max_features=64, num_tps=2,
                 num_channels=3, scale_factor=0.25, kp_variance=0.01):
    in_features = num_channels * (num_tps + 1) + num_tps * 5 + 1
    enc_blocks = []
    for i in range(num_blocks):
        cin = in_features if i == 0 else min(max_features, block_expansion * (2 ** i))
        cout = min(max_features, block_expansion * (2 ** (i + 1)))
        enc_blocks.append((cin, cout))
    dec_blocks, hourglass_out = [], []
    for i in range(num_blocks)[::-1]:
        in_f = (1 if i == num_blocks - 1 else 2) * min(max_features, block_expansion * (2 ** (i + 1)))
        hourglass_out.append(in_f)
        dec_blocks.append((in_f, min(max_features, block_expansion * (2 ** i))))
    hourglass_out.append(block_expansion + in_features)
    up_nums = int(round(math.log(1.0 / scale_factor, 2)))
    occlusion_num = 4
    ch = [hourglass_out[-1] // (2 ** i) for i in range(up_nums)]
    up_blocks = [(ch[i], ch[i] // 2) for i in range(up_nums)]
    occ_channels = [hourglass_out[-i - 1] for i in range(occlusion_num - up_nums)][::-1]
    for i in range(up_nums):
        occ_channels.append(hourglass_out[-1] // (2 ** (i + 1)))
    sigma = (1.0 / scale_factor - 1.0) / 2.0
    ks = 2 * round(sigma * 4) + 1
    return dict(num_tps=num_tps, num_channels=num_channels, kp_variance=kp_variance,
                in_features=in_features, enc_blocks=enc_blocks, dec_blocks=dec_blocks,
                hourglass_out=hourglass_out, up_nums=up_nums, occlusion_num=occlusion_num,
                up_blocks=up_blocks, occ_channels=occ_channels,
                blur_ks=ks, blur_pad=ks // 2, blur_sigma=sigma,
                inv_scale=int(round(1.0 / scale_factor)))


def init_params(key, cfg):
    keys = iter(jax.random.split(key, 128))

    def conv_init(cin, cout, k):
        fan_in = cin * k * k
        w = jax.random.normal(next(keys), (cout, cin, k, k), jnp.float32) / np.sqrt(fan_in)
        b = 0.01 * jax.random.normal(next(keys), (cout,), jnp.float32)
        return w, b

    def conv_block(cin, cout, k):
        # Plain conv: bias folded into the weight matrix as a last column
        # (paired with a constant-1 patch row inside conv2d_pallas).
        w, b = conv_init(cin, cout, k)
        wm = jnp.concatenate([w.reshape(cout, -1), b[:, None]], axis=1)
        return dict(w=wm.astype(jnp.bfloat16))

    def conv_bn_block(cin, cout, k):
        # eval-mode BatchNorm: running_mean=0, running_var=1, eps=1e-5; scale is
        # folded into the weights, shift folded into the bias column.
        w, b = conv_init(cin, cout, k)
        gamma = 1.0 + 0.1 * jax.random.normal(next(keys), (cout,), jnp.float32)
        beta = 0.1 * jax.random.normal(next(keys), (cout,), jnp.float32)
        scale = gamma / jnp.sqrt(1.0 + 1e-5)
        w_mat = w.reshape(cout, -1) * scale[:, None]
        bias = beta + b * scale
        wm = jnp.concatenate([w_mat, bias[:, None]], axis=1)
        return dict(w=wm.astype(jnp.bfloat16))

    params = {}
    # Separable anti-alias Gaussian: 1-D taps only (outer product is implicit).
    sigma, ks = cfg["blur_sigma"], cfg["blur_ks"]
    ax = np.arange(ks, dtype=np.float32)
    g1 = np.exp(-((ax - (ks - 1) / 2.0) ** 2) / (2.0 * sigma ** 2))
    g1 = g1 / g1.sum()
    params["blur"] = dict(g1=jnp.asarray(g1, jnp.float32))

    params["down_blocks"] = [conv_bn_block(ci, co, 3) for (ci, co) in cfg["enc_blocks"]]
    params["dec_blocks"] = [conv_bn_block(ci, co, 3) for (ci, co) in cfg["dec_blocks"]]
    params["maps"] = conv_block(cfg["hourglass_out"][-1], cfg["num_tps"] + 1, 7)
    params["occlusion"] = [conv_block(ci, 1, 7) for ci in cfg["occ_channels"]]
    params["up_blocks"] = [conv_bn_block(ci, co, 3) for (ci, co) in cfg["up_blocks"]]
    return params


# ----------------------------------------------------------------------------
# Forward pass (semantics of DenseMotionNetwork.forward, bg_param=None,
# dropout_flag=False, multi_mask=True)
# ----------------------------------------------------------------------------
def dense_motion_forward(params, source_image, kp_driving, kp_source, cfg):
    num_tps = cfg["num_tps"]
    Kp1 = num_tps + 1

    # --- AntiAliasInterpolation2d: separable blur + fused stride-4 decimation --
    source = antialias_down_pallas(source_image, params["blur"]["g1"],
                                   ks=cfg["blur_ks"], pad=cfg["blur_pad"],
                                   stride=cfg["inv_scale"])
    bs, _, h, w = source.shape

    out = {}
    heatmap = create_heatmap_representations(source, kp_driving, kp_source, cfg["kp_variance"])
    transformations = create_transformations(source, kp_driving, kp_source, num_tps)
    deformed_source = create_deformed_source_image(source, transformations, num_tps)
    out["deformed_source"] = deformed_source

    inp = jnp.concatenate([heatmap, deformed_source.reshape(bs, -1, h, w)], axis=1)
    inp = inp.astype(jnp.bfloat16)        # hourglass activations stay bf16

    # --- Hourglass encoder ----------------------------------------------------
    enc_outs = [inp]
    for blk in params["down_blocks"]:
        y = conv2d_pallas(enc_outs[-1], blk["w"], K=3, padding=1,
                          activation="relu", out_dtype=jnp.bfloat16)
        enc_outs.append(avg_pool2(y))

    # --- Hourglass decoder (mode=1 returns all skip-concatenated outputs) -----
    cur = enc_outs.pop()
    preds = []
    for blk in params["dec_blocks"]:
        cur = upsample2(cur)
        cur = conv2d_pallas(cur, blk["w"], K=3, padding=1,
                            activation="relu", out_dtype=jnp.bfloat16)
        cur = jnp.concatenate([cur, enc_outs.pop()], axis=1)
        preds.append(cur)

    # --- maps conv + channel softmax + deformation (one fused Pallas kernel) --
    # TODO(synk): dropout_softmax path (dropout_flag=True) not implemented; inference path only.
    # transformations laid out (xy, k, b*h*w) so the kernel's lane axis is B*HW.
    trans_lane = jnp.transpose(transformations, (4, 1, 0, 2, 3)).reshape(2, Kp1, bs * h * w)
    probs, deform, _ = maps_softmax_deform_pallas(
        preds[-1], params["maps"]["w"], trans_lane, Kp1, K=7, padding=3)
    out["contribution_maps"] = jnp.transpose(probs.reshape(Kp1, bs, h, w), (1, 0, 2, 3))
    out["deformation"] = jnp.transpose(deform.reshape(2, bs, h, w), (1, 2, 3, 0))

    # --- multi-resolution occlusion masks --------------------------------------
    occlusion_map = []
    up_nums, occ_num = cfg["up_nums"], cfg["occlusion_num"]
    for i in range(occ_num - up_nums):
        o = conv2d_pallas(preds[up_nums - occ_num + i], params["occlusion"][i]["w"],
                          K=7, padding=3, activation="sigmoid", out_dtype=jnp.float32)
        occlusion_map.append(o)
    cur = preds[-1]
    for i in range(up_nums):
        blk = params["up_blocks"][i]
        cur = upsample2(cur)
        cur = conv2d_pallas(cur, blk["w"], K=3, padding=1,
                            activation="relu", out_dtype=jnp.bfloat16)
        occ = params["occlusion"][i + occ_num - up_nums]
        o = conv2d_pallas(cur, occ["w"], K=7, padding=3,
                          activation="sigmoid", out_dtype=jnp.float32)
        occlusion_map.append(o)
    out["occlusion_map"] = occlusion_map
    return out


# ----------------------------------------------------------------------------
if __name__ == "__main__":
    CFG = build_config(block_expansion=16, num_blocks=2, max_features=64,
                       num_tps=2, num_channels=3, scale_factor=0.25)

    key = jax.random.PRNGKey(0)
    k_img, k_kd, k_ks, k_par = jax.random.split(key, 4)
    bs = 2
    source_image = jax.random.uniform(k_img, (bs, 3, 32, 32), jnp.float32)
    kp_driving = jax.random.uniform(k_kd, (bs, CFG["num_tps"] * 5, 2), jnp.float32,
                                    minval=-0.9, maxval=0.9)
    kp_source = jax.random.uniform(k_ks, (bs, CFG["num_tps"] * 5, 2), jnp.float32,
                                   minval=-0.9, maxval=0.9)
    params = init_params(k_par, CFG)

    fwd = jax.jit(lambda p, s, kd, ks: dense_motion_forward(p, s, kd, ks, CFG))
    result = fwd(params, source_image, kp_driving, kp_source)
    result = jax.block_until_ready(result)

    # sanity on shapes implied by the module
    assert result["deformed_source"].shape == (bs, CFG["num_tps"] + 1, 3, 8, 8)
    assert result["contribution_maps"].shape == (bs, CFG["num_tps"] + 1, 8, 8)
    assert result["deformation"].shape == (bs, 8, 8, 2)
    assert [o.shape for o in result["occlusion_map"]] == [
        (bs, 1, 4, 4), (bs, 1, 8, 8), (bs, 1, 16, 16), (bs, 1, 32, 32)]
    assert bool(jnp.all(jnp.isfinite(result["deformation"])))
    assert bool(jnp.all(jnp.isfinite(result["contribution_maps"])))
    print("KERNEL_OK")
</pallas_src>

<mosaic_0001>
module attributes {stable_mosaic.version = 11 : i64} {
  func.func @_blur_kernel(%arg0: i32, %arg1: memref<1x3x44x44xf32, #tpu.memory_space<vmem>>, %arg2: memref<8x44xf32, #tpu.memory_space<vmem>>, %arg3: memref<44x8xf32, #tpu.memory_space<vmem>>, %arg4: memref<1x24x8xf32, #tpu.memory_space<vmem>>) attributes {dimension_semantics = [#tpu.dimension_semantics<parallel>], iteration_bounds = array<i64: 2>, scalar_prefetch = 0 : i64, scratch_operands = 0 : i64, tpu.core_type = #tpu.core_type<tc>, window_params = [{transform_indices = @transform_0, window_bounds = array<i64: 1, 3, 44, 44>}, {pipeline_mode = #tpu.pipeline_mode<synchronous>, transform_indices = @transform_1, window_bounds = array<i64: 8, 44>}, {pipeline_mode = #tpu.pipeline_mode<synchronous>, transform_indices = @transform_2, window_bounds = array<i64: 44, 8>}, {transform_indices = @transform_3, window_bounds = array<i64: 1, 24, 8>}]} {
    %c0 = arith.constant 0 : index
    %c0_0 = arith.constant 0 : index
    %0 = vector.load %arg2[%c0, %c0_0] : memref<8x44xf32, #tpu.memory_space<vmem>>, vector<8x44xf32>
    %c0_1 = arith.constant 0 : index
    %c0_2 = arith.constant 0 : index
    %c0_3 = arith.constant 0 : index
    %c0_4 = arith.constant 0 : index
    %1 = vector.load %arg1[%c0_1, %c0_2, %c0_3, %c0_4] : memref<1x3x44x44xf32, #tpu.memory_space<vmem>>, vector<1x1x44x44xf32>
    %2 = vector.shape_cast %1 : vector<1x1x44x44xf32> to vector<44x44xf32>
    %cst = arith.constant dense<0.000000e+00> : vector<8x44xf32>
    %3 = tpu.matmul %0, %2, %cst {dimension_numbers = #tpu.dot_dimension_numbers<[1], [0], [0], [1], [0, 0, 1, 1], [], []>} : vector<8x44xf32>, vector<44x44xf32>, vector<8x44xf32> -> vector<8x44xf32>
    %c0_5 = arith.constant 0 : index
    %c1 = arith.constant 1 : index
    %c0_6 = arith.constant 0 : index
    %c0_7 = arith.constant 0 : index
    %4 = vector.load %arg1[%c0_5, %c1, %c0_6, %c0_7] : memref<1x3x44x44xf32, #tpu.memory_space<vmem>>, vector<1x1x44x44xf32>
    %5 = vector.shape_cast %4 : vector<1x1x44x44xf32> to vector<44x44xf32>
    %cst_8 = arith.constant dense<0.000000e+00> : vector<8x44xf32>
    %6 = tpu.matmul %0, %5, %cst_8 {dimension_numbers = #tpu.dot_dimension_numbers<[1], [0], [0], [1], [0, 0, 1, 1], [], []>} : vector<8x44xf32>, vector<44x44xf32>, vector<8x44xf32> -> vector<8x44xf32>
    %c0_9 = arith.constant 0 : index
    %c2 = arith.constant 2 : index
    %c0_10 = arith.constant 0 : index
    %c0_11 = arith.constant 0 : index
    %7 = vector.load %arg1[%c0_9, %c2, %c0_10, %c0_11] : memref<1x3x44x44xf32, #tpu.memory_space<vmem>>, vector<1x1x44x44xf32>
    %8 = vector.shape_cast %7 : vector<1x1x44x44xf32> to vector<44x44xf32>
    %cst_12 = arith.constant dense<0.000000e+00> : vector<8x44xf32>
    %9 = tpu.matmul %0, %8, %cst_12 {dimension_numbers = #tpu.dot_dimension_numbers<[1], [0], [0], [1], [0, 0, 1, 1], [], []>} : vector<8x44xf32>, vector<44x44xf32>, vector<8x44xf32> -> vector<8x44xf32>
    %10 = tpu.concatenate %3, %6, %9 in 0 : vector<8x44xf32>, vector<8x44xf32>, vector<8x44xf32> -> vector<24x44xf32>
    %c0_13 = arith.constant 0 : index
    %c0_14 = arith.constant 0 : index
    %11 = vector.load %arg3[%c0_13, %c0_14] : memref<44x8xf32, #tpu.memory_space<vmem>>, vector<44x8xf32>
    %cst_15 = arith.constant dense<0.000000e+00> : vector<24x8xf32>
    %12 = tpu.matmul %10, %11, %cst_15 {dimension_numbers = #tpu.dot_dimension_numbers<[1], [0], [0], [1], [0, 0, 1, 1], [], []>} : vector<24x44xf32>, vector<44x8xf32>, vector<24x8xf32> -> vector<24x8xf32>
    %c0_16 = arith.constant 0 : index
    %c0_17 = arith.constant 0 : index
    %c0_18 = arith.constant 0 : index
    %13 = vector.load %arg4[%c0_16, %c0_17, %c0_18] : memref<1x24x8xf32, #tpu.memory_space<vmem>>, vector<1x24x8xf32>
    %14 = vector.shape_cast %13 : vector<1x24x8xf32> to vector<24x8xf32>
    %15 = vector.shape_cast %12 : vector<24x8xf32> to vector<1x24x8xf32>
    tpu.vector_store %arg4[%c0_16, %c0_17, %c0_18], %15 {strides = array<i32>} : memref<1x24x8xf32, #tpu.memory_space<vmem>>, vector<1x24x8xf32>,
    return
  }
  func.func @transform_0(%arg0: i32) -> (i32, i32, i32, i32) {
    %c0_i32 = arith.constant 0 : i32
    %c0_i32_0 = arith.constant 0 : i32
    %c0_i32_1 = arith.constant 0 : i32
    %c0_i32_2 = arith.constant 0 : i32
    return %arg0, %c0_i32, %c0_i32_0, %c0_i32_1 : i32, i32, i32, i32
  }
  func.func @transform_1(%arg0: i32) -> (i32, i32) {
    %c0_i32 = arith.constant 0 : i32
    %c0_i32_0 = arith.constant 0 : i32
    %c0_i32_1 = arith.constant 0 : i32
    return %c0_i32, %c0_i32_0 : i32, i32
  }
  func.func @transform_2(%arg0: i32) -> (i32, i32) {
    %c0_i32 = arith.constant 0 : i32
    %c0_i32_0 = arith.constant 0 : i32
    %c0_i32_1 = arith.constant 0 : i32
    return %c0_i32, %c0_i32_0 : i32, i32
  }
  func.func @transform_3(%arg0: i32) -> (i32, i32, i32) {
    %c0_i32 = arith.constant 0 : i32
    %c0_i32_0 = arith.constant 0 : i32
    %c0_i32_1 = arith.constant 0 : i32
    return %arg0, %c0_i32, %c0_i32_0 : i32, i32, i32
  }
}

module attributes {stable_mosaic.version = 11 : i64} {
  func.func @_convmm_kernel(%arg0: i32, %arg1: memref<181x128xbf16, #tpu.memory_space<vmem>>, %arg2: memref<32x181xbf16, #tpu.memory_space<vmem>>, %arg3: memref<32x128xbf16, #tpu.memory_space<vmem>>) attributes {dimension_semantics = [#tpu.dimension_semantics<parallel>], iteration_bounds = array<i64: 1>, scalar_prefetch = 0 : i64, scratch_operands = 0 : i64, tpu.core_type = #tpu.core_type<tc>, window_params = [{transform_indices = @transform_0, window_bounds = array<i64: 181, 128>}, {pipeline_mode = #tpu.pipeline_mode<synchronous>, transform_indices = @transform_1, window_bounds = array<i64: 32, 181>}, {transform_indices = @transform_2, window_bounds = array<i64: 32, 128>}]} {
    %c0 = arith.constant 0 : index
    %c0_0 = arith.constant 0 : index
    %0 = vector.load %arg2[%c0, %c0_0] : memref<32x181xbf16, #tpu.memory_space<vmem>>, vector<32x181xbf16>
    %c0_1 = arith.constant 0 : index
    %c0_2 = arith.constant 0 : index
    %1 = vector.load %arg1[%c0_1, %c0_2] : memref<181x128xbf16, #tpu.memory_space<vmem>>, vector<181x128xbf16>
    %cst = arith.constant dense<0.000000e+00> : vector<32x128xf32>
    %2 = tpu.matmul %0, %1, %cst {dimension_numbers = #tpu.dot_dimension_numbers<[1], [0], [0], [1], [0, 0, 1, 1], [], []>} : vector<32x181xbf16>, vector<181x128xbf16>, vector<32x128xf32> -> vector<32x128xf32>
    %cst_3 = arith.constant 0.000000e+00 : f32
    %3 = vector.broadcast %cst_3 : f32 to vector<32x128xf32>
    %4 = arith.maximumf %2, %3 : vector<32x128xf32>
    %5 = arith.truncf %4 : vector<32x128xf32> to vector<32x128xbf16>
    %c0_4 = arith.constant 0 : index
    %c0_5 = arith.constant 0 : index
    %6 = vector.load %arg3[%c0_4, %c0_5] : memref<32x128xbf16, #tpu.memory_space<vmem>>, vector<32x128xbf16>
    tpu.vector_store %arg3[%c0_4, %c0_5], %5 {strides = array<i32>} : memref<32x128xbf16, #tpu.memory_space<vmem>>, vector<32x128xbf16>,
    return
  }
  func.func @transform_0(%arg0: i32) -> (i32, i32) {
    %c0_i32 = arith.constant 0 : i32
    %c0_i32_0 = arith.constant 0 : i32
    return %c0_i32, %arg0 : i32, i32
  }
  func.func @transform_1(%arg0: i32) -> (i32, i32) {
    %c0_i32 = arith.constant 0 : i32
    %c0_i32_0 = arith.constant 0 : i32
    %c0_i32_1 = arith.constant 0 : i32
    return %c0_i32, %c0_i32_0 : i32, i32
  }
  func.func @transform_2(%arg0: i32) -> (i32, i32) {
    %c0_i32 = arith.constant 0 : i32
    %c0_i32_0 = arith.constant 0 : i32
    return %c0_i32, %arg0 : i32, i32
  }
}

module attributes {stable_mosaic.version = 11 : i64} {
  func.func @_convmm_kernel(%arg0: i32, %arg1: memref<289x32xbf16, #tpu.memory_space<vmem>>, %arg2: memref<64x289xbf16, #tpu.memory_space<vmem>>, %arg3: memref<64x32xbf16, #tpu.memory_space<vmem>>) attributes {dimension_semantics = [#tpu.dimension_semantics<parallel>], iteration_bounds = array<i64: 1>, scalar_prefetch = 0 : i64, scratch_operands = 0 : i64, tpu.core_type = #tpu.core_type<tc>, window_params = [{transform_indices = @transform_0, window_bounds = array<i64: 289, 32>}, {pipeline_mode = #tpu.pipeline_mode<synchronous>, transform_indices = @transform_1, window_bounds = array<i64: 64, 289>}, {transform_indices = @transform_2, window_bounds = array<i64: 64, 32>}]} {
    %c0 = arith.constant 0 : index
    %c0_0 = arith.constant 0 : index
    %0 = vector.load %arg2[%c0, %c0_0] : memref<64x289xbf16, #tpu.memory_space<vmem>>, vector<64x289xbf16>
    %c0_1 = arith.constant 0 : index
    %c0_2 = arith.constant 0 : index
    %1 = vector.load %arg1[%c0_1, %c0_2] : memref<289x32xbf16, #tpu.memory_space<vmem>>, vector<289x32xbf16>
    %cst = arith.constant dense<0.000000e+00> : vector<64x32xf32>
    %2 = tpu.matmul %0, %1, %cst {dimension_numbers = #tpu.dot_dimension_numbers<[1], [0], [0], [1], [0, 0, 1, 1], [], []>} : vector<64x289xbf16>, vector<289x32xbf16>, vector<64x32xf32> -> vector<64x32xf32>
    %cst_3 = arith.constant 0.000000e+00 : f32
    %3 = vector.broadcast %cst_3 : f32 to vector<64x32xf32>
    %4 = arith.maximumf %2, %3 : vector<64x32xf32>
    %5 = arith.truncf %4 : vector<64x32xf32> to vector<64x32xbf16>
    %c0_4 = arith.constant 0 : index
    %c0_5 = arith.constant 0 : index
    %6 = vector.load %arg3[%c0_4, %c0_5] : memref<64x32xbf16, #tpu.memory_space<vmem>>, vector<64x32xbf16>
    tpu.vector_store %arg3[%c0_4, %c0_5], %5 {strides = array<i32>} : memref<64x32xbf16, #tpu.memory_space<vmem>>, vector<64x32xbf16>,
    return
  }
  func.func @transform_0(%arg0: i32) -> (i32, i32) {
    %c0_i32 = arith.constant 0 : i32
    %c0_i32_0 = arith.constant 0 : i32
    return %c0_i32, %arg0 : i32, i32
  }
  func.func @transform_1(%arg0: i32) -> (i32, i32) {
    %c0_i32 = arith.constant 0 : i32
    %c0_i32_0 = arith.constant 0 : i32
    %c0_i32_1 = arith.constant 0 : i32
    return %c0_i32, %c0_i32_0 : i32, i32
  }
  func.func @transform_2(%arg0: i32) -> (i32, i32) {
    %c0_i32 = arith.constant 0 : i32
    %c0_i32_0 = arith.constant 0 : i32
    return %c0_i32, %arg0 : i32, i32
  }
}

module attributes {stable_mosaic.version = 11 : i64} {
  func.func @_convmm_kernel(%arg0: i32, %arg1: memref<577x32xbf16, #tpu.memory_space<vmem>>, %arg2: memref<32x577xbf16, #tpu.memory_space<vmem>>, %arg3: memref<32x32xbf16, #tpu.memory_space<vmem>>) attributes {dimension_semantics = [#tpu.dimension_semantics<parallel>], iteration_bounds = array<i64: 1>, scalar_prefetch = 0 : i64, scratch_operands = 0 : i64, tpu.core_type = #tpu.core_type<tc>, window_params = [{transform_indices = @transform_0, window_bounds = array<i64: 577, 32>}, {pipeline_mode = #tpu.pipeline_mode<synchronous>, transform_indices = @transform_1, window_bounds = array<i64: 32, 577>}, {transform_indices = @transform_2, window_bounds = array<i64: 32, 32>}]} {
    %c0 = arith.constant 0 : index
    %c0_0 = arith.constant 0 : index
    %0 = vector.load %arg2[%c0, %c0_0] : memref<32x577xbf16, #tpu.memory_space<vmem>>, vector<32x577xbf16>
    %c0_1 = arith.constant 0 : index
    %c0_2 = arith.constant 0 : index
    %1 = vector.load %arg1[%c0_1, %c0_2] : memref<577x32xbf16, #tpu.memory_space<vmem>>, vector<577x32xbf16>
    %cst = arith.constant dense<0.000000e+00> : vector<32x32xf32>
    %2 = tpu.matmul %0, %1, %cst {dimension_numbers = #tpu.dot_dimension_numbers<[1], [0], [0], [1], [0, 0, 1, 1], [], []>} : vector<32x577xbf16>, vector<577x32xbf16>, vector<32x32xf32> -> vector<32x32xf32>
    %cst_3 = arith.constant 0.000000e+00 : f32
    %3 = vector.broadcast %cst_3 : f32 to vector<32x32xf32>
    %4 = arith.maximumf %2, %3 : vector<32x32xf32>
    %5 = arith.truncf %4 : vector<32x32xf32> to vector<32x32xbf16>
    %c0_4 = arith.constant 0 : index
    %c0_5 = arith.constant 0 : index
    %6 = vector.load %arg3[%c0_4, %c0_5] : memref<32x32xbf16, #tpu.memory_space<vmem>>, vector<32x32xbf16>
    tpu.vector_store %arg3[%c0_4, %c0_5], %5 {strides = array<i32>} : memref<32x32xbf16, #tpu.memory_space<vmem>>, vector<32x32xbf16>,
    return
  }
  func.func @transform_0(%arg0: i32) -> (i32, i32) {
    %c0_i32 = arith.constant 0 : i32
    %c0_i32_0 = arith.constant 0 : i32
    return %c0_i32, %arg0 : i32, i32
  }
  func.func @transform_1(%arg0: i32) -> (i32, i32) {
    %c0_i32 = arith.constant 0 : i32
    %c0_i32_0 = arith.constant 0 : i32
    %c0_i32_1 = arith.constant 0 : i32
    return %c0_i32, %c0_i32_0 : i32, i32
  }
  func.func @transform_2(%arg0: i32) -> (i32, i32) {
    %c0_i32 = arith.constant 0 : i32
    %c0_i32_0 = arith.constant 0 : i32
    return %c0_i32, %arg0 : i32, i32
  }
}

module attributes {stable_mosaic.version = 11 : i64} {
  func.func @_convmm_kernel(%arg0: i32, %arg1: memref<3137x32xbf16, #tpu.memory_space<vmem>>, %arg2: memref<1x3137xbf16, #tpu.memory_space<vmem>>, %arg3: memref<1x32xf32, #tpu.memory_space<vmem>>) attributes {dimension_semantics = [#tpu.dimension_semantics<parallel>], iteration_bounds = array<i64: 1>, scalar_prefetch = 0 : i64, scratch_operands = 0 : i64, tpu.core_type = #tpu.core_type<tc>, window_params = [{transform_indices = @transform_0, window_bounds = array<i64: 3137, 32>}, {pipeline_mode = #tpu.pipeline_mode<synchronous>, transform_indices = @transform_1, window_bounds = array<i64: 1, 3137>}, {transform_indices = @transform_2, window_bounds = array<i64: 1, 32>}]} {
    %c0 = arith.constant 0 : index
    %c0_0 = arith.constant 0 : index
    %0 = vector.load %arg2[%c0, %c0_0] : memref<1x3137xbf16, #tpu.memory_space<vmem>>, vector<1x3137xbf16>
    %c0_1 = arith.constant 0 : index
    %c0_2 = arith.constant 0 : index
    %1 = vector.load %arg1[%c0_1, %c0_2] : memref<3137x32xbf16, #tpu.memory_space<vmem>>, vector<3137x32xbf16>
    %cst = arith.constant dense<0.000000e+00> : vector<1x32xf32>
    %2 = tpu.matmul %0, %1, %cst {dimension_numbers = #tpu.dot_dimension_numbers<[1], [0], [0], [1], [0, 0, 1, 1], [], []>} : vector<1x3137xbf16>, vector<3137x32xbf16>, vector<1x32xf32> -> vector<1x32xf32>
    %3 = math.absf %2 : vector<1x32xf32>
    %cst_3 = arith.constant 0.000000e+00 : f32
    %4 = vector.broadcast %cst_3 : f32 to vector<1x32xf32>
    %5 = arith.subf %4, %3 : vector<1x32xf32>
    %6 = math.exp %5 : vector<1x32xf32>
    %cst_4 = arith.constant 0.000000e+00 : f32
    %7 = vector.broadcast %cst_4 : f32 to vector<1x32xf32>
    %8 = arith.cmpf oge, %2, %7 : vector<1x32xf32>
    %cst_5 = arith.constant 1.000000e+00 : f32
    %9 = vector.broadcast %cst_5 : f32 to vector<1x32xf32>
    %10 = arith.addf %9, %6 : vector<1x32xf32>
    %cst_6 = arith.constant 1.000000e+00 : f32
    %11 = vector.broadcast %cst_6 : f32 to vector<1x32xf32>
    %12 = arith.divf %11, %10 : vector<1x32xf32>
    %cst_7 = arith.constant 1.000000e+00 : f32
    %13 = vector.broadcast %cst_7 : f32 to vector<1x32xf32>
    %14 = arith.addf %13, %6 : vector<1x32xf32>
    %15 = arith.divf %6, %14 : vector<1x32xf32>
    %16 = arith.select %8, %12, %15 : vector<1x32xi1>, vector<1x32xf32>
    %c0_8 = arith.constant 0 : index
    %c0_9 = arith.constant 0 : index
    %17 = vector.load %arg3[%c0_8, %c0_9] : memref<1x32xf32, #tpu.memory_space<vmem>>, vector<1x32xf32>
    tpu.vector_store %arg3[%c0_8, %c0_9], %16 {strides = array<i32>} : memref<1x32xf32, #tpu.memory_space<vmem>>, vector<1x32xf32>,
    return
  }
  func.func @transform_0(%arg0: i32) -> (i32, i32) {
    %c0_i32 = arith.constant 0 : i32
    %c0_i32_0 = arith.constant 0 : i32
    return %c0_i32, %arg0 : i32, i32
  }
  func.func @transform_1(%arg0: i32) -> (i32, i32) {
    %c0_i32 = arith.constant 0 : i32
    %c0_i32_0 = arith.constant 0 : i32
    %c0_i32_1 = arith.constant 0 : i32
    return %c0_i32, %c0_i32_0 : i32, i32
  }
  func.func @transform_2(%arg0: i32) -> (i32, i32) {
    %c0_i32 = arith.constant 0 : i32
    %c0_i32_0 = arith.constant 0 : i32
    return %c0_i32, %arg0 : i32, i32
  }
}

module attributes {stable_mosaic.version = 11 : i64} {
  func.func @_convmm_kernel(%arg0: i32, %arg1: memref<577x128xbf16, #tpu.memory_space<vmem>>, %arg2: memref<16x577xbf16, #tpu.memory_space<vmem>>, %arg3: memref<16x128xbf16, #tpu.memory_space<vmem>>) attributes {dimension_semantics = [#tpu.dimension_semantics<parallel>], iteration_bounds = array<i64: 1>, scalar_prefetch = 0 : i64, scratch_operands = 0 : i64, tpu.core_type = #tpu.core_type<tc>, window_params = [{transform_indices = @transform_0, window_bounds = array<i64: 577, 128>}, {pipeline_mode = #tpu.pipeline_mode<synchronous>, transform_indices = @transform_1, window_bounds = array<i64: 16, 577>}, {transform_indices = @transform_2, window_bounds = array<i64: 16, 128>}]} {
    %c0 = arith.constant 0 : index
    %c0_0 = arith.constant 0 : index
    %0 = vector.load %arg2[%c0, %c0_0] : memref<16x577xbf16, #tpu.memory_space<vmem>>, vector<16x577xbf16>
    %c0_1 = arith.constant 0 : index
    %c0_2 = arith.constant 0 : index
    %1 = vector.load %arg1[%c0_1, %c0_2] : memref<577x128xbf16, #tpu.memory_space<vmem>>, vector<577x128xbf16>
    %cst = arith.constant dense<0.000000e+00> : vector<16x128xf32>
    %2 = tpu.matmul %0, %1, %cst {dimension_numbers = #tpu.dot_dimension_numbers<[1], [0], [0], [1], [0, 0, 1, 1], [], []>} : vector<16x577xbf16>, vector<577x128xbf16>, vector<16x128xf32> -> vector<16x128xf32>
    %cst_3 = arith.constant 0.000000e+00 : f32
    %3 = vector.broadcast %cst_3 : f32 to vector<16x128xf32>
    %4 = arith.maximumf %2, %3 : vector<16x128xf32>
    %5 = arith.truncf %4 : vector<16x128xf32> to vector<16x128xbf16>
    %c0_4 = arith.constant 0 : index
    %c0_5 = arith.constant 0 : index
    %6 = vector.load %arg3[%c0_4, %c0_5] : memref<16x128xbf16, #tpu.memory_space<vmem>>, vector<16x128xbf16>
    tpu.vector_store %arg3[%c0_4, %c0_5], %5 {strides = array<i32>} : memref<16x128xbf16, #tpu.memory_space<vmem>>, vector<16x128xbf16>,
    return
  }
  func.func @transform_0(%arg0: i32) -> (i32, i32) {
    %c0_i32 = arith.constant 0 : i32
    %c0_i32_0 = arith.constant 0 : i32
    return %c0_i32, %arg0 : i32, i32
  }
  func.func @transform_1(%arg0: i32) -> (i32, i32) {
    %c0_i32 = arith.constant 0 : i32
    %c0_i32_0 = arith.constant 0 : i32
    %c0_i32_1 = arith.constant 0 : i32
    return %c0_i32, %c0_i32_0 : i32, i32
  }
  func.func @transform_2(%arg0: i32) -> (i32, i32) {
    %c0_i32 = arith.constant 0 : i32
    %c0_i32_0 = arith.constant 0 : i32
    return %c0_i32, %arg0 : i32, i32
  }
}

module attributes {stable_mosaic.version = 11 : i64} {
  func.func @_convmm_kernel(%arg0: i32, %arg1: memref<325x512xbf16, #tpu.memory_space<vmem>>, %arg2: memref<18x325xbf16, #tpu.memory_space<vmem>>, %arg3: memref<18x512xbf16, #tpu.memory_space<vmem>>) attributes {dimension_semantics = [#tpu.dimension_semantics<parallel>], iteration_bounds = array<i64: 1>, scalar_prefetch = 0 : i64, scratch_operands = 0 : i64, tpu.core_type = #tpu.core_type<tc>, window_params = [{transform_indices = @transform_0, window_bounds = array<i64: 325, 512>}, {pipeline_mode = #tpu.pipeline_mode<synchronous>, transform_indices = @transform_1, window_bounds = array<i64: 18, 325>}, {transform_indices = @transform_2, window_bounds = array<i64: 18, 512>}]} {
    %c0 = arith.constant 0 : index
    %c0_0 = arith.constant 0 : index
    %0 = vector.load %arg2[%c0, %c0_0] : memref<18x325xbf16, #tpu.memory_space<vmem>>, vector<18x325xbf16>
    %c0_1 = arith.constant 0 : index
    %c0_2 = arith.constant 0 : index
    %1 = vector.load %arg1[%c0_1, %c0_2] : memref<325x512xbf16, #tpu.memory_space<vmem>>, vector<325x512xbf16>
    %cst = arith.constant dense<0.000000e+00> : vector<18x512xf32>
    %2 = tpu.matmul %0, %1, %cst {dimension_numbers = #tpu.dot_dimension_numbers<[1], [0], [0], [1], [0, 0, 1, 1], [], []>} : vector<18x325xbf16>, vector<325x512xbf16>, vector<18x512xf32> -> vector<18x512xf32>
    %cst_3 = arith.constant 0.000000e+00 : f32
    %3 = vector.broadcast %cst_3 : f32 to vector<18x512xf32>
    %4 = arith.maximumf %2, %3 : vector<18x512xf32>
    %5 = arith.truncf %4 : vector<18x512xf32> to vector<18x512xbf16>
    %c0_4 = arith.constant 0 : index
    %c0_5 = arith.constant 0 : index
    %6 = vector.load %arg3[%c0_4, %c0_5] : memref<18x512xbf16, #tpu.memory_space<vmem>>, vector<18x512xbf16>
    tpu.vector_store %arg3[%c0_4, %c0_5], %5 {strides = array<i32>} : memref<18x512xbf16, #tpu.memory_space<vmem>>, vector<18x512xbf16>,
    return
  }
  func.func @transform_0(%arg0: i32) -> (i32, i32) {
    %c0_i32 = arith.constant 0 : i32
    %c0_i32_0 = arith.constant 0 : i32
    return %c0_i32, %arg0 : i32, i32
  }
  func.func @transform_1(%arg0: i32) -> (i32, i32) {
    %c0_i32 = arith.constant 0 : i32
    %c0_i32_0 = arith.constant 0 : i32
    %c0_i32_1 = arith.constant 0 : i32
    return %c0_i32, %c0_i32_0 : i32, i32
  }
  func.func @transform_2(%arg0: i32) -> (i32, i32) {
    %c0_i32 = arith.constant 0 : i32
    %c0_i32_0 = arith.constant 0 : i32
    return %c0_i32, %arg0 : i32, i32
  }
}

module attributes {stable_mosaic.version = 11 : i64} {
  func.func @_maps_kernel(%arg0: i32, %arg1: memref<1765x128xbf16, #tpu.memory_space<vmem>>, %arg2: memref<3x1765xbf16, #tpu.memory_space<vmem>>, %arg3: memref<2x3x128xf32, #tpu.memory_space<vmem>>, %arg4: memref<3x128xf32, #tpu.memory_space<vmem>>, %arg5: memref<2x128xf32, #tpu.memory_space<vmem>>) attributes {dimension_semantics = [#tpu.dimension_semantics<parallel>], iteration_bounds = array<i64: 1>, scalar_prefetch = 0 : i64, scratch_operands = 0 : i64, tpu.core_type = #tpu.core_type<tc>, window_params = [{transform_indices = @transform_0, window_bounds = array<i64: 1765, 128>}, {pipeline_mode = #tpu.pipeline_mode<synchronous>, transform_indices = @transform_1, window_bounds = array<i64: 3, 1765>}, {transform_indices = @transform_2, window_bounds = array<i64: 2, 3, 128>}, {transform_indices = @transform_3, window_bounds = array<i64: 3, 128>}, {transform_indices = @transform_4, window_bounds = array<i64: 2, 128>}]} {
    %c0 = arith.constant 0 : index
    %c0_0 = arith.constant 0 : index
    %0 = vector.load %arg2[%c0, %c0_0] : memref<3x1765xbf16, #tpu.memory_space<vmem>>, vector<3x1765xbf16>
    %c0_1 = arith.constant 0 : index
    %c0_2 = arith.constant 0 : index
    %1 = vector.load %arg1[%c0_1, %c0_2] : memref<1765x128xbf16, #tpu.memory_space<vmem>>, vector<1765x128xbf16>
    %cst = arith.constant dense<0.000000e+00> : vector<3x128xf32>
    %2 = tpu.matmul %0, %1, %cst {dimension_numbers = #tpu.dot_dimension_numbers<[1], [0], [0], [1], [0, 0, 1, 1], [], []>} : vector<3x1765xbf16>, vector<1765x128xbf16>, vector<3x128xf32> -> vector<3x128xf32>
    %cst_3 = arith.constant dense<0xFF800000> : vector<128xf32>
    %3 = vector.multi_reduction <maximumf>, %2, %cst_3 [0] : vector<3x128xf32> to vector<128xf32>
    %4 = vector.shape_cast %3 : vector<128xf32> to vector<1x128xf32>
    %5 = vector.broadcast %4 : vector<1x128xf32> to vector<3x128xf32>
    %6 = arith.subf %2, %5 : vector<3x128xf32>
    %7 = math.exp %6 : vector<3x128xf32>
    %cst_4 = arith.constant dense<0.000000e+00> : vector<128xf32>
    %8 = vector.multi_reduction <add>, %7, %cst_4 [0] : vector<3x128xf32> to vector<128xf32>
    %9 = vector.shape_cast %8 : vector<128xf32> to vector<1x128xf32>
    %10 = tpu.reciprocal %9 {approx = true} : vector<1x128xf32> -> vector<1x128xf32>
    %11 = vector.broadcast %10 : vector<1x128xf32> to vector<3x128xf32>
    %12 = arith.mulf %7, %11 : vector<3x128xf32>
    %c0_5 = arith.constant 0 : index
    %c0_6 = arith.constant 0 : index
    %13 = vector.load %arg4[%c0_5, %c0_6] : memref<3x128xf32, #tpu.memory_space<vmem>>, vector<3x128xf32>
    tpu.vector_store %arg4[%c0_5, %c0_6], %12 {strides = array<i32>} : memref<3x128xf32, #tpu.memory_space<vmem>>, vector<3x128xf32>,
    %c0_7 = arith.constant 0 : index
    %c0_8 = arith.constant 0 : index
    %c0_9 = arith.constant 0 : index
    %14 = vector.load %arg3[%c0_7, %c0_8, %c0_9] : memref<2x3x128xf32, #tpu.memory_space<vmem>>, vector<2x3x128xf32>
    %15 = vector.extract_strided_slice %14 {offsets = [0, 0, 0], sizes = [1, 3, 128], strides = [1, 1, 1]} : vector<2x3x128xf32> to vector<1x3x128xf32>
    %16 = vector.shape_cast %15 : vector<1x3x128xf32> to vector<3x128xf32>
    %17 = arith.mulf %16, %12 : vector<3x128xf32>
    %cst_10 = arith.constant dense<0.000000e+00> : vector<128xf32>
    %18 = vector.multi_reduction <add>, %17, %cst_10 [0] : vector<3x128xf32> to vector<128xf32>
    %19 = vector.shape_cast %18 : vector<128xf32> to vector<1x128xf32>
    %20 = vector.extract_strided_slice %14 {offsets = [1, 0, 0], sizes = [1, 3, 128], strides = [1, 1, 1]} : vector<2x3x128xf32> to vector<1x3x128xf32>
    %21 = vector.shape_cast %20 : vector<1x3x128xf32> to vector<3x128xf32>
    %22 = arith.mulf %21, %12 : vector<3x128xf32>
    %cst_11 = arith.constant dense<0.000000e+00> : vector<128xf32>
    %23 = vector.multi_reduction <add>, %22, %cst_11 [0] : vector<3x128xf32> to vector<128xf32>
    %24 = vector.shape_cast %23 : vector<128xf32> to vector<1x128xf32>
    %25 = tpu.concatenate %19, %24 in 0 : vector<1x128xf32>, vector<1x128xf32> -> vector<2x128xf32>
    %c0_12 = arith.constant 0 : index
    %c0_13 = arith.constant 0 : index
    %26 = vector.load %arg5[%c0_12, %c0_13] : memref<2x128xf32, #tpu.memory_space<vmem>>, vector<2x128xf32>
    tpu.vector_store %arg5[%c0_12, %c0_13], %25 {strides = array<i32>} : memref<2x128xf32, #tpu.memory_space<vmem>>, vector<2x128xf32>,
    return
  }
  func.func @transform_0(%arg0: i32) -> (i32, i32) {
    %c0_i32 = arith.constant 0 : i32
    %c0_i32_0 = arith.constant 0 : i32
    return %c0_i32, %arg0 : i32, i32
  }
  func.func @transform_1(%arg0: i32) -> (i32, i32) {
    %c0_i32 = arith.constant 0 : i32
    %c0_i32_0 = arith.constant 0 : i32
    %c0_i32_1 = arith.constant 0 : i32
    return %c0_i32, %c0_i32_0 : i32, i32
  }
  func.func @transform_2(%arg0: i32) -> (i32, i32, i32) {
    %c0_i32 = arith.constant 0 : i32
    %c0_i32_0 = arith.constant 0 : i32
    %c0_i32_1 = arith.constant 0 : i32
    return %c0_i32, %c0_i32_0, %arg0 : i32, i32, i32
  }
  func.func @transform_3(%arg0: i32) -> (i32, i32) {
    %c0_i32 = arith.constant 0 : i32
    %c0_i32_0 = arith.constant 0 : i32
    return %c0_i32, %arg0 : i32, i32
  }
  func.func @transform_4(%arg0: i32) -> (i32, i32) {
    %c0_i32 = arith.constant 0 : i32
    %c0_i32_0 = arith.constant 0 : i32
    return %c0_i32, %arg0 : i32, i32
  }
}

module attributes {stable_mosaic.version = 11 : i64} {
  func.func @_convmm_kernel(%arg0: i32, %arg1: memref<1765x128xbf16, #tpu.memory_space<vmem>>, %arg2: memref<1x1765xbf16, #tpu.memory_space<vmem>>, %arg3: memref<1x128xf32, #tpu.memory_space<vmem>>) attributes {dimension_semantics = [#tpu.dimension_semantics<parallel>], iteration_bounds = array<i64: 1>, scalar_prefetch = 0 : i64, scratch_operands = 0 : i64, tpu.core_type = #tpu.core_type<tc>, window_params = [{transform_indices = @transform_0, window_bounds = array<i64: 1765, 128>}, {pipeline_mode = #tpu.pipeline_mode<synchronous>, transform_indices = @transform_1, window_bounds = array<i64: 1, 1765>}, {transform_indices = @transform_2, window_bounds = array<i64: 1, 128>}]} {
    %c0 = arith.constant 0 : index
    %c0_0 = arith.constant 0 : index
    %0 = vector.load %arg2[%c0, %c0_0] : memref<1x1765xbf16, #tpu.memory_space<vmem>>, vector<1x1765xbf16>
    %c0_1 = arith.constant 0 : index
    %c0_2 = arith.constant 0 : index
    %1 = vector.load %arg1[%c0_1, %c0_2] : memref<1765x128xbf16, #tpu.memory_space<vmem>>, vector<1765x128xbf16>
    %cst = arith.constant dense<0.000000e+00> : vector<1x128xf32>
    %2 = tpu.matmul %0, %1, %cst {dimension_numbers = #tpu.dot_dimension_numbers<[1], [0], [0], [1], [0, 0, 1, 1], [], []>} : vector<1x1765xbf16>, vector<1765x128xbf16>, vector<1x128xf32> -> vector<1x128xf32>
    %3 = math.absf %2 : vector<1x128xf32>
    %cst_3 = arith.constant 0.000000e+00 : f32
    %4 = vector.broadcast %cst_3 : f32 to vector<1x128xf32>
    %5 = arith.subf %4, %3 : vector<1x128xf32>
    %6 = math.exp %5 : vector<1x128xf32>
    %cst_4 = arith.constant 0.000000e+00 : f32
    %7 = vector.broadcast %cst_4 : f32 to vector<1x128xf32>
    %8 = arith.cmpf oge, %2, %7 : vector<1x128xf32>
    %cst_5 = arith.constant 1.000000e+00 : f32
    %9 = vector.broadcast %cst_5 : f32 to vector<1x128xf32>
    %10 = arith.addf %9, %6 : vector<1x128xf32>
    %cst_6 = arith.constant 1.000000e+00 : f32
    %11 = vector.broadcast %cst_6 : f32 to vector<1x128xf32>
    %12 = arith.divf %11, %10 : vector<1x128xf32>
    %cst_7 = arith.constant 1.000000e+00 : f32
    %13 = vector.broadcast %cst_7 : f32 to vector<1x128xf32>
    %14 = arith.addf %13, %6 : vector<1x128xf32>
    %15 = arith.divf %6, %14 : vector<1x128xf32>
    %16 = arith.select %8, %12, %15 : vector<1x128xi1>, vector<1x128xf32>
    %c0_8 = arith.constant 0 : index
    %c0_9 = arith.constant 0 : index
    %17 = vector.load %arg3[%c0_8, %c0_9] : memref<1x128xf32, #tpu.memory_space<vmem>>, vector<1x128xf32>
    tpu.vector_store %arg3[%c0_8, %c0_9], %16 {strides = array<i32>} : memref<1x128xf32, #tpu.memory_space<vmem>>, vector<1x128xf32>,
    return
  }
  func.func @transform_0(%arg0: i32) -> (i32, i32) {
    %c0_i32 = arith.constant 0 : i32
    %c0_i32_0 = arith.constant 0 : i32
    return %c0_i32, %arg0 : i32, i32
  }
  func.func @transform_1(%arg0: i32) -> (i32, i32) {
    %c0_i32 = arith.constant 0 : i32
    %c0_i32_0 = arith.constant 0 : i32
    %c0_i32_1 = arith.constant 0 : i32
    return %c0_i32, %c0_i32_0 : i32, i32
  }
  func.func @transform_2(%arg0: i32) -> (i32, i32) {
    %c0_i32 = arith.constant 0 : i32
    %c0_i32_0 = arith.constant 0 : i32
    return %c0_i32, %arg0 : i32, i32
  }
}

module attributes {stable_mosaic.version = 11 : i64} {
  func.func @_convmm_kernel(%arg0: i32, %arg1: memref<163x1024xbf16, #tpu.memory_space<vmem>>, %arg2: memref<9x163xbf16, #tpu.memory_space<vmem>>, %arg3: memref<9x1024xbf16, #tpu.memory_space<vmem>>) attributes {dimension_semantics = [#tpu.dimension_semantics<parallel>], iteration_bounds = array<i64: 2>, scalar_prefetch = 0 : i64, scratch_operands = 0 : i64, tpu.core_type = #tpu.core_type<tc>, window_params = [{transform_indices = @transform_0, window_bounds = array<i64: 163, 1024>}, {pipeline_mode = #tpu.pipeline_mode<synchronous>, transform_indices = @transform_1, window_bounds = array<i64: 9, 163>}, {transform_indices = @transform_2, window_bounds = array<i64: 9, 1024>}]} {
    %c0 = arith.constant 0 : index
    %c0_0 = arith.constant 0 : index
    %0 = vector.load %arg2[%c0, %c0_0] : memref<9x163xbf16, #tpu.memory_space<vmem>>, vector<9x163xbf16>
    %c0_1 = arith.constant 0 : index
    %c0_2 = arith.constant 0 : index
    %1 = vector.load %arg1[%c0_1, %c0_2] : memref<163x1024xbf16, #tpu.memory_space<vmem>>, vector<163x1024xbf16>
    %cst = arith.constant dense<0.000000e+00> : vector<9x1024xf32>
    %2 = tpu.matmul %0, %1, %cst {dimension_numbers = #tpu.dot_dimension_numbers<[1], [0], [0], [1], [0, 0, 1, 1], [], []>} : vector<9x163xbf16>, vector<163x1024xbf16>, vector<9x1024xf32> -> vector<9x1024xf32>
    %cst_3 = arith.constant 0.000000e+00 : f32
    %3 = vector.broadcast %cst_3 : f32 to vector<9x1024xf32>
    %4 = arith.maximumf %2, %3 : vector<9x1024xf32>
    %5 = arith.truncf %4 : vector<9x1024xf32> to vector<9x1024xbf16>
    %c0_4 = arith.constant 0 : index
    %c0_5 = arith.constant 0 : index
    %6 = vector.load %arg3[%c0_4, %c0_5] : memref<9x1024xbf16, #tpu.memory_space<vmem>>, vector<9x1024xbf16>
    tpu.vector_store %arg3[%c0_4, %c0_5], %5 {strides = array<i32>} : memref<9x1024xbf16, #tpu.memory_space<vmem>>, vector<9x1024xbf16>,
    return
  }
  func.func @transform_0(%arg0: i32) -> (i32, i32) {
    %c0_i32 = arith.constant 0 : i32
    %c0_i32_0 = arith.constant 0 : i32
    return %c0_i32, %arg0 : i32, i32
  }
  func.func @transform_1(%arg0: i32) -> (i32, i32) {
    %c0_i32 = arith.constant 0 : i32
    %c0_i32_0 = arith.constant 0 : i32
    %c0_i32_1 = arith.constant 0 : i32
    return %c0_i32, %c0_i32_0 : i32, i32
  }
  func.func @transform_2(%arg0: i32) -> (i32, i32) {
    %c0_i32 = arith.constant 0 : i32
    %c0_i32_0 = arith.constant 0 : i32
    return %c0_i32, %arg0 : i32, i32
  }
}

module attributes {stable_mosaic.version = 11 : i64} {
  func.func @_convmm_kernel(%arg0: i32, %arg1: memref<883x512xbf16, #tpu.memory_space<vmem>>, %arg2: memref<1x883xbf16, #tpu.memory_space<vmem>>, %arg3: memref<1x512xf32, #tpu.memory_space<vmem>>) attributes {dimension_semantics = [#tpu.dimension_semantics<parallel>], iteration_bounds = array<i64: 1>, scalar_prefetch = 0 : i64, scratch_operands = 0 : i64, tpu.core_type = #tpu.core_type<tc>, window_params = [{transform_indices = @transform_0, window_bounds = array<i64: 883, 512>}, {pipeline_mode = #tpu.pipeline_mode<synchronous>, transform_indices = @transform_1, window_bounds = array<i64: 1, 883>}, {transform_indices = @transform_2, window_bounds = array<i64: 1, 512>}]} {
    %c0 = arith.constant 0 : index
    %c0_0 = arith.constant 0 : index
    %0 = vector.load %arg2[%c0, %c0_0] : memref<1x883xbf16, #tpu.memory_space<vmem>>, vector<1x883xbf16>
    %c0_1 = arith.constant 0 : index
    %c0_2 = arith.constant 0 : index
    %1 = vector.load %arg1[%c0_1, %c0_2] : memref<883x512xbf16, #tpu.memory_space<vmem>>, vector<883x512xbf16>
    %cst = arith.constant dense<0.000000e+00> : vector<1x512xf32>
    %2 = tpu.matmul %0, %1, %cst {dimension_numbers = #tpu.dot_dimension_numbers<[1], [0], [0], [1], [0, 0, 1, 1], [], []>} : vector<1x883xbf16>, vector<883x512xbf16>, vector<1x512xf32> -> vector<1x512xf32>
    %3 = math.absf %2 : vector<1x512xf32>
    %cst_3 = arith.constant 0.000000e+00 : f32
    %4 = vector.broadcast %cst_3 : f32 to vector<1x512xf32>
    %5 = arith.subf %4, %3 : vector<1x512xf32>
    %6 = math.exp %5 : vector<1x512xf32>
    %cst_4 = arith.constant 0.000000e+00 : f32
    %7 = vector.broadcast %cst_4 : f32 to vector<1x512xf32>
    %8 = arith.cmpf oge, %2, %7 : vector<1x512xf32>
    %cst_5 = arith.constant 1.000000e+00 : f32
    %9 = vector.broadcast %cst_5 : f32 to vector<1x512xf32>
    %10 = arith.addf %9, %6 : vector<1x512xf32>
    %cst_6 = arith.constant 1.000000e+00 : f32
    %11 = vector.broadcast %cst_6 : f32 to vector<1x512xf32>
    %12 = arith.divf %11, %10 : vector<1x512xf32>
    %cst_7 = arith.constant 1.000000e+00 : f32
    %13 = vector.broadcast %cst_7 : f32 to vector<1x512xf32>
    %14 = arith.addf %13, %6 : vector<1x512xf32>
    %15 = arith.divf %6, %14 : vector<1x512xf32>
    %16 = arith.select %8, %12, %15 : vector<1x512xi1>, vector<1x512xf32>
    %c0_8 = arith.constant 0 : index
    %c0_9 = arith.constant 0 : index
    %17 = vector.load %arg3[%c0_8, %c0_9] : memref<1x512xf32, #tpu.memory_space<vmem>>, vector<1x512xf32>
    tpu.vector_store %arg3[%c0_8, %c0_9], %16 {strides = array<i32>} : memref<1x512xf32, #tpu.memory_space<vmem>>, vector<1x512xf32>,
    return
  }
  func.func @transform_0(%arg0: i32) -> (i32, i32) {
    %c0_i32 = arith.constant 0 : i32
    %c0_i32_0 = arith.constant 0 : i32
    return %c0_i32, %arg0 : i32, i32
  }
  func.func @transform_1(%arg0: i32) -> (i32, i32) {
    %c0_i32 = arith.constant 0 : i32
    %c0_i32_0 = arith.constant 0 : i32
    %c0_i32_1 = arith.constant 0 : i32
    return %c0_i32, %c0_i32_0 : i32, i32
  }
  func.func @transform_2(%arg0: i32) -> (i32, i32) {
    %c0_i32 = arith.constant 0 : i32
    %c0_i32_0 = arith.constant 0 : i32
    return %c0_i32, %arg0 : i32, i32
  }
}

module attributes {stable_mosaic.version = 11 : i64} {
  func.func @_convmm_kernel(%arg0: i32, %arg1: memref<442x1024xbf16, #tpu.memory_space<vmem>>, %arg2: memref<1x442xbf16, #tpu.memory_space<vmem>>, %arg3: memref<1x1024xf32, #tpu.memory_space<vmem>>) attributes {dimension_semantics = [#tpu.dimension_semantics<parallel>], iteration_bounds = array<i64: 2>, scalar_prefetch = 0 : i64, scratch_operands = 0 : i64, tpu.core_type = #tpu.core_type<tc>, window_params = [{transform_indices = @transform_0, window_bounds = array<i64: 442, 1024>}, {pipeline_mode = #tpu.pipeline_mode<synchronous>, transform_indices = @transform_1, window_bounds = array<i64: 1, 442>}, {transform_indices = @transform_2, window_bounds = array<i64: 1, 1024>}]} {
    %c0 = arith.constant 0 : index
    %c0_0 = arith.constant 0 : index
    %0 = vector.load %arg2[%c0, %c0_0] : memref<1x442xbf16, #tpu.memory_space<vmem>>, vector<1x442xbf16>
    %c0_1 = arith.constant 0 : index
    %c0_2 = arith.constant 0 : index
    %1 = vector.load %arg1[%c0_1, %c0_2] : memref<442x1024xbf16, #tpu.memory_space<vmem>>, vector<442x1024xbf16>
    %cst = arith.constant dense<0.000000e+00> : vector<1x1024xf32>
    %2 = tpu.matmul %0, %1, %cst {dimension_numbers = #tpu.dot_dimension_numbers<[1], [0], [0], [1], [0, 0, 1, 1], [], []>} : vector<1x442xbf16>, vector<442x1024xbf16>, vector<1x1024xf32> -> vector<1x1024xf32>
    %3 = math.absf %2 : vector<1x1024xf32>
    %cst_3 = arith.constant 0.000000e+00 : f32
    %4 = vector.broadcast %cst_3 : f32 to vector<1x1024xf32>
    %5 = arith.subf %4, %3 : vector<1x1024xf32>
    %6 = math.exp %5 : vector<1x1024xf32>
    %cst_4 = arith.constant 0.000000e+00 : f32
    %7 = vector.broadcast %cst_4 : f32 to vector<1x1024xf32>
    %8 = arith.cmpf oge, %2, %7 : vector<1x1024xf32>
    %cst_5 = arith.constant 1.000000e+00 : f32
    %9 = vector.broadcast %cst_5 : f32 to vector<1x1024xf32>
    %10 = arith.addf %9, %6 : vector<1x1024xf32>
    %cst_6 = arith.constant 1.000000e+00 : f32
    %11 = vector.broadcast %cst_6 : f32 to vector<1x1024xf32>
    %12 = arith.divf %11, %10 : vector<1x1024xf32>
    %cst_7 = arith.constant 1.000000e+00 : f32
    %13 = vector.broadcast %cst_7 : f32 to vector<1x1024xf32>
    %14 = arith.addf %13, %6 : vector<1x1024xf32>
    %15 = arith.divf %6, %14 : vector<1x1024xf32>
    %16 = arith.select %8, %12, %15 : vector<1x1024xi1>, vector<1x1024xf32>
    %c0_8 = arith.constant 0 : index
    %c0_9 = arith.constant 0 : index
    %17 = vector.load %arg3[%c0_8, %c0_9] : memref<1x1024xf32, #tpu.memory_space<vmem>>, vector<1x1024xf32>
    tpu.vector_store %arg3[%c0_8, %c0_9], %16 {strides = array<i32>} : memref<1x1024xf32, #tpu.memory_space<vmem>>, vector<1x1024xf32>,
    return
  }
  func.func @transform_0(%arg0: i32) -> (i32, i32) {
    %c0_i32 = arith.constant 0 : i32
    %c0_i32_0 = arith.constant 0 : i32
    return %c0_i32, %arg0 : i32, i32
  }
  func.func @transform_1(%arg0: i32) -> (i32, i32) {
    %c0_i32 = arith.constant 0 : i32
    %c0_i32_0 = arith.constant 0 : i32
    %c0_i32_1 = arith.constant 0 : i32
    return %c0_i32, %c0_i32_0 : i32, i32
  }
  func.func @transform_2(%arg0: i32) -> (i32, i32) {
    %c0_i32 = arith.constant 0 : i32
    %c0_i32_0 = arith.constant 0 : i32
    return %c0_i32, %arg0 : i32, i32
  }
}

</mosaic_0001>

<bundles_post_ra>
// kernel: sub.89
= control target key start
LH: loop header
LB: loop body
LE: loop exit
PB: predicated region body
PF: predicated region fallthrough
CT: control target
= control target key end

     0   :  { %2 = vsyncpa [#allocation1], 0  ;;  %s93_s6 = smov [#allocation0]   ;;  %s120_s0 = inlined_call_operand.hbm [shape: f32[2,10,2], index: 0, kind: input, shape index: {}]   ;;  %s121_s1 = inlined_call_operand.vmem [shape: f32[2,2,5,2], index: 1, kind: output, shape index: {}]  }
   0x1   :  { %s7_s7 = sshll.u32 %s93_s6, 4  ;;  %s8_s7 = int_to_ptr.vmem [resolvable:$true] %s7_s7 }
   0x2   :  { %s79_s8 = scalar_lea.vmem %s8_s7, 64  ;;  %p84_p1 = scmp.lt.s32.totalorder %s8_s7, %s8_s7 }
   0x3   :  { %p80_p0 = scmp.ne.s32.totalorder %s8_s7, %s79_s8  ;;  %p85_p2 = scmp.lt.s32.totalorder %s79_s8, %s79_s8 }
   0x5   :  { %p86_p3 = por %p85_p2, %p84_p1 }
   0x7   :  { %p87_p4 = pnand %p86_p3, %p80_p0 }
   0x9   :  { %90 = shalt.err (!%p87_p4)
}
   0xa   :  { %10 = dma.hbm_to_vmem [thread:$0]  %s120_s0, 64, %s8_s7, [#allocation1]  }
   0xb   :  { %91 = dma.done.wait [#allocation1], 64  }
   0xc   :  { %92 = vsyncadd [#allocation1], 4294967232  ;;  %v16_v0 = vld [vmem:[#allocation0 + $0x2] sm:$0x3]  ;;  %v19_v1 = vld [vmem:[#allocation0] sm:$0x3] }
   0xd   :  { %18 = vst [vmem:[#allocation3 + $0x8] sm:$0x3] %v16_v0  ;;  %20 = vst [vmem:[#allocation3] sm:$0x3] %v19_v1  ;;  %vm22_vm0 = vcmask 39936   ;;  %s94_s0 = smov 123  }
  0x14   :  { %v21_v2 = vld [vmem:[#allocation3] sm:$0x3]   ;;  %v25_v3 = vld [vmem:[#allocation3 + $0x8] sm:$0x3]  }
  0x15   :  { %v29_v4 = vld.sshfl [vmem:[#allocation3] sm:$0xff pattern:$0x99999810]   ;;  %23 = vst.msk [vmem:[#allocation2] ss:$8 sm:$0x3] %vm22_vm0, %v21_v2  }
  0x16   :  { %28 = vst.msk [vmem:[#allocation2 + $0x10] ss:$8 sm:$0x3] %vm22_vm0, %v25_v3   ;;  %30 = vrot.lane.b32.xlu0 %v29_v4, %s94_s0 }
  0x88   :  { %v31_v5 = vpop.permute.xlu0 %30  }
  0x89   :  { %34 = vst.msk [vmem:[#allocation2 + $0x1] ss:$8 sm:$0xf] %vm22_vm0, %v31_v5  }
  0x90   :  { %v39_v6 = vld [vmem:[#allocation2] sm:$0x3]  ;;  %v44_v7 = vld [vmem:[#allocation2 + $0x8] sm:$0x3]  ;;  %v50_v8 = vld [vmem:[#allocation2 + $0x10] sm:$0x3] }
  0x91   :  { %42 = vst [vmem:[%s121_s1] sm:$0x3] %v39_v6  ;;  %66 = vst [vmem:[%s121_s1 + $0x2] sm:$0x3] %v44_v7  ;;  %v57_v9 = vld [vmem:[#allocation2 + $0x18] sm:$0x3] }
  0x92   :  { %67 = vst [vmem:[%s121_s1 + $0x4] sm:$0x3] %v50_v8  ;;  %68 = vst [vmem:[%s121_s1 + $0x6] sm:$0x3] %v57_v9 }
  0x93   :  { %63 = vsyncpa [#allocation1], 1 }

// kernel: sub.98
= control target key start
LH: loop header
LB: loop body
LE: loop exit
PB: predicated region body
PF: predicated region fallthrough
CT: control target
= control target key end

     0   :  { %s7_s6 = smov 3  ;;  %s21_s9 = smov 3  ;;  %vm4_vm0 = vcmask 64512   ;;  %vm11_vm1 = vcmask 523712   ;;  %vm18_vm2 = vcmask 458112   ;;  %vm25_vm3 = vcmask 392512   ;;  %s121_s0 = inlined_call_operand.vmem [shape: f32[8,8,2], index: 0, kind: input, shape index: {}]   ;;  %s122_s1 = inlined_call_operand.vmem [shape: f32[64,2], index: 1, kind: output, shape index: {}]  }
   0x1   :  { %v63_v0 = vld [vmem:[%s121_s0 + $0x7] ss:$8 sm:%s7_s6]   ;;  %s77_s10 = smov 56   ;;  %v65_v1 = vld [vmem:[%s121_s0 + $0x5] ss:$8 sm:%s21_s9]   ;;  %s14_s13 = smov 3 }
   0x2   :  { %9 = vrot.lane.b32.xlu0 %v63_v0, %s77_s10  ;;  %s78_s14 = smov 40   ;;  %v64_v2 = vld [vmem:[%s121_s0 + $0x6] ss:$8 sm:%s14_s13]   ;;  %s28_s17 = smov 3  ;;  %vm32_vm4 = vcmask 326912   ;;  %vm39_vm5 = vcmask 261312  }
   0x3   :  { %23 = vrot.lane.b32.xlu1 %v65_v1, %s78_s14  ;;  %v66_v3 = vld [vmem:[%s121_s0 + $0x4] ss:$8 sm:%s28_s17]   ;;  %s35_s20 = smov 3  ;;  %s42_s21 = smov 3  ;;  %vm46_vm6 = vcmask 195712   ;;  %vm53_vm7 = vcmask 130112  }
   0x4   :  { %s79_s22 = smov 48   ;;  %s80_s23 = smov 32   ;;  %v67_v4 = vld [vmem:[%s121_s0 + $0x3] ss:$8 sm:%s35_s20]   ;;  %v68_v5 = vld [vmem:[%s121_s0 + $0x2] ss:$8 sm:%s42_s21]  }
   0x5   :  { %s2_s26 = smov 3  ;;  %s49_s29 = smov 3 }
   0x6   :  { %16 = vrot.lane.b32.xlu0 %v64_v2, %s79_s22  ;;  %v3_v6 = vld [vmem:[%s121_s0] ss:$8 sm:%s2_s26]   ;;  %s81_s3 = smov 24   ;;  %s82_s4 = smov 16  }
   0x7   :  { %30 = vrot.lane.b32.xlu1 %v66_v3, %s80_s23  ;;  %5 = vst.msk [vmem:[#allocation0] sm:$0x3] %vm4_vm0, %v3_v6   ;;  %v69_v7 = vld [vmem:[%s121_s0 + $0x1] ss:$8 sm:%s49_s29]   ;;  %s83_s0 = smov 8  }
   0xa   :  { %37 = vrot.lane.b32.xlu0 %v67_v4, %s81_s3 }
   0xb   :  { %44 = vrot.lane.b32.xlu1 %v68_v5, %s82_s4 }
   0xe   :  { %51 = vrot.lane.b32.xlu0 %v69_v7, %s83_s0 }
  0x74   :  { %v10_v8 = vpop.permute.xlu0 %9  }
  0x75   :  { %12 = vst.msk [vmem:[#allocation0] sm:$0x3] %vm11_vm1, %v10_v8   ;;  %v24_v9 = vpop.permute.xlu1 %23  }
  0x78   :  { %v17_v10 = vpop.permute.xlu0 %16  }
  0x79   :  { %19 = vst.msk [vmem:[#allocation0] sm:$0x3] %vm18_vm2, %v17_v10   ;;  %v31_v11 = vpop.permute.xlu1 %30  }
  0x7a   :  { %26 = vst.msk [vmem:[#allocation0] sm:$0x3] %vm25_vm3, %v24_v9  }
  0x7b   :  { %33 = vst.msk [vmem:[#allocation0] sm:$0x3] %vm32_vm4, %v31_v11  }
  0x7c   :  { %v38_v12 = vpop.permute.xlu0 %37  }
  0x7d   :  { %40 = vst.msk [vmem:[#allocation0] sm:$0x3] %vm39_vm5, %v38_v12   ;;  %v45_v13 = vpop.permute.xlu1 %44  }
  0x7e   :  { %47 = vst.msk [vmem:[#allocation0] sm:$0x3] %vm46_vm6, %v45_v13  }
  0x80   :  { %v52_v14 = vpop.permute.xlu0 %51  }
  0x81   :  { %54 = vst.msk [vmem:[#allocation0] sm:$0x3] %vm53_vm7, %v52_v14  }
  0x88   :  { %v59_v15 = vld [vmem:[#allocation0] sm:$0x3] }
  0x89   :  { %62 = vst [vmem:[%s122_s1] sm:$0x3] %v59_v15 }

// kernel: custom-call.11
= control target key start
LH: loop header
LB: loop body
LE: loop exit
PB: predicated region body
PF: predicated region fallthrough
CT: control target
= control target key end

     0   :  { %s1030_s0 = inlined_call_operand.vmem [shape: f32[2,2,8,8], index: 0, kind: input, shape index: {}]   ;;  %s1031_s1 = inlined_call_operand.vmem [shape: f32[2,2,8,8], index: 1, kind: output, shape index: {0}]   ;;  %s1032_s2 = inlined_call_operand.hbm [shape: s32[2,2,8], index: 2, kind: output, shape index: {1}]   ;;  %s1033_s3 = inlined_call_operand.vmem [shape: s32[2,2,8], index: 3, kind: output, shape index: {2}]  }
   0x1   :  { %1037 = sst [smem:[#allocation11_spill]] %s1030_s0 }
   0x2   :  { %5 = vsyncpa [#allocation4], 0 }
   0x3   :  { %7 = vsyncpa [#allocation4 + $0x1], 0  ;;  %s819_s12 = smov 0   ;;  %s821_s13 = smov 0  }
   0x4   :  { %s823_s14 = smov 0   ;;  %s825_s15 = smov 0  }
   0x5   :  { %s827_s16 = smov 0   ;;  %s829_s17 = smov 0  }
   0x6   :  { %s831_s18 = smov 0   ;;  %s833_s19 = smov 0  }
   0x7 LB: > { %s589_s20 = sadd.s32 4294967295, %s791_s19   ;;  %s590_s21 = sadd.s32 4294967294, %s791_s19   ;;  %s791_s19 = sphi %s833_s19, %s13_s19   ;;  %s787_s18 = sphi %s831_s18, %s1054_s18   ;;  %s783_s17 = sphi %s829_s17, %s1053_s17   ;;  %s779_s16 = sphi %s827_s16, %s1052_s16   ;;  %s775_s15 = sphi %s825_s15, %s1051_s15   ;;  %s771_s14 = sphi %s823_s14, %s1050_s14   ;;  %s767_s13 = sphi %s821_s13, %s1049_s13   ;;  %s763_s12 = sphi %s819_s12, %s1048_s12  }
   0x8   : > { %s22_s22 = sadd.s32 1, %s783_s17  ;;  %s25_s23 = sadd.s32 1, %s787_s18 }
   0x9   : > { %p23_p0 = scmp.ge.s32.totalorder %s22_s22, 2  ;;  %s29_s24 = sshrl.u32 %s783_s17, 3 }
   0xa   : > { %p46_p1 = scmp.ne.s32.totalorder %s771_s14, %s767_s13  ;;  %p47_p2 = scmp.eq.s32.totalorder %s589_s20, 3 }
   0xb   : > { %s1056_s22 = smov (%p23_p0, %s22_s22), 0  ;;  %s1058_s23 = smov (!%p23_p0, %s25_s23), %s787_s18 }
   0xc   : > { %1038 = sst [smem:[#allocation9_spill]] %s1056_s22  ;;  %s30_s25 = sshrl.u32 %s1056_s22, 3 }
   0xd   : > { %p27_p3 = scmp.ge.s32.totalorder %s1058_s23, 2  ;;  %s32_s26 = ssub.s32 %s29_s24, %s30_s25 }
   0xe   : > { %p872_p4 = por %p47_p2, %p46_p1  ;;  %p52_p5 = scmp.ne.s32.totalorder %s767_s13, %s763_s12 }
   0xf   : > { %s1060_s23 = smov (%p27_p3, %s1058_s23), 0  ;;  %p53_p6 = scmp.eq.s32.totalorder %s590_s21, 3 }
  0x10   : > { %1040 = sst [smem:[#allocation10_spill]] %s1060_s23  ;;  %s31_s28 = ssub.s32 %s787_s18, %s1060_s23 }
  0x11   : > { %s36_s29 = sadd.s32 1, %s771_s14  ;;  %s33_s30 = sor.u32 %s32_s26, %s31_s28 }
  0x12   : > { %p883_p7 = por %p53_p6, %p52_p5  ;;  %p34_p8 = scmp.eq.s32.totalorder %s33_s30, 0 }
  0x13   : > { %p592_p9 = scmp.ge.s32.totalorder %s791_s19, 4 }
  0x14   : > { %s888_s5 = scalar_select %p34_p8, %s771_s14, %s36_s29  }
  0x15   : > { %99 = sbr.rel (%p592_p9) target bundleno = 32 (0x20), region = 16  ;;  %s101_s6 = sand.u32 (!%p592_p9), 1, %s791_s19  }
  0x16   : > { %s594_s7 = sshll.u32 (!%p592_p9), %s787_s18, 1  ;;  %s593_s8 = sshll.u32 (!%p592_p9), %s101_s6, 3 }
  0x17   : > { %s105_s9 = sadd.s32 (!%p592_p9), %s783_s17, %s594_s7  ;;  %s1042_s0 = sld [smem:[#allocation11_spill]] (!%p592_p9) }
  0x18   : > { %s595_s10 = sshll.u32 (!%p592_p9), %s105_s9, 3  ;;  %s103_s25 = scalar_lea.vmem (!%p592_p9), [#allocation0], %s593_s8 }
  0x1d   : > { %s107_s24 = scalar_lea.vmem %s1042_s0, %s595_s10 }
  0x1e   : > { %v136_v0 = vld [vmem:[%s107_s24] sm:$0xff] }
  0x1f   : > { %137 = vst [vmem:[%s103_s25] sm:$0xff] %v136_v0 }
  0x20 PF: > { %p596_p10 = scmp.ge.s32.totalorder %s791_s19, 1  ;;  %p142_p11 = scmp.lt.s32.totalorder %s791_s19, 5 }
  0x22   : > { %p143_p12 = pnand %p596_p10, %p142_p11 }
  0x24   : > { %146 = sbr.rel (%p143_p12) target bundleno = 450 (0x1c2), region = 54 }
  0x29   : > { %s149_s26 = sand.u32 1, %s589_s20   ;;  %s1034_s28 = sand.u32 1, %s767_s13   ;;  %v182_v1 = vlaneseq  ;;  %v797_v4 = vmov 0  }
  0x2a   : > { %s597_s29 = sshll.u32 %s149_s26, 3  ;;  %s904_s30 = sshll.u32 %s1034_s28, 1 }
  0x2b   : > { %v907_v2 = vshrl.u32 %v182_v1, 7  ;;  %s151_s6 = scalar_lea.vmem [#allocation0], %s597_s29  ;;  %s909_s7 = scalar_lea.vmem [#allocation1], %s597_s29 }
  0x2c   : > { %v175_v3 = vld [vmem:[%s151_s6] sm:$0xff]  ;;  %s177_s8 = sand.u32 7, %s775_s15   ;;  %s166_s9 = scalar_lea.vmem [#allocation3], %s904_s30 }
  0x2d   : > { %176 = vst [vmem:[%s909_s7] sm:$0xff] %v175_v3  ;;  %186 = vst [vmem:[#allocation7] sm:$0xff] %v907_v2  ;;  %s914_s20 = scalar_lea.vmem [#allocation2], %s177_s8  ;;  %s919_s11 = scalar_lea.vmem [#allocation5], %s177_s8 }
  0x2e   : > { %181 = vst [vmem:[%s914_s20] sm:$0x1] %v797_v4  ;;  %s921_s21 = smov 0  }
  0x2f LB: >> { %v928_v7 = vstv %s795_s21  ;;  %s243_s24 = ssub.s32 128, %s795_s21  ;;  %v249_v37 = vand.u32 127, %v182_v1  ;;  %s255_s25 = scalar_lea.vmem %s909_s7, %s795_s21 [#allocation1]  ;;  %s795_s21 = sphi %s921_s21, %s192_s21  }
  0x30   : >> { %vm201_vm0 = vcmp.ge.s32.totalorder %v907_v2, %v928_v7  ;;  %s261_s29 = scalar_lea.vmem [#allocation7], %s795_s21  ;;  %vm281_vm13 = vcmp.gt.s32.totalorder %v907_v2, %v928_v7  ;;  %s192_s21 = sadd.s32 1, %s795_s21  }
  0x31   : >> { %vm273_vm10 = vcmp.gt.s32.totalorder %v249_v37, %v928_v7  ;;  %vm250_vm11 = vcmp.eq.s32.totalorder %v249_v37, %v928_v7  ;;  %p189_p13 = scmp.ge.s32.totalorder %s192_s21, 8  }
  0x32   : >> { %vm285_vm15 = vmand %vm281_vm13, %vm250_vm11 }
  0x34   : >> { %v197_v5 = vld [vmem:[%s909_s7] sm:$0xff] }
  0x35   : >> { %v198_v6 = vand.u32 2147483647, %v197_v5  ;;  %v252_v39 = vld [vmem:[%s914_s20] ss:$0 sm:$0xff] }
  0x36   : >> { %v257_v40 = vld [vmem:[%s255_s25] ss:$0 sm:$0xff] }
  0x37   : >> { %vm601_vm1 = vcmp.gt.f32.partialorder %v198_v6, -inf  ;;  %v263_v41 = vld [vmem:[%s261_s29] ss:$0 sm:$0xff] }
  0x38   : >> { %vm205_vm2 = vmand %vm201_vm0, %vm601_vm1 }
  0x39   : >> { %v206_v8 = vsel %vm205_vm2, %v907_v2, %v928_v7  ;;  %v207_v9 = vsel %vm205_vm2, %v198_v6, -inf }
  0x3a   : >> { %v208_v10 = vrot.slane %v207_v9, 1  ;;  %v209_v11 = vrot.slane %v206_v8, 1 }
  0x3c   : >> { %vm210_vm3 = vcmp.ge.f32.partialorder %v208_v10, %v207_v9  ;;  %v213_v12 = vrot.slane %v208_v10, 1  ;;  %v214_v13 = vrot.slane %v209_v11, 1 }
  0x3d   : >> { %v211_v14 = vsel %vm210_vm3, %v208_v10, %v207_v9  ;;  %v212_v15 = vsel %vm210_vm3, %v209_v11, %v206_v8 }
  0x3e   : >> { %vm215_vm4 = vcmp.ge.f32.partialorder %v213_v12, %v211_v14  ;;  %v218_v16 = vrot.slane %v213_v12, 1  ;;  %v219_v17 = vrot.slane %v214_v13, 1 }
  0x3f   : >> { %v216_v18 = vsel %vm215_vm4, %v213_v12, %v211_v14  ;;  %v217_v19 = vsel %vm215_vm4, %v214_v13, %v212_v15 }
  0x40   : >> { %vm220_vm5 = vcmp.ge.f32.partialorder %v218_v16, %v216_v18  ;;  %v223_v20 = vrot.slane %v218_v16, 1  ;;  %v224_v21 = vrot.slane %v219_v17, 1 }
  0x41   : >> { %v221_v22 = vsel %vm220_vm5, %v218_v16, %v216_v18  ;;  %v222_v23 = vsel %vm220_vm5, %v219_v17, %v217_v19 }
  0x42   : >> { %vm225_vm6 = vcmp.ge.f32.partialorder %v223_v20, %v221_v22  ;;  %v228_v24 = vrot.slane %v223_v20, 1  ;;  %v229_v25 = vrot.slane %v224_v21, 1 }
  0x43   : >> { %v226_v26 = vsel %vm225_vm6, %v223_v20, %v221_v22  ;;  %v227_v27 = vsel %vm225_vm6, %v224_v21, %v222_v23 }
  0x44   : >> { %vm230_vm7 = vcmp.ge.f32.partialorder %v228_v24, %v226_v26  ;;  %v233_v28 = vrot.slane %v228_v24, 1  ;;  %v234_v29 = vrot.slane %v229_v25, 1 }
  0x45   : >> { %v231_v30 = vsel %vm230_vm7, %v228_v24, %v226_v26  ;;  %v232_v31 = vsel %vm230_vm7, %v229_v25, %v227_v27 }
  0x46   : >> { %vm235_vm8 = vcmp.ge.f32.partialorder %v233_v28, %v231_v30  ;;  %v238_v32 = vrot.slane %v233_v28, 1  ;;  %v239_v33 = vrot.slane %v234_v29, 1 }
  0x47   : >> { %v236_v34 = vsel %vm235_vm8, %v233_v28, %v231_v30  ;;  %v237_v35 = vsel %vm235_vm8, %v234_v29, %v232_v31 }
  0x48   : >> { %vm240_vm9 = vcmp.ge.f32.partialorder %v238_v32, %v236_v34 }
  0x49   : >> { %v242_v36 = vsel %vm240_vm9, %v239_v33, %v237_v35 }
  0x4a   : >> { %244 = vrot.lane.b32.xlu0 %v242_v36, %s243_s24  ;;  %s605_s24 = sshll.u32 (%p189_p13), %s779_s16, 1 }
  0xbc   : >> { %v245_v38 = vpop.permute.xlu0 %244 }
  0xbd   : >> { %611 = vpush %v245_v38 }
  0xee   : >> { %s612_s26 = spop %611 }
  0xef   : >> { %v251_v42 = vstv %s612_s26  ;;  %s256_s6 = scalar_lea.vmem %s909_s7, %s612_s26 [#allocation1]  ;;  %s262_s8 = scalar_lea.vmem [#allocation7], %s612_s26 }
  0xf0   : >> { %v258_v43 = vld [vmem:[%s256_s6] ss:$0 sm:$0xff]  ;;  %v253_v45 = vsel %vm250_vm11, %v251_v42, %v252_v39  ;;  %s371_s26 = sadd.s32 (%p189_p13), %s775_s15, %s605_s24 }
  0xf1   : >> { %v264_v44 = vld [vmem:[%s262_s8] ss:$0 sm:$0xff]  ;;  %259 = vst [vmem:[%s256_s6] sm:$0x1] %v257_v40  ;;  %vm267_vm12 = vcmp.ne.f32.partialorder %v258_v43, 0.0  ;;  %254 = vst [vmem:[%s914_s20] sm:$0x1] %v253_v45  ;;  %v274_v52 = vsel %vm273_vm10, %v258_v43, 0.0 }
  0xf2   : >> { %265 = vst [vmem:[%s262_s8] sm:$0x1] %v263_v41  ;;  %260 = vst [vmem:[%s255_s25] sm:$0x1] %v258_v43  ;;  %s410_s25 = sshrl.u32 (%p189_p13), %s775_s15, 3  ;;  %s606_s21 = sshll.u32 (%p189_p13), %s371_s26, 3 }
  0xf3   : >> { %266 = vst [vmem:[%s261_s29] sm:$0x1] %v264_v44  ;;  %vm268_vm14 = vmand %vm250_vm11, %vm267_vm12  ;;  %s963_s29 = sadd.s32 (%p189_p13), %s779_s16, %s410_s25  ;;  %s373_s10 = scalar_lea.vmem (%p189_p13), %s1031_s1, %s606_s21 }
  0xf4   : >> { %v269_v46 = vsel %vm268_vm14, %v258_v43, 1.0  ;;  %s607_s6 = sshll.u32 (%p189_p13), %s963_s29, 5  ;;  %s418_s15 = sshll.u32 (%p189_p13), %s166_s9, 4  ;;  %s419_s15 = int_to_ptr.vmem [resolvable:$true] %s418_s15 }
  0xf5   : >> { %v282_v47 = vsel %vm281_vm13, %v269_v46, 1.0  ;;  %s416_s23 = scalar_lea.hbm (%p189_p13), %s1032_s2, %s607_s6  ;;  %s1043_s16 = sand.u32 (%p189_p13), 1, %s767_s13  }
  0xf6   : >> { %693 = vrcp.f32 %v282_v47  ;;  %s362_s24 = scalar_lea.sflag (%p189_p13), [#allocation4], %s1043_s16  ;;  %s695_s25 = scalar_lea.vmem (%p189_p13), %s419_s15, 32 }
  0xf7   : > { %p696_p0 = scmp.ne.s32.totalorder (%p189_p13), %s419_s15, %s695_s25  ;;  %s798_s26 = smov (%p189_p13), [#allocation3]  }
  0xf8   : > { %v345_v57 = vld [vmem:[#allocation2] sm:$0x3] (%p189_p13)  ;;  %s699_s22 = sshll.u32 (%p189_p13), %s798_s26, 4  ;;  %s700_s22 = int_to_ptr.vmem [resolvable:$false] %s699_s22 }
  0xf9   : >> { %v278_v49 = vld [vmem:[%s909_s7] sm:$0xff]  ;;  %348 = vst [vmem:[%s166_s9] sm:$0x3] (%p189_p13), %v345_v57  ;;  %p697_p1 = pnand (%p189_p13), %p696_p0, %p872_p4  ;;  %s701_s21 = scalar_lea.vmem (%p189_p13), %s700_s22, 64 }
  0xfa   : > { %v292_v56 = vld [vmem:[#allocation7] sm:$0xff] (%p189_p13)  ;;  %p702_p3 = scmp.lt.s32.totalorder (%p189_p13), %s419_s15, %s700_s22  ;;  %p703_p5 = scmp.lt.s32.totalorder (%p189_p13), %s701_s21, %s695_s25 }
  0xfb   : > { %p698_p2 = pneg (%p189_p13), %p697_p1 }
  0xfc   : > { %p704_p6 = por (%p189_p13), %p703_p5, %p702_p3 }
  0xfe   : > { %p705_p8 = pnand (%p189_p13), %p704_p6, %p698_p2 }
 0x103   : >> { %v694_v48 = vpop.eup %693 }
 0x104   : >> { %v284_v50 = vmul.f32 %v694_v48, %v278_v49 }
 0x106   : >> { %v286_v51 = vsel %vm285_vm15, %v284_v50, 0.0 }
 0x107   : >> { %287 = vadd.xlane.f32.xlu0 %v286_v51 }
 0x134   : > { %308 = vxpose.xlu0.b32.start.end [1/1] (short) (narrow) (%p189_p13), %v292_v56, 8 }
 0x190   : >> { %v288_v53 = vpop.xlane.xlu0 %287 }
 0x191   : >> { %v289_v54 = vmul.f32 %v288_v53, %v274_v52  ;;  %191 = sbr.rel (!%p189_p13) target bundleno = 47 (0x2f), region = 210 }
 0x193   : >> { %v290_v55 = vsub.f32 %v284_v50, %v289_v54 }
 0x195   : >> { %291 = vst [vmem:[%s909_s7] sm:$0xff] %v290_v55 }
 0x19c   : > { %v402_v58 = vld [vmem:[%s909_s7] sm:$0xff] }
 0x19d   : > { %403 = vst [vmem:[%s373_s10] sm:$0xff] %v402_v58 }
 0x19e   : > { %708 = shalt.err (!%p705_p8)
}
 0x19f   : > { %s709_s0 = scalar_lea.hbm %s416_s23, 32  ;;  %s713_s9 = scalar_lea.hbm %s1032_s2, 64 }
 0x1a0   : > { %p710_p9 = scmp.ne.s32.totalorder %s416_s23, %s709_s0  ;;  %p714_p12 = scmp.lt.s32.totalorder %s416_s23, %s1032_s2 }
 0x1a1   : > { %p715_p13 = scmp.lt.s32.totalorder %s713_s9, %s709_s0 }
 0x1a2   : > { %p711_p10 = pnand %p710_p9, %p872_p4 }
 0x1a3   : > { %p716_p0 = por %p715_p13, %p714_p12 }
 0x1a4   : > { %p712_p11 = pneg %p711_p10 }
 0x1a6   : > { %p717_p1 = pnand %p716_p0, %p712_p11 }
 0x1a8   : > { %720 = shalt.err (!%p717_p1)
}
 0x1a9   : > { %613 = dma.vmem_to_hbm [thread:$0]  (%p872_p4), %s419_s15, 32, %s416_s23, %s362_s24  }
 0x1aa   : > { %s1044_s22 = scalar_lea.vmem [#allocation6], %s904_s30  ;;  %s608_s20 = sshll.u32 (%p872_p4), %s963_s29, 1 }
 0x1ab   : > { %s1045_s8 = scalar_lea.vmem (%p872_p4), [#allocation6], %s904_s30  ;;  %s428_s26 = scalar_lea.vmem (%p872_p4), %s1033_s3, %s608_s20 }
 0x1b0   : > { %v324_v59 = vpop.trf.xlu0 }
 0x1b1   : > { %340 = vst [vmem:[%s919_s11] sm:$0x1] %v324_v59 }
 0x1b5   : > { %424 = sbr.rel (!%p872_p4) target bundleno = 450 (0x1c2), region = 104 }
 0x1b8   : > { %v353_v60 = vld [vmem:[#allocation5] sm:$0x3] }
 0x1b9   : > { %356 = vst [vmem:[%s1044_s22] sm:$0x3] %v353_v60 }
 0x1c0   : > { %v445_v61 = vld [vmem:[%s1045_s8] sm:$0x3] }
 0x1c1   : > { %446 = vst [vmem:[%s428_s26] sm:$0x3] %v445_v61 }
 0x1c2 PF: > { %p619_p2 = scmp.ge.s32.totalorder %s791_s19, 2  ;;  %s474_s23 = sand.u32 1, %s763_s12  }
 0x1c3   : > { %s475_s27 = scalar_lea.sflag [#allocation4], %s474_s23 }
 0x1c4   : > { %p616_p3 = pnand %p619_p2, %p883_p7 }
 0x1c6   : > { %p617_p4 = pneg %p616_p3 }
 0x1c8   : > { %758 = dma.done.wait (%p617_p4), %s475_s27, 32  }
 0x1c9   : > { %760 = vsyncadd (%p617_p4), %s475_s27, 4294967264  ;;  %s13_s19 = sadd.s32 1, %s791_s19   ;;  %s1046_s30 = sld [smem:[#allocation9_spill]] }
 0x1ca   : > { %p10_p5 = scmp.ge.s32.totalorder %s13_s19, 6   ;;  %s1047_s11 = sld [smem:[#allocation10_spill]] }
 0x1cb   : > { %s1048_s12 = smov %s767_s13  ;;  %s1049_s13 = smov %s771_s14 }
 0x1cc   : > { %s1050_s14 = smov %s888_s5  ;;  %s1051_s15 = smov %s783_s17 }
 0x1cd   : > { %s1052_s16 = smov %s787_s18  ;;  %12 = sbr.rel (!%p10_p5) target bundleno = 7 (0x7), region = 221 }
 0x1cf   : > { %s1053_s17 = smov %s1046_s30 }
 0x1d0   : > { %s1054_s18 = smov %s1047_s11 }
 0x1d2   :  { %487 = vsyncpa [#allocation4], 1 }
 0x1d3   :  { %489 = vsyncpa [#allocation4 + $0x1], 1 }

// kernel: custom-call.12
= control target key start
LH: loop header
LB: loop body
LE: loop exit
PB: predicated region body
PF: predicated region fallthrough
CT: control target
= control target key end

     0   :  { %s441_s6 = smov 0   ;;  %s443_s7 = smov 0   ;;  %s521_s0 = inlined_call_operand.vmem [shape: f32[2,2,1,8,8], index: 0, kind: input, shape index: {}]   ;;  %s522_s1 = inlined_call_operand.vmem [shape: f32[2,2,1,8,8], index: 1, kind: output, shape index: {}]  }
   0x1   :  { %s445_s8 = smov 0   ;;  %s447_s9 = smov 0  }
   0x2   :  { %s449_s10 = smov 0  }
   0x3 LB: > { %s333_s11 = sadd.s32 4294967295, %s428_s10   ;;  %s36_s12 = sadd.s32 1, %s420_s8  ;;  %s428_s10 = sphi %s449_s10, %s7_s10   ;;  %s424_s9 = sphi %s447_s9, %s526_s9   ;;  %s420_s8 = sphi %s445_s8, %s525_s8   ;;  %s416_s7 = sphi %s443_s7, %s524_s7   ;;  %s412_s6 = sphi %s441_s6, %s523_s6  }
   0x4   : > { %p38_p0 = scmp.ge.s32.totalorder %s36_s12, 2  ;;  %s40_s13 = sadd.s32 1, %s424_s9 }
   0x5   : > { %p335_p2 = scmp.ge.s32.totalorder %s428_s10, 4 }
   0x6   : > { %s528_s12 = smov (%p38_p0, %s36_s12), 0  ;;  %s530_s13 = smov (!%p38_p0, %s40_s13), %s424_s9 }
   0x7   : > { %p42_p1 = scmp.ge.s32.totalorder %s530_s13, 2  ;;  %54 = sbr.rel (%p335_p2) target bundleno = 15 (0xf), region = 16 }
   0x8   : > { %s56_s14 = sand.u32 (!%p335_p2), 1, %s428_s10   ;;  %s337_s15 = sshll.u32 (!%p335_p2), %s424_s9, 1 }
   0x9   : > { %s532_s13 = smov (%p42_p1, %s530_s13), 0  ;;  %s336_s16 = sshll.u32 (!%p335_p2), %s56_s14, 3 }
   0xa   : > { %s63_s17 = sadd.s32 (!%p335_p2), %s420_s8, %s337_s15  ;;  %s58_s22 = scalar_lea.vmem (!%p335_p2), [#allocation0], %s336_s16 }
   0xb   : > { %s338_s18 = sshll.u32 (!%p335_p2), %s63_s17, 3 }
   0xc   : > { %s65_s21 = scalar_lea.vmem %s521_s0, %s338_s18 }
   0xd   : > { %v94_v0 = vld [vmem:[%s65_s21] sm:$0xff] }
   0xe   : > { %95 = vst [vmem:[%s58_s22] sm:$0xff] %v94_v0 }
   0xf PF: > { %p339_p3 = scmp.ge.s32.totalorder %s428_s10, 1  ;;  %p100_p4 = scmp.lt.s32.totalorder %s428_s10, 5 }
  0x11   : > { %p101_p5 = pnand %p339_p3, %p100_p4 }
  0x13   : > { %104 = sbr.rel (%p101_p5) target bundleno = 1185 (0x4a1), region = 54 }
  0x18   : > { %s107_s23 = sand.u32 1, %s333_s11   ;;  %v118_v1 = vlaneseq  ;;  %v430_v10 = vmov -1.0   ;;  %s343_s26 = sshll.u32 %s416_s7, 1 }
  0x19   : > { %s340_s24 = sshll.u32 %s107_s23, 3  ;;  %s228_s27 = sadd.s32 %s412_s6, %s343_s26 }
  0x1a   : > { %v483_v2 = vand.u32 127, %v118_v1  ;;  %v122_v3 = vshrl.u32 %v118_v1, 7  ;;  %s109_s25 = scalar_lea.vmem [#allocation0], %s340_s24  ;;  %s344_s28 = sshll.u32 %s228_s27, 3 }
  0x1b   : > { %v125_v4 = vld [vmem:[%s109_s25] sm:$0xff]  ;;  %s230_s2 = scalar_lea.vmem %s522_s1, %s344_s28 }
  0x1c   : > { %vm120_vm0 = vcmp.lt.s32.totalorder %v483_v2, 8  ;;  %vm124_vm1 = vcmp.eq.s32.totalorder %v122_v3, %v483_v2  ;;  %vm129_vm2 = vcmp.le.s32.totalorder %v122_v3, %v483_v2  ;;  %vm143_vm4 = vcmp.eq.s32.totalorder %v483_v2, 7 }
  0x1d   : > { %v126_v5 = vsel %vm124_vm1, %v125_v4, 0.0  ;;  %vm130_vm3 = vmand %vm129_vm2, %vm120_vm0  ;;  %vm140_vm5 = vcmp.eq.s32.totalorder %v483_v2, %v122_v3  ;;  %v144_v11 = vsel %vm143_vm4, 1.0, %v430_v10  ;;  %vm151_vm6 = vcmp.eq.s32.totalorder %v483_v2, 6 }
  0x1e   : > { %v131_v6 = vsel %vm130_vm3, %v125_v4, 0.0  ;;  %127 = vadd.xlane.f32.xlu0 %v126_v5  ;;  %v145_v12 = vsel %vm140_vm5, %v144_v11, 0.0  ;;  %vm161_vm7 = vcmp.eq.s32.totalorder %v483_v2, 5  ;;  %vm171_vm8 = vcmp.eq.s32.totalorder %v483_v2, 4 }
  0x1f   : > { %vm181_vm9 = vcmp.eq.s32.totalorder %v483_v2, 3  ;;  %vm191_vm10 = vcmp.eq.s32.totalorder %v483_v2, 2  ;;  %vm201_vm11 = vcmp.eq.s32.totalorder %v483_v2, 1  ;;  %vm210_vm12 = vcmp.eq.s32.totalorder %v483_v2, 0 }
  0xa7   : > { %v488_v7 = vpop.xlane.xlu0 %127 }
  0xa8   : > { %388 = vrcp.f32 %v488_v7  ;;  %vm217_vm13 = vweird.f32 %v488_v7 }
  0xb5   : > { %v389_v8 = vpop.eup %388 }
  0xb6   : > { %v133_v9 = vmul.f32 %v389_v8, %v131_v6 }
  0xb8   : > { %134 = vst [vmem:[#allocation2] sm:$0xff] %v133_v9 }
  0xbf   : > { %v147_v13 = vld [vmem:[#allocation2 + $0x6] ss:$0 sm:$0xff]  ;;  %v157_v16 = vld [vmem:[#allocation2 + $0x5] ss:$0 sm:$0xff]  ;;  %v167_v21 = vld [vmem:[#allocation2 + $0x4] ss:$0 sm:$0xff] }
  0xc0   : > { %v148_v14 = vxor.u32 2147483648, %v147_v13  ;;  %v158_v18 = vxor.u32 2147483648, %v157_v16  ;;  %v168_v23 = vxor.u32 2147483648, %v167_v21  ;;  %v177_v26 = vld [vmem:[#allocation2 + $0x3] ss:$0 sm:$0xff] }
  0xc1   : > { %v178_v28 = vxor.u32 2147483648, %v177_v26  ;;  %v187_v31 = vld [vmem:[#allocation2 + $0x2] ss:$0 sm:$0xff]  ;;  %v197_v36 = vld [vmem:[#allocation2 + $0x1] ss:$0 sm:$0xff] }
  0xc2   : > { %v152_v15 = vmul.f32 %v148_v14, %v145_v12  ;;  %v188_v33 = vxor.u32 2147483648, %v187_v31  ;;  %v198_v38 = vxor.u32 2147483648, %v197_v36  ;;  %v206_v41 = vld [vmem:[#allocation2] ss:$0 sm:$0xff] }
  0xc3   : > { %v207_v43 = vxor.u32 2147483648, %v206_v41 }
  0xc4   : > { %153 = vadd.xlane.f32.xlu0 %v152_v15 }
 0x14d   : > { %v154_v17 = vpop.xlane.xlu0 %153 }
 0x14e   : > { %v155_v19 = vsel %vm151_vm6, %v154_v17, %v145_v12 }
 0x14f   : > { %v162_v20 = vmul.f32 %v158_v18, %v155_v19 }
 0x151   : > { %163 = vadd.xlane.f32.xlu1 %v162_v20 }
 0x1da   : > { %v164_v22 = vpop.xlane.xlu1 %163 }
 0x1db   : > { %v165_v24 = vsel %vm161_vm7, %v164_v22, %v155_v19 }
 0x1dc   : > { %v172_v25 = vmul.f32 %v168_v23, %v165_v24 }
 0x1de   : > { %173 = vadd.xlane.f32.xlu1 %v172_v25 }
 0x267   : > { %v174_v27 = vpop.xlane.xlu1 %173 }
 0x268   : > { %v175_v29 = vsel %vm171_vm8, %v174_v27, %v165_v24 }
 0x269   : > { %v182_v30 = vmul.f32 %v178_v28, %v175_v29 }
 0x26b   : > { %183 = vadd.xlane.f32.xlu0 %v182_v30 }
 0x2f4   : > { %v184_v32 = vpop.xlane.xlu0 %183 }
 0x2f5   : > { %v185_v34 = vsel %vm181_vm9, %v184_v32, %v175_v29 }
 0x2f6   : > { %v192_v35 = vmul.f32 %v188_v33, %v185_v34 }
 0x2f8   : > { %193 = vadd.xlane.f32.xlu1 %v192_v35 }
 0x381   : > { %v194_v37 = vpop.xlane.xlu1 %193 }
 0x382   : > { %v195_v39 = vsel %vm191_vm10, %v194_v37, %v185_v34 }
 0x383   : > { %v202_v40 = vmul.f32 %v198_v38, %v195_v39 }
 0x385   : > { %203 = vadd.xlane.f32.xlu0 %v202_v40 }
 0x40e   : > { %v204_v42 = vpop.xlane.xlu0 %203 }
 0x40f   : > { %v205_v44 = vsel %vm201_vm11, %v204_v42, %v195_v39 }
 0x410   : > { %v211_v45 = vmul.f32 %v207_v43, %v205_v44 }
 0x412   : > { %212 = vadd.xlane.f32.xlu1 %v211_v45 }
 0x49b   : > { %v213_v46 = vpop.xlane.xlu1 %212 }
 0x49c   : > { %v214_v47 = vsel %vm210_vm12, %v213_v46, %v205_v44 }
 0x49d   : > { %v216_v48 = vmul.f32 %v389_v8, %v214_v47 }
 0x49f   : > { %v218_v49 = vsel %vm217_vm13, %v214_v47, %v216_v48 }
 0x4a0   : > { %260 = vst [vmem:[%s230_s2] sm:$0xff] %v218_v49 }
 0x4a1 PF: > { %s7_s10 = sadd.s32 1, %s428_s10   ;;  %s523_s6 = smov %s420_s8 }
 0x4a2   : > { %p4_p6 = scmp.ge.s32.totalorder %s7_s10, 6   ;;  %s524_s7 = smov %s424_s9 }
 0x4a3   : > { %s525_s8 = smov %s528_s12  ;;  %s526_s9 = smov %s532_s13 }
 0x4a4   :  { %6 = sbr.rel (!%p4_p6) target bundleno = 3 (0x3), region = 124 }

// kernel: custom-call.13
= control target key start
LH: loop header
LB: loop body
LE: loop exit
PB: predicated region body
PF: predicated region fallthrough
CT: control target
= control target key end

     0   :  { %s442_s6 = smov 0   ;;  %s444_s7 = smov 0   ;;  %s522_s0 = inlined_call_operand.vmem [shape: f32[2,2,1,8,8], index: 0, kind: input, shape index: {}]   ;;  %s523_s1 = inlined_call_operand.vmem [shape: f32[2,2,1,8,8], index: 1, kind: output, shape index: {}]  }
   0x1   :  { %s446_s8 = smov 0   ;;  %s448_s9 = smov 0  }
   0x2   :  { %s450_s10 = smov 0  }
   0x3 LB: > { %s334_s11 = sadd.s32 4294967295, %s429_s10   ;;  %s36_s12 = sadd.s32 1, %s421_s8  ;;  %s429_s10 = sphi %s450_s10, %s7_s10   ;;  %s425_s9 = sphi %s448_s9, %s527_s9   ;;  %s421_s8 = sphi %s446_s8, %s526_s8   ;;  %s417_s7 = sphi %s444_s7, %s525_s7   ;;  %s413_s6 = sphi %s442_s6, %s524_s6  }
   0x4   : > { %p38_p0 = scmp.ge.s32.totalorder %s36_s12, 2  ;;  %s40_s13 = sadd.s32 1, %s425_s9 }
   0x5   : > { %p336_p2 = scmp.ge.s32.totalorder %s429_s10, 4 }
   0x6   : > { %s529_s12 = smov (%p38_p0, %s36_s12), 0  ;;  %s531_s13 = smov (!%p38_p0, %s40_s13), %s425_s9 }
   0x7   : > { %p42_p1 = scmp.ge.s32.totalorder %s531_s13, 2  ;;  %54 = sbr.rel (%p336_p2) target bundleno = 15 (0xf), region = 16 }
   0x8   : > { %s56_s14 = sand.u32 (!%p336_p2), 1, %s429_s10   ;;  %s338_s15 = sshll.u32 (!%p336_p2), %s425_s9, 1 }
   0x9   : > { %s533_s13 = smov (%p42_p1, %s531_s13), 0  ;;  %s337_s16 = sshll.u32 (!%p336_p2), %s56_s14, 3 }
   0xa   : > { %s63_s17 = sadd.s32 (!%p336_p2), %s421_s8, %s338_s15  ;;  %s58_s22 = scalar_lea.vmem (!%p336_p2), [#allocation0], %s337_s16 }
   0xb   : > { %s339_s18 = sshll.u32 (!%p336_p2), %s63_s17, 3 }
   0xc   : > { %s65_s21 = scalar_lea.vmem %s522_s0, %s339_s18 }
   0xd   : > { %v94_v0 = vld [vmem:[%s65_s21] sm:$0xff] }
   0xe   : > { %95 = vst [vmem:[%s58_s22] sm:$0xff] %v94_v0 }
   0xf PF: > { %p340_p3 = scmp.ge.s32.totalorder %s429_s10, 1  ;;  %p100_p4 = scmp.lt.s32.totalorder %s429_s10, 5 }
  0x11   : > { %p101_p5 = pnand %p340_p3, %p100_p4 }
  0x13   : > { %104 = sbr.rel (%p101_p5) target bundleno = 1185 (0x4a1), region = 54 }
  0x18   : > { %s107_s23 = sand.u32 1, %s334_s11   ;;  %v118_v1 = vlaneseq  ;;  %v431_v10 = vmov -1.0   ;;  %s344_s26 = sshll.u32 %s417_s7, 1 }
  0x19   : > { %s341_s24 = sshll.u32 %s107_s23, 3  ;;  %s229_s27 = sadd.s32 %s413_s6, %s344_s26 }
  0x1a   : > { %v484_v2 = vand.u32 127, %v118_v1  ;;  %v122_v3 = vshrl.u32 %v118_v1, 7  ;;  %s109_s25 = scalar_lea.vmem [#allocation0], %s341_s24  ;;  %s345_s28 = sshll.u32 %s229_s27, 3 }
  0x1b   : > { %v125_v4 = vld [vmem:[%s109_s25] sm:$0xff]  ;;  %s231_s2 = scalar_lea.vmem %s523_s1, %s345_s28 }
  0x1c   : > { %vm120_vm0 = vcmp.lt.s32.totalorder %v484_v2, 8  ;;  %vm124_vm1 = vcmp.eq.s32.totalorder %v122_v3, %v484_v2  ;;  %vm129_vm2 = vcmp.ge.s32.totalorder %v122_v3, %v484_v2  ;;  %vm143_vm4 = vcmp.eq.s32.totalorder %v484_v2, 0 }
  0x1d   : > { %v126_v5 = vsel %vm124_vm1, %v125_v4, 0.0  ;;  %vm130_vm3 = vmand %vm129_vm2, %vm120_vm0  ;;  %vm140_vm5 = vcmp.eq.s32.totalorder %v484_v2, %v122_v3  ;;  %v144_v11 = vsel %vm143_vm4, 1.0, %v431_v10  ;;  %vm151_vm6 = vcmp.eq.s32.totalorder %v484_v2, 1 }
  0x1e   : > { %v131_v6 = vsel %vm130_vm3, %v125_v4, 0.0  ;;  %127 = vadd.xlane.f32.xlu0 %v126_v5  ;;  %v145_v12 = vsel %vm140_vm5, %v144_v11, 0.0  ;;  %vm161_vm7 = vcmp.eq.s32.totalorder %v484_v2, 2  ;;  %vm171_vm8 = vcmp.eq.s32.totalorder %v484_v2, 3 }
  0x1f   : > { %vm181_vm9 = vcmp.eq.s32.totalorder %v484_v2, 4  ;;  %vm191_vm10 = vcmp.eq.s32.totalorder %v484_v2, 5  ;;  %vm201_vm11 = vcmp.eq.s32.totalorder %v484_v2, 6  ;;  %vm211_vm12 = vcmp.eq.s32.totalorder %v484_v2, 7 }
  0xa7   : > { %v489_v7 = vpop.xlane.xlu0 %127 }
  0xa8   : > { %389 = vrcp.f32 %v489_v7  ;;  %vm218_vm13 = vweird.f32 %v489_v7 }
  0xb5   : > { %v390_v8 = vpop.eup %389 }
  0xb6   : > { %v133_v9 = vmul.f32 %v390_v8, %v131_v6 }
  0xb8   : > { %134 = vst [vmem:[#allocation2] sm:$0xff] %v133_v9 }
  0xbf   : > { %v147_v13 = vld [vmem:[#allocation2 + $0x1] ss:$0 sm:$0xff]  ;;  %v157_v16 = vld [vmem:[#allocation2 + $0x2] ss:$0 sm:$0xff]  ;;  %v167_v21 = vld [vmem:[#allocation2 + $0x3] ss:$0 sm:$0xff] }
  0xc0   : > { %v148_v14 = vxor.u32 2147483648, %v147_v13  ;;  %v158_v18 = vxor.u32 2147483648, %v157_v16  ;;  %v168_v23 = vxor.u32 2147483648, %v167_v21  ;;  %v177_v26 = vld [vmem:[#allocation2 + $0x4] ss:$0 sm:$0xff] }
  0xc1   : > { %v178_v28 = vxor.u32 2147483648, %v177_v26  ;;  %v187_v31 = vld [vmem:[#allocation2 + $0x5] ss:$0 sm:$0xff]  ;;  %v197_v36 = vld [vmem:[#allocation2 + $0x6] ss:$0 sm:$0xff] }
  0xc2   : > { %v152_v15 = vmul.f32 %v148_v14, %v145_v12  ;;  %v188_v33 = vxor.u32 2147483648, %v187_v31  ;;  %v198_v38 = vxor.u32 2147483648, %v197_v36  ;;  %v207_v41 = vld [vmem:[#allocation2 + $0x7] ss:$0 sm:$0xff] }
  0xc3   : > { %v208_v43 = vxor.u32 2147483648, %v207_v41 }
  0xc4   : > { %153 = vadd.xlane.f32.xlu0 %v152_v15 }
 0x14d   : > { %v154_v17 = vpop.xlane.xlu0 %153 }
 0x14e   : > { %v155_v19 = vsel %vm151_vm6, %v154_v17, %v145_v12 }
 0x14f   : > { %v162_v20 = vmul.f32 %v158_v18, %v155_v19 }
 0x151   : > { %163 = vadd.xlane.f32.xlu1 %v162_v20 }
 0x1da   : > { %v164_v22 = vpop.xlane.xlu1 %163 }
 0x1db   : > { %v165_v24 = vsel %vm161_vm7, %v164_v22, %v155_v19 }
 0x1dc   : > { %v172_v25 = vmul.f32 %v168_v23, %v165_v24 }
 0x1de   : > { %173 = vadd.xlane.f32.xlu1 %v172_v25 }
 0x267   : > { %v174_v27 = vpop.xlane.xlu1 %173 }
 0x268   : > { %v175_v29 = vsel %vm171_vm8, %v174_v27, %v165_v24 }
 0x269   : > { %v182_v30 = vmul.f32 %v178_v28, %v175_v29 }
 0x26b   : > { %183 = vadd.xlane.f32.xlu0 %v182_v30 }
 0x2f4   : > { %v184_v32 = vpop.xlane.xlu0 %183 }
 0x2f5   : > { %v185_v34 = vsel %vm181_vm9, %v184_v32, %v175_v29 }
 0x2f6   : > { %v192_v35 = vmul.f32 %v188_v33, %v185_v34 }
 0x2f8   : > { %193 = vadd.xlane.f32.xlu1 %v192_v35 }
 0x381   : > { %v194_v37 = vpop.xlane.xlu1 %193 }
 0x382   : > { %v195_v39 = vsel %vm191_vm10, %v194_v37, %v185_v34 }
 0x383   : > { %v202_v40 = vmul.f32 %v198_v38, %v195_v39 }
 0x385   : > { %203 = vadd.xlane.f32.xlu0 %v202_v40 }
 0x40e   : > { %v204_v42 = vpop.xlane.xlu0 %203 }
 0x40f   : > { %v205_v44 = vsel %vm201_vm11, %v204_v42, %v195_v39 }
 0x410   : > { %v212_v45 = vmul.f32 %v208_v43, %v205_v44 }
 0x412   : > { %213 = vadd.xlane.f32.xlu1 %v212_v45 }
 0x49b   : > { %v214_v46 = vpop.xlane.xlu1 %213 }
 0x49c   : > { %v215_v47 = vsel %vm211_vm12, %v214_v46, %v205_v44 }
 0x49d   : > { %v217_v48 = vmul.f32 %v390_v8, %v215_v47 }
 0x49f   : > { %v219_v49 = vsel %vm218_vm13, %v215_v47, %v217_v48 }
 0x4a0   : > { %261 = vst [vmem:[%s231_s2] sm:$0xff] %v219_v49 }
 0x4a1 PF: > { %s7_s10 = sadd.s32 1, %s429_s10   ;;  %s524_s6 = smov %s421_s8 }
 0x4a2   : > { %p4_p6 = scmp.ge.s32.totalorder %s7_s10, 6   ;;  %s525_s7 = smov %s425_s9 }
 0x4a3   : > { %s526_s8 = smov %s529_s12  ;;  %s527_s9 = smov %s533_s13 }
 0x4a4   :  { %6 = sbr.rel (!%p4_p6) target bundleno = 3 (0x3), region = 125 }

// kernel: _lambda_.12
= control target key start
LH: loop header
LB: loop body
LE: loop exit
PB: predicated region body
PF: predicated region fallthrough
CT: control target
= control target key end

     0   :  { %s742_s12 = smov 0   ;;  %s850_s0 = inlined_call_operand.vmem [shape: f32[2,3,44,44], index: 0, kind: input, shape index: {}]   ;;  %s851_s1 = inlined_call_operand.vmem [shape: f32[8,44], index: 1, kind: input, shape index: {}]   ;;  %s852_s2 = inlined_call_operand.vmem [shape: f32[44,8], index: 2, kind: input, shape index: {}]   ;;  %s853_s3 = inlined_call_operand.vmem [shape: f32[2,24,8], index: 3, kind: output, shape index: {}]  }
   0x1 LB: > { %s573_s13 = sadd.s32 4294967295, %s718_s12   ;;  %p577_p0 = scmp.ge.s32.totalorder %s718_s12, 1  ;;  %s718_s12 = sphi %s742_s12, %s13_s12  }
   0x2   : > { %p137_p1 = scmp.lt.s32.totalorder %s718_s12, 3 }
   0x4   : > { %p138_p2 = pnand %p577_p0, %p137_p1 }
   0x5   : > { %p161_p3 = scmp.lt.s32.totalorder (!%p138_p2), %s573_s13, 1 }
   0x6   : > { %141 = sbr.rel (%p138_p2) target bundleno = 427 (0x1ab), region = 32 }
   0xb   : > { %v720_v0 = vmov 0.0   ;;  %s855_s13 = smov (!%p161_p3, %s573_s13), 1  ;;  %vm721_vm0 = vmmov 0   ;;  %vm182_vm1 = vcmask 1043456   ;;  %v171_v12 = vld [vmem:[%s851_s1] sm:$0xff]  ;;  %vm178_vm2 = vcmask 359424  }
   0xc   : > { %634 = vmatprep.subr.mxu0 %v720_v0  ;;  %649 = vmatprep.subr.mxu1 %v720_v0  ;;  %s700_s14 = smul.u32 144, %s855_s13  ;;  %v421_v17 = vld [vmem:[%s852_s2 + $0x28] sm:$0xf]  ;;  %v420_v19 = vld [vmem:[%s852_s2 + $0x20] sm:$0xff]  ;;  %v419_v21 = vld [vmem:[%s852_s2 + $0x18] sm:$0xff]  ;;  %vm514_vm3 = vcmask 64512  }
   0xd   : > { %646 = vmatprep.mubr.msk.f32.mxu0 %vm721_vm0, %v720_v0  ;;  %661 = vmatprep.mubr.msk.f32.mxu1 %vm721_vm0, %v720_v0  ;;  %v418_v23 = vld [vmem:[%s852_s2 + $0x10] sm:$0xff]  ;;  %v417_v24 = vld [vmem:[%s852_s2 + $0x8] sm:$0xff]  ;;  %v416_v25 = vld [vmem:[%s852_s2] sm:$0xff]  ;;  %s701_s5 = smul.u32 24, %s855_s13 }
   0xe   : > { %s762_s17 = scalar_lea.vmem %s850_s0, %s700_s14 }
   0xf   : > { %v177_v1 = vld [vmem:[%s762_s17 + $0x28] sm:$0xf]  ;;  %v176_v2 = vld [vmem:[%s762_s17 + $0x20] sm:$0xff]  ;;  %v587_v3 = vld [vmem:[%s762_s17 + $0x58] sm:$0xf]  ;;  %s170_s8 = scalar_lea.vmem %s853_s3, %s701_s5 }
  0x10   : > { %635 = vmatpush3.msk.msra.mxu0 %vm182_vm1, %v177_v1  ;;  %v175_v4 = vld [vmem:[%s762_s17 + $0x18] sm:$0xff]  ;;  %650 = vmatpush3.msk.msra.mxu1 %vm182_vm1, %v587_v3  ;;  %v586_v5 = vld [vmem:[%s762_s17 + $0x50] sm:$0xff]  ;;  %v585_v6 = vld [vmem:[%s762_s17 + $0x48] sm:$0xff] }
  0x11   : > { %636 = vmatprep.subr.mxu0 %v720_v0  ;;  %651 = vmatprep.subr.mxu1 %v720_v0  ;;  %v174_v7 = vld [vmem:[%s762_s17 + $0x10] sm:$0xff]  ;;  %v584_v8 = vld [vmem:[%s762_s17 + $0x40] sm:$0xff]  ;;  %v173_v9 = vld [vmem:[%s762_s17 + $0x8] sm:$0xff] }
  0x12   : > { %637 = vmatpush3.msra.mxu0 %v176_v2  ;;  %652 = vmatpush3.msra.mxu1 %v586_v5  ;;  %v583_v10 = vld [vmem:[%s762_s17 + $0x38] sm:$0xff]  ;;  %v172_v11 = vld [vmem:[%s762_s17] sm:$0xff]  ;;  %v595_v13 = vld [vmem:[%s762_s17 + $0x88] sm:$0xf] }
  0x13   : > { %638 = vmatprep.subr.mxu0 %v720_v0  ;;  %653 = vmatprep.subr.mxu1 %v720_v0  ;;  %v582_v14 = vld [vmem:[%s762_s17 + $0x30] sm:$0xff]  ;;  %v594_v15 = vld [vmem:[%s762_s17 + $0x80] sm:$0xff]  ;;  %v593_v16 = vld [vmem:[%s762_s17 + $0x78] sm:$0xff] }
  0x14   : > { %639 = vmatpush3.msra.mxu0 %v175_v4  ;;  %654 = vmatpush3.msra.mxu1 %v585_v6  ;;  %v592_v18 = vld [vmem:[%s762_s17 + $0x70] sm:$0xff]  ;;  %v591_v20 = vld [vmem:[%s762_s17 + $0x68] sm:$0xff]  ;;  %v590_v22 = vld [vmem:[%s762_s17 + $0x60] sm:$0xff] }
  0x15   : > { %640 = vmatprep.subr.mxu0 %v720_v0  ;;  %655 = vmatprep.subr.mxu1 %v720_v0 }
  0x16   : > { %641 = vmatpush3.msra.mxu0 %v174_v7  ;;  %656 = vmatpush3.msra.mxu1 %v584_v8 }
  0x17   : > { %642 = vmatprep.subr.mxu0 %v720_v0  ;;  %657 = vmatprep.subr.mxu1 %v720_v0 }
  0x18   : > { %643 = vmatpush3.msra.mxu0 %v173_v9  ;;  %658 = vmatpush3.msra.mxu1 %v583_v10 }
  0x19   : > { %644 = vmatprep.subr.mxu0 %v720_v0  ;;  %659 = vmatprep.subr.mxu1 %v720_v0 }
  0x1a   : > { %645 = vmatpush3.msra.mxu0 %v172_v11  ;;  %660 = vmatpush3.msra.mxu1 %v582_v14 }
  0x1b   : > { %647 = vmatmul.mubr.msk.f32.vlgmr.msra.gmra.mxu0 %vm178_vm2, %v171_v12  ;;  %664 = vmatprep.subr.mxu0 %v720_v0 }
  0x1c   : > { %665 = vmatpush3.msk.msra.mxu0 %vm182_vm1, %v595_v13  ;;  %662 = vmatmul.mubr.msk.f32.vlgmr.msra.gmra.mxu1 %vm178_vm2, %v171_v12 }
  0x1d   : > { %666 = vmatprep.subr.mxu0 %v720_v0  ;;  %676 = vmatprep.mubr.msk.f32.mxu0 %vm721_vm0, %v720_v0 }
  0x1e   : > { %667 = vmatpush3.msra.mxu0 %v594_v15  ;;  %679 = vmatprep.subr.mxu1 %v720_v0 }
  0x1f   : > { %668 = vmatprep.subr.mxu0 %v720_v0  ;;  %680 = vmatpush3.msk.msra.mxu1 %vm182_vm1, %v421_v17 }
  0x20   : > { %669 = vmatpush3.msra.mxu0 %v593_v16  ;;  %681 = vmatprep.subr.mxu1 %v720_v0 }
  0x21   : > { %670 = vmatprep.subr.mxu0 %v720_v0  ;;  %682 = vmatpush3.msra.mxu1 %v420_v19 }
  0x22   : > { %671 = vmatpush3.msra.mxu0 %v592_v18  ;;  %683 = vmatprep.subr.mxu1 %v720_v0 }
  0x23   : > { %672 = vmatprep.subr.mxu0 %v720_v0  ;;  %684 = vmatpush3.msra.mxu1 %v419_v21 }
  0x24   : > { %673 = vmatpush3.msra.mxu0 %v591_v20  ;;  %685 = vmatprep.subr.mxu1 %v720_v0 }
  0x25   : > { %674 = vmatprep.subr.mxu0 %v720_v0  ;;  %686 = vmatpush3.msra.mxu1 %v418_v23 }
  0x26   : > { %675 = vmatpush3.msra.mxu0 %v590_v22  ;;  %687 = vmatprep.subr.mxu1 %v720_v0 }
  0x27   : > { %677 = vmatmul.mubr.msk.f32.vlgmr.msra.gmra.mxu0 %vm178_vm2, %v171_v12  ;;  %688 = vmatpush3.msra.mxu1 %v417_v24 }
  0x28   : > { %691 = vmatprep.mubr.msk.f32.mxu1 %vm721_vm0, %v720_v0  ;;  %689 = vmatprep.subr.mxu1 %v720_v0 }
  0x29   : > { %690 = vmatpush3.msra.mxu1 %v416_v25 }
  0xdb   : > { %v252_v26 = vpop.f32.mrf.mxu0 }
  0xdc   : > { %692 = vmatmul.mubr.msk.f32.vlgmr.msra.gmra.mxu1 %vm178_vm2, %v252_v26  ;;  %v332_v28 = vpop.f32.mrf.mxu1 }
  0xdd   : > { %v648_v27 = vpop.f32.mrf.mxu0  ;;  %694 = vmatprep.mubr.msk.f32.mxu1 %vm721_vm0, %v720_v0 }
  0xde   : > { %v663_v29 = vpop.f32.mrf.mxu1 }
  0xe0   : > { %695 = vmatmul.mubr.msk.f32.gmra.mxu1 %vm178_vm2, %v332_v28 }
  0xe1   : > { %697 = vmatprep.mubr.msk.f32.mxu1 %vm721_vm0, %v720_v0 }
  0xe7   : > { %v412_v30 = vpop.f32.mrf.mxu0 }
  0xe8   : > { %698 = vmatmul.mubr.msk.f32.gmra.mxu1 %vm178_vm2, %v412_v30 }
  0xe9   : > { %v678_v31 = vpop.f32.mrf.mxu0 }
 0x19c   : > { %v500_v32 = vpop.f32.mrf.mxu1 }
 0x19d   : > { %515 = vst.msk [vmem:[%s170_s8] sm:$0xff] %vm514_vm3, %v500_v32 }
 0x19e   : > { %v693_v33 = vpop.f32.mrf.mxu1 }
 0x1a0   : > { %v505_v34 = vpop.f32.mrf.mxu1 }
 0x1a1   : > { %516 = vst.msk [vmem:[%s170_s8 + $0x8] sm:$0xff] %vm514_vm3, %v505_v34 }
 0x1a2   : > { %v696_v35 = vpop.f32.mrf.mxu1 }
 0x1a8   : > { %v510_v36 = vpop.f32.mrf.mxu1 }
 0x1a9   : > { %517 = vst.msk [vmem:[%s170_s8 + $0x10] sm:$0xff] %vm514_vm3, %v510_v36 }
 0x1aa   : > { %v699_v37 = vpop.f32.mrf.mxu1 }
 0x1ab PF: > { %s13_s12 = sadd.s32 1, %s718_s12  }
 0x1ac   : > { %p10_p4 = scmp.ge.s32.totalorder %s13_s12, 4  }
 0x1ae   :  { %12 = sbr.rel (!%p10_p4) target bundleno = 1 (0x1), region = 64 }

// kernel: _lambda_.13
= control target key start
LH: loop header
LB: loop body
LE: loop exit
PB: predicated region body
PF: predicated region fallthrough
CT: control target
= control target key end

     0   :  { %v298_v0 = vmov 0   ;;  %vm126_vm0 = vcmask 433152   ;;  %vm133_vm1 = vcmask 1041408   ;;  %vm134_vm2 = vcmask 1042432   ;;  %s393_s0 = inlined_call_operand.vmem [shape: bf16[181,128], index: 0, kind: input, shape index: {}]   ;;  %s394_s1 = inlined_call_operand.vmem [shape: bf16[32,181], index: 1, kind: input, shape index: {}]   ;;  %s395_s2 = inlined_call_operand.vmem [shape: bf16[32,128], index: 2, kind: output, shape index: {}]  }
   0x1   :  { %140 = vmatprep.subr.bf16.mxu0 %v298_v0  ;;  %254 = vmatprep.subr.bf16.mxu1 %v298_v0  ;;  %v280_v1 = vld [vmem:[%s393_s0 + $0x38] sm:$0xff]   ;;  %v281_v2 = vld [vmem:[%s393_s0 + $0x30] sm:$0xff]   ;;  %v282_v3 = vld [vmem:[%s393_s0 + $0x28] sm:$0xff]   ;;  %v299_v10 = vmov 65535  }
   0x2   :  { %141 = vmatpush1.bf16.msra.mxu0 %v280_v1  ;;  %266 = vmatpush1.bf16.msra.mxu1 %v280_v1  ;;  %v283_v4 = vld [vmem:[%s393_s0 + $0x20] sm:$0xff]   ;;  %v284_v6 = vld [vmem:[%s393_s0 + $0x18] sm:$0xff]   ;;  %v285_v8 = vld [vmem:[%s393_s0 + $0x10] sm:$0xff]   ;;  %v135_v11 = vsel %vm133_vm1, 4294967295, %v299_v10 }
   0x3   :  { %142 = vmatprep.subr.bf16.mxu0 %v298_v0  ;;  %255 = vmatprep.subr.bf16.mxu1 %v298_v0  ;;  %v294_v5 = vld [vmem:[%s394_s1 + $0x4] ss:$8 sps:$4 sm:$0xff]   ;;  %v297_v7 = vld [vmem:[%s394_s1 + $0x14] ss:$8 sps:$4 sm:$0xff]   ;;  %v136_v14 = vsel %vm134_vm2, %v135_v11, 0 }
   0x4   :  { %233 = vmatprep.mubr.msk.bf16.mxu0 %vm126_vm0, %v294_v5  ;;  %234 = vmatprep.mubr.msk.bf16.mxu1 %vm126_vm0, %v297_v7  ;;  %v286_v9 = vld [vmem:[%s393_s0 + $0x8] sm:$0xff]   ;;  %v287_v12 = vld [vmem:[%s393_s0] sm:$0xff]   ;;  %v288_v13 = vld [vmem:[%s393_s0 + $0x58] ss:$0 sps:$4 sm:$0x77]  }
   0x5   :  { %v138_v15 = vand.u32 %v288_v13, %v136_v14  ;;  %v289_v16 = vld [vmem:[%s393_s0 + $0x50] sm:$0xff]   ;;  %v290_v17 = vld [vmem:[%s393_s0 + $0x48] sm:$0xff]   ;;  %v291_v18 = vld [vmem:[%s393_s0 + $0x40] sm:$0xff]  }
   0x6   :  { %143 = vmatpush1.bf16.msra.mxu0 %v281_v2  ;;  %267 = vmatpush1.bf16.msra.mxu1 %v281_v2  ;;  %v292_v19 = vld [vmem:[%s394_s1] ss:$8 sps:$4 sm:$0xff]   ;;  %v295_v20 = vld [vmem:[%s394_s1 + $0x10] ss:$8 sps:$4 sm:$0xff]  }
   0x7   :  { %144 = vmatprep.subr.bf16.mxu0 %v298_v0  ;;  %256 = vmatprep.subr.bf16.mxu1 %v298_v0 }
   0xa   :  { %145 = vmatpush1.bf16.msra.mxu0 %v282_v3  ;;  %268 = vmatpush1.bf16.msra.mxu1 %v282_v3 }
   0xb   :  { %146 = vmatprep.subr.bf16.mxu0 %v298_v0  ;;  %257 = vmatprep.subr.bf16.mxu1 %v298_v0 }
   0xe   :  { %147 = vmatpush1.bf16.msra.mxu0 %v283_v4  ;;  %269 = vmatpush1.bf16.msra.mxu1 %v283_v4 }
   0xf   :  { %148 = vmatprep.subr.bf16.mxu0 %v298_v0  ;;  %258 = vmatprep.subr.bf16.mxu1 %v298_v0 }
  0x12   :  { %149 = vmatpush1.bf16.msra.mxu0 %v284_v6  ;;  %270 = vmatpush1.bf16.msra.mxu1 %v284_v6 }
  0x13   :  { %150 = vmatprep.subr.bf16.mxu0 %v298_v0  ;;  %259 = vmatprep.subr.bf16.mxu1 %v298_v0 }
  0x16   :  { %151 = vmatpush1.bf16.msra.mxu0 %v285_v8  ;;  %271 = vmatpush1.bf16.msra.mxu1 %v285_v8 }
  0x17   :  { %152 = vmatprep.subr.bf16.mxu0 %v298_v0  ;;  %260 = vmatprep.subr.bf16.mxu1 %v298_v0 }
  0x1a   :  { %153 = vmatpush1.bf16.msra.mxu0 %v286_v9  ;;  %272 = vmatpush1.bf16.msra.mxu1 %v286_v9 }
  0x1b   :  { %154 = vmatprep.subr.bf16.mxu0 %v298_v0  ;;  %261 = vmatprep.subr.bf16.mxu1 %v298_v0 }
  0x1e   :  { %155 = vmatpush1.bf16.msra.mxu0 %v287_v12  ;;  %273 = vmatpush1.bf16.msra.mxu1 %v287_v12 }
  0x1f   :  { %164 = vmatprep.subr.bf16.mxu0 %v298_v0  ;;  %262 = vmatprep.subr.bf16.mxu1 %v298_v0 }
  0x22   :  { %165 = vmatpush2.bf16.msra.mxu0 %v138_v15  ;;  %274 = vmatpush2.bf16.msra.mxu1 %v138_v15 }
  0x23   :  { %166 = vmatprep.subr.bf16.mxu0 %v298_v0  ;;  %263 = vmatprep.subr.bf16.mxu1 %v298_v0 }
  0x26   :  { %167 = vmatpush2.bf16.msra.mxu0 %v289_v16  ;;  %275 = vmatpush2.bf16.msra.mxu1 %v289_v16 }
  0x27   :  { %168 = vmatprep.subr.bf16.mxu0 %v298_v0  ;;  %264 = vmatprep.subr.bf16.mxu1 %v298_v0 }
  0x2a   :  { %169 = vmatpush2.bf16.msra.mxu0 %v290_v17  ;;  %276 = vmatpush2.bf16.msra.mxu1 %v290_v17 }
  0x2b   :  { %170 = vmatprep.subr.bf16.mxu0 %v298_v0  ;;  %265 = vmatprep.subr.bf16.mxu1 %v298_v0 }
  0x2e   :  { %171 = vmatpush2.bf16.msra.mxu0 %v291_v18  ;;  %277 = vmatpush2.bf16.msra.mxu1 %v291_v18 }
  0x31   :  { %173 = vmatmul.mubr.bf16.vlgmr.msra.gmra.mxu0 %v292_v19  ;;  %181 = vmatmul.mubr.bf16.vlgmr.msra.gmra.mxu1 %v295_v20 }
  0xf1   :  { %v174_v21 = vpop.f32.mrf.mxu0  ;;  %v182_v22 = vpop.f32.mrf.mxu1 }
  0xf2   :  { %v189_v27 = vmax.f32 %v174_v21, 0.0  ;;  %v191_v28 = vmax.f32 %v182_v22, 0.0 }
  0xf3   :  { %v176_v23 = vpop.f32.mrf.mxu0  ;;  %v184_v24 = vpop.f32.mrf.mxu1 }
  0xf5   :  { %v177_v25 = vpop.f32.mrf.mxu0  ;;  %v185_v26 = vpop.f32.mrf.mxu1 }
  0xf6   :  { %v190_v29 = vmax.f32 %v177_v25, 0.0  ;;  %v192_v30 = vmax.f32 %v185_v26, 0.0 }
  0xf7   :  { %v179_v31 = vpop.f32.mrf.mxu0  ;;  %v187_v32 = vpop.f32.mrf.mxu1 }
  0xf8   :  { %v246_v33 = vpack.c.bf16 %v190_v29, %v189_v27  ;;  %v251_v34 = vpack.c.bf16 %v192_v30, %v191_v28 }
  0xfa   :  { %247 = vst [vmem:[%s395_s2] sm:$0xff] %v246_v33   ;;  %253 = vst [vmem:[%s395_s2 + $0x8] sm:$0xff] %v251_v34  }

// kernel: _lambda_.14
= control target key start
LH: loop header
LB: loop body
LE: loop exit
PB: predicated region body
PF: predicated region fallthrough
CT: control target
= control target key end

     0   :  { %vm249_vm0 = vcmask 1040384   ;;  %v586_v8 = vmov 0   ;;  %vm236_vm1 = vcmask 269312   ;;  %vm425_vm2 = vcmask 257024   ;;  %s731_s0 = inlined_call_operand.vmem [shape: bf16[289,32], index: 0, kind: input, shape index: {}]   ;;  %s732_s1 = inlined_call_operand.vmem [shape: bf16[64,289], index: 1, kind: input, shape index: {}]   ;;  %s733_s2 = inlined_call_operand.vmem [shape: bf16[64,32], index: 2, kind: output, shape index: {}]  }
   0x1   :  { %v551_v0 = vld [vmem:[%s731_s0 + $0x78] sm:$0xff]   ;;  %v553_v2 = vld [vmem:[%s731_s0 + $0x70] sm:$0xff]   ;;  %v555_v4 = vld [vmem:[%s731_s0 + $0x68] sm:$0xff]   ;;  %v251_v9 = vsel %vm249_vm0, 65535, %v586_v8 }
   0x2   :  { %v552_v1 = vld [vmem:[%s731_s0 + $0x38] sm:$0xff]   ;;  %489 = vmatprep.subr.bf16.mxu0 %v551_v0  ;;  %v554_v3 = vld [vmem:[%s731_s0 + $0x30] sm:$0xff]   ;;  %v556_v5 = vld [vmem:[%s731_s0 + $0x28] sm:$0xff]  }
   0x3   :  { %490 = vmatpush3.bf16.msra.mxu0 %v552_v1  ;;  %v557_v6 = vld [vmem:[%s731_s0 + $0x60] sm:$0xff]   ;;  %v559_v10 = vld [vmem:[%s731_s0 + $0x58] sm:$0xff]   ;;  %v563_v11 = vld [vmem:[%s731_s0 + $0x90] ss:$0 sps:$4 sm:$0x11]  }
   0x4   :  { %491 = vmatprep.subr.bf16.mxu0 %v553_v2  ;;  %v558_v7 = vld [vmem:[%s731_s0 + $0x20] sm:$0xff]   ;;  %v560_v12 = vld [vmem:[%s731_s0 + $0x18] sm:$0xff]   ;;  %v253_v13 = vand.u32 %v563_v11, %v251_v9  ;;  %v566_v14 = vld [vmem:[%s731_s0 + $0x88] sm:$0xff]  }
   0x5   :  { %v561_v15 = vld [vmem:[%s731_s0 + $0x50] sm:$0xff]   ;;  %v569_v17 = vld [vmem:[%s731_s0 + $0x80] sm:$0xff]   ;;  %v564_v18 = vld [vmem:[%s731_s0 + $0x48] sm:$0xff]  }
   0x6   :  { %536 = vmatprep.subr.bf16.mxu1 %v253_v13  ;;  %v562_v16 = vld [vmem:[%s731_s0 + $0x10] sm:$0xff]   ;;  %v565_v21 = vld [vmem:[%s731_s0 + $0x8] sm:$0xff]   ;;  %v567_v22 = vld [vmem:[%s731_s0 + $0x40] sm:$0xff]  }
   0x7   :  { %492 = vmatpush3.bf16.msra.mxu0 %v554_v3  ;;  %537 = vmatpush3.bf16.msra.mxu1 %v253_v13  ;;  %v572_v19 = vld [vmem:[%s732_s1 + $0x4] ss:$12 sps:$4 sm:$0xff]   ;;  %v573_v20 = vld [vmem:[%s732_s1 + $0x8] ss:$12 sps:$4 sm:$0xff]   ;;  %v574_v23 = vld [vmem:[%s732_s1 + $0x20] ss:$12 sps:$4 sm:$0xff]  }
   0x8   :  { %493 = vmatprep.subr.bf16.mxu0 %v555_v4  ;;  %538 = vmatprep.subr.bf16.mxu1 %v566_v14  ;;  %v581_v24 = vld [vmem:[%s732_s1 + $0x38] ss:$12 sps:$4 sm:$0xff]   ;;  %v570_v26 = vld [vmem:[%s732_s1] ss:$12 sps:$4 sm:$0xff]   ;;  %v575_v27 = vld [vmem:[%s732_s1 + $0x1c] ss:$12 sps:$4 sm:$0xff]  }
   0x9   :  { %287 = vmatprep.mubr.bf16.mxu0 %v572_v19  ;;  %542 = vmatprep.mubr.msk.bf16.mxu1 %vm236_vm1, %v573_v20  ;;  %v568_v25 = vld [vmem:[%s731_s0] sm:$0xff]   ;;  %v582_v28 = vld [vmem:[%s732_s1 + $0x50] ss:$12 sps:$4 sm:$0xff]   ;;  %v583_v32 = vld [vmem:[%s732_s1 + $0x4c] ss:$12 sps:$4 sm:$0xff]  }
   0xa   :  { %v577_v29 = vld [vmem:[%s732_s1 + $0x18] ss:$12 sps:$4 sm:$0xff]   ;;  %v578_v30 = vld [vmem:[%s732_s1 + $0x34] ss:$12 sps:$4 sm:$0xff]   ;;  %v580_v31 = vld [vmem:[%s732_s1 + $0x30] ss:$12 sps:$4 sm:$0xff]  }
   0xb   :  { %494 = vmatpush3.bf16.msra.mxu0 %v556_v5  ;;  %539 = vmatpush3.bf16.msra.mxu1 %v566_v14  ;;  %v585_v33 = vld [vmem:[%s732_s1 + $0x48] ss:$12 sps:$4 sm:$0xff]  }
   0xc   :  { %495 = vmatprep.subr.bf16.mxu0 %v557_v6  ;;  %540 = vmatprep.subr.bf16.mxu1 %v569_v17 }
   0xf   :  { %496 = vmatpush3.bf16.msra.mxu0 %v558_v7  ;;  %541 = vmatpush3.bf16.msra.mxu1 %v569_v17 }
  0x10   :  { %497 = vmatprep.subr.bf16.mxu0 %v559_v10 }
  0x12   :  { %543 = vmatmul.mubr.msk.bf16.vlgmr.msra.gmra.mxu1 %vm236_vm1, %v574_v23 }
  0x13   :  { %498 = vmatpush3.bf16.msra.mxu0 %v560_v12  ;;  %546 = vmatprep.mubr.msk.bf16.mxu1 %vm236_vm1, %v581_v24 }
  0x14   :  { %499 = vmatprep.subr.bf16.mxu0 %v561_v15 }
  0x17   :  { %500 = vmatpush3.bf16.msra.mxu0 %v562_v16 }
  0x18   :  { %501 = vmatprep.subr.bf16.mxu0 %v564_v18 }
  0x1a   :  { %547 = vmatmul.mubr.msk.bf16.gmra.mxu1 %vm236_vm1, %v582_v28 }
  0x1b   :  { %502 = vmatpush3.bf16.msra.mxu0 %v565_v21 }
  0x1c   :  { %503 = vmatprep.subr.bf16.mxu0 %v567_v22 }
  0x1f   :  { %504 = vmatpush3.bf16.msra.mxu0 %v568_v25 }
  0x22   :  { %288 = vmatmul.mubr.bf16.vlgmr.msra.gmra.mxu0 %v570_v26 }
  0x23   :  { %295 = vmatprep.mubr.bf16.mxu0 %v575_v27 }
  0x2a   :  { %296 = vmatmul.mubr.bf16.gmra.mxu0 %v577_v29 }
  0x2b   :  { %303 = vmatprep.mubr.bf16.mxu0 %v578_v30 }
  0x32   :  { %304 = vmatmul.mubr.bf16.gmra.mxu0 %v580_v31 }
  0x33   :  { %311 = vmatprep.mubr.bf16.mxu0 %v583_v32 }
  0x3a   :  { %312 = vmatmul.mubr.bf16.gmra.mxu0 %v585_v33 }
  0xd2   :  { %v544_v34 = vpop.f32.mrf.mxu1 }
  0xd4   :  { %v354_v35 = vpop.f32.mrf.mxu1 }
  0xd6   :  { %v545_v38 = vpop.f32.mrf.mxu1 }
  0xd8   :  { %v357_v43 = vpop.f32.mrf.mxu1 }
  0xda   :  { %v548_v50 = vpop.f32.mrf.mxu1 }
  0xdc   :  { %v370_v57 = vpop.f32.mrf.mxu1 }
  0xde   :  { %v549_v0 = vpop.f32.mrf.mxu1 }
  0xe0   :  { %v373_v7 = vpop.f32.mrf.mxu1 }
  0xe2   :  { %v505_v36 = vpop.f32.mrf.mxu0 }
  0xe4   :  { %v506_v37 = vpop.f32.mrf.mxu0 }
  0xe5   :  { %v507_v39 = vadd.f32 %v506_v37, %v505_v36 }
  0xe6   :  { %v508_v40 = vpop.f32.mrf.mxu0 }
  0xe7   :  { %v355_v41 = vadd.f32 %v507_v39, %v354_v35 }
  0xe8   :  { %v509_v42 = vpop.f32.mrf.mxu0 }
  0xe9   :  { %v385_v44 = vmax.f32 %v355_v41, 0.0  ;;  %v510_v45 = vadd.f32 %v509_v42, %v508_v40 }
  0xea   :  { %v511_v46 = vpop.f32.mrf.mxu0 }
  0xeb   :  { %v481_v47 = vpack.c.bf16 %v385_v44, %v385_v44  ;;  %v358_v48 = vadd.f32 %v510_v45, %v357_v43 }
  0xec   :  { %v512_v49 = vpop.f32.mrf.mxu0 }
  0xed   :  { %426 = vst.msk [vmem:[%s733_s2] sm:$0xf] %vm425_vm2, %v481_v47  ;;  %v386_v51 = vmax.f32 %v358_v48, 0.0  ;;  %v513_v52 = vadd.f32 %v512_v49, %v511_v46 }
  0xee   :  { %v514_v53 = vpop.f32.mrf.mxu0 }
  0xef   :  { %v482_v54 = vpack.c.bf16 %v386_v51, %v386_v51  ;;  %v363_v55 = vadd.f32 %v544_v34, %v513_v52 }
  0xf0   :  { %v515_v56 = vpop.f32.mrf.mxu0 }
  0xf1   :  { %427 = vst.msk [vmem:[%s733_s2 + $0x4] sm:$0xf] %vm425_vm2, %v482_v54  ;;  %v387_v58 = vmax.f32 %v363_v55, 0.0  ;;  %v516_v59 = vadd.f32 %v515_v56, %v514_v53 }
  0xf2   :  { %v517_v60 = vpop.f32.mrf.mxu0 }
  0xf3   :  { %v483_v61 = vpack.c.bf16 %v387_v58, %v387_v58  ;;  %v366_v62 = vadd.f32 %v545_v38, %v516_v59 }
  0xf4   :  { %v518_v63 = vpop.f32.mrf.mxu0 }
  0xf5   :  { %428 = vst.msk [vmem:[%s733_s2 + $0x8] sm:$0xf] %vm425_vm2, %v483_v61  ;;  %v388_v1 = vmax.f32 %v366_v62, 0.0  ;;  %v519_v2 = vadd.f32 %v518_v63, %v517_v60 }
  0xf6   :  { %v520_v3 = vpop.f32.mrf.mxu0 }
  0xf7   :  { %v484_v4 = vpack.c.bf16 %v388_v1, %v388_v1  ;;  %v371_v5 = vadd.f32 %v519_v2, %v370_v57 }
  0xf8   :  { %v521_v6 = vpop.f32.mrf.mxu0 }
  0xf9   :  { %429 = vst.msk [vmem:[%s733_s2 + $0xc] sm:$0xf] %vm425_vm2, %v484_v4  ;;  %v389_v8 = vmax.f32 %v371_v5, 0.0  ;;  %v522_v9 = vadd.f32 %v521_v6, %v520_v3 }
  0xfa   :  { %v523_v10 = vpop.f32.mrf.mxu0 }
  0xfb   :  { %v485_v11 = vpack.c.bf16 %v389_v8, %v389_v8  ;;  %v374_v12 = vadd.f32 %v522_v9, %v373_v7 }
  0xfc   :  { %v524_v13 = vpop.f32.mrf.mxu0 }
  0xfd   :  { %430 = vst.msk [vmem:[%s733_s2 + $0x10] sm:$0xf] %vm425_vm2, %v485_v11  ;;  %v390_v14 = vmax.f32 %v374_v12, 0.0  ;;  %v525_v15 = vadd.f32 %v524_v13, %v523_v10 }
  0xfe   :  { %v526_v16 = vpop.f32.mrf.mxu0 }
  0xff   :  { %v486_v17 = vpack.c.bf16 %v390_v14, %v390_v14  ;;  %v379_v18 = vadd.f32 %v548_v50, %v525_v15 }
 0x100   :  { %v527_v19 = vpop.f32.mrf.mxu0 }
 0x101   :  { %431 = vst.msk [vmem:[%s733_s2 + $0x14] sm:$0xf] %vm425_vm2, %v486_v17  ;;  %v391_v20 = vmax.f32 %v379_v18, 0.0  ;;  %v528_v21 = vadd.f32 %v527_v19, %v526_v16 }
 0x103   :  { %v487_v22 = vpack.c.bf16 %v391_v20, %v391_v20  ;;  %v382_v23 = vadd.f32 %v549_v0, %v528_v21 }
 0x105   :  { %432 = vst.msk [vmem:[%s733_s2 + $0x18] sm:$0xf] %vm425_vm2, %v487_v22  ;;  %v392_v24 = vmax.f32 %v382_v23, 0.0 }
 0x107   :  { %v488_v25 = vpack.c.bf16 %v392_v24, %v392_v24 }
 0x109   :  { %433 = vst.msk [vmem:[%s733_s2 + $0x1c] sm:$0xf] %vm425_vm2, %v488_v25 }

// kernel: _lambda_.15
= control target key start
LH: loop header
LB: loop body
LE: loop exit
PB: predicated region body
PF: predicated region fallthrough
CT: control target
= control target key end

     0   :  { %vm373_vm0 = vcmask 1040384   ;;  %v741_v34 = vmov 0   ;;  %vm366_vm1 = vcmask 531456   ;;  %vm546_vm2 = vcmask 257024   ;;  %s914_s0 = inlined_call_operand.vmem [shape: bf16[577,32], index: 0, kind: input, shape index: {}]   ;;  %s915_s1 = inlined_call_operand.vmem [shape: bf16[32,577], index: 1, kind: input, shape index: {}]   ;;  %s916_s2 = inlined_call_operand.vmem [shape: bf16[32,32], index: 2, kind: output, shape index: {}]  }
   0x1   :  { %v690_v0 = vld [vmem:[%s914_s0 + $0x78] sm:$0xff]   ;;  %v694_v4 = vld [vmem:[%s914_s0 + $0x70] sm:$0xff]   ;;  %v698_v8 = vld [vmem:[%s914_s0 + $0x68] sm:$0xff]   ;;  %v375_v35 = vsel %vm373_vm0, 65535, %v741_v34 }
   0x2   :  { %v691_v1 = vld [vmem:[%s914_s0 + $0xf8] sm:$0xff]   ;;  %612 = vmatprep.subr.bf16.mxu0 %v690_v0  ;;  %v695_v5 = vld [vmem:[%s914_s0 + $0xf0] sm:$0xff]   ;;  %v699_v9 = vld [vmem:[%s914_s0 + $0xe8] sm:$0xff]  }
   0x3   :  { %v692_v2 = vld [vmem:[%s914_s0 + $0x38] sm:$0xff]   ;;  %640 = vmatprep.subr.bf16.mxu1 %v691_v1  ;;  %v696_v6 = vld [vmem:[%s914_s0 + $0x30] sm:$0xff]   ;;  %v700_v10 = vld [vmem:[%s914_s0 + $0x28] sm:$0xff]  }
   0x4   :  { %v693_v3 = vld [vmem:[%s914_s0 + $0xb8] sm:$0xff]   ;;  %613 = vmatpush3.bf16.msra.mxu0 %v692_v2  ;;  %v697_v7 = vld [vmem:[%s914_s0 + $0xb0] sm:$0xff]   ;;  %v701_v11 = vld [vmem:[%s914_s0 + $0xa8] sm:$0xff]  }
   0x5   :  { %641 = vmatpush3.bf16.msra.mxu1 %v693_v3  ;;  %614 = vmatprep.subr.bf16.mxu0 %v694_v4  ;;  %v702_v12 = vld [vmem:[%s914_s0 + $0x60] sm:$0xff]   ;;  %v706_v16 = vld [vmem:[%s914_s0 + $0x58] sm:$0xff]   ;;  %v710_v20 = vld [vmem:[%s914_s0 + $0x50] sm:$0xff]  }
   0x6   :  { %642 = vmatprep.subr.bf16.mxu1 %v695_v5  ;;  %v703_v13 = vld [vmem:[%s914_s0 + $0xe0] sm:$0xff]   ;;  %v707_v17 = vld [vmem:[%s914_s0 + $0xd8] sm:$0xff]   ;;  %v711_v21 = vld [vmem:[%s914_s0 + $0xd0] sm:$0xff]  }
   0x7   :  { %v704_v14 = vld [vmem:[%s914_s0 + $0x20] sm:$0xff]   ;;  %v708_v18 = vld [vmem:[%s914_s0 + $0x18] sm:$0xff]   ;;  %v712_v22 = vld [vmem:[%s914_s0 + $0x10] sm:$0xff]  }
   0x8   :  { %615 = vmatpush3.bf16.msra.mxu0 %v696_v6  ;;  %v705_v15 = vld [vmem:[%s914_s0 + $0xa0] sm:$0xff]   ;;  %v709_v19 = vld [vmem:[%s914_s0 + $0x98] sm:$0xff]   ;;  %v713_v23 = vld [vmem:[%s914_s0 + $0x90] sm:$0xff]  }
   0x9   :  { %643 = vmatpush3.bf16.msra.mxu1 %v697_v7  ;;  %616 = vmatprep.subr.bf16.mxu0 %v698_v8  ;;  %v714_v24 = vld [vmem:[%s914_s0 + $0x48] sm:$0xff]   ;;  %v718_v28 = vld [vmem:[%s914_s0 + $0x40] sm:$0xff]   ;;  %v729_v39 = vld [vmem:[%s914_s0 + $0x118] sm:$0xff]  }
   0xa   :  { %644 = vmatprep.subr.bf16.mxu1 %v699_v9  ;;  %v715_v25 = vld [vmem:[%s914_s0 + $0xc8] sm:$0xff]   ;;  %v719_v29 = vld [vmem:[%s914_s0 + $0xc0] sm:$0xff]   ;;  %v736_v45 = vld [vmem:[%s914_s0 + $0x110] sm:$0xff]  }
   0xb   :  { %v716_v26 = vld [vmem:[%s914_s0 + $0x8] sm:$0xff]   ;;  %v720_v30 = vld [vmem:[%s914_s0] sm:$0xff]  }
   0xc   :  { %617 = vmatpush3.bf16.msra.mxu0 %v700_v10  ;;  %v717_v27 = vld [vmem:[%s914_s0 + $0x88] sm:$0xff]   ;;  %v721_v31 = vld [vmem:[%s914_s0 + $0x80] sm:$0xff]  }
   0xd   :  { %645 = vmatpush3.bf16.msra.mxu1 %v701_v11  ;;  %618 = vmatprep.subr.bf16.mxu0 %v702_v12  ;;  %v722_v32 = vld [vmem:[%s915_s1] ss:$20 sps:$4 sm:$0xff]   ;;  %v724_v33 = vld [vmem:[%s915_s1 + $0x4] ss:$20 sps:$4 sm:$0xff]   ;;  %v725_v36 = vld [vmem:[%s915_s1 + $0x8] ss:$20 sps:$4 sm:$0xff]  }
   0xe   :  { %646 = vmatprep.subr.bf16.mxu1 %v703_v13  ;;  %v727_v37 = vld [vmem:[%s915_s1 + $0xc] ss:$20 sps:$4 sm:$0xff]   ;;  %411 = vmatprep.mubr.bf16.mxu0 %v724_v33  ;;  %v732_v42 = vld [vmem:[%s915_s1 + $0x34] ss:$20 sps:$4 sm:$0xff]   ;;  %v735_v44 = vld [vmem:[%s915_s1 + $0x30] ss:$20 sps:$4 sm:$0xff]  }
   0xf   :  { %v728_v38 = vld [vmem:[%s914_s0 + $0x120] ss:$0 sps:$4 sm:$0x11]   ;;  %460 = vmatprep.mubr.bf16.mxu1 %v727_v37  ;;  %v734_v43 = vld [vmem:[%s915_s1 + $0x28] ss:$20 sps:$4 sm:$0xff]  }
  0x10   :  { %619 = vmatpush3.bf16.msra.mxu0 %v704_v14  ;;  %v377_v40 = vand.u32 %v728_v38, %v375_v35  ;;  %v730_v41 = vld [vmem:[%s915_s1 + $0x2c] ss:$20 sps:$4 sm:$0xff]   ;;  %v739_v46 = vld [vmem:[%s915_s1 + $0x10] ss:$20 sps:$4 sm:$0xff]  }
  0x11   :  { %647 = vmatpush3.bf16.msra.mxu1 %v705_v15  ;;  %620 = vmatprep.subr.bf16.mxu0 %v706_v16  ;;  %v737_v47 = vld [vmem:[%s914_s0 + $0x108] sm:$0xff]   ;;  %v738_v48 = vld [vmem:[%s914_s0 + $0x100] sm:$0xff]  }
  0x12   :  { %648 = vmatprep.subr.bf16.mxu1 %v707_v17  ;;  %v740_v49 = vld [vmem:[%s915_s1 + $0x38] ss:$20 sps:$4 sm:$0xff]  }
  0x14   :  { %621 = vmatpush3.bf16.msra.mxu0 %v708_v18 }
  0x15   :  { %649 = vmatpush3.bf16.msra.mxu1 %v709_v19  ;;  %622 = vmatprep.subr.bf16.mxu0 %v710_v20 }
  0x16   :  { %650 = vmatprep.subr.bf16.mxu1 %v711_v21 }
  0x18   :  { %623 = vmatpush3.bf16.msra.mxu0 %v712_v22 }
  0x19   :  { %651 = vmatpush3.bf16.msra.mxu1 %v713_v23  ;;  %624 = vmatprep.subr.bf16.mxu0 %v714_v24 }
  0x1a   :  { %652 = vmatprep.subr.bf16.mxu1 %v715_v25 }
  0x1c   :  { %625 = vmatpush3.bf16.msra.mxu0 %v716_v26 }
  0x1d   :  { %653 = vmatpush3.bf16.msra.mxu1 %v717_v27  ;;  %626 = vmatprep.subr.bf16.mxu0 %v718_v28 }
  0x1e   :  { %654 = vmatprep.subr.bf16.mxu1 %v719_v29 }
  0x20   :  { %627 = vmatpush3.bf16.msra.mxu0 %v720_v30 }
  0x21   :  { %655 = vmatpush3.bf16.msra.mxu1 %v721_v31  ;;  %675 = vmatprep.subr.bf16.mxu0 %v377_v40 }
  0x23   :  { %412 = vmatmul.mubr.bf16.vlgmr.msra.gmra.mxu0 %v722_v32 }
  0x24   :  { %461 = vmatmul.mubr.bf16.vlgmr.msra.gmra.mxu1 %v725_v36  ;;  %419 = vmatprep.mubr.bf16.mxu0 %v730_v41 }
  0x25   :  { %676 = vmatpush3.bf16.msra.mxu0 %v377_v40  ;;  %468 = vmatprep.mubr.bf16.mxu1 %v732_v42 }
  0x26   :  { %677 = vmatprep.subr.bf16.mxu0 %v729_v39 }
  0x29   :  { %678 = vmatpush3.bf16.msra.mxu0 %v729_v39 }
  0x2a   :  { %679 = vmatprep.subr.bf16.mxu0 %v736_v45 }
  0x2b   :  { %420 = vmatmul.mubr.bf16.gmra.mxu0 %v734_v43 }
  0x2c   :  { %469 = vmatmul.mubr.bf16.gmra.mxu1 %v735_v44  ;;  %685 = vmatprep.mubr.msk.bf16.mxu0 %vm366_vm1, %v739_v46 }
  0x2d   :  { %680 = vmatpush3.bf16.msra.mxu0 %v736_v45 }
  0x2e   :  { %681 = vmatprep.subr.bf16.mxu0 %v737_v47 }
  0x31   :  { %682 = vmatpush3.bf16.msra.mxu0 %v737_v47 }
  0x32   :  { %683 = vmatprep.subr.bf16.mxu0 %v738_v48 }
  0x35   :  { %684 = vmatpush3.bf16.msra.mxu0 %v738_v48 }
  0x38   :  { %686 = vmatmul.mubr.msk.bf16.vlgmr.msra.gmra.mxu0 %vm366_vm1, %v740_v49 }
  0xe3   :  { %v628_v50 = vpop.f32.mrf.mxu0 }
  0xe4   :  { %v656_v51 = vpop.f32.mrf.mxu1 }
  0xe5   :  { %v629_v52 = vpop.f32.mrf.mxu0 }
  0xe6   :  { %v657_v53 = vpop.f32.mrf.mxu1  ;;  %v630_v4 = vadd.f32 %v629_v52, %v628_v50 }
  0xe7   :  { %v631_v54 = vpop.f32.mrf.mxu0  ;;  %v658_v5 = vadd.f32 %v657_v53, %v656_v51 }
  0xe8   :  { %v659_v55 = vpop.f32.mrf.mxu1 }
  0xe9   :  { %v632_v56 = vpop.f32.mrf.mxu0  ;;  %v463_v13 = vadd.f32 %v658_v5, %v630_v4 }
  0xea   :  { %v660_v57 = vpop.f32.mrf.mxu1  ;;  %v633_v10 = vadd.f32 %v632_v56, %v631_v54 }
  0xeb   :  { %v634_v58 = vpop.f32.mrf.mxu0  ;;  %v661_v11 = vadd.f32 %v660_v57, %v659_v55 }
  0xec   :  { %v662_v59 = vpop.f32.mrf.mxu1 }
  0xed   :  { %v635_v60 = vpop.f32.mrf.mxu0  ;;  %v466_v22 = vadd.f32 %v661_v11, %v633_v10 }
  0xee   :  { %v663_v61 = vpop.f32.mrf.mxu1  ;;  %v636_v0 = vadd.f32 %v635_v60, %v634_v58 }
  0xef   :  { %v637_v62 = vpop.f32.mrf.mxu0  ;;  %v664_v1 = vadd.f32 %v663_v61, %v662_v59 }
  0xf0   :  { %v665_v63 = vpop.f32.mrf.mxu1 }
  0xf1   :  { %v638_v2 = vpop.f32.mrf.mxu0  ;;  %v471_v8 = vadd.f32 %v664_v1, %v636_v0 }
  0xf2   :  { %v666_v3 = vpop.f32.mrf.mxu1  ;;  %v639_v6 = vadd.f32 %v638_v2, %v637_v62 }
  0xf3   :  { %v667_v7 = vadd.f32 %v666_v3, %v665_v63 }
  0xf5   :  { %v474_v17 = vadd.f32 %v667_v7, %v639_v6 }
  0xf8   :  { %v687_v9 = vpop.f32.mrf.mxu0 }
  0xf9   :  { %v520_v12 = vadd.f32 %v687_v9, %v471_v8 }
  0xfa   :  { %v511_v14 = vpop.f32.mrf.mxu0 }
  0xfb   :  { %v528_v15 = vmax.f32 %v520_v12, 0.0  ;;  %v512_v16 = vadd.f32 %v511_v14, %v463_v13 }
  0xfc   :  { %v688_v18 = vpop.f32.mrf.mxu0 }
  0xfd   :  { %v610_v19 = vpack.c.bf16 %v528_v15, %v528_v15  ;;  %v526_v20 = vmax.f32 %v512_v16, 0.0  ;;  %v523_v21 = vadd.f32 %v688_v18, %v474_v17 }
  0xfe   :  { %v514_v23 = vpop.f32.mrf.mxu0 }
  0xff   :  { %549 = vst.msk [vmem:[%s916_s2 + $0x8] sm:$0xf] %vm546_vm2, %v610_v19  ;;  %v608_v24 = vpack.c.bf16 %v526_v20, %v526_v20  ;;  %v529_v25 = vmax.f32 %v523_v21, 0.0  ;;  %v515_v26 = vadd.f32 %v514_v23, %v466_v22 }
 0x101   :  { %547 = vst.msk [vmem:[%s916_s2] sm:$0xf] %vm546_vm2, %v608_v24  ;;  %v611_v27 = vpack.c.bf16 %v529_v25, %v529_v25  ;;  %v527_v28 = vmax.f32 %v515_v26, 0.0 }
 0x103   :  { %550 = vst.msk [vmem:[%s916_s2 + $0xc] sm:$0xf] %vm546_vm2, %v611_v27  ;;  %v609_v29 = vpack.c.bf16 %v527_v28, %v527_v28 }
 0x105   :  { %548 = vst.msk [vmem:[%s916_s2 + $0x4] sm:$0xf] %vm546_vm2, %v609_v29 }

// kernel: _lambda_.18
= control target key start
LH: loop header
LB: loop body
LE: loop exit
PB: predicated region body
PF: predicated region fallthrough
CT: control target
= control target key end

     0   :  { %v3014_v22 = vmov 1966171168   ;;  %v417_v24 = vlaneseq  ;;  %vm1781_vm0 = vcmask 1040384   ;;  %vm3017_vm1 = vmmov 0   ;;  %s3675_s0 = inlined_call_operand.vmem [shape: bf16[3137,32], index: 0, kind: input, shape index: {}]   ;;  %s3676_s1 = inlined_call_operand.vmem [shape: bf16[1,3137], index: 1, kind: input, shape index: {}]   ;;  %s3677_s2 = inlined_call_operand.vmem [shape: f32[1,32], index: 2, kind: output, shape index: {}]  }
   0x1   :  { %v2810_v0 = vld [vmem:[%s3675_s0 + $0x78] sm:$0xff]   ;;  %v2814_v4 = vld [vmem:[%s3675_s0 + $0x70] sm:$0xff]   ;;  %v2818_v8 = vld [vmem:[%s3675_s0 + $0x68] sm:$0xff]   ;;  %v415_v23 = vunpack.c.l.s4 %v3014_v22  ;;  %vm1777_vm2 = vcmask 531456   ;;  %vm2317_vm3 = vcmask 253952  }
   0x2   :  { %v2811_v1 = vld [vmem:[%s3675_s0 + $0xf8] sm:$0xff]   ;;  %2522 = vmatprep.subr.bf16.mxu0 %v2810_v0  ;;  %v2815_v5 = vld [vmem:[%s3675_s0 + $0xf0] sm:$0xff]   ;;  %v2819_v9 = vld [vmem:[%s3675_s0 + $0xe8] sm:$0xff]   ;;  %v418_v30 = vshrl.u32 %v417_v24, 7 }
   0x3   :  { %v2812_v2 = vld [vmem:[%s3675_s0 + $0x38] sm:$0xff]   ;;  %2544 = vmatprep.subr.bf16.mxu1 %v2811_v1  ;;  %v2816_v6 = vld [vmem:[%s3675_s0 + $0x30] sm:$0xff]   ;;  %v2820_v10 = vld [vmem:[%s3675_s0 + $0x28] sm:$0xff]   ;;  %v416_v29 = vunpack.c.0.s8 %v415_v23 }
   0x4   :  { %v2813_v3 = vld [vmem:[%s3675_s0 + $0xb8] sm:$0xff]   ;;  %2523 = vmatpush3.bf16.msra.mxu0 %v2812_v2  ;;  %v2817_v7 = vld [vmem:[%s3675_s0 + $0xb0] sm:$0xff]   ;;  %v2821_v11 = vld [vmem:[%s3675_s0 + $0xa8] sm:$0xff]  }
   0x5   :  { %2545 = vmatpush3.bf16.msra.mxu1 %v2813_v3  ;;  %2524 = vmatprep.subr.bf16.mxu0 %v2814_v4  ;;  %v2822_v12 = vld [vmem:[%s3675_s0 + $0x60] sm:$0xff]   ;;  %v2826_v16 = vld [vmem:[%s3675_s0 + $0x58] sm:$0xff]   ;;  %v2830_v20 = vld [vmem:[%s3675_s0 + $0x50] sm:$0xff]   ;;  %v3123_v35 = vsub.s32 %v416_v29, %v418_v30 }
   0x6   :  { %2546 = vmatprep.subr.bf16.mxu1 %v2815_v5  ;;  %v2823_v13 = vld [vmem:[%s3675_s0 + $0xe0] sm:$0xff]   ;;  %v2827_v17 = vld [vmem:[%s3675_s0 + $0xd8] sm:$0xff]   ;;  %v2831_v21 = vld [vmem:[%s3675_s0 + $0xd0] sm:$0xff]  }
   0x7   :  { %v2824_v14 = vld [vmem:[%s3675_s0 + $0x20] sm:$0xff]   ;;  %v2828_v18 = vld [vmem:[%s3675_s0 + $0x18] sm:$0xff]   ;;  %v2832_v25 = vld [vmem:[%s3675_s0 + $0x10] sm:$0xff]  }
   0x8   :  { %2525 = vmatpush3.bf16.msra.mxu0 %v2816_v6  ;;  %v2825_v15 = vld [vmem:[%s3675_s0 + $0xa0] sm:$0xff]   ;;  %v2829_v19 = vld [vmem:[%s3675_s0 + $0x98] sm:$0xff]   ;;  %v2833_v26 = vld [vmem:[%s3675_s0 + $0x90] sm:$0xff]  }
   0x9   :  { %2547 = vmatpush3.bf16.msra.mxu1 %v2817_v7  ;;  %2526 = vmatprep.subr.bf16.mxu0 %v2818_v8  ;;  %v2834_v27 = vld [vmem:[%s3675_s0 + $0x48] sm:$0xff]   ;;  %v2838_v33 = vld [vmem:[%s3675_s0 + $0x40] sm:$0xff]   ;;  %v2843_v41 = vld [vmem:[%s3675_s0 + $0x178] sm:$0xff]  }
   0xa   :  { %2548 = vmatprep.subr.bf16.mxu1 %v2819_v9  ;;  %v2835_v28 = vld [vmem:[%s3675_s0 + $0xc8] sm:$0xff]   ;;  %v2839_v34 = vld [vmem:[%s3675_s0 + $0xc0] sm:$0xff]   ;;  %v2845_v44 = vld [vmem:[%s3675_s0 + $0x1f8] sm:$0xff]  }
   0xb   :  { %v2836_v31 = vld [vmem:[%s3675_s0 + $0x8] sm:$0xff]   ;;  %v2840_v36 = vld [vmem:[%s3675_s0] sm:$0xff]   ;;  %v2844_v47 = vld [vmem:[%s3675_s0 + $0x138] sm:$0xff]  }
   0xc   :  { %2527 = vmatpush3.bf16.msra.mxu0 %v2820_v10  ;;  %v2837_v32 = vld [vmem:[%s3675_s0 + $0x88] sm:$0xff]   ;;  %v2841_v37 = vld [vmem:[%s3675_s0 + $0x80] sm:$0xff]   ;;  %v2847_v50 = vld [vmem:[%s3675_s0 + $0x170] sm:$0xff]  }
   0xd   :  { %2549 = vmatpush3.bf16.msra.mxu1 %v2821_v11  ;;  %2528 = vmatprep.subr.bf16.mxu0 %v2822_v12  ;;  %v12_v38 = vld [vmem:[%s3676_s1] sm:$0xff]  ;;  %v2846_v52 = vld [vmem:[%s3675_s0 + $0x1b8] sm:$0xff]   ;;  %v2849_v54 = vld [vmem:[%s3675_s0 + $0x1f0] sm:$0xff]  }
   0xe   :  { %2550 = vmatprep.subr.bf16.mxu1 %v2823_v13  ;;  %v413_v39 = vcombine.high %v12_v38, %v12_v38  ;;  %v420_v40 = vrot.slane %v12_v38, %v3123_v35  ;;  %v2848_v55 = vld [vmem:[%s3675_s0 + $0x130] sm:$0xff]   ;;  %v2851_v57 = vld [vmem:[%s3675_s0 + $0x168] sm:$0xff]   ;;  %v2855_v61 = vld [vmem:[%s3675_s0 + $0x160] sm:$0xff]  }
   0xf   :  { %v2850_v58 = vld [vmem:[%s3675_s0 + $0x1b0] sm:$0xff]   ;;  %v2853_v59 = vld [vmem:[%s3675_s0 + $0x1e8] sm:$0xff]   ;;  %v2857_v63 = vld [vmem:[%s3675_s0 + $0x1e0] sm:$0xff]  }
  0x10   :  { %2529 = vmatpush3.bf16.msra.mxu0 %v2824_v14  ;;  %v428_v42 = vcombine.high %v420_v40, %v420_v40  ;;  %v436_v43 = vrot.slane %v420_v40, %v3123_v35  ;;  %v3143_v45 = vrot.slane %v413_v39, %v3123_v35  ;;  %v2852_v60 = vld [vmem:[%s3675_s0 + $0x128] sm:$0xff]   ;;  %v2856_v0 = vld [vmem:[%s3675_s0 + $0x120] sm:$0xff]   ;;  %v2859_v1 = vld [vmem:[%s3675_s0 + $0x158] sm:$0xff]  }
  0x11   :  { %2551 = vmatpush3.bf16.msra.mxu1 %v2825_v15  ;;  %2530 = vmatprep.subr.bf16.mxu0 %v2826_v16  ;;  %v2854_v62 = vld [vmem:[%s3675_s0 + $0x1a8] sm:$0xff]   ;;  %v2858_v2 = vld [vmem:[%s3675_s0 + $0x1a0] sm:$0xff]   ;;  %v2861_v3 = vld [vmem:[%s3675_s0 + $0x1d8] sm:$0xff]  }
  0x12   :  { %2552 = vmatprep.subr.bf16.mxu1 %v2827_v17  ;;  %v450_v46 = vrot.slane %v428_v42, %v3123_v35  ;;  %v429_v48 = vcombine.high %v3143_v45, %v3143_v45  ;;  %v458_v49 = vcombine.high %v436_v43, %v436_v43  ;;  %v2860_v4 = vld [vmem:[%s3675_s0 + $0x118] sm:$0xff]   ;;  %v2863_v5 = vld [vmem:[%s3675_s0 + $0x150] sm:$0xff]   ;;  %v2867_v9 = vld [vmem:[%s3675_s0 + $0x148] sm:$0xff]   ;;  %v443_v17 = vrot.slane %v3143_v45, %v3123_v35 }
  0x13   :  { %v2862_v6 = vld [vmem:[%s3675_s0 + $0x198] sm:$0xff]   ;;  %v2865_v7 = vld [vmem:[%s3675_s0 + $0x1d0] sm:$0xff]   ;;  %v2869_v11 = vld [vmem:[%s3675_s0 + $0x1c8] sm:$0xff]  }
  0x14   :  { %2531 = vmatpush3.bf16.msra.mxu0 %v2828_v18  ;;  %1819 = vmatprep.mubr.bf16.mxu0 %v450_v46  ;;  %v460_v51 = vcombine.high %v450_v46, %v450_v46  ;;  %v457_v53 = vrot.slane %v429_v48, %v3123_v35  ;;  %v2864_v8 = vld [vmem:[%s3675_s0 + $0x110] sm:$0xff]   ;;  %v2868_v12 = vld [vmem:[%s3675_s0 + $0x108] sm:$0xff]   ;;  %v2871_v13 = vld [vmem:[%s3675_s0 + $0x140] sm:$0xff]   ;;  %v459_v22 = vcombine.high %v443_v17, %v443_v17 }
  0x15   :  { %2553 = vmatpush3.bf16.msra.mxu1 %v2829_v19  ;;  %2532 = vmatprep.subr.bf16.mxu0 %v2830_v20  ;;  %v2866_v10 = vld [vmem:[%s3675_s0 + $0x190] sm:$0xff]   ;;  %v2870_v14 = vld [vmem:[%s3675_s0 + $0x188] sm:$0xff]   ;;  %v2873_v15 = vld [vmem:[%s3675_s0 + $0x1c0] sm:$0xff]  }
  0x16   :  { %2554 = vmatprep.subr.bf16.mxu1 %v2831_v21  ;;  %1859 = vmatprep.mubr.bf16.mxu1 %v460_v51  ;;  %v461_v56 = vcombine.high %v457_v53, %v457_v53  ;;  %v2872_v16 = vld [vmem:[%s3675_s0 + $0x100] sm:$0xff]   ;;  %v2875_v18 = vld [vmem:[%s3675_s0 + $0x278] sm:$0xff]   ;;  %v2879_v23 = vld [vmem:[%s3675_s0 + $0x270] sm:$0xff]  }
  0x17   :  { %v2874_v19 = vld [vmem:[%s3675_s0 + $0x180] sm:$0xff]   ;;  %v2877_v20 = vld [vmem:[%s3675_s0 + $0x2f8] sm:$0xff]   ;;  %v2885_v29 = vld [vmem:[%s3675_s0 + $0x2e8] sm:$0xff]  }
  0x18   :  { %2533 = vmatpush3.bf16.msra.mxu0 %v2832_v25  ;;  %v2876_v21 = vld [vmem:[%s3675_s0 + $0x238] sm:$0xff]   ;;  %v2881_v25 = vld [vmem:[%s3675_s0 + $0x2f0] sm:$0xff]   ;;  %v2884_v30 = vld [vmem:[%s3675_s0 + $0x228] sm:$0xff]  }
  0x19   :  { %2555 = vmatpush3.bf16.msra.mxu1 %v2833_v26  ;;  %2534 = vmatprep.subr.bf16.mxu0 %v2834_v27  ;;  %v2878_v24 = vld [vmem:[%s3675_s0 + $0x2b8] sm:$0xff]   ;;  %v2880_v26 = vld [vmem:[%s3675_s0 + $0x230] sm:$0xff]   ;;  %v2883_v27 = vld [vmem:[%s3675_s0 + $0x268] sm:$0xff]  }
  0x1a   :  { %2556 = vmatprep.subr.bf16.mxu1 %v2835_v28  ;;  %v2882_v28 = vld [vmem:[%s3675_s0 + $0x2b0] sm:$0xff]   ;;  %v2893_v38 = vld [vmem:[%s3675_s0 + $0x2d8] sm:$0xff]   ;;  %v2901_v46 = vld [vmem:[%s3675_s0 + $0x2c8] sm:$0xff]  }
  0x1b   :  { %v2892_v39 = vld [vmem:[%s3675_s0 + $0x218] sm:$0xff]   ;;  %v2895_v40 = vld [vmem:[%s3675_s0 + $0x250] sm:$0xff]   ;;  %v2903_v48 = vld [vmem:[%s3675_s0 + $0x240] sm:$0xff]  }
  0x1c   :  { %2535 = vmatpush3.bf16.msra.mxu0 %v2836_v31  ;;  %v2887_v31 = vld [vmem:[%s3675_s0 + $0x260] sm:$0xff]   ;;  %v2897_v42 = vld [vmem:[%s3675_s0 + $0x2d0] sm:$0xff]  }
  0x1d   :  { %2557 = vmatpush3.bf16.msra.mxu1 %v2837_v32  ;;  %2536 = vmatprep.subr.bf16.mxu0 %v2838_v33  ;;  %v2886_v32 = vld [vmem:[%s3675_s0 + $0x2a8] sm:$0xff]   ;;  %v2889_v33 = vld [vmem:[%s3675_s0 + $0x2e0] sm:$0xff]   ;;  %v2898_v45 = vld [vmem:[%s3675_s0 + $0x290] sm:$0xff]  }
  0x1e   :  { %2558 = vmatprep.subr.bf16.mxu1 %v2839_v34  ;;  %v2888_v34 = vld [vmem:[%s3675_s0 + $0x220] sm:$0xff]  }
  0x1f   :  { %v2905_v51 = vld [vmem:[%s3675_s0 + $0x2c0] sm:$0xff]  }
  0x20   :  { %2537 = vmatpush3.bf16.msra.mxu0 %v2840_v36  ;;  %v2891_v36 = vld [vmem:[%s3675_s0 + $0x258] sm:$0xff]  }
  0x21   :  { %2559 = vmatpush3.bf16.msra.mxu1 %v2841_v37  ;;  %2566 = vmatprep.subr.bf16.mxu0 %v2843_v41  ;;  %v2890_v37 = vld [vmem:[%s3675_s0 + $0x2a0] sm:$0xff]   ;;  %v2894_v41 = vld [vmem:[%s3675_s0 + $0x298] sm:$0xff]  }
  0x22   :  { %2588 = vmatprep.subr.bf16.mxu1 %v2845_v44  ;;  %v2899_v44 = vld [vmem:[%s3675_s0 + $0x248] sm:$0xff]  }
  0x23   :  { %1820 = vmatmul.mubr.bf16.vlgmr.msra.gmra.mxu0 %v436_v43  ;;  %v2896_v43 = vld [vmem:[%s3675_s0 + $0x210] sm:$0xff]  }
  0x24   :  { %2567 = vmatpush3.bf16.msra.mxu0 %v2844_v47  ;;  %1860 = vmatmul.mubr.bf16.vlgmr.msra.gmra.mxu1 %v458_v49  ;;  %v2900_v47 = vld [vmem:[%s3675_s0 + $0x208] sm:$0xff]  }
  0x25   :  { %2568 = vmatprep.subr.bf16.mxu0 %v2847_v50  ;;  %2589 = vmatpush3.bf16.msra.mxu1 %v2846_v52  ;;  %v2902_v49 = vld [vmem:[%s3675_s0 + $0x288] sm:$0xff]  }
  0x26   :  { %1899 = vmatprep.mubr.bf16.mxu0 %v457_v53  ;;  %2590 = vmatprep.subr.bf16.mxu1 %v2849_v54  ;;  %v13_v50 = vld [vmem:[%s3676_s1 + $0x8] sm:$0xff]  ;;  %v2904_v54 = vld [vmem:[%s3675_s0 + $0x200] sm:$0xff]  }
  0x27   :  { %1939 = vmatprep.mubr.bf16.mxu1 %v461_v56  ;;  %v469_v52 = vrot.slane %v13_v50, %v3123_v35  ;;  %v462_v53 = vcombine.high %v13_v50, %v13_v50  ;;  %v2953_v50 = vld [vmem:[%s3675_s0 + $0x420] sm:$0xff]  }
  0x28   :  { %2569 = vmatpush3.bf16.msra.mxu0 %v2848_v55 }
  0x29   :  { %2570 = vmatprep.subr.bf16.mxu0 %v2851_v57  ;;  %2591 = vmatpush3.bf16.msra.mxu1 %v2850_v58  ;;  %v477_v55 = vcombine.high %v469_v52, %v469_v52  ;;  %v485_v56 = vrot.slane %v469_v52, %v3123_v35  ;;  %v2907_v57 = vld [vmem:[%s3675_s0 + $0x378] sm:$0xff]   ;;  %v3343_v58 = vrot.slane %v462_v53, %v3123_v35  ;;  %v2955_v52 = vld [vmem:[%s3675_s0 + $0x4a0] sm:$0xff]  }
  0x2a   :  { %2592 = vmatprep.subr.bf16.mxu1 %v2853_v59  ;;  %v2906_v59 = vld [vmem:[%s3675_s0 + $0x280] sm:$0xff]   ;;  %v2958_v53 = vld [vmem:[%s3675_s0 + $0x4d8] sm:$0xff]  }
  0x2c   :  { %2571 = vmatpush3.bf16.msra.mxu0 %v2852_v60  ;;  %v499_v60 = vrot.slane %v477_v55, %v3123_v35  ;;  %v2960_v55 = vld [vmem:[%s3675_s0 + $0x450] sm:$0xff]  }
  0x2d   :  { %2572 = vmatprep.subr.bf16.mxu0 %v2855_v61  ;;  %2593 = vmatpush3.bf16.msra.mxu1 %v2854_v62  ;;  %v2908_v61 = vld [vmem:[%s3675_s0 + $0x338] sm:$0xff]   ;;  %v478_v62 = vcombine.high %v3343_v58, %v3343_v58 }
  0x2e   :  { %2594 = vmatprep.subr.bf16.mxu1 %v2857_v63  ;;  %v2909_v63 = vld [vmem:[%s3675_s0 + $0x3f8] sm:$0xff]  }
  0x30   :  { %2573 = vmatpush3.bf16.msra.mxu0 %v2856_v0  ;;  %v509_v0 = vcombine.high %v499_v60, %v499_v60 }
  0x31   :  { %2574 = vmatprep.subr.bf16.mxu0 %v2859_v1  ;;  %2595 = vmatpush3.bf16.msra.mxu1 %v2858_v2  ;;  %v507_v1 = vcombine.high %v485_v56, %v485_v56  ;;  %v2911_v2 = vld [vmem:[%s3675_s0 + $0x370] sm:$0xff]  }
  0x32   :  { %2596 = vmatprep.subr.bf16.mxu1 %v2861_v3  ;;  %v506_v3 = vrot.slane %v478_v62, %v3123_v35  ;;  %v2965_v62 = vld [vmem:[%s3675_s0 + $0x408] sm:$0xff]  }
  0x34   :  { %2575 = vmatpush3.bf16.msra.mxu0 %v2860_v4  ;;  %v2910_v4 = vld [vmem:[%s3675_s0 + $0x3b8] sm:$0xff]  }
  0x35   :  { %2576 = vmatprep.subr.bf16.mxu0 %v2863_v5  ;;  %2597 = vmatpush3.bf16.msra.mxu1 %v2862_v6  ;;  %v2913_v5 = vld [vmem:[%s3675_s0 + $0x3f0] sm:$0xff]   ;;  %v510_v6 = vcombine.high %v506_v3, %v506_v3 }
  0x36   :  { %2598 = vmatprep.subr.bf16.mxu1 %v2865_v7  ;;  %v2912_v7 = vld [vmem:[%s3675_s0 + $0x330] sm:$0xff]  }
  0x38   :  { %2577 = vmatpush3.bf16.msra.mxu0 %v2864_v8  ;;  %v2915_v8 = vld [vmem:[%s3675_s0 + $0x368] sm:$0xff]  }
  0x39   :  { %2578 = vmatprep.subr.bf16.mxu0 %v2867_v9  ;;  %2599 = vmatpush3.bf16.msra.mxu1 %v2866_v10  ;;  %v2914_v9 = vld [vmem:[%s3675_s0 + $0x3b0] sm:$0xff]   ;;  %v2917_v10 = vld [vmem:[%s3675_s0 + $0x3e8] sm:$0xff]  }
  0x3a   :  { %2600 = vmatprep.subr.bf16.mxu1 %v2869_v11  ;;  %v2916_v11 = vld [vmem:[%s3675_s0 + $0x328] sm:$0xff]  }
  0x3c   :  { %2579 = vmatpush3.bf16.msra.mxu0 %v2868_v12  ;;  %v2919_v12 = vld [vmem:[%s3675_s0 + $0x360] sm:$0xff]  }
  0x3d   :  { %2580 = vmatprep.subr.bf16.mxu0 %v2871_v13  ;;  %2601 = vmatpush3.bf16.msra.mxu1 %v2870_v14  ;;  %v2918_v13 = vld [vmem:[%s3675_s0 + $0x3a8] sm:$0xff]   ;;  %v2921_v14 = vld [vmem:[%s3675_s0 + $0x3e0] sm:$0xff]  }
  0x3e   :  { %2602 = vmatprep.subr.bf16.mxu1 %v2873_v15  ;;  %v2920_v15 = vld [vmem:[%s3675_s0 + $0x320] sm:$0xff]  }
  0x40   :  { %2581 = vmatpush3.bf16.msra.mxu0 %v2872_v16  ;;  %v2923_v16 = vld [vmem:[%s3675_s0 + $0x358] sm:$0xff]  }
  0x41   :  { %2610 = vmatprep.subr.bf16.mxu0 %v2875_v18  ;;  %2603 = vmatpush3.bf16.msra.mxu1 %v2874_v19  ;;  %v2925_v18 = vld [vmem:[%s3675_s0 + $0x3d8] sm:$0xff]  }
  0x42   :  { %2632 = vmatprep.subr.bf16.mxu1 %v2877_v20  ;;  %v2924_v19 = vld [vmem:[%s3675_s0 + $0x318] sm:$0xff]   ;;  %v2927_v20 = vld [vmem:[%s3675_s0 + $0x350] sm:$0xff]  }
  0x43   :  { %1900 = vmatmul.mubr.bf16.vlgmr.msra.gmra.mxu0 %v443_v17  ;;  %v2922_v17 = vld [vmem:[%s3675_s0 + $0x3a0] sm:$0xff]  }
  0x44   :  { %2611 = vmatpush3.bf16.msra.mxu0 %v2876_v21  ;;  %1940 = vmatmul.mubr.bf16.vlgmr.msra.gmra.mxu1 %v459_v22  ;;  %v2926_v21 = vld [vmem:[%s3675_s0 + $0x398] sm:$0xff]   ;;  %v2929_v22 = vld [vmem:[%s3675_s0 + $0x3d0] sm:$0xff]  }
  0x45   :  { %2612 = vmatprep.subr.bf16.mxu0 %v2879_v23  ;;  %2633 = vmatpush3.bf16.msra.mxu1 %v2878_v24  ;;  %v2928_v23 = vld [vmem:[%s3675_s0 + $0x310] sm:$0xff]   ;;  %v2931_v24 = vld [vmem:[%s3675_s0 + $0x348] sm:$0xff]  }
  0x46   :  { %2634 = vmatprep.subr.bf16.mxu1 %v2881_v25  ;;  %1979 = vmatprep.mubr.bf16.mxu0 %v499_v60  ;;  %v2930_v25 = vld [vmem:[%s3675_s0 + $0x390] sm:$0xff]  }
  0x47   :  { %2019 = vmatprep.mubr.bf16.mxu1 %v509_v0  ;;  %v2963_v60 = vld [vmem:[%s3675_s0 + $0x490] sm:$0xff]   ;;  %v2967_v0 = vld [vmem:[%s3675_s0 + $0x488] sm:$0xff]  }
  0x48   :  { %2613 = vmatpush3.bf16.msra.mxu0 %v2880_v26  ;;  %v2933_v26 = vld [vmem:[%s3675_s0 + $0x3c8] sm:$0xff]  }
  0x49   :  { %2614 = vmatprep.subr.bf16.mxu0 %v2883_v27  ;;  %2635 = vmatpush3.bf16.msra.mxu1 %v2882_v28  ;;  %v2932_v27 = vld [vmem:[%s3675_s0 + $0x308] sm:$0xff]   ;;  %v2935_v28 = vld [vmem:[%s3675_s0 + $0x340] sm:$0xff]  }
  0x4a   :  { %2636 = vmatprep.subr.bf16.mxu1 %v2885_v29  ;;  %v2934_v29 = vld [vmem:[%s3675_s0 + $0x388] sm:$0xff]  }
  0x4c   :  { %2615 = vmatpush3.bf16.msra.mxu0 %v2884_v30  ;;  %v2937_v30 = vld [vmem:[%s3675_s0 + $0x3c0] sm:$0xff]  }
  0x4d   :  { %2616 = vmatprep.subr.bf16.mxu0 %v2887_v31  ;;  %2637 = vmatpush3.bf16.msra.mxu1 %v2886_v32  ;;  %v2936_v31 = vld [vmem:[%s3675_s0 + $0x300] sm:$0xff]   ;;  %v492_v32 = vrot.slane %v3343_v58, %v3123_v35  ;;  %v2961_v58 = vld [vmem:[%s3675_s0 + $0x410] sm:$0xff]  }
  0x4e   :  { %2638 = vmatprep.subr.bf16.mxu1 %v2889_v33  ;;  %v2940_v33 = vld [vmem:[%s3675_s0 + $0x478] sm:$0xff]  }
  0x50   :  { %2617 = vmatpush3.bf16.msra.mxu0 %v2888_v34  ;;  %v2939_v34 = vld [vmem:[%s3675_s0 + $0x380] sm:$0xff]  }
  0x51   :  { %2618 = vmatprep.subr.bf16.mxu0 %v2891_v36  ;;  %2639 = vmatpush3.bf16.msra.mxu1 %v2890_v37  ;;  %v2942_v36 = vld [vmem:[%s3675_s0 + $0x4f8] sm:$0xff]  }
  0x52   :  { %2640 = vmatprep.subr.bf16.mxu1 %v2893_v38  ;;  %v2941_v37 = vld [vmem:[%s3675_s0 + $0x438] sm:$0xff]   ;;  %v508_v38 = vcombine.high %v492_v32, %v492_v32 }
  0x54   :  { %2619 = vmatpush3.bf16.msra.mxu0 %v2892_v39  ;;  %v2944_v39 = vld [vmem:[%s3675_s0 + $0x470] sm:$0xff]  }
  0x55   :  { %2620 = vmatprep.subr.bf16.mxu0 %v2895_v40  ;;  %2641 = vmatpush3.bf16.msra.mxu1 %v2894_v41  ;;  %v2943_v40 = vld [vmem:[%s3675_s0 + $0x4b8] sm:$0xff]   ;;  %v2946_v41 = vld [vmem:[%s3675_s0 + $0x4f0] sm:$0xff]  }
  0x56   :  { %2642 = vmatprep.subr.bf16.mxu1 %v2897_v42  ;;  %v2945_v42 = vld [vmem:[%s3675_s0 + $0x430] sm:$0xff]  }
  0x58   :  { %2621 = vmatpush3.bf16.msra.mxu0 %v2896_v43  ;;  %v2948_v43 = vld [vmem:[%s3675_s0 + $0x468] sm:$0xff]  }
  0x59   :  { %2622 = vmatprep.subr.bf16.mxu0 %v2899_v44  ;;  %2643 = vmatpush3.bf16.msra.mxu1 %v2898_v45  ;;  %v2947_v44 = vld [vmem:[%s3675_s0 + $0x4b0] sm:$0xff]   ;;  %v2950_v45 = vld [vmem:[%s3675_s0 + $0x4e8] sm:$0xff]  }
  0x5a   :  { %2644 = vmatprep.subr.bf16.mxu1 %v2901_v46  ;;  %v2949_v46 = vld [vmem:[%s3675_s0 + $0x428] sm:$0xff]  }
  0x5c   :  { %2623 = vmatpush3.bf16.msra.mxu0 %v2900_v47  ;;  %v2952_v47 = vld [vmem:[%s3675_s0 + $0x460] sm:$0xff]  }
  0x5d   :  { %2624 = vmatprep.subr.bf16.mxu0 %v2903_v48  ;;  %2645 = vmatpush3.bf16.msra.mxu1 %v2902_v49  ;;  %v2951_v48 = vld [vmem:[%s3675_s0 + $0x4a8] sm:$0xff]   ;;  %v2954_v49 = vld [vmem:[%s3675_s0 + $0x4e0] sm:$0xff]  }
  0x5e   :  { %2646 = vmatprep.subr.bf16.mxu1 %v2905_v51  ;;  %v2956_v51 = vld [vmem:[%s3675_s0 + $0x458] sm:$0xff]  }
  0x60   :  { %2625 = vmatpush3.bf16.msra.mxu0 %v2904_v54  ;;  %v2957_v54 = vld [vmem:[%s3675_s0 + $0x418] sm:$0xff]  }
  0x61   :  { %2654 = vmatprep.subr.bf16.mxu0 %v2907_v57  ;;  %2647 = vmatpush3.bf16.msra.mxu1 %v2906_v59  ;;  %v2962_v57 = vld [vmem:[%s3675_s0 + $0x4d0] sm:$0xff]   ;;  %v2964_v59 = vld [vmem:[%s3675_s0 + $0x448] sm:$0xff]  }
  0x62   :  { %2676 = vmatprep.subr.bf16.mxu1 %v2909_v63  ;;  %v2968_v63 = vld [vmem:[%s3675_s0 + $0x440] sm:$0xff]  }
  0x63   :  { %1980 = vmatmul.mubr.bf16.vlgmr.msra.gmra.mxu0 %v485_v56  ;;  %v2959_v56 = vld [vmem:[%s3675_s0 + $0x498] sm:$0xff]  }
  0x64   :  { %2655 = vmatpush3.bf16.msra.mxu0 %v2908_v61  ;;  %2020 = vmatmul.mubr.bf16.vlgmr.msra.gmra.mxu1 %v507_v1  ;;  %v2966_v61 = vld [vmem:[%s3675_s0 + $0x4c8] sm:$0xff]   ;;  %v14_v1 = vld [vmem:[%s3676_s1 + $0x10] sm:$0xff] }
  0x65   :  { %2656 = vmatprep.subr.bf16.mxu0 %v2911_v2  ;;  %2677 = vmatpush3.bf16.msra.mxu1 %v2910_v4  ;;  %v2970_v2 = vld [vmem:[%s3675_s0 + $0x4c0] sm:$0xff]   ;;  %v511_v4 = vcombine.high %v14_v1, %v14_v1 }
  0x66   :  { %2059 = vmatprep.mubr.bf16.mxu0 %v506_v3  ;;  %2678 = vmatprep.subr.bf16.mxu1 %v2913_v5  ;;  %v518_v3 = vrot.slane %v14_v1, %v3123_v35  ;;  %v2969_v5 = vld [vmem:[%s3675_s0 + $0x400] sm:$0xff]  }
  0x67   :  { %2099 = vmatprep.mubr.bf16.mxu1 %v510_v6 }
  0x68   :  { %2657 = vmatpush3.bf16.msra.mxu0 %v2912_v7  ;;  %v526_v6 = vcombine.high %v518_v3, %v518_v3  ;;  %v534_v7 = vrot.slane %v518_v3, %v3123_v35 }
  0x69   :  { %2658 = vmatprep.subr.bf16.mxu0 %v2915_v8  ;;  %2679 = vmatpush3.bf16.msra.mxu1 %v2914_v9  ;;  %v2972_v8 = vld [vmem:[%s3675_s0 + $0x578] sm:$0xff]   ;;  %v3549_v9 = vrot.slane %v511_v4, %v3123_v35 }
  0x6a   :  { %2680 = vmatprep.subr.bf16.mxu1 %v2917_v10  ;;  %v2971_v10 = vld [vmem:[%s3675_s0 + $0x480] sm:$0xff]  }
  0x6c   :  { %2659 = vmatpush3.bf16.msra.mxu0 %v2916_v11  ;;  %v548_v11 = vrot.slane %v526_v6, %v3123_v35 }
  0x6d   :  { %2660 = vmatprep.subr.bf16.mxu0 %v2919_v12  ;;  %2681 = vmatpush3.bf16.msra.mxu1 %v2918_v13  ;;  %v2973_v12 = vld [vmem:[%s3675_s0 + $0x538] sm:$0xff]   ;;  %v527_v13 = vcombine.high %v3549_v9, %v3549_v9 }
  0x6e   :  { %2682 = vmatprep.subr.bf16.mxu1 %v2921_v14  ;;  %v2974_v14 = vld [vmem:[%s3675_s0 + $0x5f8] sm:$0xff]  }
  0x70   :  { %2661 = vmatpush3.bf16.msra.mxu0 %v2920_v15  ;;  %v558_v15 = vcombine.high %v548_v11, %v548_v11 }
  0x71   :  { %2662 = vmatprep.subr.bf16.mxu0 %v2923_v16  ;;  %2683 = vmatpush3.bf16.msra.mxu1 %v2922_v17  ;;  %v556_v16 = vcombine.high %v534_v7, %v534_v7  ;;  %v2976_v17 = vld [vmem:[%s3675_s0 + $0x570] sm:$0xff]  }
  0x72   :  { %2684 = vmatprep.subr.bf16.mxu1 %v2925_v18  ;;  %v555_v18 = vrot.slane %v527_v13, %v3123_v35 }
  0x74   :  { %2663 = vmatpush3.bf16.msra.mxu0 %v2924_v19  ;;  %v2975_v19 = vld [vmem:[%s3675_s0 + $0x5b8] sm:$0xff]  }
  0x75   :  { %2664 = vmatprep.subr.bf16.mxu0 %v2927_v20  ;;  %2685 = vmatpush3.bf16.msra.mxu1 %v2926_v21  ;;  %v2978_v20 = vld [vmem:[%s3675_s0 + $0x5f0] sm:$0xff]   ;;  %v559_v21 = vcombine.high %v555_v18, %v555_v18 }
  0x76   :  { %2686 = vmatprep.subr.bf16.mxu1 %v2929_v22  ;;  %v2977_v22 = vld [vmem:[%s3675_s0 + $0x530] sm:$0xff]  }
  0x78   :  { %2665 = vmatpush3.bf16.msra.mxu0 %v2928_v23  ;;  %v2980_v23 = vld [vmem:[%s3675_s0 + $0x568] sm:$0xff]  }
  0x79   :  { %2666 = vmatprep.subr.bf16.mxu0 %v2931_v24  ;;  %2687 = vmatpush3.bf16.msra.mxu1 %v2930_v25  ;;  %v2979_v24 = vld [vmem:[%s3675_s0 + $0x5b0] sm:$0xff]   ;;  %v2982_v25 = vld [vmem:[%s3675_s0 + $0x5e8] sm:$0xff]  }
  0x7a   :  { %2688 = vmatprep.subr.bf16.mxu1 %v2933_v26  ;;  %v2981_v26 = vld [vmem:[%s3675_s0 + $0x528] sm:$0xff]  }
  0x7c   :  { %2667 = vmatpush3.bf16.msra.mxu0 %v2932_v27  ;;  %v2984_v27 = vld [vmem:[%s3675_s0 + $0x560] sm:$0xff]  }
  0x7d   :  { %2668 = vmatprep.subr.bf16.mxu0 %v2935_v28  ;;  %2689 = vmatpush3.bf16.msra.mxu1 %v2934_v29  ;;  %v2983_v28 = vld [vmem:[%s3675_s0 + $0x5a8] sm:$0xff]   ;;  %v2986_v29 = vld [vmem:[%s3675_s0 + $0x5e0] sm:$0xff]  }
  0x7e   :  { %2690 = vmatprep.subr.bf16.mxu1 %v2937_v30  ;;  %v2985_v30 = vld [vmem:[%s3675_s0 + $0x520] sm:$0xff]  }
  0x80   :  { %2669 = vmatpush3.bf16.msra.mxu0 %v2936_v31  ;;  %v2988_v31 = vld [vmem:[%s3675_s0 + $0x558] sm:$0xff]  }
  0x81   :  { %2698 = vmatprep.subr.bf16.mxu0 %v2940_v33  ;;  %2691 = vmatpush3.bf16.msra.mxu1 %v2939_v34  ;;  %v2990_v33 = vld [vmem:[%s3675_s0 + $0x5d8] sm:$0xff]  }
  0x82   :  { %2720 = vmatprep.subr.bf16.mxu1 %v2942_v36  ;;  %v2989_v34 = vld [vmem:[%s3675_s0 + $0x518] sm:$0xff]   ;;  %v2992_v36 = vld [vmem:[%s3675_s0 + $0x550] sm:$0xff]  }
  0x83   :  { %2060 = vmatmul.mubr.bf16.vlgmr.msra.gmra.mxu0 %v492_v32  ;;  %v2987_v32 = vld [vmem:[%s3675_s0 + $0x5a0] sm:$0xff]  }
  0x84   :  { %2699 = vmatpush3.bf16.msra.mxu0 %v2941_v37  ;;  %2100 = vmatmul.mubr.bf16.vlgmr.msra.gmra.mxu1 %v508_v38  ;;  %v2991_v37 = vld [vmem:[%s3675_s0 + $0x598] sm:$0xff]   ;;  %v2994_v38 = vld [vmem:[%s3675_s0 + $0x5d0] sm:$0xff]  }
  0x85   :  { %2700 = vmatprep.subr.bf16.mxu0 %v2944_v39  ;;  %2721 = vmatpush3.bf16.msra.mxu1 %v2943_v40  ;;  %v2993_v39 = vld [vmem:[%s3675_s0 + $0x510] sm:$0xff]   ;;  %v2996_v40 = vld [vmem:[%s3675_s0 + $0x548] sm:$0xff]  }
  0x86   :  { %2722 = vmatprep.subr.bf16.mxu1 %v2946_v41  ;;  %2139 = vmatprep.mubr.bf16.mxu0 %v548_v11  ;;  %v2995_v41 = vld [vmem:[%s3675_s0 + $0x590] sm:$0xff]  }
  0x87   :  { %2179 = vmatprep.mubr.bf16.mxu1 %v558_v15 }
  0x88   :  { %2701 = vmatpush3.bf16.msra.mxu0 %v2945_v42  ;;  %v2998_v42 = vld [vmem:[%s3675_s0 + $0x5c8] sm:$0xff]  }
  0x89   :  { %2702 = vmatprep.subr.bf16.mxu0 %v2948_v43  ;;  %2723 = vmatpush3.bf16.msra.mxu1 %v2947_v44  ;;  %v2997_v43 = vld [vmem:[%s3675_s0 + $0x508] sm:$0xff]   ;;  %v3000_v44 = vld [vmem:[%s3675_s0 + $0x540] sm:$0xff]  }
  0x8a   :  { %2724 = vmatprep.subr.bf16.mxu1 %v2950_v45  ;;  %v2999_v45 = vld [vmem:[%s3675_s0 + $0x588] sm:$0xff]  }
  0x8c   :  { %2703 = vmatpush3.bf16.msra.mxu0 %v2949_v46  ;;  %v3002_v46 = vld [vmem:[%s3675_s0 + $0x5c0] sm:$0xff]  }
  0x8d   :  { %2704 = vmatprep.subr.bf16.mxu0 %v2952_v47  ;;  %2725 = vmatpush3.bf16.msra.mxu1 %v2951_v48  ;;  %v3015_v47 = vmov 0  }
  0x8e   :  { %2726 = vmatprep.subr.bf16.mxu1 %v2954_v49  ;;  %v1783_v48 = vsel %vm1781_vm0, 65535, %v3015_v47  ;;  %v3001_v49 = vld [vmem:[%s3675_s0 + $0x500] sm:$0xff]  }
  0x90   :  { %2705 = vmatpush3.bf16.msra.mxu0 %v2953_v50  ;;  %v3005_v50 = vld [vmem:[%s3675_s0 + $0x620] ss:$0 sps:$4 sm:$0x11]  }
  0x91   :  { %2706 = vmatprep.subr.bf16.mxu0 %v2956_v51  ;;  %2727 = vmatpush3.bf16.msra.mxu1 %v2955_v52  ;;  %v541_v51 = vrot.slane %v3549_v9, %v3123_v35  ;;  %v3004_v52 = vld [vmem:[%s3675_s0 + $0x580] sm:$0xff]  }
  0x92   :  { %2728 = vmatprep.subr.bf16.mxu1 %v2958_v53  ;;  %v1785_v53 = vand.u32 %v3005_v50, %v1783_v48 }
  0x94   :  { %2707 = vmatpush3.bf16.msra.mxu0 %v2957_v54  ;;  %v3016_v54 = vmov 0.0  }
  0x95   :  { %2708 = vmatprep.subr.bf16.mxu0 %v2960_v55  ;;  %2729 = vmatpush3.bf16.msra.mxu1 %v2959_v56  ;;  %v557_v55 = vcombine.high %v541_v51, %v541_v51  ;;  %v3006_v56 = vld [vmem:[%s3675_s0 + $0x618] sm:$0xff]  }
  0x96   :  { %2730 = vmatprep.subr.bf16.mxu1 %v2962_v57  ;;  %v3007_v57 = vld [vmem:[%s3675_s0 + $0x610] sm:$0xff]  }
  0x98   :  { %2709 = vmatpush3.bf16.msra.mxu0 %v2961_v58  ;;  %v3008_v58 = vld [vmem:[%s3675_s0 + $0x608] sm:$0xff]  }
  0x99   :  { %2710 = vmatprep.subr.bf16.mxu0 %v2964_v59  ;;  %2731 = vmatpush3.bf16.msra.mxu1 %v2963_v60  ;;  %v3009_v59 = vld [vmem:[%s3675_s0 + $0x600] sm:$0xff]   ;;  %v2323_v60 = vld.sshfl [vmem:[%s3676_s1 + $0x18] sm:$0x1 pattern:$0x75316420] }
  0x9a   :  { %2732 = vmatprep.subr.bf16.mxu1 %v2966_v61  ;;  %v573_v61 = vrot.slane %v2323_v60, %v3123_v35 }
  0x9c   :  { %2711 = vmatpush3.bf16.msra.mxu0 %v2965_v62 }
  0x9d   :  { %2712 = vmatprep.subr.bf16.mxu0 %v2968_v63  ;;  %2733 = vmatpush3.bf16.msra.mxu1 %v2967_v0 }
  0x9e   :  { %2734 = vmatprep.subr.bf16.mxu1 %v2970_v2 }
  0xa0   :  { %2713 = vmatpush3.bf16.msra.mxu0 %v2969_v5 }
  0xa1   :  { %2742 = vmatprep.subr.bf16.mxu0 %v2972_v8  ;;  %2735 = vmatpush3.bf16.msra.mxu1 %v2971_v10 }
  0xa2   :  { %2764 = vmatprep.subr.bf16.mxu1 %v2974_v14 }
  0xa3   :  { %2140 = vmatmul.mubr.bf16.vlgmr.msra.gmra.mxu0 %v534_v7 }
  0xa4   :  { %2743 = vmatpush3.bf16.msra.mxu0 %v2973_v12  ;;  %2180 = vmatmul.mubr.bf16.vlgmr.msra.gmra.mxu1 %v556_v16 }
  0xa5   :  { %2744 = vmatprep.subr.bf16.mxu0 %v2976_v17  ;;  %2765 = vmatpush3.bf16.msra.mxu1 %v2975_v19 }
  0xa6   :  { %2219 = vmatprep.mubr.bf16.mxu0 %v555_v18  ;;  %2766 = vmatprep.subr.bf16.mxu1 %v2978_v20 }
  0xa7   :  { %2259 = vmatprep.mubr.bf16.mxu1 %v559_v21 }
  0xa8   :  { %2745 = vmatpush3.bf16.msra.mxu0 %v2977_v22 }
  0xa9   :  { %2746 = vmatprep.subr.bf16.mxu0 %v2980_v23  ;;  %2767 = vmatpush3.bf16.msra.mxu1 %v2979_v24 }
  0xaa   :  { %2768 = vmatprep.subr.bf16.mxu1 %v2982_v25 }
  0xac   :  { %2747 = vmatpush3.bf16.msra.mxu0 %v2981_v26 }
  0xad   :  { %2748 = vmatprep.subr.bf16.mxu0 %v2984_v27  ;;  %2769 = vmatpush3.bf16.msra.mxu1 %v2983_v28 }
  0xae   :  { %2770 = vmatprep.subr.bf16.mxu1 %v2986_v29 }
  0xb0   :  { %2749 = vmatpush3.bf16.msra.mxu0 %v2985_v30 }
  0xb1   :  { %2750 = vmatprep.subr.bf16.mxu0 %v2988_v31  ;;  %2771 = vmatpush3.bf16.msra.mxu1 %v2987_v32 }
  0xb2   :  { %2772 = vmatprep.subr.bf16.mxu1 %v2990_v33 }
  0xb4   :  { %2751 = vmatpush3.bf16.msra.mxu0 %v2989_v34 }
  0xb5   :  { %2752 = vmatprep.subr.bf16.mxu0 %v2992_v36  ;;  %2773 = vmatpush3.bf16.msra.mxu1 %v2991_v37 }
  0xb6   :  { %2774 = vmatprep.subr.bf16.mxu1 %v2994_v38 }
  0xb8   :  { %2753 = vmatpush3.bf16.msra.mxu0 %v2993_v39 }
  0xb9   :  { %2754 = vmatprep.subr.bf16.mxu0 %v2996_v40  ;;  %2775 = vmatpush3.bf16.msra.mxu1 %v2995_v41 }
  0xba   :  { %2776 = vmatprep.subr.bf16.mxu1 %v2998_v42 }
  0xbc   :  { %2755 = vmatpush3.bf16.msra.mxu0 %v2997_v43 }
  0xbd   :  { %2756 = vmatprep.subr.bf16.mxu0 %v3000_v44  ;;  %2777 = vmatpush3.bf16.msra.mxu1 %v2999_v45 }
  0xbe   :  { %2778 = vmatprep.subr.bf16.mxu1 %v3002_v46 }
  0xc0   :  { %2757 = vmatpush3.bf16.msra.mxu0 %v3001_v49 }
  0xc1   :  { %2792 = vmatprep.subr.bf16.mxu0 %v3016_v54  ;;  %2779 = vmatpush3.bf16.msra.mxu1 %v3004_v52 }
  0xc3   :  { %2220 = vmatmul.mubr.bf16.vlgmr.msra.gmra.mxu0 %v541_v51 }
  0xc4   :  { %2793 = vmatpush3.bf16.msra.mxu0 %v1785_v53  ;;  %2802 = vmatprep.mubr.msk.bf16.mxu0 %vm3017_vm1, %v3016_v54 }
  0xc5   :  { %2260 = vmatmul.mubr.bf16.vlgmr.msra.gmra.mxu1 %v557_v55  ;;  %2794 = vmatprep.subr.bf16.mxu0 %v3016_v54 }
  0xc8   :  { %2795 = vmatpush3.bf16.msra.mxu0 %v3006_v56 }
  0xc9   :  { %2796 = vmatprep.subr.bf16.mxu0 %v3016_v54 }
  0xcc   :  { %2797 = vmatpush3.bf16.msra.mxu0 %v3007_v57 }
  0xcd   :  { %2798 = vmatprep.subr.bf16.mxu0 %v3016_v54 }
  0xd0   :  { %2799 = vmatpush3.bf16.msra.mxu0 %v3008_v58 }
  0xd1   :  { %2800 = vmatprep.subr.bf16.mxu0 %v3016_v54 }
  0xd4   :  { %2801 = vmatpush3.bf16.msra.mxu0 %v3009_v59 }
  0xd7   :  { %2803 = vmatmul.mubr.msk.bf16.vlgmr.msra.gmra.mxu0 %vm1777_vm2, %v573_v61 }
  0xe3   :  { %v2538_v62 = vpop.f32.mrf.mxu0 }
  0xe4   :  { %v2560_v63 = vpop.f32.mrf.mxu1 }
  0xe5   :  { %v2539_v0 = vpop.f32.mrf.mxu0 }
  0xe6   :  { %v2540_v1 = vadd.f32 %v2539_v0, %v2538_v62  ;;  %v2561_v2 = vpop.f32.mrf.mxu1 }
  0xe7   :  { %v2541_v3 = vpop.f32.mrf.mxu0  ;;  %v2562_v4 = vadd.f32 %v2561_v2, %v2560_v63 }
  0xe8   :  { %v2563_v6 = vpop.f32.mrf.mxu1 }
  0xe9   :  { %v2542_v5 = vpop.f32.mrf.mxu0  ;;  %v1862_v7 = vadd.f32 %v2562_v4, %v2540_v1 }
  0xea   :  { %v2564_v8 = vpop.f32.mrf.mxu1 }
 0x103   :  { %v2582_v9 = vpop.f32.mrf.mxu0 }
 0x104   :  { %v2604_v11 = vpop.f32.mrf.mxu1 }
 0x105   :  { %v2583_v10 = vpop.f32.mrf.mxu0 }
 0x106   :  { %v2584_v12 = vadd.f32 %v2583_v10, %v2582_v9  ;;  %v2605_v35 = vpop.f32.mrf.mxu1 }
 0x107   :  { %v2585_v13 = vpop.f32.mrf.mxu0  ;;  %v2606_v15 = vadd.f32 %v2605_v35, %v2604_v11 }
 0x108   :  { %v1902_v14 = vadd.f32 %v2584_v12, %v1862_v7  ;;  %v2607_v17 = vpop.f32.mrf.mxu1 }
 0x109   :  { %v2586_v16 = vpop.f32.mrf.mxu0 }
 0x10a   :  { %v1942_v18 = vadd.f32 %v2606_v15, %v1902_v14  ;;  %v2608_v19 = vpop.f32.mrf.mxu1 }
 0x123   :  { %v2626_v20 = vpop.f32.mrf.mxu0 }
 0x124   :  { %v2648_v22 = vpop.f32.mrf.mxu1 }
 0x125   :  { %v2627_v21 = vpop.f32.mrf.mxu0 }
 0x126   :  { %v2628_v23 = vadd.f32 %v2627_v21, %v2626_v20  ;;  %v2649_v25 = vpop.f32.mrf.mxu1 }
 0x127   :  { %v2629_v24 = vpop.f32.mrf.mxu0  ;;  %v2650_v27 = vadd.f32 %v2649_v25, %v2648_v22 }
 0x128   :  { %v1982_v26 = vadd.f32 %v2628_v23, %v1942_v18  ;;  %v2651_v29 = vpop.f32.mrf.mxu1 }
 0x129   :  { %v2630_v28 = vpop.f32.mrf.mxu0 }
 0x12a   :  { %v2022_v30 = vadd.f32 %v2650_v27, %v1982_v26  ;;  %v2652_v31 = vpop.f32.mrf.mxu1 }
 0x143   :  { %v2670_v32 = vpop.f32.mrf.mxu0 }
 0x144   :  { %v2692_v34 = vpop.f32.mrf.mxu1 }
 0x145   :  { %v2671_v33 = vpop.f32.mrf.mxu0 }
 0x146   :  { %v2672_v36 = vadd.f32 %v2671_v33, %v2670_v32  ;;  %v2693_v38 = vpop.f32.mrf.mxu1 }
 0x147   :  { %v2673_v37 = vpop.f32.mrf.mxu0  ;;  %v2694_v40 = vadd.f32 %v2693_v38, %v2692_v34 }
 0x148   :  { %v2062_v39 = vadd.f32 %v2672_v36, %v2022_v30  ;;  %v2695_v42 = vpop.f32.mrf.mxu1 }
 0x149   :  { %v2674_v41 = vpop.f32.mrf.mxu0 }
 0x14a   :  { %v2102_v43 = vadd.f32 %v2694_v40, %v2062_v39  ;;  %v2696_v44 = vpop.f32.mrf.mxu1 }
 0x163   :  { %v2714_v45 = vpop.f32.mrf.mxu0 }
 0x164   :  { %v2736_v47 = vpop.f32.mrf.mxu1 }
 0x165   :  { %v2715_v46 = vpop.f32.mrf.mxu0 }
 0x166   :  { %v2737_v49 = vpop.f32.mrf.mxu1  ;;  %v2716_v58 = vadd.f32 %v2715_v46, %v2714_v45 }
 0x167   :  { %v2717_v48 = vpop.f32.mrf.mxu0  ;;  %v2738_v63 = vadd.f32 %v2737_v49, %v2736_v47 }
 0x168   :  { %v2739_v51 = vpop.f32.mrf.mxu1  ;;  %v2142_v62 = vadd.f32 %v2716_v58, %v2102_v43 }
 0x169   :  { %v2718_v50 = vpop.f32.mrf.mxu0 }
 0x16a   :  { %v2740_v52 = vpop.f32.mrf.mxu1  ;;  %v2182_v1 = vadd.f32 %v2738_v63, %v2142_v62 }
 0x183   :  { %v2758_v53 = vpop.f32.mrf.mxu0 }
 0x185   :  { %v2759_v54 = vpop.f32.mrf.mxu0  ;;  %v2780_v55 = vpop.f32.mrf.mxu1 }
 0x186   :  { %v2760_v0 = vadd.f32 %v2759_v54, %v2758_v53 }
 0x187   :  { %v2761_v56 = vpop.f32.mrf.mxu0  ;;  %v2781_v57 = vpop.f32.mrf.mxu1 }
 0x188   :  { %v2222_v2 = vadd.f32 %v2760_v0, %v2182_v1  ;;  %v2782_v3 = vadd.f32 %v2781_v57, %v2780_v55 }
 0x189   :  { %v2762_v59 = vpop.f32.mrf.mxu0  ;;  %v2783_v60 = vpop.f32.mrf.mxu1 }
 0x18a   :  { %v2262_v4 = vadd.f32 %v2782_v3, %v2222_v2 }
 0x18b   :  { %v2784_v61 = vpop.f32.mrf.mxu1 }
 0x197   :  { %v2301_v5 = vpop.f32.mrf.mxu0 }
 0x198   :  { %v2302_v6 = vadd.f32 %v2301_v5, %v2262_v4 }
 0x199   :  { %v2804_v7 = vpop.f32.mrf.mxu0 }
 0x19a   :  { %v2307_v8 = vand.u32 2147483647, %v2302_v6  ;;  %vm2311_vm4 = vcmp.ge.f32.partialorder %v2302_v6, 0.0 }
 0x19b   :  { %v2304_v9 = vpop.f32.mrf.mxu0 }
 0x19c   :  { %v2308_v10 = vsub.f32 0.0, %v2307_v8 }
 0x19d   :  { %v2805_v11 = vpop.f32.mrf.mxu0 }
 0x19e   :  { %v2309_v12 = vmul.f32 1.442695, %v2308_v10 }
 0x1a0   :  { %3010 = vpow2.f32 %v2309_v12 }
 0x1ad   :  { %v3011_v13 = vpop.eup %3010 }
 0x1ae   :  { %v2312_v35 = vadd.f32 1.0, %v3011_v13 }
 0x1b0   :  { %3012 = vrcp.f32 %v2312_v35 }
 0x1bd   :  { %v3013_v14 = vpop.eup %3012 }
 0x1be   :  { %v2315_v15 = vmul.f32 %v3013_v14, %v3011_v13 }
 0x1c0   :  { %v2316_v16 = vsel %vm2311_vm4, %v3013_v14, %v2315_v15 }
 0x1c1   :  { %2318 = vst.msk [vmem:[%s3677_s2] sm:$0x1] %vm2317_vm3, %v2316_v16 }

// kernel: _lambda_.16
= control target key start
LH: loop header
LB: loop body
LE: loop exit
PB: predicated region body
PF: predicated region fallthrough
CT: control target
= control target key end

     0   :  { %vm339_vm0 = vcmask 1040384   ;;  %v647_v34 = vmov 0.0   ;;  %v648_v35 = vmov 0   ;;  %vm649_vm1 = vmmov 0   ;;  %s794_s0 = inlined_call_operand.vmem [shape: bf16[577,128], index: 0, kind: input, shape index: {}]   ;;  %s795_s1 = inlined_call_operand.vmem [shape: bf16[16,577], index: 1, kind: input, shape index: {}]   ;;  %s796_s2 = inlined_call_operand.vmem [shape: bf16[16,128], index: 2, kind: output, shape index: {}]  }
   0x1   :  { %v603_v0 = vld [vmem:[%s794_s0 + $0x78] sm:$0xff]   ;;  %v607_v4 = vld [vmem:[%s794_s0 + $0x70] sm:$0xff]   ;;  %v611_v8 = vld [vmem:[%s794_s0 + $0x68] sm:$0xff]   ;;  %v341_v36 = vsel %vm339_vm0, 65535, %v648_v35  ;;  %vm335_vm2 = vcmask 531456  }
   0x2   :  { %v604_v1 = vld [vmem:[%s794_s0 + $0xf8] sm:$0xff]   ;;  %536 = vmatprep.subr.bf16.mxu0 %v603_v0  ;;  %v608_v5 = vld [vmem:[%s794_s0 + $0xf0] sm:$0xff]   ;;  %v612_v9 = vld [vmem:[%s794_s0 + $0xe8] sm:$0xff]  }
   0x3   :  { %v605_v2 = vld [vmem:[%s794_s0 + $0x38] sm:$0xff]   ;;  %558 = vmatprep.subr.bf16.mxu1 %v604_v1  ;;  %v609_v6 = vld [vmem:[%s794_s0 + $0x30] sm:$0xff]   ;;  %v613_v10 = vld [vmem:[%s794_s0 + $0x28] sm:$0xff]  }
   0x4   :  { %v606_v3 = vld [vmem:[%s794_s0 + $0xb8] sm:$0xff]   ;;  %537 = vmatpush3.bf16.msra.mxu0 %v605_v2  ;;  %v610_v7 = vld [vmem:[%s794_s0 + $0xb0] sm:$0xff]   ;;  %v614_v11 = vld [vmem:[%s794_s0 + $0xa8] sm:$0xff]  }
   0x5   :  { %559 = vmatpush3.bf16.msra.mxu1 %v606_v3  ;;  %538 = vmatprep.subr.bf16.mxu0 %v607_v4  ;;  %v615_v12 = vld [vmem:[%s794_s0 + $0x60] sm:$0xff]   ;;  %v619_v16 = vld [vmem:[%s794_s0 + $0x58] sm:$0xff]   ;;  %v623_v20 = vld [vmem:[%s794_s0 + $0x50] sm:$0xff]  }
   0x6   :  { %560 = vmatprep.subr.bf16.mxu1 %v608_v5  ;;  %v616_v13 = vld [vmem:[%s794_s0 + $0xe0] sm:$0xff]   ;;  %v620_v17 = vld [vmem:[%s794_s0 + $0xd8] sm:$0xff]   ;;  %v624_v21 = vld [vmem:[%s794_s0 + $0xd0] sm:$0xff]  }
   0x7   :  { %v617_v14 = vld [vmem:[%s794_s0 + $0x20] sm:$0xff]   ;;  %v621_v18 = vld [vmem:[%s794_s0 + $0x18] sm:$0xff]   ;;  %v625_v22 = vld [vmem:[%s794_s0 + $0x10] sm:$0xff]  }
   0x8   :  { %539 = vmatpush3.bf16.msra.mxu0 %v609_v6  ;;  %v618_v15 = vld [vmem:[%s794_s0 + $0xa0] sm:$0xff]   ;;  %v622_v19 = vld [vmem:[%s794_s0 + $0x98] sm:$0xff]   ;;  %v626_v23 = vld [vmem:[%s794_s0 + $0x90] sm:$0xff]  }
   0x9   :  { %561 = vmatpush3.bf16.msra.mxu1 %v610_v7  ;;  %540 = vmatprep.subr.bf16.mxu0 %v611_v8  ;;  %v627_v24 = vld [vmem:[%s794_s0 + $0x48] sm:$0xff]   ;;  %v631_v28 = vld [vmem:[%s794_s0 + $0x40] sm:$0xff]   ;;  %v642_v41 = vld [vmem:[%s794_s0 + $0x118] sm:$0xff]  }
   0xa   :  { %562 = vmatprep.subr.bf16.mxu1 %v612_v9  ;;  %v628_v25 = vld [vmem:[%s794_s0 + $0xc8] sm:$0xff]   ;;  %v632_v29 = vld [vmem:[%s794_s0 + $0xc0] sm:$0xff]   ;;  %v643_v42 = vld [vmem:[%s794_s0 + $0x110] sm:$0xff]  }
   0xb   :  { %v629_v26 = vld [vmem:[%s794_s0 + $0x8] sm:$0xff]   ;;  %v633_v30 = vld [vmem:[%s794_s0] sm:$0xff]  }
   0xc   :  { %541 = vmatpush3.bf16.msra.mxu0 %v613_v10  ;;  %v630_v27 = vld [vmem:[%s794_s0 + $0x88] sm:$0xff]   ;;  %v634_v31 = vld [vmem:[%s794_s0 + $0x80] sm:$0xff]  }
   0xd   :  { %563 = vmatpush3.bf16.msra.mxu1 %v614_v11  ;;  %542 = vmatprep.subr.bf16.mxu0 %v615_v12  ;;  %v635_v32 = vld [vmem:[%s795_s1] ss:$20 sps:$4 sm:$0xff]   ;;  %v637_v33 = vld [vmem:[%s795_s1 + $0x4] ss:$20 sps:$4 sm:$0xff]   ;;  %v638_v37 = vld [vmem:[%s795_s1 + $0x8] ss:$20 sps:$4 sm:$0xff]  }
   0xe   :  { %564 = vmatprep.subr.bf16.mxu1 %v616_v13  ;;  %v640_v38 = vld [vmem:[%s795_s1 + $0xc] ss:$20 sps:$4 sm:$0xff]   ;;  %377 = vmatprep.mubr.bf16.mxu0 %v637_v33  ;;  %v646_v45 = vld [vmem:[%s795_s1 + $0x10] ss:$20 sps:$4 sm:$0xff]  }
   0xf   :  { %v641_v39 = vld [vmem:[%s794_s0 + $0x120] ss:$0 sps:$4 sm:$0x11]   ;;  %418 = vmatprep.mubr.bf16.mxu1 %v640_v38  ;;  %v644_v43 = vld [vmem:[%s794_s0 + $0x108] sm:$0xff]  }
  0x10   :  { %543 = vmatpush3.bf16.msra.mxu0 %v617_v14  ;;  %v343_v40 = vand.u32 %v641_v39, %v341_v36  ;;  %v645_v44 = vld [vmem:[%s794_s0 + $0x100] sm:$0xff]  }
  0x11   :  { %565 = vmatpush3.bf16.msra.mxu1 %v618_v15  ;;  %544 = vmatprep.subr.bf16.mxu0 %v619_v16 }
  0x12   :  { %566 = vmatprep.subr.bf16.mxu1 %v620_v17 }
  0x14   :  { %545 = vmatpush3.bf16.msra.mxu0 %v621_v18 }
  0x15   :  { %567 = vmatpush3.bf16.msra.mxu1 %v622_v19  ;;  %546 = vmatprep.subr.bf16.mxu0 %v623_v20 }
  0x16   :  { %568 = vmatprep.subr.bf16.mxu1 %v624_v21 }
  0x18   :  { %547 = vmatpush3.bf16.msra.mxu0 %v625_v22 }
  0x19   :  { %569 = vmatpush3.bf16.msra.mxu1 %v626_v23  ;;  %548 = vmatprep.subr.bf16.mxu0 %v627_v24 }
  0x1a   :  { %570 = vmatprep.subr.bf16.mxu1 %v628_v25 }
  0x1c   :  { %549 = vmatpush3.bf16.msra.mxu0 %v629_v26 }
  0x1d   :  { %571 = vmatpush3.bf16.msra.mxu1 %v630_v27  ;;  %550 = vmatprep.subr.bf16.mxu0 %v631_v28 }
  0x1e   :  { %572 = vmatprep.subr.bf16.mxu1 %v632_v29 }
  0x20   :  { %551 = vmatpush3.bf16.msra.mxu0 %v633_v30 }
  0x21   :  { %573 = vmatpush3.bf16.msra.mxu1 %v634_v31  ;;  %586 = vmatprep.subr.bf16.mxu0 %v647_v34 }
  0x23   :  { %378 = vmatmul.mubr.bf16.vlgmr.msra.gmra.mxu0 %v635_v32 }
  0x24   :  { %419 = vmatmul.mubr.bf16.vlgmr.msra.gmra.mxu1 %v638_v37  ;;  %596 = vmatprep.mubr.msk.bf16.mxu0 %vm649_vm1, %v647_v34 }
  0x25   :  { %587 = vmatpush3.bf16.msra.mxu0 %v343_v40 }
  0x26   :  { %588 = vmatprep.subr.bf16.mxu0 %v647_v34 }
  0x29   :  { %589 = vmatpush3.bf16.msra.mxu0 %v642_v41 }
  0x2a   :  { %590 = vmatprep.subr.bf16.mxu0 %v647_v34 }
  0x2d   :  { %591 = vmatpush3.bf16.msra.mxu0 %v643_v42 }
  0x2e   :  { %592 = vmatprep.subr.bf16.mxu0 %v647_v34 }
  0x31   :  { %593 = vmatpush3.bf16.msra.mxu0 %v644_v43 }
  0x32   :  { %594 = vmatprep.subr.bf16.mxu0 %v647_v34 }
  0x35   :  { %595 = vmatpush3.bf16.msra.mxu0 %v645_v44 }
  0x38   :  { %597 = vmatmul.mubr.msk.bf16.vlgmr.msra.gmra.mxu0 %vm335_vm2, %v646_v45 }
  0xe3   :  { %v552_v46 = vpop.f32.mrf.mxu0 }
  0xe4   :  { %v574_v47 = vpop.f32.mrf.mxu1 }
  0xe5   :  { %v553_v48 = vpop.f32.mrf.mxu0 }
  0xe6   :  { %v575_v49 = vpop.f32.mrf.mxu1  ;;  %v554_v54 = vadd.f32 %v553_v48, %v552_v46 }
  0xe7   :  { %v555_v50 = vpop.f32.mrf.mxu0  ;;  %v576_v55 = vadd.f32 %v575_v49, %v574_v47 }
  0xe8   :  { %v577_v51 = vpop.f32.mrf.mxu1 }
  0xe9   :  { %v556_v52 = vpop.f32.mrf.mxu0  ;;  %v421_v59 = vadd.f32 %v576_v55, %v554_v54 }
  0xea   :  { %v578_v53 = vpop.f32.mrf.mxu1  ;;  %v557_v56 = vadd.f32 %v556_v52, %v555_v50 }
  0xeb   :  { %v579_v57 = vadd.f32 %v578_v53, %v577_v51 }
  0xed   :  { %v424_v62 = vadd.f32 %v579_v57, %v557_v56 }
  0xf8   :  { %v461_v58 = vpop.f32.mrf.mxu0 }
  0xf9   :  { %v462_v61 = vadd.f32 %v461_v58, %v421_v59 }
  0xfa   :  { %v598_v60 = vpop.f32.mrf.mxu0 }
  0xfb   :  { %v468_v2 = vmax.f32 %v462_v61, 0.0 }
  0xfc   :  { %v464_v63 = vpop.f32.mrf.mxu0 }
  0xfd   :  { %v465_v0 = vadd.f32 %v464_v63, %v424_v62 }
  0xfe   :  { %v599_v1 = vpop.f32.mrf.mxu0 }
  0xff   :  { %v469_v3 = vmax.f32 %v465_v0, 0.0 }
 0x101   :  { %v534_v4 = vpack.c.bf16 %v469_v3, %v468_v2 }
 0x103   :  { %535 = vst [vmem:[%s796_s2] sm:$0xff] %v534_v4  }

// kernel: _lambda_.20
= control target key start
LH: loop header
LB: loop body
LE: loop exit
PB: predicated region body
PF: predicated region fallthrough
CT: control target
= control target key end

     0   :  { %vm542_vm0 = vcmask 1041408   ;;  %vm543_vm1 = vcmask 1042432   ;;  %v1063_v1 = vmov 65535   ;;  %v1064_v3 = vmov 0   ;;  %s1381_s0 = inlined_call_operand.vmem [shape: bf16[325,512], index: 0, kind: input, shape index: {}]   ;;  %s1382_s1 = inlined_call_operand.vmem [shape: bf16[18,325], index: 1, kind: input, shape index: {}]   ;;  %s1383_s2 = inlined_call_operand.vmem [shape: bf16[18,512], index: 2, kind: output, shape index: {}]  }
   0x1   :  { %v932_v0 = vld [vmem:[%s1381_s0 + $0xe4] ss:$16 sps:$4 sm:$0xff]   ;;  %v544_v2 = vsel %vm542_vm0, 4294967295, %v1063_v1  ;;  %641 = vmatprep.mubr.bf16.mxu1 %v1064_v3  ;;  %v934_v4 = vld [vmem:[%s1381_s0 + $0xe0] ss:$16 sps:$4 sm:$0xff]   ;;  %vm535_vm2 = vcmask 564224  }
   0x2   :  { %v98_v5 = vld [vmem:[%s1381_s0 + $0x280] sm:$0x77]  ;;  %v1090_v6 = vsel %vm543_vm1, %v544_v2, 0  ;;  %558 = vmatprep.subr.bf16.mxu0 %v932_v0  ;;  %v967_v29 = vld [vmem:[%s1381_s0 + $0xec] ss:$16 sps:$4 sm:$0xff]  }
   0x3   :  { %v911_v7 = vcombine.high %v98_v5, %v98_v5  ;;  %v910_v8 = vcombine.low %v98_v5, %v98_v5  ;;  %v937_v9 = vld [vmem:[%s1381_s0 + $0xc4] ss:$16 sps:$4 sm:$0xff]   ;;  %559 = vmatpush1.bf16.msra.mxu0 %v934_v4  ;;  %v939_v10 = vld [vmem:[%s1381_s0 + $0xc0] ss:$16 sps:$4 sm:$0xff]   ;;  %v965_v32 = vld [vmem:[%s1381_s0 + $0xe8] ss:$16 sps:$4 sm:$0xff]  }
   0x4   :  { %560 = vmatprep.subr.bf16.mxu0 %v937_v9  ;;  %v940_v13 = vld [vmem:[%s1381_s0 + $0x264] ss:$16 sps:$4 sm:$0xff]   ;;  %v942_v15 = vld [vmem:[%s1381_s0 + $0x260] ss:$16 sps:$4 sm:$0xff]   ;;  %v973_v34 = vld [vmem:[%s1381_s0 + $0xcc] ss:$16 sps:$4 sm:$0xff]  }
   0x5   :  { %v550_v11 = vand.u32 %v911_v7, %v1090_v6  ;;  %v547_v12 = vand.u32 %v910_v8, %v1090_v6  ;;  %v943_v14 = vld [vmem:[%s1381_s0 + $0xa4] ss:$16 sps:$4 sm:$0xff]   ;;  %v945_v16 = vld [vmem:[%s1381_s0 + $0xa0] ss:$16 sps:$4 sm:$0xff]   ;;  %v971_v36 = vld [vmem:[%s1381_s0 + $0xc8] ss:$16 sps:$4 sm:$0xff]  }
   0x6   :  { %v946_v17 = vld [vmem:[%s1381_s0 + $0x244] ss:$16 sps:$4 sm:$0xff]   ;;  %v948_v19 = vld [vmem:[%s1381_s0 + $0x240] ss:$16 sps:$4 sm:$0xff]   ;;  %v979_v38 = vld [vmem:[%s1381_s0 + $0xac] ss:$16 sps:$4 sm:$0xff]  }
   0x7   :  { %615 = vmatprep.subr.bf16.mxu1 %v550_v11  ;;  %561 = vmatpush1.bf16.msra.mxu0 %v939_v10  ;;  %v949_v18 = vld [vmem:[%s1381_s0 + $0x84] ss:$16 sps:$4 sm:$0xff]   ;;  %v951_v20 = vld [vmem:[%s1381_s0 + $0x80] ss:$16 sps:$4 sm:$0xff]   ;;  %v977_v40 = vld [vmem:[%s1381_s0 + $0xa8] ss:$16 sps:$4 sm:$0xff]  }
   0x8   :  { %616 = vmatpush1.bf16.msra.mxu1 %v547_v12  ;;  %562 = vmatprep.subr.bf16.mxu0 %v943_v14  ;;  %v952_v21 = vld [vmem:[%s1381_s0 + $0x224] ss:$16 sps:$4 sm:$0xff]   ;;  %v954_v23 = vld [vmem:[%s1381_s0 + $0x220] ss:$16 sps:$4 sm:$0xff]   ;;  %v985_v42 = vld [vmem:[%s1381_s0 + $0x8c] ss:$16 sps:$4 sm:$0xff]  }
   0x9   :  { %617 = vmatprep.subr.bf16.mxu1 %v940_v13  ;;  %v955_v22 = vld [vmem:[%s1381_s0 + $0x64] ss:$16 sps:$4 sm:$0xff]   ;;  %v957_v24 = vld [vmem:[%s1381_s0 + $0x60] ss:$16 sps:$4 sm:$0xff]   ;;  %v983_v44 = vld [vmem:[%s1381_s0 + $0x88] ss:$16 sps:$4 sm:$0xff]  }
   0xa   :  { %v958_v25 = vld [vmem:[%s1381_s0 + $0x204] ss:$16 sps:$4 sm:$0xff]   ;;  %v960_v27 = vld [vmem:[%s1381_s0 + $0x200] ss:$16 sps:$4 sm:$0xff]   ;;  %v991_v46 = vld [vmem:[%s1381_s0 + $0x6c] ss:$16 sps:$4 sm:$0xff]  }
   0xb   :  { %563 = vmatpush1.bf16.msra.mxu0 %v945_v16  ;;  %v961_v26 = vld [vmem:[%s1381_s0 + $0x44] ss:$16 sps:$4 sm:$0xff]   ;;  %v963_v28 = vld [vmem:[%s1381_s0 + $0x40] ss:$16 sps:$4 sm:$0xff]   ;;  %v989_v48 = vld [vmem:[%s1381_s0 + $0x68] ss:$16 sps:$4 sm:$0xff]  }
   0xc   :  { %618 = vmatpush1.bf16.msra.mxu1 %v942_v15  ;;  %564 = vmatprep.subr.bf16.mxu0 %v949_v18  ;;  %v968_v30 = vld [vmem:[%s1381_s0 + $0x24] ss:$16 sps:$4 sm:$0xff]   ;;  %v970_v33 = vld [vmem:[%s1381_s0 + $0x20] ss:$16 sps:$4 sm:$0xff]   ;;  %v997_v50 = vld [vmem:[%s1381_s0 + $0x4c] ss:$16 sps:$4 sm:$0xff]  }
   0xd   :  { %619 = vmatprep.subr.bf16.mxu1 %v946_v17  ;;  %v1157_v31 = vld [vmem:[%s1382_s1 + $0x8] ss:$12 sps:$4 sm:$0xff]   ;;  %v976_v37 = vld [vmem:[%s1381_s0] ss:$16 sps:$4 sm:$0xff]   ;;  %v1003_v54 = vld [vmem:[%s1381_s0 + $0x2c] ss:$16 sps:$4 sm:$0xff]  }
   0xe   :  { %v974_v35 = vld [vmem:[%s1381_s0 + $0x4] ss:$16 sps:$4 sm:$0xff]   ;;  %v982_v41 = vld [vmem:[%s1381_s0 + $0x1e0] ss:$16 sps:$4 sm:$0xff]   ;;  %v995_v52 = vld [vmem:[%s1381_s0 + $0x48] ss:$16 sps:$4 sm:$0xff]  }
   0xf   :  { %565 = vmatpush1.bf16.msra.mxu0 %v951_v20  ;;  %v980_v39 = vld [vmem:[%s1381_s0 + $0x1e4] ss:$16 sps:$4 sm:$0xff]   ;;  %v988_v45 = vld [vmem:[%s1381_s0 + $0x1c0] ss:$16 sps:$4 sm:$0xff]   ;;  %v1001_v57 = vld [vmem:[%s1381_s0 + $0x28] ss:$16 sps:$4 sm:$0xff]  }
  0x10   :  { %620 = vmatpush1.bf16.msra.mxu1 %v948_v19  ;;  %566 = vmatprep.subr.bf16.mxu0 %v955_v22  ;;  %v986_v43 = vld [vmem:[%s1381_s0 + $0x1c4] ss:$16 sps:$4 sm:$0xff]   ;;  %v994_v49 = vld [vmem:[%s1381_s0 + $0x1a0] ss:$16 sps:$4 sm:$0xff]   ;;  %v1009_v59 = vld [vmem:[%s1381_s0 + $0xc] ss:$16 sps:$4 sm:$0xff]  }
  0x11   :  { %621 = vmatprep.subr.bf16.mxu1 %v952_v21  ;;  %v992_v47 = vld [vmem:[%s1381_s0 + $0x1a4] ss:$16 sps:$4 sm:$0xff]   ;;  %v1000_v53 = vld [vmem:[%s1381_s0 + $0x180] ss:$16 sps:$4 sm:$0xff]   ;;  %v1007_v62 = vld [vmem:[%s1381_s0 + $0x8] ss:$16 sps:$4 sm:$0xff]  }
  0x12   :  { %v998_v51 = vld [vmem:[%s1381_s0 + $0x184] ss:$16 sps:$4 sm:$0xff]   ;;  %v1006_v58 = vld [vmem:[%s1381_s0 + $0x160] ss:$16 sps:$4 sm:$0xff]   ;;  %v1015_v0 = vld [vmem:[%s1381_s0 + $0x1ec] ss:$16 sps:$4 sm:$0xff]  }
  0x13   :  { %567 = vmatpush1.bf16.msra.mxu0 %v957_v24  ;;  %v1030_v55 = vld [vmem:[%s1382_s1 + $0x4] ss:$12 sps:$4 sm:$0xff]   ;;  %v1252_v61 = vld [vmem:[%s1382_s1 + $0x20] ss:$0 sps:$4 sm:$0x11]  }
  0x14   :  { %622 = vmatpush1.bf16.msra.mxu1 %v954_v23  ;;  %568 = vmatprep.subr.bf16.mxu0 %v961_v26  ;;  %v1004_v56 = vld [vmem:[%s1381_s0 + $0x164] ss:$16 sps:$4 sm:$0xff]   ;;  %v1012_v63 = vld [vmem:[%s1381_s0 + $0x140] ss:$16 sps:$4 sm:$0xff]   ;;  %v99_v2 = vld [vmem:[%s1381_s0 + $0x288] sm:$0x77] }
  0x15   :  { %623 = vmatprep.subr.bf16.mxu1 %v958_v25  ;;  %590 = vmatprep.mubr.bf16.mxu0 %v1030_v55  ;;  %v1010_v60 = vld [vmem:[%s1381_s0 + $0x144] ss:$16 sps:$4 sm:$0xff]   ;;  %v1013_v4 = vld [vmem:[%s1381_s0 + $0x1e8] ss:$16 sps:$4 sm:$0xff]   ;;  %v1018_v5 = vld [vmem:[%s1381_s0 + $0x120] ss:$16 sps:$4 sm:$0xff]   ;;  %v913_v9 = vcombine.high %v99_v2, %v99_v2  ;;  %v912_v12 = vcombine.low %v99_v2, %v99_v2 }
  0x16   :  { %v1016_v1 = vld [vmem:[%s1381_s0 + $0x124] ss:$16 sps:$4 sm:$0xff]   ;;  %v1021_v7 = vld [vmem:[%s1381_s0 + $0x1cc] ss:$16 sps:$4 sm:$0xff]   ;;  %v1019_v10 = vld [vmem:[%s1381_s0 + $0x1c8] ss:$16 sps:$4 sm:$0xff]  }
  0x17   :  { %569 = vmatpush1.bf16.msra.mxu0 %v963_v28  ;;  %v1022_v8 = vld [vmem:[%s1381_s0 + $0x104] ss:$16 sps:$4 sm:$0xff]   ;;  %v1024_v11 = vld [vmem:[%s1381_s0 + $0x100] ss:$16 sps:$4 sm:$0xff]   ;;  %v1027_v13 = vld [vmem:[%s1381_s0 + $0x1ac] ss:$16 sps:$4 sm:$0xff]   ;;  %v556_v14 = vand.u32 %v913_v9, %v1090_v6  ;;  %v553_v18 = vand.u32 %v912_v12, %v1090_v6 }
  0x18   :  { %624 = vmatpush1.bf16.msra.mxu1 %v960_v27  ;;  %570 = vmatprep.subr.bf16.mxu0 %v968_v30  ;;  %v1028_v15 = vld [vmem:[%s1382_s1] ss:$12 sps:$4 sm:$0xff]   ;;  %v16_v16 = vld [vmem:[%s1382_s1 + $0x18] sm:$0x11] }
  0x19   :  { %660 = vmatprep.subr.bf16.mxu1 %v967_v29  ;;  %v1025_v17 = vld [vmem:[%s1381_s0 + $0x1a8] ss:$16 sps:$4 sm:$0xff]   ;;  %v1035_v19 = vld [vmem:[%s1381_s0 + $0x18c] ss:$16 sps:$4 sm:$0xff]   ;;  %v828_v21 = vcombine.high %v16_v16, %v16_v16  ;;  %v827_v25 = vcombine.low %v16_v16, %v16_v16 }
  0x1a   :  { %v1038_v20 = vld [vmem:[%s1381_s0 + $0x26c] ss:$16 sps:$4 sm:$0xff]   ;;  %v1033_v22 = vld [vmem:[%s1381_s0 + $0x188] ss:$16 sps:$4 sm:$0xff]  }
  0x1b   :  { %914 = vmatmul.mubr.msk.bf16.vlgmr.msra.gmra.mxu1 %vm535_vm2, %v1157_v31  ;;  %571 = vmatpush1.bf16.msra.mxu0 %v970_v33  ;;  %v1036_v6 = vld [vmem:[%s1381_s0 + $0x268] ss:$16 sps:$4 sm:$0xff]   ;;  %v1041_v23 = vld [vmem:[%s1381_s0 + $0x16c] ss:$16 sps:$4 sm:$0xff]  }
  0x1c   :  { %661 = vmatpush1.bf16.msra.mxu1 %v965_v32  ;;  %572 = vmatprep.subr.bf16.mxu0 %v974_v35  ;;  %v1047_v24 = vld [vmem:[%s1381_s0 + $0x24c] ss:$16 sps:$4 sm:$0xff]   ;;  %v1039_v26 = vld [vmem:[%s1381_s0 + $0x168] ss:$16 sps:$4 sm:$0xff]  }
  0x1d   :  { %662 = vmatprep.subr.bf16.mxu1 %v973_v34  ;;  %651 = vmatprep.mubr.bf16.mxu1 %v1064_v3  ;;  %v1045_v27 = vld [vmem:[%s1381_s0 + $0x248] ss:$16 sps:$4 sm:$0xff]   ;;  %v1050_v28 = vld [vmem:[%s1381_s0 + $0x14c] ss:$16 sps:$4 sm:$0xff]  }
  0x1e   :  { %v1053_v29 = vld [vmem:[%s1381_s0 + $0x22c] ss:$16 sps:$4 sm:$0xff]   ;;  %v1048_v30 = vld [vmem:[%s1381_s0 + $0x148] ss:$16 sps:$4 sm:$0xff]  }
  0x1f   :  { %573 = vmatpush1.bf16.msra.mxu0 %v976_v37  ;;  %v1051_v32 = vld [vmem:[%s1381_s0 + $0x228] ss:$16 sps:$4 sm:$0xff]   ;;  %v1056_v33 = vld [vmem:[%s1381_s0 + $0x12c] ss:$16 sps:$4 sm:$0xff]  }
  0x20   :  { %663 = vmatpush1.bf16.msra.mxu1 %v971_v36  ;;  %574 = vmatprep.subr.bf16.mxu0 %v980_v39  ;;  %v1059_v34 = vld [vmem:[%s1381_s0 + $0x20c] ss:$16 sps:$4 sm:$0xff]   ;;  %v1054_v35 = vld [vmem:[%s1381_s0 + $0x128] ss:$16 sps:$4 sm:$0xff]  }
  0x21   :  { %664 = vmatprep.subr.bf16.mxu1 %v979_v38  ;;  %v1057_v36 = vld [vmem:[%s1381_s0 + $0x208] ss:$16 sps:$4 sm:$0xff]   ;;  %v1062_v37 = vld [vmem:[%s1381_s0 + $0x10c] ss:$16 sps:$4 sm:$0xff]  }
  0x22   :  { %v1060_v38 = vld [vmem:[%s1381_s0 + $0x108] ss:$16 sps:$4 sm:$0xff]  }
  0x23   :  { %575 = vmatpush2.bf16.msra.mxu0 %v982_v41  ;;  %915 = vmatmul.mubr.msk.bf16.gmra.mxu1 %vm535_vm2, %v1252_v61 }
  0x24   :  { %665 = vmatpush1.bf16.msra.mxu1 %v977_v40  ;;  %576 = vmatprep.subr.bf16.mxu0 %v986_v43 }
  0x25   :  { %666 = vmatprep.subr.bf16.mxu1 %v985_v42  ;;  %692 = vmatprep.mubr.bf16.mxu1 %v1030_v55 }
  0x27   :  { %577 = vmatpush2.bf16.msra.mxu0 %v988_v45 }
  0x28   :  { %667 = vmatpush1.bf16.msra.mxu1 %v983_v44  ;;  %578 = vmatprep.subr.bf16.mxu0 %v992_v47 }
  0x29   :  { %668 = vmatprep.subr.bf16.mxu1 %v991_v46 }
  0x2b   :  { %579 = vmatpush2.bf16.msra.mxu0 %v994_v49 }
  0x2c   :  { %669 = vmatpush1.bf16.msra.mxu1 %v989_v48  ;;  %580 = vmatprep.subr.bf16.mxu0 %v998_v51 }
  0x2d   :  { %670 = vmatprep.subr.bf16.mxu1 %v997_v50 }
  0x2f   :  { %581 = vmatpush2.bf16.msra.mxu0 %v1000_v53 }
  0x30   :  { %671 = vmatpush1.bf16.msra.mxu1 %v995_v52  ;;  %582 = vmatprep.subr.bf16.mxu0 %v1004_v56 }
  0x31   :  { %672 = vmatprep.subr.bf16.mxu1 %v1003_v54 }
  0x33   :  { %583 = vmatpush2.bf16.msra.mxu0 %v1006_v58 }
  0x34   :  { %673 = vmatpush1.bf16.msra.mxu1 %v1001_v57  ;;  %584 = vmatprep.subr.bf16.mxu0 %v1010_v60 }
  0x35   :  { %674 = vmatprep.subr.bf16.mxu1 %v1009_v59 }
  0x37   :  { %585 = vmatpush2.bf16.msra.mxu0 %v1012_v63 }
  0x38   :  { %675 = vmatpush1.bf16.msra.mxu1 %v1007_v62  ;;  %586 = vmatprep.subr.bf16.mxu0 %v1016_v1 }
  0x39   :  { %676 = vmatprep.subr.bf16.mxu1 %v1015_v0 }
  0x3b   :  { %587 = vmatpush2.bf16.msra.mxu0 %v1018_v5 }
  0x3c   :  { %677 = vmatpush2.bf16.msra.mxu1 %v1013_v4  ;;  %588 = vmatprep.subr.bf16.mxu0 %v1022_v8 }
  0x3d   :  { %678 = vmatprep.subr.bf16.mxu1 %v1021_v7 }
  0x3f   :  { %589 = vmatpush2.bf16.msra.mxu0 %v1024_v11 }
  0x40   :  { %679 = vmatpush2.bf16.msra.mxu1 %v1019_v10  ;;  %717 = vmatprep.subr.bf16.mxu0 %v556_v14 }
  0x41   :  { %680 = vmatprep.subr.bf16.mxu1 %v1027_v13 }
  0x42   :  { %591 = vmatmul.mubr.bf16.vlgmr.msra.gmra.mxu0 %v1028_v15 }
  0x43   :  { %718 = vmatpush1.bf16.msra.mxu0 %v553_v18  ;;  %600 = vmatprep.mubr.bf16.mxu0 %v828_v21 }
  0x44   :  { %681 = vmatpush2.bf16.msra.mxu1 %v1025_v17  ;;  %719 = vmatprep.subr.bf16.mxu0 %v1038_v20 }
  0x45   :  { %682 = vmatprep.subr.bf16.mxu1 %v1035_v19 }
  0x47   :  { %720 = vmatpush1.bf16.msra.mxu0 %v1036_v6 }
  0x48   :  { %683 = vmatpush2.bf16.msra.mxu1 %v1033_v22  ;;  %721 = vmatprep.subr.bf16.mxu0 %v1047_v24 }
  0x49   :  { %684 = vmatprep.subr.bf16.mxu1 %v1041_v23 }
  0x4a   :  { %601 = vmatmul.mubr.bf16.gmra.mxu0 %v827_v25 }
  0x4b   :  { %722 = vmatpush1.bf16.msra.mxu0 %v1045_v27  ;;  %743 = vmatprep.mubr.bf16.mxu0 %v1064_v3 }
  0x4c   :  { %685 = vmatpush2.bf16.msra.mxu1 %v1039_v26  ;;  %723 = vmatprep.subr.bf16.mxu0 %v1053_v29 }
  0x4d   :  { %686 = vmatprep.subr.bf16.mxu1 %v1050_v28 }
  0x4f   :  { %724 = vmatpush1.bf16.msra.mxu0 %v1051_v32 }
  0x50   :  { %687 = vmatpush2.bf16.msra.mxu1 %v1048_v30  ;;  %725 = vmatprep.subr.bf16.mxu0 %v1059_v34 }
  0x51   :  { %688 = vmatprep.subr.bf16.mxu1 %v1056_v33 }
  0x53   :  { %726 = vmatpush1.bf16.msra.mxu0 %v1057_v36 }
  0x54   :  { %689 = vmatpush2.bf16.msra.mxu1 %v1054_v35 }
  0x55   :  { %690 = vmatprep.subr.bf16.mxu1 %v1062_v37 }
  0x56   :  { %916 = vmatmul.mubr.msk.bf16.vlgmr.msra.gmra.mxu0 %vm535_vm2, %v1157_v31 }
  0x57   :  { %753 = vmatprep.mubr.bf16.mxu0 %v1064_v3 }
  0x58   :  { %691 = vmatpush2.bf16.msra.mxu1 %v1060_v38 }
  0x5b   :  { %693 = vmatmul.mubr.bf16.vlgmr.msra.gmra.mxu1 %v1028_v15 }
  0x5c   :  { %702 = vmatprep.mubr.bf16.mxu1 %v828_v21 }
  0x5e   :  { %917 = vmatmul.mubr.msk.bf16.gmra.mxu0 %vm535_vm2, %v1252_v61 }
  0x63   :  { %703 = vmatmul.mubr.bf16.gmra.mxu1 %v827_v25 }
  0xdb   :  { %v643_v39 = vpop.f32.mrf.mxu1 }
  0xdd   :  { %v645_v40 = vpop.f32.mrf.mxu1 }
  0xdf   :  { %v647_v41 = vpop.f32.mrf.mxu1 }
  0xe1   :  { %v649_v42 = vpop.f32.mrf.mxu1 }
  0xe3   :  { %v653_v43 = vpop.f32.mrf.mxu1 }
  0xe5   :  { %v655_v44 = vpop.f32.mrf.mxu1 }
  0xe7   :  { %v657_v45 = vpop.f32.mrf.mxu1 }
  0xe9   :  { %v658_v46 = vpop.f32.mrf.mxu1 }
 0x102   :  { %v592_v47 = vpop.f32.mrf.mxu0 }
 0x103   :  { %v644_v48 = vadd.f32 %v643_v39, %v592_v47 }
 0x104   :  { %v594_v31 = vpop.f32.mrf.mxu0 }
 0x105   :  { %v646_v49 = vadd.f32 %v645_v40, %v594_v31  ;;  %v762_v3 = vmax.f32 %v644_v48, 0.0 }
 0x106   :  { %v596_v50 = vpop.f32.mrf.mxu0 }
 0x107   :  { %v763_v51 = vmax.f32 %v646_v49, 0.0  ;;  %v648_v52 = vadd.f32 %v647_v41, %v596_v50 }
 0x108   :  { %v598_v53 = vpop.f32.mrf.mxu0 }
 0x109   :  { %v924_v54 = vpack.c.bf16 %v763_v51, %v762_v3  ;;  %v650_v55 = vadd.f32 %v649_v42, %v598_v53  ;;  %v766_v57 = vmax.f32 %v648_v52, 0.0 }
 0x10a   :  { %v602_v56 = vpop.f32.mrf.mxu0 }
 0x10b   :  { %814 = vst [vmem:[%s1383_s2] sm:$0xff] %v924_v54  ;;  %v767_v58 = vmax.f32 %v650_v55, 0.0  ;;  %v654_v59 = vadd.f32 %v653_v43, %v602_v56 }
 0x10c   :  { %v604_v60 = vpop.f32.mrf.mxu0 }
 0x10d   :  { %v926_v61 = vpack.c.bf16 %v767_v58, %v766_v57  ;;  %v770_v62 = vmax.f32 %v654_v59, 0.0  ;;  %v656_v63 = vadd.f32 %v655_v44, %v604_v60 }
 0x10e   :  { %v606_v0 = vpop.f32.mrf.mxu0 }
 0x10f   :  { %816 = vst [vmem:[%s1383_s2 + $0x10] sm:$0xff] %v926_v61  ;;  %v771_v1 = vmax.f32 %v656_v63, 0.0 }
 0x110   :  { %v607_v2 = vpop.f32.mrf.mxu0 }
 0x111   :  { %v928_v4 = vpack.c.bf16 %v771_v1, %v770_v62 }
 0x113   :  { %818 = vst [vmem:[%s1383_s2 + $0x20] sm:$0x11] %v928_v4 }
 0x116   :  { %v745_v5 = vpop.f32.mrf.mxu0 }
 0x118   :  { %v747_v7 = vpop.f32.mrf.mxu0 }
 0x11a   :  { %v749_v9 = vpop.f32.mrf.mxu0 }
 0x11b   :  { %v694_v8 = vpop.f32.mrf.mxu1 }
 0x11c   :  { %v746_v10 = vadd.f32 %v745_v5, %v694_v8  ;;  %v751_v12 = vpop.f32.mrf.mxu0 }
 0x11d   :  { %v696_v11 = vpop.f32.mrf.mxu1 }
 0x11e   :  { %v748_v13 = vadd.f32 %v747_v7, %v696_v11  ;;  %v755_v15 = vpop.f32.mrf.mxu0  ;;  %v764_v16 = vmax.f32 %v746_v10, 0.0 }
 0x11f   :  { %v698_v14 = vpop.f32.mrf.mxu1 }
 0x120   :  { %v765_v17 = vmax.f32 %v748_v13, 0.0  ;;  %v750_v18 = vadd.f32 %v749_v9, %v698_v14  ;;  %v757_v20 = vpop.f32.mrf.mxu0 }
 0x121   :  { %v700_v19 = vpop.f32.mrf.mxu1 }
 0x122   :  { %v925_v21 = vpack.c.bf16 %v765_v17, %v764_v16  ;;  %v752_v22 = vadd.f32 %v751_v12, %v700_v19  ;;  %v759_v23 = vpop.f32.mrf.mxu0  ;;  %v768_v24 = vmax.f32 %v750_v18, 0.0 }
 0x123   :  { %v704_v6 = vpop.f32.mrf.mxu1 }
 0x124   :  { %815 = vst [vmem:[%s1383_s2 + $0x8] sm:$0xff] %v925_v21  ;;  %v769_v25 = vmax.f32 %v752_v22, 0.0  ;;  %v756_v26 = vadd.f32 %v755_v15, %v704_v6  ;;  %v760_v28 = vpop.f32.mrf.mxu0 }
 0x125   :  { %v706_v27 = vpop.f32.mrf.mxu1 }
 0x126   :  { %v927_v29 = vpack.c.bf16 %v769_v25, %v768_v24  ;;  %v758_v30 = vadd.f32 %v757_v20, %v706_v27  ;;  %v772_v33 = vmax.f32 %v756_v26, 0.0 }
 0x127   :  { %v708_v32 = vpop.f32.mrf.mxu1 }
 0x128   :  { %817 = vst [vmem:[%s1383_s2 + $0x18] sm:$0xff] %v927_v29  ;;  %v773_v34 = vmax.f32 %v758_v30, 0.0 }
 0x129   :  { %v709_v35 = vpop.f32.mrf.mxu1 }
 0x12a   :  { %v929_v36 = vpack.c.bf16 %v773_v34, %v772_v33 }
 0x12c   :  { %819 = vst [vmem:[%s1383_s2 + $0x28] sm:$0x11] %v929_v36 }

// kernel: _lambda_.17
= control target key start
LH: loop header
LB: loop body
LE: loop exit
PB: predicated region body
PF: predicated region fallthrough
CT: control target
= control target key end

     0   :  { %v1687_v20 = vmov 1983009808   ;;  %v250_v22 = vlaneseq  ;;  %vm985_vm0 = vcmask 1041408   ;;  %vm986_vm1 = vcmask 1042432   ;;  %s2115_s0 = inlined_call_operand.vmem [shape: bf16[1765,128], index: 0, kind: input, shape index: {}]   ;;  %s2116_s1 = inlined_call_operand.vmem [shape: bf16[3,1765], index: 1, kind: input, shape index: {}]   ;;  %s2117_s2 = inlined_call_operand.vmem [shape: f32[2,3,128], index: 2, kind: input, shape index: {}]   ;;  %s2118_s3 = inlined_call_operand.vmem [shape: f32[3,128], index: 3, kind: output, shape index: {0}]   ;;  %s2119_s4 = inlined_call_operand.vmem [shape: f32[2,128], index: 4, kind: output, shape index: {1}]  }
   0x1   :  { %v1569_v0 = vld [vmem:[%s2115_s0 + $0x78] sm:$0xff]   ;;  %v1571_v2 = vld [vmem:[%s2115_s0 + $0x70] sm:$0xff]   ;;  %v1575_v6 = vld [vmem:[%s2115_s0 + $0x68] sm:$0xff]   ;;  %v248_v21 = vunpack.c.l.s4 %v1687_v20  ;;  %vm981_vm2 = vcmask 826368   ;;  %vm1310_vm3 = vcmask 1040384  }
   0x2   :  { %v1570_v1 = vld [vmem:[%s2115_s0 + $0x38] sm:$0xff]   ;;  %1434 = vmatprep.subr.bf16.mxu1 %v1569_v0  ;;  %v1573_v4 = vld [vmem:[%s2115_s0 + $0x30] sm:$0xff]   ;;  %v1577_v8 = vld [vmem:[%s2115_s0 + $0x28] sm:$0xff]   ;;  %v251_v28 = vshrl.u32 %v250_v22, 7 }
   0x3   :  { %1435 = vmatpush3.bf16.msra.mxu1 %v1570_v1  ;;  %v1572_v3 = vld [vmem:[%s2115_s0 + $0x178] sm:$0xff]   ;;  %v1576_v7 = vld [vmem:[%s2115_s0 + $0x170] sm:$0xff]   ;;  %v1579_v10 = vld [vmem:[%s2115_s0 + $0x60] sm:$0xff]   ;;  %v249_v27 = vunpack.c.0.s8 %v248_v21 }
   0x4   :  { %1436 = vmatprep.subr.bf16.mxu1 %v1571_v2  ;;  %1478 = vmatprep.subr.bf16.mxu0 %v1572_v3  ;;  %v1574_v5 = vld [vmem:[%s2115_s0 + $0x138] sm:$0xff]   ;;  %v1578_v9 = vld [vmem:[%s2115_s0 + $0x130] sm:$0xff]   ;;  %v1580_v11 = vld [vmem:[%s2115_s0 + $0x168] sm:$0xff]  }
   0x5   :  { %1479 = vmatpush3.bf16.msra.mxu0 %v1574_v5  ;;  %v1581_v12 = vld [vmem:[%s2115_s0 + $0x20] sm:$0xff]   ;;  %v1582_v13 = vld [vmem:[%s2115_s0 + $0x128] sm:$0xff]   ;;  %v1583_v14 = vld [vmem:[%s2115_s0 + $0x58] sm:$0xff]   ;;  %v1799_v33 = vsub.s32 %v249_v27, %v251_v28  ;;  %v1688_v27 = vmov 0  }
   0x6   :  { %1480 = vmatprep.subr.bf16.mxu0 %v1576_v7  ;;  %v1584_v15 = vld [vmem:[%s2115_s0 + $0x160] sm:$0xff]   ;;  %v1585_v16 = vld [vmem:[%s2115_s0 + $0x18] sm:$0xff]   ;;  %v1587_v18 = vld [vmem:[%s2115_s0 + $0x50] sm:$0xff]  }
   0x7   :  { %1437 = vmatpush3.bf16.msra.mxu1 %v1573_v4  ;;  %v1586_v17 = vld [vmem:[%s2115_s0 + $0x120] sm:$0xff]   ;;  %v1588_v19 = vld [vmem:[%s2115_s0 + $0x158] sm:$0xff]   ;;  %v1589_v23 = vld [vmem:[%s2115_s0 + $0x10] sm:$0xff]  }
   0x8   :  { %1438 = vmatprep.subr.bf16.mxu1 %v1575_v6  ;;  %v1590_v24 = vld [vmem:[%s2115_s0 + $0x118] sm:$0xff]   ;;  %v1591_v25 = vld [vmem:[%s2115_s0 + $0x48] sm:$0xff]   ;;  %v1592_v26 = vld [vmem:[%s2115_s0 + $0x150] sm:$0xff]  }
   0x9   :  { %1481 = vmatpush3.bf16.msra.mxu0 %v1578_v9  ;;  %v1593_v29 = vld [vmem:[%s2115_s0 + $0x8] sm:$0xff]   ;;  %v1594_v30 = vld [vmem:[%s2115_s0 + $0x110] sm:$0xff]   ;;  %v1595_v31 = vld [vmem:[%s2115_s0 + $0x40] sm:$0xff]  }
   0xa   :  { %1482 = vmatprep.subr.bf16.mxu0 %v1580_v11  ;;  %v1596_v32 = vld [vmem:[%s2115_s0 + $0x148] sm:$0xff]   ;;  %v1597_v34 = vld [vmem:[%s2115_s0] sm:$0xff]   ;;  %v1600_v39 = vld [vmem:[%s2115_s0 + $0xf8] sm:$0xff]  }
   0xb   :  { %1439 = vmatpush3.bf16.msra.mxu1 %v1577_v8  ;;  %v1598_v35 = vld [vmem:[%s2115_s0 + $0x108] sm:$0xff]   ;;  %v17_v36 = vld [vmem:[%s2116_s1] sm:$0xff]  ;;  %v1602_v42 = vld [vmem:[%s2115_s0 + $0xb8] sm:$0xff]  }
   0xc   :  { %1440 = vmatprep.subr.bf16.mxu1 %v1579_v10  ;;  %v246_v37 = vcombine.high %v17_v36, %v17_v36  ;;  %v253_v38 = vrot.slane %v17_v36, %v1799_v33  ;;  %v1601_v40 = vld [vmem:[%s2115_s0 + $0x140] sm:$0xff]   ;;  %v1604_v45 = vld [vmem:[%s2115_s0 + $0xf0] sm:$0xff]   ;;  %v18_v46 = vld [vmem:[%s2116_s1 + $0x8] sm:$0xff] }
   0xd   :  { %1483 = vmatpush3.bf16.msra.mxu0 %v1582_v13  ;;  %v1603_v44 = vld [vmem:[%s2115_s0 + $0x100] sm:$0xff]   ;;  %v270_v48 = vrot.slane %v18_v46, %v1799_v33  ;;  %v1606_v49 = vld [vmem:[%s2115_s0 + $0x278] sm:$0xff]   ;;  %v1607_v50 = vld [vmem:[%s2115_s0 + $0xb0] sm:$0xff]   ;;  %v263_v7 = vcombine.high %v18_v46, %v18_v46 }
   0xe   :  { %1484 = vmatprep.subr.bf16.mxu0 %v1584_v15  ;;  %v261_v41 = vcombine.high %v253_v38, %v253_v38  ;;  %v1821_v43 = vrot.slane %v246_v37, %v1799_v33  ;;  %v1608_v52 = vld [vmem:[%s2115_s0 + $0x238] sm:$0xff]   ;;  %v1609_v53 = vld [vmem:[%s2115_s0 + $0xe8] sm:$0xff]   ;;  %v1610_v54 = vld [vmem:[%s2115_s0 + $0x270] sm:$0xff]  }
   0xf   :  { %1441 = vmatpush3.bf16.msra.mxu1 %v1581_v12  ;;  %v278_v51 = vcombine.high %v270_v48, %v270_v48  ;;  %v1611_v55 = vld [vmem:[%s2115_s0 + $0xa8] sm:$0xff]   ;;  %v1612_v56 = vld [vmem:[%s2115_s0 + $0x230] sm:$0xff]   ;;  %v1613_v57 = vld [vmem:[%s2115_s0 + $0xe0] sm:$0xff]   ;;  %v1914_v13 = vrot.slane %v263_v7, %v1799_v33 }
  0x10   :  { %1442 = vmatprep.subr.bf16.mxu1 %v1583_v14  ;;  %1024 = vmatprep.mubr.bf16.mxu1 %v261_v41  ;;  %v262_v47 = vcombine.high %v1821_v43, %v1821_v43  ;;  %v1614_v58 = vld [vmem:[%s2115_s0 + $0x268] sm:$0xff]   ;;  %v1615_v59 = vld [vmem:[%s2115_s0 + $0xa0] sm:$0xff]   ;;  %v1617_v61 = vld [vmem:[%s2115_s0 + $0xd8] sm:$0xff]  }
  0x11   :  { %1485 = vmatpush3.bf16.msra.mxu0 %v1586_v17  ;;  %1104 = vmatprep.mubr.bf16.mxu0 %v278_v51  ;;  %v1616_v60 = vld [vmem:[%s2115_s0 + $0x228] sm:$0xff]   ;;  %v1618_v62 = vld [vmem:[%s2115_s0 + $0x260] sm:$0xff]   ;;  %v1619_v63 = vld [vmem:[%s2115_s0 + $0x98] sm:$0xff]   ;;  %v1689_v51 = vmov 65535  }
  0x12   :  { %1486 = vmatprep.subr.bf16.mxu0 %v1588_v19  ;;  %v1620_v0 = vld [vmem:[%s2115_s0 + $0x220] sm:$0xff]   ;;  %v1621_v1 = vld [vmem:[%s2115_s0 + $0xd0] sm:$0xff]   ;;  %v1622_v2 = vld [vmem:[%s2115_s0 + $0x258] sm:$0xff]  }
  0x13   :  { %1443 = vmatpush3.bf16.msra.mxu1 %v1585_v16  ;;  %v1623_v3 = vld [vmem:[%s2115_s0 + $0x90] sm:$0xff]   ;;  %v1624_v4 = vld [vmem:[%s2115_s0 + $0x218] sm:$0xff]   ;;  %v1625_v5 = vld [vmem:[%s2115_s0 + $0xc8] sm:$0xff]  }
  0x14   :  { %1444 = vmatprep.subr.bf16.mxu1 %v1587_v18  ;;  %v1626_v6 = vld [vmem:[%s2115_s0 + $0x250] sm:$0xff]   ;;  %v1627_v8 = vld [vmem:[%s2115_s0 + $0x88] sm:$0xff]   ;;  %v1629_v10 = vld [vmem:[%s2115_s0 + $0xc0] sm:$0xff]   ;;  %v279_v18 = vcombine.high %v1914_v13, %v1914_v13 }
  0x15   :  { %1487 = vmatpush3.bf16.msra.mxu0 %v1590_v24  ;;  %v1628_v9 = vld [vmem:[%s2115_s0 + $0x210] sm:$0xff]   ;;  %v1630_v11 = vld [vmem:[%s2115_s0 + $0x248] sm:$0xff]   ;;  %v1631_v12 = vld [vmem:[%s2115_s0 + $0x80] sm:$0xff]  }
  0x16   :  { %1488 = vmatprep.subr.bf16.mxu0 %v1592_v26  ;;  %v1632_v14 = vld [vmem:[%s2115_s0 + $0x208] sm:$0xff]   ;;  %v1633_v15 = vld [vmem:[%s2115_s0 + $0x1f8] sm:$0xff]   ;;  %v1634_v16 = vld [vmem:[%s2115_s0 + $0x240] sm:$0xff]  }
  0x17   :  { %1445 = vmatpush3.bf16.msra.mxu1 %v1589_v23  ;;  %v1635_v17 = vld [vmem:[%s2115_s0 + $0x1b8] sm:$0xff]   ;;  %v1636_v19 = vld [vmem:[%s2115_s0 + $0x200] sm:$0xff]   ;;  %v1637_v20 = vld [vmem:[%s2115_s0 + $0x1f0] sm:$0xff]  }
  0x18   :  { %1446 = vmatprep.subr.bf16.mxu1 %v1591_v25  ;;  %v19_v21 = vld [vmem:[%s2116_s1 + $0x10] sm:$0xff]  ;;  %v1639_v24 = vld [vmem:[%s2115_s0 + $0x338] sm:$0xff]   ;;  %v1640_v26 = vld [vmem:[%s2115_s0 + $0x1e8] sm:$0xff]  }
  0x19   :  { %1489 = vmatpush3.bf16.msra.mxu0 %v1594_v30  ;;  %v287_v22 = vrot.slane %v19_v21, %v1799_v33  ;;  %v1638_v23 = vld [vmem:[%s2115_s0 + $0x1b0] sm:$0xff]   ;;  %v1641_v28 = vld [vmem:[%s2115_s0 + $0x1a8] sm:$0xff]   ;;  %v1643_v30 = vld [vmem:[%s2115_s0 + $0x1e0] sm:$0xff]  }
  0x1a   :  { %1490 = vmatprep.subr.bf16.mxu0 %v1596_v32  ;;  %v1645_v32 = vld [vmem:[%s2115_s0 + $0x328] sm:$0xff]   ;;  %v1648_v36 = vld [vmem:[%s2115_s0 + $0x320] sm:$0xff]   ;;  %v1649_v37 = vld [vmem:[%s2115_s0 + $0x1d0] sm:$0xff]  }
  0x1b   :  { %1447 = vmatpush3.bf16.msra.mxu1 %v1593_v29  ;;  %v295_v25 = vcombine.high %v287_v22, %v287_v22  ;;  %v1642_v29 = vld [vmem:[%s2115_s0 + $0x330] sm:$0xff]   ;;  %v1653_v41 = vld [vmem:[%s2115_s0 + $0x188] sm:$0xff]  }
  0x1c   :  { %1448 = vmatprep.subr.bf16.mxu1 %v1595_v31  ;;  %v1644_v31 = vld [vmem:[%s2115_s0 + $0x1a0] sm:$0xff]   ;;  %v1657_v46 = vld [vmem:[%s2115_s0 + $0x308] sm:$0xff]   ;;  %v1675_v7 = vld [vmem:[%s2115_s0 + $0x350] sm:$0xff]  }
  0x1d   :  { %1491 = vmatpush3.bf16.msra.mxu0 %v1598_v35  ;;  %v1647_v35 = vld [vmem:[%s2115_s0 + $0x198] sm:$0xff]  }
  0x1e   :  { %1492 = vmatprep.subr.bf16.mxu0 %v1601_v40  ;;  %v1652_v40 = vld [vmem:[%s2115_s0 + $0x1c8] sm:$0xff]  }
  0x1f   :  { %1449 = vmatpush3.bf16.msra.mxu1 %v1597_v34  ;;  %v1646_v34 = vld [vmem:[%s2115_s0 + $0x1d8] sm:$0xff]  }
  0x20   :  { %1456 = vmatprep.subr.bf16.mxu1 %v1600_v39  ;;  %v1651_v39 = vld [vmem:[%s2115_s0 + $0x318] sm:$0xff]  }
  0x21   :  { %1493 = vmatpush3.bf16.msra.mxu0 %v1603_v44  ;;  %v1655_v44 = vld [vmem:[%s2115_s0 + $0x1c0] sm:$0xff]  }
  0x22   :  { %1025 = vmatmul.mubr.bf16.vlgmr.msra.gmra.mxu1 %v253_v38  ;;  %1522 = vmatprep.subr.bf16.mxu0 %v1606_v49  ;;  %v1650_v38 = vld [vmem:[%s2115_s0 + $0x190] sm:$0xff]   ;;  %v1659_v49 = vld [vmem:[%s2115_s0 + $0x2b8] sm:$0xff]  }
  0x23   :  { %1457 = vmatpush3.bf16.msra.mxu1 %v1602_v42  ;;  %1064 = vmatprep.mubr.bf16.mxu1 %v262_v47  ;;  %v1654_v42 = vld [vmem:[%s2115_s0 + $0x310] sm:$0xff]   ;;  %v1658_v47 = vld [vmem:[%s2115_s0 + $0x2f8] sm:$0xff]  }
  0x24   :  { %1458 = vmatprep.subr.bf16.mxu1 %v1604_v45  ;;  %1105 = vmatmul.mubr.bf16.vlgmr.msra.gmra.mxu0 %v270_v48  ;;  %v1656_v45 = vld [vmem:[%s2115_s0 + $0x180] sm:$0xff]  }
  0x25   :  { %1523 = vmatpush3.bf16.msra.mxu0 %v1608_v52  ;;  %1184 = vmatprep.mubr.bf16.mxu0 %v295_v25  ;;  %v987_v52 = vsel %vm985_vm0, 4294967295, %v1689_v51 }
  0x26   :  { %1524 = vmatprep.subr.bf16.mxu0 %v1610_v54  ;;  %v1661_v54 = vld [vmem:[%s2115_s0 + $0x2f0] sm:$0xff]  }
  0x27   :  { %1459 = vmatpush3.bf16.msra.mxu1 %v1607_v50  ;;  %v1663_v50 = vld [vmem:[%s2115_s0 + $0x370] ss:$0 sps:$4 sm:$0x77]  }
  0x28   :  { %1460 = vmatprep.subr.bf16.mxu1 %v1609_v53 }
  0x29   :  { %1525 = vmatpush3.bf16.msra.mxu0 %v1612_v56  ;;  %v1662_v56 = vld [vmem:[%s2115_s0 + $0x2b0] sm:$0xff]  }
  0x2a   :  { %1526 = vmatprep.subr.bf16.mxu0 %v1614_v58  ;;  %v1664_v58 = vld [vmem:[%s2115_s0 + $0x2e8] sm:$0xff]  }
  0x2b   :  { %1461 = vmatpush3.bf16.msra.mxu1 %v1611_v55  ;;  %v988_v55 = vsel %vm986_vm1, %v987_v52, 0 }
  0x2c   :  { %1462 = vmatprep.subr.bf16.mxu1 %v1613_v57  ;;  %v990_v57 = vand.u32 %v1663_v50, %v988_v55 }
  0x2d   :  { %1527 = vmatpush3.bf16.msra.mxu0 %v1616_v60  ;;  %v1666_v60 = vld [vmem:[%s2115_s0 + $0x368] sm:$0xff]  }
  0x2e   :  { %1528 = vmatprep.subr.bf16.mxu0 %v1618_v62  ;;  %v1668_v62 = vld [vmem:[%s2115_s0 + $0x2a0] sm:$0xff]  }
  0x2f   :  { %1463 = vmatpush3.bf16.msra.mxu1 %v1615_v59  ;;  %v1665_v59 = vld [vmem:[%s2115_s0 + $0x2a8] sm:$0xff]  }
  0x30   :  { %1464 = vmatprep.subr.bf16.mxu1 %v1617_v61  ;;  %v1667_v61 = vld [vmem:[%s2115_s0 + $0x2e0] sm:$0xff]  }
  0x31   :  { %1529 = vmatpush3.bf16.msra.mxu0 %v1620_v0  ;;  %v1670_v0 = vld [vmem:[%s2115_s0 + $0x2d8] sm:$0xff]  }
  0x32   :  { %1530 = vmatprep.subr.bf16.mxu0 %v1622_v2  ;;  %v1671_v2 = vld [vmem:[%s2115_s0 + $0x298] sm:$0xff]  }
  0x33   :  { %1465 = vmatpush3.bf16.msra.mxu1 %v1619_v63  ;;  %v1669_v63 = vld [vmem:[%s2115_s0 + $0x360] sm:$0xff]  }
  0x34   :  { %1466 = vmatprep.subr.bf16.mxu1 %v1621_v1  ;;  %v1321_v1 = vld.sshfl [vmem:[%s2116_s1 + $0x18] sm:$0x33 pattern:$0x76325410] }
  0x35   :  { %1531 = vmatpush3.bf16.msra.mxu0 %v1624_v4  ;;  %v1672_v4 = vld [vmem:[%s2115_s0 + $0x358] sm:$0xff]  }
  0x36   :  { %1532 = vmatprep.subr.bf16.mxu0 %v1626_v6  ;;  %v1674_v6 = vld [vmem:[%s2115_s0 + $0x290] sm:$0xff]  }
  0x37   :  { %1467 = vmatpush3.bf16.msra.mxu1 %v1623_v3  ;;  %v304_v3 = vcombine.high %v1321_v1, %v1321_v1 }
  0x38   :  { %1468 = vmatprep.subr.bf16.mxu1 %v1625_v5  ;;  %v1673_v5 = vld [vmem:[%s2115_s0 + $0x2d0] sm:$0xff]  }
  0x39   :  { %1533 = vmatpush3.bf16.msra.mxu0 %v1628_v9  ;;  %v1677_v9 = vld [vmem:[%s2115_s0 + $0x288] sm:$0xff]  }
  0x3a   :  { %1534 = vmatprep.subr.bf16.mxu0 %v1630_v11  ;;  %v1679_v11 = vld [vmem:[%s2115_s0 + $0x2c0] sm:$0xff]  }
  0x3b   :  { %1469 = vmatpush3.bf16.msra.mxu1 %v1627_v8  ;;  %v1676_v8 = vld [vmem:[%s2115_s0 + $0x2c8] sm:$0xff]  }
  0x3c   :  { %1470 = vmatprep.subr.bf16.mxu1 %v1629_v10  ;;  %v1678_v10 = vld [vmem:[%s2115_s0 + $0x348] sm:$0xff]  }
  0x3d   :  { %1535 = vmatpush3.bf16.msra.mxu0 %v1632_v14 }
  0x3e   :  { %1536 = vmatprep.subr.bf16.mxu0 %v1634_v16 }
  0x3f   :  { %1471 = vmatpush3.bf16.msra.mxu1 %v1631_v12  ;;  %v1680_v12 = vld [vmem:[%s2115_s0 + $0x280] sm:$0xff]  }
  0x40   :  { %1500 = vmatprep.subr.bf16.mxu1 %v1633_v15 }
  0x41   :  { %1537 = vmatpush3.bf16.msra.mxu0 %v1636_v19 }
  0x42   :  { %1065 = vmatmul.mubr.bf16.vlgmr.msra.gmra.mxu1 %v1821_v43  ;;  %1232 = vmatprep.subr.bf16.mxu0 %v1688_v27  ;;  %v280_v43 = vcombine.high %v19_v21, %v19_v21 }
  0x43   :  { %1501 = vmatpush3.bf16.msra.mxu1 %v1635_v17  ;;  %1144 = vmatprep.mubr.bf16.mxu1 %v279_v18 }
  0x44   :  { %1502 = vmatprep.subr.bf16.mxu1 %v1637_v20  ;;  %1185 = vmatmul.mubr.bf16.vlgmr.msra.gmra.mxu0 %v287_v22  ;;  %v2011_v48 = vrot.slane %v280_v43, %v1799_v33  ;;  %v1660_v33 = vld [vmem:[%s2115_s0 + $0x300] sm:$0xff]  }
  0x45   :  { %1233 = vmatpush1.bf16.msra.mxu0 %v1639_v24  ;;  %1433 = vmatprep.mubr.msk.bf16.mxu0 %vm981_vm2, %v304_v3 }
  0x46   :  { %1234 = vmatprep.subr.bf16.mxu0 %v1688_v27  ;;  %v296_v53 = vcombine.high %v2011_v48, %v2011_v48 }
  0x47   :  { %1503 = vmatpush3.bf16.msra.mxu1 %v1638_v23 }
  0x48   :  { %1504 = vmatprep.subr.bf16.mxu1 %v1640_v26 }
  0x49   :  { %1235 = vmatpush1.bf16.msra.mxu0 %v1642_v29 }
  0x4a   :  { %1236 = vmatprep.subr.bf16.mxu0 %v1688_v27 }
  0x4b   :  { %1505 = vmatpush3.bf16.msra.mxu1 %v1641_v28 }
  0x4c   :  { %1506 = vmatprep.subr.bf16.mxu1 %v1643_v30 }
  0x4d   :  { %1237 = vmatpush1.bf16.msra.mxu0 %v1645_v32 }
  0x4e   :  { %1238 = vmatprep.subr.bf16.mxu0 %v1688_v27 }
  0x4f   :  { %1507 = vmatpush3.bf16.msra.mxu1 %v1644_v31 }
  0x50   :  { %1508 = vmatprep.subr.bf16.mxu1 %v1646_v34 }
  0x51   :  { %1239 = vmatpush1.bf16.msra.mxu0 %v1648_v36 }
  0x52   :  { %1240 = vmatprep.subr.bf16.mxu0 %v1688_v27 }
  0x53   :  { %1509 = vmatpush3.bf16.msra.mxu1 %v1647_v35 }
  0x54   :  { %1510 = vmatprep.subr.bf16.mxu1 %v1649_v37 }
  0x55   :  { %1241 = vmatpush1.bf16.msra.mxu0 %v1651_v39 }
  0x56   :  { %1242 = vmatprep.subr.bf16.mxu0 %v1688_v27 }
  0x57   :  { %1511 = vmatpush3.bf16.msra.mxu1 %v1650_v38 }
  0x58   :  { %1512 = vmatprep.subr.bf16.mxu1 %v1652_v40 }
  0x59   :  { %1243 = vmatpush1.bf16.msra.mxu0 %v1654_v42 }
  0x5a   :  { %1244 = vmatprep.subr.bf16.mxu0 %v1688_v27 }
  0x5b   :  { %1513 = vmatpush3.bf16.msra.mxu1 %v1653_v41 }
  0x5c   :  { %1514 = vmatprep.subr.bf16.mxu1 %v1655_v44 }
  0x5d   :  { %1245 = vmatpush1.bf16.msra.mxu0 %v1657_v46 }
  0x5e   :  { %1246 = vmatprep.subr.bf16.mxu0 %v1688_v27 }
  0x5f   :  { %1515 = vmatpush3.bf16.msra.mxu1 %v1656_v45 }
  0x60   :  { %1544 = vmatprep.subr.bf16.mxu1 %v1658_v47 }
  0x61   :  { %1247 = vmatpush1.bf16.msra.mxu0 %v1660_v33 }
  0x62   :  { %1145 = vmatmul.mubr.bf16.vlgmr.msra.gmra.mxu1 %v1914_v13  ;;  %1250 = vmatprep.subr.bf16.mxu0 %v1688_v27  ;;  %v1681_v13 = vld [vmem:[%s2115_s0 + $0x340] sm:$0xff]  }
  0x63   :  { %1545 = vmatpush3.bf16.msra.mxu1 %v1659_v49  ;;  %1224 = vmatprep.mubr.bf16.mxu1 %v296_v53 }
  0x64   :  { %1546 = vmatprep.subr.bf16.mxu1 %v1661_v54 }
  0x65   :  { %1251 = vmatpush2.bf16.msra.mxu0 %v990_v57 }
  0x66   :  { %1252 = vmatprep.subr.bf16.mxu0 %v1688_v27 }
  0x67   :  { %1547 = vmatpush3.bf16.msra.mxu1 %v1662_v56 }
  0x68   :  { %1548 = vmatprep.subr.bf16.mxu1 %v1664_v58 }
  0x69   :  { %1253 = vmatpush2.bf16.msra.mxu0 %v1666_v60 }
  0x6a   :  { %1254 = vmatprep.subr.bf16.mxu0 %v1688_v27 }
  0x6b   :  { %1549 = vmatpush3.bf16.msra.mxu1 %v1665_v59 }
  0x6c   :  { %1550 = vmatprep.subr.bf16.mxu1 %v1667_v61 }
  0x6d   :  { %1255 = vmatpush2.bf16.msra.mxu0 %v1669_v63 }
  0x6e   :  { %1256 = vmatprep.subr.bf16.mxu0 %v1688_v27 }
  0x6f   :  { %1551 = vmatpush3.bf16.msra.mxu1 %v1668_v62 }
  0x70   :  { %1552 = vmatprep.subr.bf16.mxu1 %v1670_v0 }
  0x71   :  { %1257 = vmatpush2.bf16.msra.mxu0 %v1672_v4 }
  0x72   :  { %1258 = vmatprep.subr.bf16.mxu0 %v1688_v27 }
  0x73   :  { %1553 = vmatpush3.bf16.msra.mxu1 %v1671_v2 }
  0x74   :  { %1554 = vmatprep.subr.bf16.mxu1 %v1673_v5 }
  0x75   :  { %1259 = vmatpush2.bf16.msra.mxu0 %v1675_v7 }
  0x76   :  { %1260 = vmatprep.subr.bf16.mxu0 %v1688_v27 }
  0x77   :  { %1555 = vmatpush3.bf16.msra.mxu1 %v1674_v6 }
  0x78   :  { %1556 = vmatprep.subr.bf16.mxu1 %v1676_v8  ;;  %v1292_v8 = vld [vmem:[%s2117_s2] sm:$0x7] }
  0x79   :  { %1261 = vmatpush2.bf16.msra.mxu0 %v1678_v10 }
  0x7a   :  { %1262 = vmatprep.subr.bf16.mxu0 %v1688_v27 }
  0x7b   :  { %1557 = vmatpush3.bf16.msra.mxu1 %v1677_v9  ;;  %v1293_v9 = vld [vmem:[%s2117_s2 + $0x4] sm:$0x7] }
  0x7c   :  { %1558 = vmatprep.subr.bf16.mxu1 %v1679_v11 }
  0x7d   :  { %1263 = vmatpush2.bf16.msra.mxu0 %v1681_v13 }
  0x7f   :  { %1559 = vmatpush3.bf16.msra.mxu1 %v1680_v12 }
  0x80   :  { %1265 = vmatmul.mubr.bf16.vlgmr.msra.gmra.mxu0 %v1321_v1 }
  0x82   :  { %1225 = vmatmul.mubr.bf16.vlgmr.msra.gmra.mxu1 %v2011_v48 }
  0xe2   :  { %v1450_v14 = vpop.f32.mrf.mxu1 }
  0xe4   :  { %v1451_v15 = vpop.f32.mrf.mxu1  ;;  %v1494_v18 = vpop.f32.mrf.mxu0 }
  0xe5   :  { %v1452_v16 = vadd.f32 %v1451_v15, %v1450_v14 }
  0xe6   :  { %v1453_v17 = vpop.f32.mrf.mxu1  ;;  %v1495_v20 = vpop.f32.mrf.mxu0 }
  0xe7   :  { %v1496_v21 = vadd.f32 %v1495_v20, %v1494_v18 }
  0xe8   :  { %v1454_v19 = vpop.f32.mrf.mxu1  ;;  %v1497_v22 = vpop.f32.mrf.mxu0 }
  0xea   :  { %v1498_v23 = vpop.f32.mrf.mxu0 }
 0x102   :  { %v1472_v24 = vpop.f32.mrf.mxu1 }
 0x104   :  { %v1473_v25 = vpop.f32.mrf.mxu1  ;;  %v1538_v29 = vpop.f32.mrf.mxu0 }
 0x105   :  { %v1474_v26 = vadd.f32 %v1473_v25, %v1472_v24 }
 0x106   :  { %v1475_v28 = vpop.f32.mrf.mxu1  ;;  %v1539_v31 = vpop.f32.mrf.mxu0 }
 0x107   :  { %v1067_v27 = vadd.f32 %v1474_v26, %v1452_v16  ;;  %v1540_v43 = vadd.f32 %v1539_v31, %v1538_v29 }
 0x108   :  { %v1476_v30 = vpop.f32.mrf.mxu1  ;;  %v1541_v34 = vpop.f32.mrf.mxu0 }
 0x109   :  { %v1107_v32 = vadd.f32 %v1496_v21, %v1067_v27 }
 0x10a   :  { %v1542_v35 = vpop.f32.mrf.mxu0 }
 0x122   :  { %v1516_v36 = vpop.f32.mrf.mxu1 }
 0x124   :  { %v1517_v37 = vpop.f32.mrf.mxu1 }
 0x125   :  { %v1518_v40 = vadd.f32 %v1517_v37, %v1516_v36 }
 0x126   :  { %v1519_v38 = vpop.f32.mrf.mxu1 }
 0x127   :  { %v1147_v41 = vadd.f32 %v1518_v40, %v1107_v32 }
 0x128   :  { %v1520_v39 = vpop.f32.mrf.mxu1 }
 0x129   :  { %v1187_v46 = vadd.f32 %v1540_v43, %v1147_v41 }
 0x140   :  { %v1266_v44 = vpop.f32.mrf.mxu0 }
 0x142   :  { %v1560_v42 = vpop.f32.mrf.mxu1  ;;  %v1268_v48 = vpop.f32.mrf.mxu0 }
 0x144   :  { %v1561_v45 = vpop.f32.mrf.mxu1  ;;  %v1269_v51 = vpop.f32.mrf.mxu0 }
 0x145   :  { %v1562_v47 = vadd.f32 %v1561_v45, %v1560_v42 }
 0x146   :  { %v1563_v49 = vpop.f32.mrf.mxu1  ;;  %v1270_v53 = vpop.f32.mrf.mxu0 }
 0x147   :  { %v1227_v50 = vadd.f32 %v1562_v47, %v1187_v46 }
 0x148   :  { %v1564_v52 = vpop.f32.mrf.mxu1 }
 0x149   :  { %v1267_v33 = vadd.f32 %v1266_v44, %v1227_v50 }
 0x14b   :  { %v1272_v54 = vsel %vm986_vm1, %v1267_v33, -inf }
 0x14c   :  { %v1273_v55 = vrot.slane %v1272_v54, 4 }
 0x14e   :  { %v1274_v56 = vmax.f32 %v1272_v54, %v1273_v55 }
 0x150   :  { %v1275_v57 = vrot.slane %v1274_v56, 2 }
 0x152   :  { %v1276_v58 = vmax.f32 %v1274_v56, %v1275_v57 }
 0x154   :  { %v1277_v59 = vrot.slane %v1276_v58, 1 }
 0x156   :  { %v1278_v60 = vmax.f32 %v1276_v58, %v1277_v59 }
 0x158   :  { %v1279_v61 = vsub.f32 %v1267_v33, %v1278_v60 }
 0x15a   :  { %v1280_v62 = vmul.f32 1.442695, %v1279_v61 }
 0x15c   :  { %1683 = vpow2.f32 %v1280_v62 }
 0x169   :  { %v1684_v63 = vpop.eup %1683 }
 0x16a   :  { %v1282_v0 = vsel %vm986_vm1, %v1684_v63, 0.0 }
 0x16b   :  { %v1283_v1 = vrot.slane %v1282_v0, 4 }
 0x16d   :  { %v1284_v2 = vadd.f32 %v1283_v1, %v1282_v0 }
 0x16f   :  { %v1285_v3 = vrot.slane %v1284_v2, 2 }
 0x171   :  { %v1286_v4 = vadd.f32 %v1285_v3, %v1284_v2 }
 0x173   :  { %v1287_v5 = vrot.slane %v1286_v4, 1 }
 0x175   :  { %v1288_v6 = vadd.f32 %v1287_v5, %v1286_v4 }
 0x177   :  { %1685 = vrcp.f32 %v1288_v6 }
 0x184   :  { %v1686_v7 = vpop.eup %1685 }
 0x185   :  { %v1290_v10 = vmul.f32 %v1686_v7, %v1684_v63 }
 0x187   :  { %1291 = vst [vmem:[%s2118_s3] sm:$0x7] %v1290_v10  ;;  %v1294_v11 = vmul.f32 %v1292_v8, %v1290_v10  ;;  %v1302_v12 = vmul.f32 %v1293_v9, %v1290_v10 }
 0x189   :  { %v1295_v13 = vsel %vm986_vm1, %v1294_v11, 0.0  ;;  %v1303_v14 = vsel %vm986_vm1, %v1302_v12, 0.0 }
 0x18a   :  { %v1296_v15 = vrot.slane %v1295_v13, 4  ;;  %v1304_v16 = vrot.slane %v1303_v14, 4 }
 0x18c   :  { %v1297_v17 = vadd.f32 %v1296_v15, %v1295_v13  ;;  %v1305_v18 = vadd.f32 %v1304_v16, %v1303_v14 }
 0x18e   :  { %v1298_v19 = vrot.slane %v1297_v17, 2  ;;  %v1306_v20 = vrot.slane %v1305_v18, 2 }
 0x190   :  { %v1299_v21 = vadd.f32 %v1298_v19, %v1297_v17  ;;  %v1307_v22 = vadd.f32 %v1306_v20, %v1305_v18 }
 0x192   :  { %v1300_v23 = vrot.slane %v1299_v21, 1  ;;  %v1308_v24 = vrot.slane %v1307_v22, 1 }
 0x194   :  { %v1301_v25 = vadd.f32 %v1300_v23, %v1299_v21  ;;  %v1309_v26 = vadd.f32 %v1308_v24, %v1307_v22 }
 0x196   :  { %v1311_v28 = vsel %vm1310_vm3, %v1301_v25, %v1309_v26 }
 0x197   :  { %1312 = vst [vmem:[%s2119_s4] sm:$0x3] %v1311_v28 }

// kernel: _lambda_.19
= control target key start
LH: loop header
LB: loop body
LE: loop exit
PB: predicated region body
PF: predicated region fallthrough
CT: control target
= control target key end

     0   :  { %v1679_v20 = vmov 1966171168   ;;  %v241_v22 = vlaneseq  ;;  %vm1009_vm0 = vcmask 826368   ;;  %vm1013_vm1 = vcmask 1041408   ;;  %s2108_s0 = inlined_call_operand.vmem [shape: bf16[1765,128], index: 0, kind: input, shape index: {}]   ;;  %s2109_s1 = inlined_call_operand.vmem [shape: bf16[1,1765], index: 1, kind: input, shape index: {}]   ;;  %s2110_s2 = inlined_call_operand.vmem [shape: f32[1,128], index: 2, kind: output, shape index: {}]  }
   0x1   :  { %v1562_v0 = vld [vmem:[%s2108_s0 + $0x78] sm:$0xff]   ;;  %v1564_v2 = vld [vmem:[%s2108_s0 + $0x70] sm:$0xff]   ;;  %v1568_v6 = vld [vmem:[%s2108_s0 + $0x68] sm:$0xff]   ;;  %v239_v21 = vunpack.c.l.s4 %v1679_v20  ;;  %vm1014_vm2 = vcmask 1042432  }
   0x2   :  { %v1563_v1 = vld [vmem:[%s2108_s0 + $0x38] sm:$0xff]   ;;  %1427 = vmatprep.subr.bf16.mxu1 %v1562_v0  ;;  %v1566_v4 = vld [vmem:[%s2108_s0 + $0x30] sm:$0xff]   ;;  %v1570_v8 = vld [vmem:[%s2108_s0 + $0x28] sm:$0xff]   ;;  %v242_v28 = vshrl.u32 %v241_v22, 7 }
   0x3   :  { %1428 = vmatpush3.bf16.msra.mxu1 %v1563_v1  ;;  %v1565_v3 = vld [vmem:[%s2108_s0 + $0x178] sm:$0xff]   ;;  %v1569_v7 = vld [vmem:[%s2108_s0 + $0x170] sm:$0xff]   ;;  %v1572_v10 = vld [vmem:[%s2108_s0 + $0x60] sm:$0xff]   ;;  %v240_v27 = vunpack.c.0.s8 %v239_v21 }
   0x4   :  { %1429 = vmatprep.subr.bf16.mxu1 %v1564_v2  ;;  %1471 = vmatprep.subr.bf16.mxu0 %v1565_v3  ;;  %v1567_v5 = vld [vmem:[%s2108_s0 + $0x138] sm:$0xff]   ;;  %v1571_v9 = vld [vmem:[%s2108_s0 + $0x130] sm:$0xff]   ;;  %v1573_v11 = vld [vmem:[%s2108_s0 + $0x168] sm:$0xff]  }
   0x5   :  { %1472 = vmatpush3.bf16.msra.mxu0 %v1567_v5  ;;  %v1574_v12 = vld [vmem:[%s2108_s0 + $0x20] sm:$0xff]   ;;  %v1575_v13 = vld [vmem:[%s2108_s0 + $0x128] sm:$0xff]   ;;  %v1576_v14 = vld [vmem:[%s2108_s0 + $0x58] sm:$0xff]   ;;  %v1781_v33 = vsub.s32 %v240_v27, %v242_v28 }
   0x6   :  { %1473 = vmatprep.subr.bf16.mxu0 %v1569_v7  ;;  %v1577_v15 = vld [vmem:[%s2108_s0 + $0x160] sm:$0xff]   ;;  %v1578_v16 = vld [vmem:[%s2108_s0 + $0x18] sm:$0xff]   ;;  %v1580_v18 = vld [vmem:[%s2108_s0 + $0x50] sm:$0xff]  }
   0x7   :  { %1430 = vmatpush3.bf16.msra.mxu1 %v1566_v4  ;;  %v1579_v17 = vld [vmem:[%s2108_s0 + $0x120] sm:$0xff]   ;;  %v1581_v19 = vld [vmem:[%s2108_s0 + $0x158] sm:$0xff]   ;;  %v1582_v23 = vld [vmem:[%s2108_s0 + $0x10] sm:$0xff]  }
   0x8   :  { %1431 = vmatprep.subr.bf16.mxu1 %v1568_v6  ;;  %v1583_v24 = vld [vmem:[%s2108_s0 + $0x118] sm:$0xff]   ;;  %v1584_v25 = vld [vmem:[%s2108_s0 + $0x48] sm:$0xff]   ;;  %v1585_v26 = vld [vmem:[%s2108_s0 + $0x150] sm:$0xff]  }
   0x9   :  { %1474 = vmatpush3.bf16.msra.mxu0 %v1571_v9  ;;  %v1586_v29 = vld [vmem:[%s2108_s0 + $0x8] sm:$0xff]   ;;  %v1587_v30 = vld [vmem:[%s2108_s0 + $0x110] sm:$0xff]   ;;  %v1588_v31 = vld [vmem:[%s2108_s0 + $0x40] sm:$0xff]  }
   0xa   :  { %1475 = vmatprep.subr.bf16.mxu0 %v1573_v11  ;;  %v1589_v32 = vld [vmem:[%s2108_s0 + $0x148] sm:$0xff]   ;;  %v1590_v34 = vld [vmem:[%s2108_s0] sm:$0xff]   ;;  %v1593_v39 = vld [vmem:[%s2108_s0 + $0xf8] sm:$0xff]  }
   0xb   :  { %1432 = vmatpush3.bf16.msra.mxu1 %v1570_v8  ;;  %v1591_v35 = vld [vmem:[%s2108_s0 + $0x108] sm:$0xff]   ;;  %v12_v36 = vld [vmem:[%s2109_s1] sm:$0xff]  ;;  %v1595_v44 = vld [vmem:[%s2108_s0 + $0xb8] sm:$0xff]  }
   0xc   :  { %1433 = vmatprep.subr.bf16.mxu1 %v1572_v10  ;;  %v1795_v37 = vld [vmem:[%s2109_s1 + $0x8] sm:$0x3f]  ;;  %v244_v38 = vrot.slane %v12_v36, %v1781_v33  ;;  %v237_v40 = vcombine.high %v12_v36, %v12_v36  ;;  %v1594_v41 = vld [vmem:[%s2108_s0 + $0x140] sm:$0xff]   ;;  %v1597_v50 = vld [vmem:[%s2108_s0 + $0xf0] sm:$0xff]  }
   0xd   :  { %1476 = vmatpush3.bf16.msra.mxu0 %v1575_v13  ;;  %v1806_v42 = vrot.slane %v1795_v37, %v1781_v33  ;;  %v1596_v47 = vld [vmem:[%s2108_s0 + $0x100] sm:$0xff]   ;;  %v1599_v52 = vld [vmem:[%s2108_s0 + $0x278] sm:$0xff]   ;;  %v1600_v56 = vld [vmem:[%s2108_s0 + $0xb0] sm:$0xff]   ;;  %v286_v13 = vcombine.high %v1795_v37, %v1795_v37 }
   0xe   :  { %1477 = vmatprep.subr.bf16.mxu0 %v1577_v15  ;;  %v252_v43 = vcombine.high %v244_v38, %v244_v38  ;;  %v251_v45 = vrot.slane %v237_v40, %v1781_v33  ;;  %v1813_v46 = vrot.slane %v244_v38, %v1781_v33  ;;  %v1601_v57 = vld [vmem:[%s2108_s0 + $0x238] sm:$0xff]   ;;  %v1602_v59 = vld [vmem:[%s2108_s0 + $0xe8] sm:$0xff]   ;;  %v1603_v60 = vld [vmem:[%s2108_s0 + $0x270] sm:$0xff]  }
   0xf   :  { %1434 = vmatpush3.bf16.msra.mxu1 %v1574_v12  ;;  %v301_v48 = vcombine.high %v1806_v42, %v1806_v42  ;;  %v1604_v61 = vld [vmem:[%s2108_s0 + $0xa8] sm:$0xff]   ;;  %v1605_v62 = vld [vmem:[%s2108_s0 + $0x230] sm:$0xff]   ;;  %v1606_v63 = vld [vmem:[%s2108_s0 + $0xe0] sm:$0xff]  }
  0x10   :  { %1435 = vmatprep.subr.bf16.mxu1 %v1576_v14  ;;  %v274_v49 = vrot.slane %v252_v43, %v1781_v33  ;;  %v253_v51 = vcombine.high %v251_v45, %v251_v45  ;;  %v1828_v53 = vrot.slane %v251_v45, %v1781_v33  ;;  %v1607_v0 = vld [vmem:[%s2108_s0 + $0x268] sm:$0xff]   ;;  %v1608_v1 = vld [vmem:[%s2108_s0 + $0xa0] sm:$0xff]   ;;  %v1610_v3 = vld [vmem:[%s2108_s0 + $0xd8] sm:$0xff]  }
  0x11   :  { %1478 = vmatpush3.bf16.msra.mxu0 %v1579_v17  ;;  %v1841_v58 = vrot.slane %v301_v48, %v1781_v33  ;;  %v1609_v2 = vld [vmem:[%s2108_s0 + $0x228] sm:$0xff]   ;;  %v1611_v4 = vld [vmem:[%s2108_s0 + $0x260] sm:$0xff]   ;;  %v1612_v5 = vld [vmem:[%s2108_s0 + $0x98] sm:$0xff]  }
  0x12   :  { %1479 = vmatprep.subr.bf16.mxu0 %v1581_v19  ;;  %v284_v54 = vcombine.high %v274_v49, %v274_v49  ;;  %1052 = vmatprep.mubr.bf16.mxu1 %v274_v49  ;;  %v1831_v55 = vrot.slane %v253_v51, %v1781_v33  ;;  %v1613_v6 = vld [vmem:[%s2108_s0 + $0x220] sm:$0xff]   ;;  %v1614_v7 = vld [vmem:[%s2108_s0 + $0xd0] sm:$0xff]   ;;  %v1615_v8 = vld [vmem:[%s2108_s0 + $0x258] sm:$0xff]   ;;  %v1918_v19 = vrot.slane %v286_v13, %v1781_v33 }
  0x13   :  { %1436 = vmatpush3.bf16.msra.mxu1 %v1578_v16  ;;  %v1616_v9 = vld [vmem:[%s2108_s0 + $0x90] sm:$0xff]   ;;  %v1617_v10 = vld [vmem:[%s2108_s0 + $0x218] sm:$0xff]   ;;  %v1618_v11 = vld [vmem:[%s2108_s0 + $0xc8] sm:$0xff]  }
  0x14   :  { %1437 = vmatprep.subr.bf16.mxu1 %v1580_v18  ;;  %1132 = vmatprep.mubr.bf16.mxu0 %v1831_v55  ;;  %v1619_v12 = vld [vmem:[%s2108_s0 + $0x250] sm:$0xff]   ;;  %v1620_v14 = vld [vmem:[%s2108_s0 + $0x88] sm:$0xff]   ;;  %v1622_v16 = vld [vmem:[%s2108_s0 + $0xc0] sm:$0xff]  }
  0x15   :  { %1480 = vmatpush3.bf16.msra.mxu0 %v1583_v24  ;;  %v1621_v15 = vld [vmem:[%s2108_s0 + $0x210] sm:$0xff]   ;;  %v1623_v17 = vld [vmem:[%s2108_s0 + $0x248] sm:$0xff]   ;;  %v1624_v18 = vld [vmem:[%s2108_s0 + $0x80] sm:$0xff]   ;;  %v282_v24 = vcombine.high %v1813_v46, %v1813_v46 }
  0x16   :  { %1481 = vmatprep.subr.bf16.mxu0 %v1585_v26  ;;  %v1625_v20 = vld [vmem:[%s2108_s0 + $0x208] sm:$0xff]   ;;  %v1626_v21 = vld [vmem:[%s2108_s0 + $0x1f8] sm:$0xff]   ;;  %v1627_v22 = vld [vmem:[%s2108_s0 + $0x240] sm:$0xff]   ;;  %v285_v26 = vcombine.high %v1831_v55, %v1831_v55  ;;  %v1681_v55 = vmov 65535  }
  0x17   :  { %1438 = vmatpush3.bf16.msra.mxu1 %v1582_v23  ;;  %v302_v23 = vcombine.high %v1918_v19, %v1918_v19  ;;  %v1628_v27 = vld [vmem:[%s2108_s0 + $0x1b8] sm:$0xff]   ;;  %v1630_v28 = vld [vmem:[%s2108_s0 + $0x1f0] sm:$0xff]   ;;  %v1634_v37 = vld [vmem:[%s2108_s0 + $0x1a8] sm:$0xff]  }
  0x18   :  { %1439 = vmatprep.subr.bf16.mxu1 %v1584_v25  ;;  %v1629_v25 = vld [vmem:[%s2108_s0 + $0x200] sm:$0xff]   ;;  %v1635_v36 = vld [vmem:[%s2108_s0 + $0x330] sm:$0xff]   ;;  %v1640_v43 = vld [vmem:[%s2108_s0 + $0x198] sm:$0xff]  }
  0x19   :  { %1482 = vmatpush3.bf16.msra.mxu0 %v1587_v30  ;;  %v1632_v30 = vld [vmem:[%s2108_s0 + $0x338] sm:$0xff]   ;;  %v1636_v38 = vld [vmem:[%s2108_s0 + $0x1e0] sm:$0xff]   ;;  %v1647_v48 = vld [vmem:[%s2108_s0 + $0x310] sm:$0xff]  }
  0x1a   :  { %1483 = vmatprep.subr.bf16.mxu0 %v1589_v32  ;;  %v1680_v32 = vmov 0   ;;  %v1637_v40 = vld [vmem:[%s2108_s0 + $0x1a0] sm:$0xff]   ;;  %v1644_v45 = vld [vmem:[%s2108_s0 + $0x318] sm:$0xff]   ;;  %v1646_v49 = vld [vmem:[%s2108_s0 + $0x188] sm:$0xff]  }
  0x1b   :  { %1440 = vmatpush3.bf16.msra.mxu1 %v1586_v29  ;;  %v1946_v29 = vrot.slane %v1806_v42, %v1781_v33  ;;  %v1641_v42 = vld [vmem:[%s2108_s0 + $0x320] sm:$0xff]   ;;  %v1650_v51 = vld [vmem:[%s2108_s0 + $0x308] sm:$0xff]  }
  0x1c   :  { %1441 = vmatprep.subr.bf16.mxu1 %v1588_v31  ;;  %v330_v31 = vrot.slane %v302_v23, %v1781_v33  ;;  %v1669_v13 = vld [vmem:[%s2108_s0 + $0x2c8] sm:$0xff]  }
  0x1d   :  { %1484 = vmatpush3.bf16.msra.mxu0 %v1591_v35  ;;  %v1633_v35 = vld [vmem:[%s2108_s0 + $0x1e8] sm:$0xff]  }
  0x1e   :  { %1485 = vmatprep.subr.bf16.mxu0 %v1594_v41  ;;  %v1639_v41 = vld [vmem:[%s2108_s0 + $0x1d8] sm:$0xff]  }
  0x1f   :  { %1442 = vmatpush3.bf16.msra.mxu1 %v1590_v34  ;;  %v1631_v34 = vld [vmem:[%s2108_s0 + $0x1b0] sm:$0xff]  }
  0x20   :  { %1449 = vmatprep.subr.bf16.mxu1 %v1593_v39  ;;  %v1638_v39 = vld [vmem:[%s2108_s0 + $0x328] sm:$0xff]  }
  0x21   :  { %1486 = vmatpush3.bf16.msra.mxu0 %v1596_v47  ;;  %v1645_v47 = vld [vmem:[%s2108_s0 + $0x1c8] sm:$0xff]  }
  0x22   :  { %1053 = vmatmul.mubr.bf16.vlgmr.msra.gmra.mxu1 %v1813_v46  ;;  %1515 = vmatprep.subr.bf16.mxu0 %v1599_v52  ;;  %v1643_v46 = vld [vmem:[%s2108_s0 + $0x190] sm:$0xff]   ;;  %v1649_v52 = vld [vmem:[%s2108_s0 + $0x180] sm:$0xff]  }
  0x23   :  { %1450 = vmatpush3.bf16.msra.mxu1 %v1595_v44  ;;  %1092 = vmatprep.mubr.bf16.mxu1 %v284_v54  ;;  %v1642_v44 = vld [vmem:[%s2108_s0 + $0x1d0] sm:$0xff]  }
  0x24   :  { %1451 = vmatprep.subr.bf16.mxu1 %v1597_v50  ;;  %1133 = vmatmul.mubr.bf16.vlgmr.msra.gmra.mxu0 %v1828_v53  ;;  %v1648_v50 = vld [vmem:[%s2108_s0 + $0x1c0] sm:$0xff]   ;;  %v1656_v54 = vld [vmem:[%s2108_s0 + $0x370] ss:$0 sps:$4 sm:$0x77]  }
  0x25   :  { %1516 = vmatpush3.bf16.msra.mxu0 %v1601_v57  ;;  %1212 = vmatprep.mubr.bf16.mxu0 %v1841_v58  ;;  %v1651_v57 = vld [vmem:[%s2108_s0 + $0x2f8] sm:$0xff]  }
  0x26   :  { %1517 = vmatprep.subr.bf16.mxu0 %v1603_v60  ;;  %v283_v60 = vcombine.high %v1828_v53, %v1828_v53  ;;  %v1655_v53 = vld [vmem:[%s2108_s0 + $0x2b0] sm:$0xff]  }
  0x27   :  { %1452 = vmatpush3.bf16.msra.mxu1 %v1600_v56  ;;  %v1015_v56 = vsel %vm1013_vm1, 4294967295, %v1681_v55 }
  0x28   :  { %1453 = vmatprep.subr.bf16.mxu1 %v1602_v59  ;;  %v1653_v59 = vld [vmem:[%s2108_s0 + $0x300] sm:$0xff]  }
  0x29   :  { %1518 = vmatpush3.bf16.msra.mxu0 %v1605_v62  ;;  %v1652_v62 = vld [vmem:[%s2108_s0 + $0x2b8] sm:$0xff]  }
  0x2a   :  { %1519 = vmatprep.subr.bf16.mxu0 %v1607_v0  ;;  %v1654_v0 = vld [vmem:[%s2108_s0 + $0x2f0] sm:$0xff]  }
  0x2b   :  { %1454 = vmatpush3.bf16.msra.mxu1 %v1604_v61  ;;  %v1016_v61 = vsel %vm1014_vm2, %v1015_v56, 0 }
  0x2c   :  { %1455 = vmatprep.subr.bf16.mxu1 %v1606_v63  ;;  %v332_v63 = vcombine.high %v1841_v58, %v1841_v58  ;;  %v1657_v58 = vld [vmem:[%s2108_s0 + $0x2e8] sm:$0xff]  }
  0x2d   :  { %1520 = vmatpush3.bf16.msra.mxu0 %v1609_v2  ;;  %v1659_v2 = vld [vmem:[%s2108_s0 + $0x368] sm:$0xff]  }
  0x2e   :  { %1521 = vmatprep.subr.bf16.mxu0 %v1611_v4  ;;  %v1660_v4 = vld [vmem:[%s2108_s0 + $0x2e0] sm:$0xff]  }
  0x2f   :  { %1456 = vmatpush3.bf16.msra.mxu1 %v1608_v1  ;;  %v1018_v1 = vand.u32 %v1656_v54, %v1016_v61 }
  0x30   :  { %1457 = vmatprep.subr.bf16.mxu1 %v1610_v3  ;;  %v1658_v3 = vld [vmem:[%s2108_s0 + $0x2a8] sm:$0xff]  }
  0x31   :  { %1522 = vmatpush3.bf16.msra.mxu0 %v1613_v6  ;;  %v1661_v6 = vld [vmem:[%s2108_s0 + $0x2a0] sm:$0xff]  }
  0x32   :  { %1523 = vmatprep.subr.bf16.mxu0 %v1615_v8  ;;  %v1665_v8 = vld [vmem:[%s2108_s0 + $0x358] sm:$0xff]  }
  0x33   :  { %1458 = vmatpush3.bf16.msra.mxu1 %v1612_v5  ;;  %v1662_v5 = vld [vmem:[%s2108_s0 + $0x360] sm:$0xff]  }
  0x34   :  { %1459 = vmatprep.subr.bf16.mxu1 %v1614_v7  ;;  %v1663_v7 = vld [vmem:[%s2108_s0 + $0x2d8] sm:$0xff]  }
  0x35   :  { %1524 = vmatpush3.bf16.msra.mxu0 %v1617_v10  ;;  %v1666_v10 = vld [vmem:[%s2108_s0 + $0x2d0] sm:$0xff]  }
  0x36   :  { %1525 = vmatprep.subr.bf16.mxu0 %v1619_v12  ;;  %v1667_v12 = vld [vmem:[%s2108_s0 + $0x290] sm:$0xff]  }
  0x37   :  { %1460 = vmatpush3.bf16.msra.mxu1 %v1616_v9  ;;  %v1664_v9 = vld [vmem:[%s2108_s0 + $0x298] sm:$0xff]  }
  0x38   :  { %1461 = vmatprep.subr.bf16.mxu1 %v1618_v11  ;;  %v1668_v11 = vld [vmem:[%s2108_s0 + $0x350] sm:$0xff]  }
  0x39   :  { %1526 = vmatpush3.bf16.msra.mxu0 %v1621_v15  ;;  %v1670_v15 = vld [vmem:[%s2108_s0 + $0x288] sm:$0xff]  }
  0x3a   :  { %1527 = vmatprep.subr.bf16.mxu0 %v1623_v17  ;;  %v1674_v17 = vld [vmem:[%s2108_s0 + $0x340] sm:$0xff]  }
  0x3b   :  { %1462 = vmatpush3.bf16.msra.mxu1 %v1620_v14  ;;  %v1671_v14 = vld [vmem:[%s2108_s0 + $0x348] sm:$0xff]  }
  0x3c   :  { %1463 = vmatprep.subr.bf16.mxu1 %v1622_v16  ;;  %v1672_v16 = vld [vmem:[%s2108_s0 + $0x2c0] sm:$0xff]  }
  0x3d   :  { %1528 = vmatpush3.bf16.msra.mxu0 %v1625_v20  ;;  %v316_v20 = vrot.slane %v1918_v19, %v1781_v33 }
  0x3e   :  { %1529 = vmatprep.subr.bf16.mxu0 %v1627_v22 }
  0x3f   :  { %1464 = vmatpush3.bf16.msra.mxu1 %v1624_v18  ;;  %v1673_v18 = vld [vmem:[%s2108_s0 + $0x280] sm:$0xff]  }
  0x40   :  { %1493 = vmatprep.subr.bf16.mxu1 %v1626_v21  ;;  %v331_v21 = vcombine.high %v1946_v29, %v1946_v29 }
  0x41   :  { %1530 = vmatpush3.bf16.msra.mxu0 %v1629_v25 }
  0x42   :  { %1093 = vmatmul.mubr.bf16.vlgmr.msra.gmra.mxu1 %v282_v24  ;;  %1260 = vmatprep.subr.bf16.mxu0 %v1680_v32 }
  0x43   :  { %1494 = vmatpush3.bf16.msra.mxu1 %v1628_v27  ;;  %1172 = vmatprep.mubr.bf16.mxu1 %v285_v26 }
  0x44   :  { %1495 = vmatprep.subr.bf16.mxu1 %v1630_v28  ;;  %1213 = vmatmul.mubr.bf16.vlgmr.msra.gmra.mxu0 %v1946_v29 }
  0x45   :  { %1261 = vmatpush1.bf16.msra.mxu0 %v1632_v30  ;;  %1426 = vmatprep.mubr.msk.bf16.mxu0 %vm1009_vm0, %v330_v31 }
  0x46   :  { %1262 = vmatprep.subr.bf16.mxu0 %v1680_v32 }
  0x47   :  { %1496 = vmatpush3.bf16.msra.mxu1 %v1631_v34 }
  0x48   :  { %1497 = vmatprep.subr.bf16.mxu1 %v1633_v35 }
  0x49   :  { %1263 = vmatpush1.bf16.msra.mxu0 %v1635_v36 }
  0x4a   :  { %1264 = vmatprep.subr.bf16.mxu0 %v1680_v32 }
  0x4b   :  { %1498 = vmatpush3.bf16.msra.mxu1 %v1634_v37 }
  0x4c   :  { %1499 = vmatprep.subr.bf16.mxu1 %v1636_v38 }
  0x4d   :  { %1265 = vmatpush1.bf16.msra.mxu0 %v1638_v39 }
  0x4e   :  { %1266 = vmatprep.subr.bf16.mxu0 %v1680_v32 }
  0x4f   :  { %1500 = vmatpush3.bf16.msra.mxu1 %v1637_v40 }
  0x50   :  { %1501 = vmatprep.subr.bf16.mxu1 %v1639_v41 }
  0x51   :  { %1267 = vmatpush1.bf16.msra.mxu0 %v1641_v42 }
  0x52   :  { %1268 = vmatprep.subr.bf16.mxu0 %v1680_v32 }
  0x53   :  { %1502 = vmatpush3.bf16.msra.mxu1 %v1640_v43 }
  0x54   :  { %1503 = vmatprep.subr.bf16.mxu1 %v1642_v44 }
  0x55   :  { %1269 = vmatpush1.bf16.msra.mxu0 %v1644_v45 }
  0x56   :  { %1270 = vmatprep.subr.bf16.mxu0 %v1680_v32 }
  0x57   :  { %1504 = vmatpush3.bf16.msra.mxu1 %v1643_v46 }
  0x58   :  { %1505 = vmatprep.subr.bf16.mxu1 %v1645_v47 }
  0x59   :  { %1271 = vmatpush1.bf16.msra.mxu0 %v1647_v48 }
  0x5a   :  { %1272 = vmatprep.subr.bf16.mxu0 %v1680_v32 }
  0x5b   :  { %1506 = vmatpush3.bf16.msra.mxu1 %v1646_v49 }
  0x5c   :  { %1507 = vmatprep.subr.bf16.mxu1 %v1648_v50 }
  0x5d   :  { %1273 = vmatpush1.bf16.msra.mxu0 %v1650_v51 }
  0x5e   :  { %1274 = vmatprep.subr.bf16.mxu0 %v1680_v32 }
  0x5f   :  { %1508 = vmatpush3.bf16.msra.mxu1 %v1649_v52 }
  0x60   :  { %1537 = vmatprep.subr.bf16.mxu1 %v1651_v57 }
  0x61   :  { %1275 = vmatpush1.bf16.msra.mxu0 %v1653_v59 }
  0x62   :  { %1173 = vmatmul.mubr.bf16.vlgmr.msra.gmra.mxu1 %v283_v60  ;;  %1278 = vmatprep.subr.bf16.mxu0 %v1680_v32 }
  0x63   :  { %1538 = vmatpush3.bf16.msra.mxu1 %v1652_v62  ;;  %1252 = vmatprep.mubr.bf16.mxu1 %v332_v63 }
  0x64   :  { %1539 = vmatprep.subr.bf16.mxu1 %v1654_v0 }
  0x65   :  { %1279 = vmatpush2.bf16.msra.mxu0 %v1018_v1 }
  0x66   :  { %1280 = vmatprep.subr.bf16.mxu0 %v1680_v32 }
  0x67   :  { %1540 = vmatpush3.bf16.msra.mxu1 %v1655_v53 }
  0x68   :  { %1541 = vmatprep.subr.bf16.mxu1 %v1657_v58 }
  0x69   :  { %1281 = vmatpush2.bf16.msra.mxu0 %v1659_v2 }
  0x6a   :  { %1282 = vmatprep.subr.bf16.mxu0 %v1680_v32 }
  0x6b   :  { %1542 = vmatpush3.bf16.msra.mxu1 %v1658_v3 }
  0x6c   :  { %1543 = vmatprep.subr.bf16.mxu1 %v1660_v4 }
  0x6d   :  { %1283 = vmatpush2.bf16.msra.mxu0 %v1662_v5 }
  0x6e   :  { %1284 = vmatprep.subr.bf16.mxu0 %v1680_v32 }
  0x6f   :  { %1544 = vmatpush3.bf16.msra.mxu1 %v1661_v6 }
  0x70   :  { %1545 = vmatprep.subr.bf16.mxu1 %v1663_v7 }
  0x71   :  { %1285 = vmatpush2.bf16.msra.mxu0 %v1665_v8 }
  0x72   :  { %1286 = vmatprep.subr.bf16.mxu0 %v1680_v32 }
  0x73   :  { %1546 = vmatpush3.bf16.msra.mxu1 %v1664_v9 }
  0x74   :  { %1547 = vmatprep.subr.bf16.mxu1 %v1666_v10 }
  0x75   :  { %1287 = vmatpush2.bf16.msra.mxu0 %v1668_v11 }
  0x76   :  { %1288 = vmatprep.subr.bf16.mxu0 %v1680_v32 }
  0x77   :  { %1548 = vmatpush3.bf16.msra.mxu1 %v1667_v12 }
  0x78   :  { %1549 = vmatprep.subr.bf16.mxu1 %v1669_v13 }
  0x79   :  { %1289 = vmatpush2.bf16.msra.mxu0 %v1671_v14 }
  0x7a   :  { %1290 = vmatprep.subr.bf16.mxu0 %v1680_v32 }
  0x7b   :  { %1550 = vmatpush3.bf16.msra.mxu1 %v1670_v15 }
  0x7c   :  { %1551 = vmatprep.subr.bf16.mxu1 %v1672_v16 }
  0x7d   :  { %1291 = vmatpush2.bf16.msra.mxu0 %v1674_v17 }
  0x7f   :  { %1552 = vmatpush3.bf16.msra.mxu1 %v1673_v18 }
  0x80   :  { %1293 = vmatmul.mubr.bf16.vlgmr.msra.gmra.mxu0 %v316_v20 }
  0x82   :  { %1253 = vmatmul.mubr.bf16.vlgmr.msra.gmra.mxu1 %v331_v21 }
  0xe2   :  { %v1443_v22 = vpop.f32.mrf.mxu1 }
  0xe4   :  { %v1444_v23 = vpop.f32.mrf.mxu1  ;;  %v1487_v24 = vpop.f32.mrf.mxu0 }
  0xe5   :  { %v1445_v25 = vadd.f32 %v1444_v23, %v1443_v22 }
  0xe6   :  { %v1446_v26 = vpop.f32.mrf.mxu1  ;;  %v1488_v27 = vpop.f32.mrf.mxu0 }
  0xe7   :  { %v1489_v28 = vadd.f32 %v1488_v27, %v1487_v24 }
  0xe8   :  { %v1447_v30 = vpop.f32.mrf.mxu1  ;;  %v1490_v31 = vpop.f32.mrf.mxu0 }
  0xea   :  { %v1491_v32 = vpop.f32.mrf.mxu0 }
 0x102   :  { %v1465_v34 = vpop.f32.mrf.mxu1 }
 0x104   :  { %v1466_v35 = vpop.f32.mrf.mxu1  ;;  %v1531_v33 = vpop.f32.mrf.mxu0 }
 0x105   :  { %v1467_v19 = vadd.f32 %v1466_v35, %v1465_v34 }
 0x106   :  { %v1468_v36 = vpop.f32.mrf.mxu1  ;;  %v1532_v37 = vpop.f32.mrf.mxu0 }
 0x107   :  { %v1095_v29 = vadd.f32 %v1467_v19, %v1445_v25  ;;  %v1533_v51 = vadd.f32 %v1532_v37, %v1531_v33 }
 0x108   :  { %v1469_v38 = vpop.f32.mrf.mxu1  ;;  %v1534_v39 = vpop.f32.mrf.mxu0 }
 0x109   :  { %v1135_v40 = vadd.f32 %v1489_v28, %v1095_v29 }
 0x10a   :  { %v1535_v41 = vpop.f32.mrf.mxu0 }
 0x122   :  { %v1509_v42 = vpop.f32.mrf.mxu1 }
 0x124   :  { %v1510_v43 = vpop.f32.mrf.mxu1 }
 0x125   :  { %v1511_v46 = vadd.f32 %v1510_v43, %v1509_v42 }
 0x126   :  { %v1512_v44 = vpop.f32.mrf.mxu1 }
 0x127   :  { %v1175_v48 = vadd.f32 %v1511_v46, %v1135_v40 }
 0x128   :  { %v1513_v45 = vpop.f32.mrf.mxu1 }
 0x129   :  { %v1215_v55 = vadd.f32 %v1533_v51, %v1175_v48 }
 0x140   :  { %v1294_v47 = vpop.f32.mrf.mxu0 }
 0x142   :  { %v1553_v49 = vpop.f32.mrf.mxu1  ;;  %v1296_v50 = vpop.f32.mrf.mxu0 }
 0x144   :  { %v1554_v52 = vpop.f32.mrf.mxu1  ;;  %v1297_v54 = vpop.f32.mrf.mxu0 }
 0x145   :  { %v1555_v56 = vadd.f32 %v1554_v52, %v1553_v49 }
 0x146   :  { %v1556_v57 = vpop.f32.mrf.mxu1  ;;  %v1298_v59 = vpop.f32.mrf.mxu0 }
 0x147   :  { %v1255_v60 = vadd.f32 %v1555_v56, %v1215_v55 }
 0x148   :  { %v1557_v61 = vpop.f32.mrf.mxu1 }
 0x149   :  { %v1295_v62 = vadd.f32 %v1294_v47, %v1255_v60 }
 0x14b   :  { %v1300_v63 = vand.u32 2147483647, %v1295_v62  ;;  %vm1304_vm3 = vcmp.ge.f32.partialorder %v1295_v62, 0.0 }
 0x14d   :  { %v1301_v0 = vsub.f32 0.0, %v1300_v63 }
 0x14f   :  { %v1302_v1 = vmul.f32 1.442695, %v1301_v0 }
 0x151   :  { %1675 = vpow2.f32 %v1302_v1 }
 0x15e   :  { %v1676_v53 = vpop.eup %1675 }
 0x15f   :  { %v1305_v58 = vadd.f32 1.0, %v1676_v53 }
 0x161   :  { %1677 = vrcp.f32 %v1305_v58 }
 0x16e   :  { %v1678_v2 = vpop.eup %1677 }
 0x16f   :  { %v1308_v3 = vmul.f32 %v1678_v2, %v1676_v53 }
 0x171   :  { %v1309_v4 = vsel %vm1304_vm3, %v1678_v2, %v1308_v3 }
 0x172   :  { %1310 = vst [vmem:[%s2110_s2] sm:$0x1] %v1309_v4 }

// kernel: _lambda_.22
= control target key start
LH: loop header
LB: loop body
LE: loop exit
PB: predicated region body
PF: predicated region fallthrough
CT: control target
= control target key end

     0   :  { %s1433_s9 = smov 0   ;;  %s1435_s10 = smov 0   ;;  %s1823_s0 = inlined_call_operand.vmem [shape: bf16[163,2048], index: 0, kind: input, shape index: {}]   ;;  %s1824_s1 = inlined_call_operand.vmem [shape: bf16[9,163], index: 1, kind: input, shape index: {}]   ;;  %s1825_s2 = inlined_call_operand.vmem [shape: bf16[9,2048], index: 2, kind: output, shape index: {}]  }
   0x1   :  { %s1437_s11 = smov 0  }
   0x2 LB: > { %s1230_s12 = sadd.s32 4294967295, %s1415_s11   ;;  %s1450_s13 = sadd.s32 1, %s1415_s11   ;;  %s1415_s11 = sphi %s1437_s11, %s1831_s11   ;;  %s1411_s10 = sphi %s1435_s10, %s1830_s10   ;;  %s1407_s9 = sphi %s1433_s9, %s1829_s9  }
   0x3   : > { %s16_s14 = ssub.s32 %s1415_s11, %s1450_s13  ;;  %s19_s15 = sadd.s32 1, %s1411_s10 }
   0x4   : > { %p17_p0 = scmp.eq.s32.totalorder %s16_s14, 0  ;;  %p26_p1 = scmp.ne.s32.totalorder %s1411_s10, %s1407_s9 }
   0x5   : > { %p27_p2 = scmp.eq.s32.totalorder %s1415_s11, 0  ;;  %p77_p3 = scmp.eq.s32.totalorder %s1230_s12, 1 }
   0x6   : > { %s1461_s16 = scalar_select %p17_p0, %s1411_s10, %s19_s15  }
   0x7   : > { %p28_p4 = por %p27_p2, %p26_p1  ;;  %p1463_p5 = por %p77_p3, %p26_p1 }
   0x8   : > { %p1233_p6 = scmp.ge.s32.totalorder %s1415_s11, 2 }
   0xa   : > { %102 = sbr.rel (%p1233_p6) target bundleno = 62 (0x3e), region = 20 }
   0xf   : > { %105 = sbr.rel (!%p28_p4) target bundleno = 62 (0x3e), region = 24  ;;  %s107_s18 = sand.u32 (%p28_p4), 1, %s1411_s10  }
  0x10   : > { %s1345_s19 = sshll.u32 (%p28_p4), %s1415_s11, 5  ;;  %s1355_s20 = smul.u32 (%p28_p4), 672, %s107_s18 }
  0x11   : > { %s1473_s23 = scalar_lea.vmem (%p28_p4), %s1823_s0, %s1345_s19 }
  0x12   : > { %v125_v0 = vld [vmem:[%s1473_s23] sm:$0xff] (%p28_p4)  ;;  %v127_v1 = vld [vmem:[%s1473_s23 + $0x8] sm:$0xff] (%p28_p4)  ;;  %v129_v2 = vld [vmem:[%s1473_s23 + $0x10] sm:$0xff] (%p28_p4)  ;;  %s1481_s24 = scalar_lea.vmem (%p28_p4), [#allocation2], %s1355_s20 }
  0x13   : > { %v131_v3 = vld [vmem:[%s1473_s23 + $0x18] sm:$0xff] (%p28_p4)  ;;  %v133_v4 = vld [vmem:[%s1473_s23 + $0x40] sm:$0xff] (%p28_p4)  ;;  %v135_v5 = vld [vmem:[%s1473_s23 + $0x48] sm:$0xff] (%p28_p4)  ;;  %126 = vst [vmem:[%s1481_s24] sm:$0xff] (%p28_p4), %v125_v0 }
  0x14   : > { %128 = vst [vmem:[%s1481_s24 + $0x8] sm:$0xff] %v127_v1  ;;  %130 = vst [vmem:[%s1481_s24 + $0x10] sm:$0xff] %v129_v2  ;;  %v137_v6 = vld [vmem:[%s1473_s23 + $0x50] sm:$0xff]  ;;  %v139_v7 = vld [vmem:[%s1473_s23 + $0x58] sm:$0xff] }
  0x15   : > { %132 = vst [vmem:[%s1481_s24 + $0x18] sm:$0xff] %v131_v3  ;;  %134 = vst [vmem:[%s1481_s24 + $0x20] sm:$0xff] %v133_v4  ;;  %v141_v8 = vld [vmem:[%s1473_s23 + $0x80] sm:$0xff]  ;;  %v143_v9 = vld [vmem:[%s1473_s23 + $0x88] sm:$0xff] }
  0x16   : > { %136 = vst [vmem:[%s1481_s24 + $0x28] sm:$0xff] %v135_v5  ;;  %138 = vst [vmem:[%s1481_s24 + $0x30] sm:$0xff] %v137_v6  ;;  %v145_v10 = vld [vmem:[%s1473_s23 + $0x90] sm:$0xff]  ;;  %v147_v11 = vld [vmem:[%s1473_s23 + $0x98] sm:$0xff] }
  0x17   : > { %140 = vst [vmem:[%s1481_s24 + $0x38] sm:$0xff] %v139_v7  ;;  %142 = vst [vmem:[%s1481_s24 + $0x40] sm:$0xff] %v141_v8  ;;  %v149_v12 = vld [vmem:[%s1473_s23 + $0xc0] sm:$0xff]  ;;  %v151_v13 = vld [vmem:[%s1473_s23 + $0xc8] sm:$0xff] }
  0x18   : > { %144 = vst [vmem:[%s1481_s24 + $0x48] sm:$0xff] %v143_v9  ;;  %146 = vst [vmem:[%s1481_s24 + $0x50] sm:$0xff] %v145_v10  ;;  %v153_v14 = vld [vmem:[%s1473_s23 + $0xd0] sm:$0xff]  ;;  %v155_v15 = vld [vmem:[%s1473_s23 + $0xd8] sm:$0xff] }
  0x19   : > { %148 = vst [vmem:[%s1481_s24 + $0x58] sm:$0xff] %v147_v11  ;;  %150 = vst [vmem:[%s1481_s24 + $0x60] sm:$0xff] %v149_v12  ;;  %v157_v16 = vld [vmem:[%s1473_s23 + $0x100] sm:$0xff]  ;;  %v159_v17 = vld [vmem:[%s1473_s23 + $0x108] sm:$0xff] }
  0x1a   : > { %152 = vst [vmem:[%s1481_s24 + $0x68] sm:$0xff] %v151_v13  ;;  %154 = vst [vmem:[%s1481_s24 + $0x70] sm:$0xff] %v153_v14  ;;  %v161_v18 = vld [vmem:[%s1473_s23 + $0x110] sm:$0xff]  ;;  %v163_v19 = vld [vmem:[%s1473_s23 + $0x118] sm:$0xff] }
  0x1b   : > { %156 = vst [vmem:[%s1481_s24 + $0x78] sm:$0xff] %v155_v15  ;;  %158 = vst [vmem:[%s1481_s24 + $0x80] sm:$0xff] %v157_v16  ;;  %v165_v20 = vld [vmem:[%s1473_s23 + $0x140] sm:$0xff]  ;;  %v167_v21 = vld [vmem:[%s1473_s23 + $0x148] sm:$0xff] }
  0x1c   : > { %160 = vst [vmem:[%s1481_s24 + $0x88] sm:$0xff] %v159_v17  ;;  %162 = vst [vmem:[%s1481_s24 + $0x90] sm:$0xff] %v161_v18  ;;  %v169_v22 = vld [vmem:[%s1473_s23 + $0x150] sm:$0xff]  ;;  %v171_v23 = vld [vmem:[%s1473_s23 + $0x158] sm:$0xff] }
  0x1d   : > { %164 = vst [vmem:[%s1481_s24 + $0x98] sm:$0xff] %v163_v19  ;;  %166 = vst [vmem:[%s1481_s24 + $0xa0] sm:$0xff] %v165_v20  ;;  %v173_v24 = vld [vmem:[%s1473_s23 + $0x180] sm:$0xff]  ;;  %v175_v25 = vld [vmem:[%s1473_s23 + $0x188] sm:$0xff] }
  0x1e   : > { %168 = vst [vmem:[%s1481_s24 + $0xa8] sm:$0xff] %v167_v21  ;;  %170 = vst [vmem:[%s1481_s24 + $0xb0] sm:$0xff] %v169_v22  ;;  %v177_v26 = vld [vmem:[%s1473_s23 + $0x190] sm:$0xff]  ;;  %v179_v27 = vld [vmem:[%s1473_s23 + $0x198] sm:$0xff] }
  0x1f   : > { %172 = vst [vmem:[%s1481_s24 + $0xb8] sm:$0xff] %v171_v23  ;;  %174 = vst [vmem:[%s1481_s24 + $0xc0] sm:$0xff] %v173_v24  ;;  %v181_v28 = vld [vmem:[%s1473_s23 + $0x1c0] sm:$0xff]  ;;  %v183_v29 = vld [vmem:[%s1473_s23 + $0x1c8] sm:$0xff] }
  0x20   : > { %176 = vst [vmem:[%s1481_s24 + $0xc8] sm:$0xff] %v175_v25  ;;  %178 = vst [vmem:[%s1481_s24 + $0xd0] sm:$0xff] %v177_v26  ;;  %v185_v30 = vld [vmem:[%s1473_s23 + $0x1d0] sm:$0xff]  ;;  %v187_v31 = vld [vmem:[%s1473_s23 + $0x1d8] sm:$0xff] }
  0x21   : > { %180 = vst [vmem:[%s1481_s24 + $0xd8] sm:$0xff] %v179_v27  ;;  %182 = vst [vmem:[%s1481_s24 + $0xe0] sm:$0xff] %v181_v28  ;;  %v189_v32 = vld [vmem:[%s1473_s23 + $0x200] sm:$0xff]  ;;  %v191_v33 = vld [vmem:[%s1473_s23 + $0x208] sm:$0xff] }
  0x22   : > { %184 = vst [vmem:[%s1481_s24 + $0xe8] sm:$0xff] %v183_v29  ;;  %186 = vst [vmem:[%s1481_s24 + $0xf0] sm:$0xff] %v185_v30  ;;  %v193_v34 = vld [vmem:[%s1473_s23 + $0x210] sm:$0xff]  ;;  %v195_v35 = vld [vmem:[%s1473_s23 + $0x218] sm:$0xff] }
  0x23   : > { %188 = vst [vmem:[%s1481_s24 + $0xf8] sm:$0xff] %v187_v31  ;;  %190 = vst [vmem:[%s1481_s24 + $0x100] sm:$0xff] %v189_v32  ;;  %v197_v36 = vld [vmem:[%s1473_s23 + $0x240] sm:$0xff]  ;;  %v199_v37 = vld [vmem:[%s1473_s23 + $0x248] sm:$0xff] }
  0x24   : > { %192 = vst [vmem:[%s1481_s24 + $0x108] sm:$0xff] %v191_v33  ;;  %194 = vst [vmem:[%s1481_s24 + $0x110] sm:$0xff] %v193_v34  ;;  %v201_v38 = vld [vmem:[%s1473_s23 + $0x250] sm:$0xff]  ;;  %v203_v39 = vld [vmem:[%s1473_s23 + $0x258] sm:$0xff] }
  0x25   : > { %196 = vst [vmem:[%s1481_s24 + $0x118] sm:$0xff] %v195_v35  ;;  %198 = vst [vmem:[%s1481_s24 + $0x120] sm:$0xff] %v197_v36  ;;  %v205_v40 = vld [vmem:[%s1473_s23 + $0x280] sm:$0xff]  ;;  %v207_v41 = vld [vmem:[%s1473_s23 + $0x288] sm:$0xff] }
  0x26   : > { %200 = vst [vmem:[%s1481_s24 + $0x128] sm:$0xff] %v199_v37  ;;  %202 = vst [vmem:[%s1481_s24 + $0x130] sm:$0xff] %v201_v38  ;;  %v209_v42 = vld [vmem:[%s1473_s23 + $0x290] sm:$0xff]  ;;  %v211_v43 = vld [vmem:[%s1473_s23 + $0x298] sm:$0xff] }
  0x27   : > { %204 = vst [vmem:[%s1481_s24 + $0x138] sm:$0xff] %v203_v39  ;;  %206 = vst [vmem:[%s1481_s24 + $0x140] sm:$0xff] %v205_v40  ;;  %v213_v44 = vld [vmem:[%s1473_s23 + $0x2c0] sm:$0xff]  ;;  %v215_v45 = vld [vmem:[%s1473_s23 + $0x2c8] sm:$0xff] }
  0x28   : > { %208 = vst [vmem:[%s1481_s24 + $0x148] sm:$0xff] %v207_v41  ;;  %210 = vst [vmem:[%s1481_s24 + $0x150] sm:$0xff] %v209_v42  ;;  %v217_v46 = vld [vmem:[%s1473_s23 + $0x2d0] sm:$0xff]  ;;  %v219_v47 = vld [vmem:[%s1473_s23 + $0x2d8] sm:$0xff] }
  0x29   : > { %212 = vst [vmem:[%s1481_s24 + $0x158] sm:$0xff] %v211_v43  ;;  %214 = vst [vmem:[%s1481_s24 + $0x160] sm:$0xff] %v213_v44  ;;  %v221_v48 = vld [vmem:[%s1473_s23 + $0x300] sm:$0xff]  ;;  %v223_v49 = vld [vmem:[%s1473_s23 + $0x308] sm:$0xff] }
  0x2a   : > { %216 = vst [vmem:[%s1481_s24 + $0x168] sm:$0xff] %v215_v45  ;;  %218 = vst [vmem:[%s1481_s24 + $0x170] sm:$0xff] %v217_v46  ;;  %v225_v50 = vld [vmem:[%s1473_s23 + $0x310] sm:$0xff]  ;;  %v227_v51 = vld [vmem:[%s1473_s23 + $0x318] sm:$0xff] }
  0x2b   : > { %220 = vst [vmem:[%s1481_s24 + $0x178] sm:$0xff] %v219_v47  ;;  %222 = vst [vmem:[%s1481_s24 + $0x180] sm:$0xff] %v221_v48  ;;  %v229_v52 = vld [vmem:[%s1473_s23 + $0x340] sm:$0xff]  ;;  %v231_v53 = vld [vmem:[%s1473_s23 + $0x348] sm:$0xff] }
  0x2c   : > { %224 = vst [vmem:[%s1481_s24 + $0x188] sm:$0xff] %v223_v49  ;;  %226 = vst [vmem:[%s1481_s24 + $0x190] sm:$0xff] %v225_v50  ;;  %v233_v54 = vld [vmem:[%s1473_s23 + $0x350] sm:$0xff]  ;;  %v235_v55 = vld [vmem:[%s1473_s23 + $0x358] sm:$0xff] }
  0x2d   : > { %228 = vst [vmem:[%s1481_s24 + $0x198] sm:$0xff] %v227_v51  ;;  %230 = vst [vmem:[%s1481_s24 + $0x1a0] sm:$0xff] %v229_v52  ;;  %v237_v56 = vld [vmem:[%s1473_s23 + $0x380] sm:$0xff]  ;;  %v239_v57 = vld [vmem:[%s1473_s23 + $0x388] sm:$0xff] }
  0x2e   : > { %232 = vst [vmem:[%s1481_s24 + $0x1a8] sm:$0xff] %v231_v53  ;;  %234 = vst [vmem:[%s1481_s24 + $0x1b0] sm:$0xff] %v233_v54  ;;  %v241_v58 = vld [vmem:[%s1473_s23 + $0x390] sm:$0xff]  ;;  %v243_v59 = vld [vmem:[%s1473_s23 + $0x398] sm:$0xff] }
  0x2f   : > { %236 = vst [vmem:[%s1481_s24 + $0x1b8] sm:$0xff] %v235_v55  ;;  %238 = vst [vmem:[%s1481_s24 + $0x1c0] sm:$0xff] %v237_v56  ;;  %v245_v60 = vld [vmem:[%s1473_s23 + $0x3c0] sm:$0xff]  ;;  %v247_v61 = vld [vmem:[%s1473_s23 + $0x3c8] sm:$0xff] }
  0x30   : > { %240 = vst [vmem:[%s1481_s24 + $0x1c8] sm:$0xff] %v239_v57  ;;  %242 = vst [vmem:[%s1481_s24 + $0x1d0] sm:$0xff] %v241_v58  ;;  %v249_v62 = vld [vmem:[%s1473_s23 + $0x3d0] sm:$0xff]  ;;  %v251_v63 = vld [vmem:[%s1473_s23 + $0x3d8] sm:$0xff] }
  0x31   : > { %244 = vst [vmem:[%s1481_s24 + $0x1d8] sm:$0xff] %v243_v59  ;;  %246 = vst [vmem:[%s1481_s24 + $0x1e0] sm:$0xff] %v245_v60  ;;  %v253_v0 = vld [vmem:[%s1473_s23 + $0x400] sm:$0xff]  ;;  %v255_v1 = vld [vmem:[%s1473_s23 + $0x408] sm:$0xff] }
  0x32   : > { %248 = vst [vmem:[%s1481_s24 + $0x1e8] sm:$0xff] %v247_v61  ;;  %250 = vst [vmem:[%s1481_s24 + $0x1f0] sm:$0xff] %v249_v62  ;;  %v257_v2 = vld [vmem:[%s1473_s23 + $0x410] sm:$0xff]  ;;  %v259_v3 = vld [vmem:[%s1473_s23 + $0x418] sm:$0xff] }
  0x33   : > { %252 = vst [vmem:[%s1481_s24 + $0x1f8] sm:$0xff] %v251_v63  ;;  %254 = vst [vmem:[%s1481_s24 + $0x200] sm:$0xff] %v253_v0  ;;  %v261_v4 = vld [vmem:[%s1473_s23 + $0x440] sm:$0xff]  ;;  %v263_v5 = vld [vmem:[%s1473_s23 + $0x448] sm:$0xff] }
  0x34   : > { %256 = vst [vmem:[%s1481_s24 + $0x208] sm:$0xff] %v255_v1  ;;  %258 = vst [vmem:[%s1481_s24 + $0x210] sm:$0xff] %v257_v2  ;;  %v265_v6 = vld [vmem:[%s1473_s23 + $0x450] sm:$0xff]  ;;  %v267_v7 = vld [vmem:[%s1473_s23 + $0x458] sm:$0xff] }
  0x35   : > { %260 = vst [vmem:[%s1481_s24 + $0x218] sm:$0xff] %v259_v3  ;;  %262 = vst [vmem:[%s1481_s24 + $0x220] sm:$0xff] %v261_v4  ;;  %v269_v8 = vld [vmem:[%s1473_s23 + $0x480] sm:$0xff]  ;;  %v271_v9 = vld [vmem:[%s1473_s23 + $0x488] sm:$0xff] }
  0x36   : > { %264 = vst [vmem:[%s1481_s24 + $0x228] sm:$0xff] %v263_v5  ;;  %266 = vst [vmem:[%s1481_s24 + $0x230] sm:$0xff] %v265_v6  ;;  %v273_v10 = vld [vmem:[%s1473_s23 + $0x490] sm:$0xff]  ;;  %v275_v11 = vld [vmem:[%s1473_s23 + $0x498] sm:$0xff] }
  0x37   : > { %268 = vst [vmem:[%s1481_s24 + $0x238] sm:$0xff] %v267_v7  ;;  %270 = vst [vmem:[%s1481_s24 + $0x240] sm:$0xff] %v269_v8  ;;  %v277_v12 = vld [vmem:[%s1473_s23 + $0x4c0] sm:$0xff]  ;;  %v279_v13 = vld [vmem:[%s1473_s23 + $0x4c8] sm:$0xff] }
  0x38   : > { %272 = vst [vmem:[%s1481_s24 + $0x248] sm:$0xff] %v271_v9  ;;  %274 = vst [vmem:[%s1481_s24 + $0x250] sm:$0xff] %v273_v10  ;;  %v281_v14 = vld [vmem:[%s1473_s23 + $0x4d0] sm:$0xff]  ;;  %v283_v15 = vld [vmem:[%s1473_s23 + $0x4d8] sm:$0xff] }
  0x39   : > { %276 = vst [vmem:[%s1481_s24 + $0x258] sm:$0xff] %v275_v11  ;;  %278 = vst [vmem:[%s1481_s24 + $0x260] sm:$0xff] %v277_v12  ;;  %v285_v16 = vld [vmem:[%s1473_s23 + $0x500] sm:$0xff]  ;;  %v287_v17 = vld [vmem:[%s1473_s23 + $0x508] sm:$0xff] }
  0x3a   : > { %280 = vst [vmem:[%s1481_s24 + $0x268] sm:$0xff] %v279_v13  ;;  %282 = vst [vmem:[%s1481_s24 + $0x270] sm:$0xff] %v281_v14  ;;  %v289_v18 = vld [vmem:[%s1473_s23 + $0x510] sm:$0xff]  ;;  %v291_v19 = vld [vmem:[%s1473_s23 + $0x518] sm:$0xff] }
  0x3b   : > { %284 = vst [vmem:[%s1481_s24 + $0x278] sm:$0xff] %v283_v15  ;;  %286 = vst [vmem:[%s1481_s24 + $0x280] sm:$0xff] %v285_v16 }
  0x3c   : > { %288 = vst [vmem:[%s1481_s24 + $0x288] sm:$0xff] %v287_v17  ;;  %290 = vst [vmem:[%s1481_s24 + $0x290] sm:$0xff] %v289_v18 }
  0x3d   : > { %292 = vst [vmem:[%s1481_s24 + $0x298] sm:$0xff] %v291_v19 }
  0x3e PF: > { %p1236_p7 = scmp.ge.s32.totalorder %s1415_s11, 1  ;;  %p297_p8 = scmp.lt.s32.totalorder %s1415_s11, 3 }
  0x40   : > { %p298_p9 = pnand %p1236_p7, %p297_p8 }
  0x41   : > { %s304_s25 = sand.u32 (!%p298_p9), 1, %s1407_s9  }
  0x42   : > { %301 = sbr.rel (%p298_p9) target bundleno = 377 (0x179), region = 47  ;;  %s1237_s4 = sshll.u32 (!%p298_p9), %s304_s25, 6 }
  0x43   : > { %s1356_s26 = smul.u32 (!%p298_p9), 672, %s304_s25  ;;  %s1772_s5 = scalar_lea.vmem (!%p298_p9), [#allocation3], %s1237_s4 }
  0x45   : > { %s1655_s29 = scalar_lea.vmem (!%p298_p9), [#allocation2], %s1356_s26 }
  0x47   : > { %vm842_vm0 = vcmask 285696   ;;  %v1653_v20 = vld [vmem:[%s1824_s1 + $0x4] ss:$8 sps:$4 sm:$0x1f]   ;;  %v386_v23 = vld [vmem:[%s1655_s29 + $0x1c8] sm:$0xff]  ;;  %vm846_vm1 = vcmask 1040384  }
  0x48   : > { %v385_v21 = vld [vmem:[%s1655_s29 + $0x1c0] sm:$0xff]  ;;  %1328 = vmatprep.mubr.msk.bf16.mxu0 %vm842_vm0, %v1653_v20  ;;  %1329 = vmatprep.mubr.msk.bf16.mxu1 %vm842_vm0, %v1653_v20  ;;  %v390_v25 = vld [vmem:[%s1655_s29 + $0x1e8] sm:$0xff]  ;;  %vm847_vm2 = vcmask 1041408   ;;  %v1417_v16 = vmov 65535   ;;  %vm1115_vm3 = vsmask.f32 256 }
  0x49   : > { %v389_v22 = vld [vmem:[%s1655_s29 + $0x1e0] sm:$0xff]  ;;  %v1299_v29 = vcombine.high %v386_v23, %v390_v25  ;;  %v1298_v30 = vcombine.low %v386_v23, %v390_v25  ;;  %v378_v32 = vld [vmem:[%s1655_s29 + $0x188] sm:$0xff]  ;;  %v848_v17 = vsel %vm846_vm1, 4294967295, %v1417_v16  ;;  %vm1117_vm4 = vcmask 1044484   ;;  %vm1116_vm6 = vmand %vm846_vm1, %vm1115_vm3  ;;  %s1354_s6 = sshll.u32 (%p1463_p5), %s1230_s12, 5 }
  0x4a   : > { %v1297_v24 = vcombine.high %v385_v21, %v389_v22  ;;  %v1296_v26 = vcombine.low %v385_v21, %v389_v22  ;;  %v377_v27 = vld [vmem:[%s1655_s29 + $0x180] sm:$0xff]  ;;  %v382_v33 = vld [vmem:[%s1655_s29 + $0x1a8] sm:$0xff]  ;;  %v1696_v25 = vsel %vm847_vm2, %v848_v17, 0  ;;  %vm1118_vm5 = vsmask.f32 4352  ;;  %s1142_s9 = scalar_lea.vmem (%p1463_p5), %s1825_s2, %s1354_s6 }
  0x4b   : > { %v381_v28 = vld [vmem:[%s1655_s29 + $0x1a0] sm:$0xff]  ;;  %v1291_v35 = vcombine.high %v378_v32, %v382_v33  ;;  %v370_v37 = vld [vmem:[%s1655_s29 + $0x148] sm:$0xff]  ;;  %917 = vmatprep.subr.bf16.mxu1 %v1299_v29  ;;  %v1290_v40 = vcombine.low %v378_v32, %v382_v33  ;;  %vm1119_vm7 = vmand %vm1117_vm4, %vm1118_vm5 }
  0x4c   : > { %v1289_v31 = vcombine.high %v377_v27, %v381_v28  ;;  %v369_v34 = vld [vmem:[%s1655_s29 + $0x140] sm:$0xff]  ;;  %874 = vmatprep.subr.bf16.mxu0 %v1297_v24  ;;  %v374_v38 = vld [vmem:[%s1655_s29 + $0x168] sm:$0xff]  ;;  %v1288_v39 = vcombine.low %v377_v27, %v381_v28  ;;  %918 = vmatpush1.bf16.msra.mxu1 %v1298_v30  ;;  %vm1776_vm8 = vmor %vm1119_vm7, %vm1116_vm6 }
  0x4d   : > { %v373_v36 = vld [vmem:[%s1655_s29 + $0x160] sm:$0xff]  ;;  %875 = vmatpush1.bf16.msra.mxu0 %v1296_v26  ;;  %919 = vmatprep.subr.bf16.mxu1 %v1291_v35  ;;  %v1283_v42 = vcombine.high %v370_v37, %v374_v38  ;;  %v362_v45 = vld [vmem:[%s1655_s29 + $0x108] sm:$0xff]  ;;  %v1282_v48 = vcombine.low %v370_v37, %v374_v38 }
  0x4e   : > { %876 = vmatprep.subr.bf16.mxu0 %v1289_v31  ;;  %v1281_v41 = vcombine.high %v369_v34, %v373_v36  ;;  %v361_v43 = vld [vmem:[%s1655_s29 + $0x100] sm:$0xff]  ;;  %v366_v46 = vld [vmem:[%s1655_s29 + $0x128] sm:$0xff]  ;;  %v1280_v47 = vcombine.low %v369_v34, %v373_v36 }
  0x4f   : > { %v365_v44 = vld [vmem:[%s1655_s29 + $0x120] sm:$0xff]  ;;  %v1275_v50 = vcombine.high %v362_v45, %v366_v46  ;;  %v354_v53 = vld [vmem:[%s1655_s29 + $0xc8] sm:$0xff]  ;;  %v1274_v56 = vcombine.low %v362_v45, %v366_v46 }
  0x50   : > { %920 = vmatpush1.bf16.msra.mxu1 %v1290_v40  ;;  %v1273_v49 = vcombine.high %v361_v43, %v365_v44  ;;  %v353_v51 = vld [vmem:[%s1655_s29 + $0xc0] sm:$0xff]  ;;  %v358_v54 = vld [vmem:[%s1655_s29 + $0xe8] sm:$0xff]  ;;  %v1272_v55 = vcombine.low %v361_v43, %v365_v44 }
  0x51   : > { %877 = vmatpush1.bf16.msra.mxu0 %v1288_v39  ;;  %921 = vmatprep.subr.bf16.mxu1 %v1283_v42  ;;  %v357_v52 = vld [vmem:[%s1655_s29 + $0xe0] sm:$0xff]  ;;  %v1267_v58 = vcombine.high %v354_v53, %v358_v54  ;;  %v346_v61 = vld [vmem:[%s1655_s29 + $0x88] sm:$0xff]  ;;  %v1266_v0 = vcombine.low %v354_v53, %v358_v54 }
  0x52   : > { %878 = vmatprep.subr.bf16.mxu0 %v1281_v41  ;;  %v1265_v57 = vcombine.high %v353_v51, %v357_v52  ;;  %v345_v59 = vld [vmem:[%s1655_s29 + $0x80] sm:$0xff]  ;;  %v350_v62 = vld [vmem:[%s1655_s29 + $0xa8] sm:$0xff]  ;;  %v1264_v63 = vcombine.low %v353_v51, %v357_v52  ;;  %v388_v51 = vld [vmem:[%s1655_s29 + $0x1d8] sm:$0xff] }
  0x53   : > { %v349_v60 = vld [vmem:[%s1655_s29 + $0xa0] sm:$0xff]  ;;  %v1259_v2 = vcombine.high %v346_v61, %v350_v62  ;;  %v338_v5 = vld [vmem:[%s1655_s29 + $0x48] sm:$0xff]  ;;  %v1258_v8 = vcombine.low %v346_v61, %v350_v62  ;;  %v392_v52 = vld [vmem:[%s1655_s29 + $0x1f8] sm:$0xff] }
  0x54   : > { %922 = vmatpush1.bf16.msra.mxu1 %v1282_v48  ;;  %v1257_v1 = vcombine.high %v345_v59, %v349_v60  ;;  %v337_v3 = vld [vmem:[%s1655_s29 + $0x40] sm:$0xff]  ;;  %v342_v6 = vld [vmem:[%s1655_s29 + $0x68] sm:$0xff]  ;;  %v1256_v7 = vcombine.low %v345_v59, %v349_v60  ;;  %v380_v60 = vld [vmem:[%s1655_s29 + $0x198] sm:$0xff] }
  0x55   : > { %879 = vmatpush1.bf16.msra.mxu0 %v1280_v47  ;;  %923 = vmatprep.subr.bf16.mxu1 %v1275_v50  ;;  %v341_v4 = vld [vmem:[%s1655_s29 + $0x60] sm:$0xff]  ;;  %v1251_v10 = vcombine.high %v338_v5, %v342_v6  ;;  %v330_v14 = vld [vmem:[%s1655_s29 + $0x8] sm:$0xff]  ;;  %v1250_v21 = vcombine.low %v338_v5, %v342_v6  ;;  %v391_v50 = vld [vmem:[%s1655_s29 + $0x1f0] sm:$0xff] }
  0x56   : > { %880 = vmatprep.subr.bf16.mxu0 %v1273_v49  ;;  %v1249_v9 = vcombine.high %v337_v3, %v341_v4  ;;  %v329_v11 = vld [vmem:[%s1655_s29] sm:$0xff]  ;;  %v334_v15 = vld [vmem:[%s1655_s29 + $0x28] sm:$0xff]  ;;  %v1248_v19 = vcombine.low %v337_v3, %v341_v4  ;;  %v387_v49 = vld [vmem:[%s1655_s29 + $0x1d0] sm:$0xff] }
  0x57   : > { %v333_v12 = vld [vmem:[%s1655_s29 + $0x20] sm:$0xff]  ;;  %v410_v18 = vld [vmem:[%s1655_s29 + $0x288] sm:$0x33]  ;;  %v1243_v24 = vcombine.high %v330_v14, %v334_v15  ;;  %v1242_v29 = vcombine.low %v330_v14, %v334_v15  ;;  %v384_v61 = vld [vmem:[%s1655_s29 + $0x1b8] sm:$0xff]  ;;  %v1300_v62 = vcombine.low %v387_v49, %v391_v50 }
  0x58   : > { %924 = vmatpush1.bf16.msra.mxu1 %v1274_v56  ;;  %v409_v13 = vld [vmem:[%s1655_s29 + $0x280] sm:$0x33]  ;;  %v1241_v22 = vcombine.high %v329_v11, %v333_v12  ;;  %v1323_v26 = vcombine.high %v410_v18, %v410_v18  ;;  %v1240_v27 = vcombine.low %v329_v11, %v333_v12  ;;  %v1322_v31 = vcombine.low %v410_v18, %v410_v18  ;;  %v402_v35 = vld [vmem:[%s1655_s29 + $0x248] sm:$0xff]  ;;  %v375_v3 = vld [vmem:[%s1655_s29 + $0x170] sm:$0xff] }
  0x59   : > { %881 = vmatpush1.bf16.msra.mxu0 %v1272_v55  ;;  %925 = vmatprep.subr.bf16.mxu1 %v1267_v58  ;;  %v1321_v23 = vcombine.high %v409_v13, %v409_v13  ;;  %v1320_v28 = vcombine.low %v409_v13, %v409_v13  ;;  %v401_v33 = vld [vmem:[%s1655_s29 + $0x240] sm:$0xff]  ;;  %v406_v36 = vld [vmem:[%s1655_s29 + $0x268] sm:$0xff]  ;;  %v1301_v55 = vcombine.high %v387_v49, %v391_v50  ;;  %v383_v58 = vld [vmem:[%s1655_s29 + $0x1b0] sm:$0xff] }
  0x5a   : > { %882 = vmatprep.subr.bf16.mxu0 %v1265_v57  ;;  %v860_v32 = vand.u32 %v1323_v26, %v1696_v25  ;;  %v405_v34 = vld [vmem:[%s1655_s29 + $0x260] sm:$0xff]  ;;  %v857_v38 = vand.u32 %v1322_v31, %v1696_v25  ;;  %v1315_v40 = vcombine.high %v402_v35, %v406_v36  ;;  %v394_v43 = vld [vmem:[%s1655_s29 + $0x208] sm:$0xff]  ;;  %v1314_v46 = vcombine.low %v402_v35, %v406_v36  ;;  %v379_v57 = vld [vmem:[%s1655_s29 + $0x190] sm:$0xff] }
  0x5b   : > { %v854_v30 = vand.u32 %v1321_v23, %v1696_v25  ;;  %v851_v37 = vand.u32 %v1320_v28, %v1696_v25  ;;  %v1313_v39 = vcombine.high %v401_v33, %v405_v34  ;;  %v393_v41 = vld [vmem:[%s1655_s29 + $0x200] sm:$0xff]  ;;  %v398_v44 = vld [vmem:[%s1655_s29 + $0x228] sm:$0xff]  ;;  %v1312_v45 = vcombine.low %v401_v33, %v405_v34  ;;  %v372_v4 = vld [vmem:[%s1655_s29 + $0x158] sm:$0xff] }
  0x5c   : > { %926 = vmatpush1.bf16.msra.mxu1 %v1266_v0  ;;  %v397_v42 = vld [vmem:[%s1655_s29 + $0x220] sm:$0xff]  ;;  %v1307_v48 = vcombine.high %v394_v43, %v398_v44  ;;  %v1306_v54 = vcombine.low %v394_v43, %v398_v44  ;;  %v1303_v56 = vcombine.high %v388_v51, %v392_v52  ;;  %v1293_v0 = vcombine.high %v379_v57, %v383_v58  ;;  %v376_v5 = vld [vmem:[%s1655_s29 + $0x178] sm:$0xff]  ;;  %v367_v11 = vld [vmem:[%s1655_s29 + $0x130] sm:$0xff] }
  0x5d   : > { %883 = vmatpush1.bf16.msra.mxu0 %v1264_v63  ;;  %927 = vmatprep.subr.bf16.mxu1 %v1259_v2  ;;  %v1305_v47 = vcombine.high %v393_v41, %v397_v42  ;;  %v1304_v53 = vcombine.low %v393_v41, %v397_v42  ;;  %v1719_v59 = vld [vmem:[%s1824_s1] ss:$8 sps:$4 sm:$0x1f]   ;;  %v1302_v63 = vcombine.low %v388_v51, %v392_v52  ;;  %v371_v2 = vld [vmem:[%s1655_s29 + $0x150] sm:$0xff] }
  0x5e   : > { %884 = vmatprep.subr.bf16.mxu0 %v1257_v1  ;;  %v1295_v1 = vcombine.high %v380_v60, %v384_v61  ;;  %v1292_v6 = vcombine.low %v379_v57, %v383_v58  ;;  %v364_v12 = vld [vmem:[%s1655_s29 + $0x118] sm:$0xff]  ;;  %v1284_v14 = vcombine.low %v371_v2, %v375_v3  ;;  %v1286_v15 = vcombine.low %v372_v4, %v376_v5  ;;  %v355_v18 = vld [vmem:[%s1655_s29 + $0xd0] sm:$0xff] }
  0x5f   : > { %v368_v13 = vld [vmem:[%s1655_s29 + $0x138] sm:$0xff]  ;;  %v351_v28 = vld [vmem:[%s1655_s29 + $0xb0] sm:$0xff] }
  0x60   : > { %928 = vmatpush1.bf16.msra.mxu1 %v1258_v8  ;;  %v1285_v8 = vcombine.high %v371_v2, %v375_v3  ;;  %v1279_v17 = vcombine.high %v364_v12, %v368_v13  ;;  %v339_v35 = vld [vmem:[%s1655_s29 + $0x50] sm:$0xff] }
  0x61   : > { %885 = vmatpush1.bf16.msra.mxu0 %v1256_v7  ;;  %929 = vmatprep.subr.bf16.mxu1 %v1251_v10  ;;  %v1294_v7 = vcombine.low %v380_v60, %v384_v61  ;;  %v363_v10 = vld [vmem:[%s1655_s29 + $0x110] sm:$0xff] }
  0x62   : > { %886 = vmatprep.subr.bf16.mxu0 %v1249_v9  ;;  %v1287_v9 = vcombine.high %v372_v4, %v376_v5  ;;  %v1277_v16 = vcombine.high %v363_v10, %v367_v11  ;;  %v1276_v23 = vcombine.low %v363_v10, %v367_v11  ;;  %v343_v36 = vld [vmem:[%s1655_s29 + $0x70] sm:$0xff] }
  0x63   : > { %v1253_v41 = vcombine.high %v339_v35, %v343_v36  ;;  %v331_v43 = vld [vmem:[%s1655_s29 + $0x10] sm:$0xff]  ;;  %v1252_v49 = vcombine.low %v339_v35, %v343_v36  ;;  %v1124_v36 = vld [vmem:[%s1772_s5 + $0x28] sm:$0x11] }
  0x64   : > { %930 = vmatpush1.bf16.msra.mxu1 %v1250_v21  ;;  %v356_v21 = vld [vmem:[%s1655_s29 + $0xd8] sm:$0xff]  ;;  %v335_v44 = vld [vmem:[%s1655_s29 + $0x30] sm:$0xff] }
  0x65   : > { %887 = vmatpush1.bf16.msra.mxu0 %v1248_v19  ;;  %931 = vmatprep.subr.bf16.mxu1 %v1243_v24  ;;  %v359_v19 = vld [vmem:[%s1655_s29 + $0xf0] sm:$0xff]  ;;  %v1245_v51 = vcombine.high %v331_v43, %v335_v44 }
  0x66   : > { %888 = vmatprep.subr.bf16.mxu0 %v1241_v22  ;;  %v360_v22 = vld [vmem:[%s1655_s29 + $0xf8] sm:$0xff]  ;;  %v1269_v24 = vcombine.high %v355_v18, %v359_v19  ;;  %v1268_v31 = vcombine.low %v355_v18, %v359_v19 }
  0x67   : > { %v1271_v26 = vcombine.high %v356_v21, %v360_v22 }
  0x68   : > { %932 = vmatpush1.bf16.msra.mxu1 %v1242_v29  ;;  %v348_v29 = vld [vmem:[%s1655_s29 + $0x98] sm:$0xff] }
  0x69   : > { %889 = vmatpush1.bf16.msra.mxu0 %v1240_v27  ;;  %943 = vmatprep.subr.bf16.mxu1 %v860_v32  ;;  %v347_v27 = vld [vmem:[%s1655_s29 + $0x90] sm:$0xff]  ;;  %v1270_v32 = vcombine.low %v356_v21, %v360_v22 }
  0x6a   : > { %900 = vmatprep.subr.bf16.mxu0 %v854_v30  ;;  %v352_v30 = vld [vmem:[%s1655_s29 + $0xb8] sm:$0xff]  ;;  %v1261_v33 = vcombine.high %v347_v27, %v351_v28 }
  0x6b   : > { %v1263_v34 = vcombine.high %v348_v29, %v352_v30 }
  0x6c   : > { %944 = vmatpush2.bf16.msra.mxu1 %v857_v38  ;;  %v344_v38 = vld [vmem:[%s1655_s29 + $0x78] sm:$0xff] }
  0x6d   : > { %901 = vmatpush2.bf16.msra.mxu0 %v851_v37  ;;  %945 = vmatprep.subr.bf16.mxu1 %v1315_v40  ;;  %v340_v37 = vld [vmem:[%s1655_s29 + $0x58] sm:$0xff]  ;;  %v1262_v40 = vcombine.low %v348_v29, %v352_v30 }
  0x6e   : > { %902 = vmatprep.subr.bf16.mxu0 %v1313_v39  ;;  %v1260_v39 = vcombine.low %v347_v27, %v351_v28  ;;  %v1255_v42 = vcombine.high %v340_v37, %v344_v38  ;;  %v1254_v50 = vcombine.low %v340_v37, %v344_v38 }
  0x70   : > { %946 = vmatpush2.bf16.msra.mxu1 %v1314_v46  ;;  %v332_v46 = vld [vmem:[%s1655_s29 + $0x18] sm:$0xff] }
  0x71   : > { %903 = vmatpush2.bf16.msra.mxu0 %v1312_v45  ;;  %947 = vmatprep.subr.bf16.mxu1 %v1307_v48  ;;  %v411_v45 = vld [vmem:[%s1655_s29 + $0x290] sm:$0x33]  ;;  %v412_v48 = vld [vmem:[%s1655_s29 + $0x298] sm:$0x33] }
  0x72   : > { %904 = vmatprep.subr.bf16.mxu0 %v1305_v47  ;;  %v336_v47 = vld [vmem:[%s1655_s29 + $0x38] sm:$0xff]  ;;  %v1325_v52 = vcombine.high %v411_v45, %v411_v45  ;;  %v1326_v60 = vcombine.low %v412_v48, %v412_v48 }
  0x73   : > { %v1246_v57 = vcombine.low %v332_v46, %v336_v47 }
  0x74   : > { %948 = vmatpush2.bf16.msra.mxu1 %v1306_v54  ;;  %v1327_v54 = vcombine.high %v412_v48, %v412_v48  ;;  %v866_v58 = vand.u32 %v1325_v52, %v1696_v25  ;;  %v869_v3 = vand.u32 %v1326_v60, %v1696_v25 }
  0x75   : > { %905 = vmatpush2.bf16.msra.mxu0 %v1304_v53  ;;  %1003 = vmatprep.subr.bf16.mxu1 %v1303_v56  ;;  %v1247_v53 = vcombine.high %v332_v46, %v336_v47  ;;  %v1324_v56 = vcombine.low %v411_v45, %v411_v45 }
  0x76   : > { %960 = vmatprep.subr.bf16.mxu0 %v1301_v55  ;;  %v1244_v55 = vcombine.low %v331_v43, %v335_v44  ;;  %v872_v61 = vand.u32 %v1327_v54, %v1696_v25 }
  0x77   : > { %950 = vmatmul.mubr.bf16.vlgmr.msra.gmra.mxu1 %v1719_v59  ;;  %v863_v2 = vand.u32 %v1324_v56, %v1696_v25 }
  0x78   : > { %907 = vmatmul.mubr.bf16.vlgmr.msra.gmra.mxu0 %v1719_v59  ;;  %1004 = vmatpush1.bf16.msra.mxu1 %v1302_v63  ;;  %v407_v63 = vld [vmem:[%s1655_s29 + $0x270] sm:$0xff] }
  0x79   : > { %961 = vmatpush1.bf16.msra.mxu0 %v1300_v62  ;;  %1005 = vmatprep.subr.bf16.mxu1 %v1295_v1  ;;  %v403_v62 = vld [vmem:[%s1655_s29 + $0x250] sm:$0xff]  ;;  %v408_v1 = vld [vmem:[%s1655_s29 + $0x278] sm:$0xff] }
  0x7a   : > { %962 = vmatprep.subr.bf16.mxu0 %v1293_v0  ;;  %1330 = vmatprep.mubr.msk.bf16.mxu0 %vm842_vm0, %v1653_v20  ;;  %v404_v0 = vld [vmem:[%s1655_s29 + $0x258] sm:$0xff]  ;;  %v1317_v4 = vcombine.high %v403_v62, %v407_v63  ;;  %v1316_v10 = vcombine.low %v403_v62, %v407_v63 }
  0x7b   : > { %1331 = vmatprep.mubr.msk.bf16.mxu1 %vm842_vm0, %v1653_v20  ;;  %v1278_v20 = vcombine.low %v364_v12, %v368_v13  ;;  %v1319_v5 = vcombine.high %v404_v0, %v408_v1  ;;  %v1318_v11 = vcombine.low %v404_v0, %v408_v1 }
  0x7c   : > { %1006 = vmatpush1.bf16.msra.mxu1 %v1294_v7  ;;  %v399_v7 = vld [vmem:[%s1655_s29 + $0x230] sm:$0xff] }
  0x7d   : > { %963 = vmatpush1.bf16.msra.mxu0 %v1292_v6  ;;  %1007 = vmatprep.subr.bf16.mxu1 %v1287_v9  ;;  %v395_v6 = vld [vmem:[%s1655_s29 + $0x210] sm:$0xff]  ;;  %v400_v9 = vld [vmem:[%s1655_s29 + $0x238] sm:$0xff] }
  0x7e   : > { %964 = vmatprep.subr.bf16.mxu0 %v1285_v8  ;;  %v396_v8 = vld [vmem:[%s1655_s29 + $0x218] sm:$0xff]  ;;  %v1309_v12 = vcombine.high %v395_v6, %v399_v7 }
  0x7f   : > { %v1311_v13 = vcombine.high %v396_v8, %v400_v9  ;;  %v1310_v25 = vcombine.low %v396_v8, %v400_v9 }
  0x80   : > { %1008 = vmatpush1.bf16.msra.mxu1 %v1286_v15 }
  0x81   : > { %965 = vmatpush1.bf16.msra.mxu0 %v1284_v14  ;;  %1009 = vmatprep.subr.bf16.mxu1 %v1279_v17  ;;  %v1308_v14 = vcombine.low %v395_v6, %v399_v7 }
  0x82   : > { %966 = vmatprep.subr.bf16.mxu0 %v1277_v16 }
  0x84   : > { %1010 = vmatpush1.bf16.msra.mxu1 %v1278_v20 }
  0x85   : > { %967 = vmatpush1.bf16.msra.mxu0 %v1276_v23  ;;  %1011 = vmatprep.subr.bf16.mxu1 %v1271_v26 }
  0x86   : > { %968 = vmatprep.subr.bf16.mxu0 %v1269_v24 }
  0x88   : > { %1012 = vmatpush1.bf16.msra.mxu1 %v1270_v32 }
  0x89   : > { %969 = vmatpush1.bf16.msra.mxu0 %v1268_v31  ;;  %1013 = vmatprep.subr.bf16.mxu1 %v1263_v34 }
  0x8a   : > { %970 = vmatprep.subr.bf16.mxu0 %v1261_v33  ;;  %v1121_v33 = vld [vmem:[%s1772_s5 + $0x20] sm:$0x11] }
  0x8c   : > { %1014 = vmatpush1.bf16.msra.mxu1 %v1262_v40 }
  0x8d   : > { %971 = vmatpush1.bf16.msra.mxu0 %v1260_v39  ;;  %1015 = vmatprep.subr.bf16.mxu1 %v1255_v42 }
  0x8e   : > { %972 = vmatprep.subr.bf16.mxu0 %v1253_v41 }
  0x90   : > { %1016 = vmatpush1.bf16.msra.mxu1 %v1254_v50 }
  0x91   : > { %973 = vmatpush1.bf16.msra.mxu0 %v1252_v49  ;;  %1017 = vmatprep.subr.bf16.mxu1 %v1247_v53 }
  0x92   : > { %974 = vmatprep.subr.bf16.mxu0 %v1245_v51 }
  0x94   : > { %1018 = vmatpush1.bf16.msra.mxu1 %v1246_v57  ;;  %v1127_v57 = vld [vmem:[%s1772_s5 + $0x30] sm:$0x11] }
  0x95   : > { %975 = vmatpush1.bf16.msra.mxu0 %v1244_v55  ;;  %1029 = vmatprep.subr.bf16.mxu1 %v872_v61  ;;  %v1130_v61 = vld [vmem:[%s1772_s5 + $0x38] sm:$0x11] }
  0x96   : > { %986 = vmatprep.subr.bf16.mxu0 %v866_v58 }
  0x98   : > { %1030 = vmatpush2.bf16.msra.mxu1 %v869_v3 }
  0x99   : > { %987 = vmatpush2.bf16.msra.mxu0 %v863_v2  ;;  %1031 = vmatprep.subr.bf16.mxu1 %v1319_v5 }
  0x9a   : > { %988 = vmatprep.subr.bf16.mxu0 %v1317_v4 }
  0x9c   : > { %1032 = vmatpush2.bf16.msra.mxu1 %v1318_v11 }
  0x9d   : > { %989 = vmatpush2.bf16.msra.mxu0 %v1316_v10  ;;  %1033 = vmatprep.subr.bf16.mxu1 %v1311_v13 }
  0x9e   : > { %990 = vmatprep.subr.bf16.mxu0 %v1309_v12 }
  0xa0   : > { %1034 = vmatpush2.bf16.msra.mxu1 %v1310_v25 }
  0xa1   : > { %991 = vmatpush2.bf16.msra.mxu0 %v1308_v14 }
  0xa3   : > { %1036 = vmatmul.mubr.bf16.vlgmr.msra.gmra.mxu1 %v1719_v59 }
  0xa4   : > { %993 = vmatmul.mubr.bf16.vlgmr.msra.gmra.mxu0 %v1719_v59 }
 0x137   : > { %v951_v17 = vpop.f32.mrf.mxu1 }
 0x138   : > { %v908_v15 = vpop.f32.mrf.mxu0  ;;  %v1048_v18 = vmax.f32 %v951_v17, 0.0 }
 0x139   : > { %v1046_v16 = vmax.f32 %v908_v15, 0.0  ;;  %v953_v22 = vpop.f32.mrf.mxu1 }
 0x13a   : > { %v910_v19 = vpop.f32.mrf.mxu0  ;;  %v1049_v23 = vmax.f32 %v953_v22, 0.0 }
 0x13b   : > { %v1047_v21 = vmax.f32 %v910_v19, 0.0  ;;  %v955_v26 = vpop.f32.mrf.mxu1 }
 0x13c   : > { %v912_v20 = vpop.f32.mrf.mxu0  ;;  %v1347_v59 = vpack.c.bf16 %v1049_v23, %v1048_v18  ;;  %v1056_v31 = vmax.f32 %v955_v26, 0.0 }
 0x13d   : > { %v1346_v24 = vpack.c.bf16 %v1047_v21, %v1046_v16  ;;  %v1054_v28 = vmax.f32 %v912_v20, 0.0  ;;  %v957_v30 = vpop.f32.mrf.mxu1 }
 0x13e   : > { %v914_v27 = vpop.f32.mrf.mxu0  ;;  %1111 = vst [vmem:[%s1772_s5 + $0x8] sm:$0xff] %v1347_v59  ;;  %v1057_v34 = vmax.f32 %v957_v30, 0.0 }
 0x13f   : > { %1110 = vst [vmem:[%s1772_s5] sm:$0xff] %v1346_v24  ;;  %v1055_v29 = vmax.f32 %v914_v27, 0.0 }
 0x140   : > { %v1351_v37 = vpack.c.bf16 %v1057_v34, %v1056_v31 }
 0x141   : > { %v1350_v35 = vpack.c.bf16 %v1055_v29, %v1054_v28 }
 0x142   : > { %v1125_v39 = vsel %vm1776_vm8, %v1351_v37, %v1124_v36 }
 0x143   : > { %v1122_v38 = vsel %vm1776_vm8, %v1350_v35, %v1121_v33  ;;  %1126 = vst [vmem:[%s1772_s5 + $0x28] sm:$0x11] %v1125_v39 }
 0x144   : > { %1123 = vst [vmem:[%s1772_s5 + $0x20] sm:$0x11] %v1122_v38 }
 0x145   : > { %v1157_v2 = vld [vmem:[%s1772_s5 + $0x8] sm:$0xff] (%p1463_p5) }
 0x146   : > { %v1155_v1 = vld [vmem:[%s1772_s5] sm:$0xff] (%p1463_p5)  ;;  %1158 = vst [vmem:[%s1142_s9 + $0x8] sm:$0xff] (%p1463_p5), %v1157_v2 }
 0x147   : > { %1156 = vst [vmem:[%s1142_s9] sm:$0xff] (%p1463_p5), %v1155_v1 }
 0x14a   : > { %v1165_v6 = vld [vmem:[%s1772_s5 + $0x28] sm:$0xff] (%p1463_p5) }
 0x14b   : > { %v1163_v5 = vld [vmem:[%s1772_s5 + $0x20] sm:$0xff] (%p1463_p5)  ;;  %1166 = vst [vmem:[%s1142_s9 + $0x48] sm:$0xff] (%p1463_p5), %v1165_v6 }
 0x14c   : > { %1164 = vst [vmem:[%s1142_s9 + $0x40] sm:$0xff] (%p1463_p5), %v1163_v5 }
 0x163   : > { %v1037_v41 = vpop.f32.mrf.mxu1 }
 0x164   : > { %v994_v40 = vpop.f32.mrf.mxu0  ;;  %v1052_v46 = vmax.f32 %v1037_v41, 0.0 }
 0x165   : > { %v1050_v43 = vmax.f32 %v994_v40, 0.0  ;;  %v1039_v45 = vpop.f32.mrf.mxu1 }
 0x166   : > { %v996_v42 = vpop.f32.mrf.mxu0  ;;  %v1053_v47 = vmax.f32 %v1039_v45, 0.0 }
 0x167   : > { %v1051_v44 = vmax.f32 %v996_v42, 0.0  ;;  %v1041_v50 = vpop.f32.mrf.mxu1 }
 0x168   : > { %v998_v48 = vpop.f32.mrf.mxu0  ;;  %v1349_v51 = vpack.c.bf16 %v1053_v47, %v1052_v46  ;;  %v1060_v56 = vmax.f32 %v1041_v50, 0.0 }
 0x169   : > { %v1348_v49 = vpack.c.bf16 %v1051_v44, %v1050_v43  ;;  %v1058_v53 = vmax.f32 %v998_v48, 0.0  ;;  %v1043_v55 = vpop.f32.mrf.mxu1 }
 0x16a   : > { %v1000_v52 = vpop.f32.mrf.mxu0  ;;  %1113 = vst [vmem:[%s1772_s5 + $0x18] sm:$0xff] %v1349_v51  ;;  %v1061_v58 = vmax.f32 %v1043_v55, 0.0 }
 0x16b   : > { %1112 = vst [vmem:[%s1772_s5 + $0x10] sm:$0xff] %v1348_v49  ;;  %v1059_v54 = vmax.f32 %v1000_v52, 0.0 }
 0x16c   : > { %v1353_v62 = vpack.c.bf16 %v1061_v58, %v1060_v56  ;;  %1139 = sbr.rel (!%p1463_p5) target bundleno = 377 (0x179), region = 55 }
 0x16d   : > { %v1352_v60 = vpack.c.bf16 %v1059_v54, %v1058_v53 }
 0x16e   : > { %v1131_v0 = vsel %vm1776_vm8, %v1353_v62, %v1130_v61 }
 0x16f   : > { %v1128_v63 = vsel %vm1776_vm8, %v1352_v60, %v1127_v57  ;;  %1132 = vst [vmem:[%s1772_s5 + $0x38] sm:$0x11] %v1131_v0 }
 0x170   : > { %1129 = vst [vmem:[%s1772_s5 + $0x30] sm:$0x11] %v1128_v63 }
 0x171   : > { %v1161_v4 = vld [vmem:[%s1772_s5 + $0x18] sm:$0xff] }
 0x172   : > { %v1159_v3 = vld [vmem:[%s1772_s5 + $0x10] sm:$0xff]  ;;  %1162 = vst [vmem:[%s1142_s9 + $0x18] sm:$0xff] %v1161_v4 }
 0x173   : > { %1160 = vst [vmem:[%s1142_s9 + $0x10] sm:$0xff] %v1159_v3 }
 0x176   : > { %v1169_v8 = vld [vmem:[%s1772_s5 + $0x38] sm:$0xff] }
 0x177   : > { %v1167_v7 = vld [vmem:[%s1772_s5 + $0x30] sm:$0xff]  ;;  %1170 = vst [vmem:[%s1142_s9 + $0x58] sm:$0xff] %v1169_v8 }
 0x178   : > { %1168 = vst [vmem:[%s1142_s9 + $0x50] sm:$0xff] %v1167_v7 }
 0x179 PF: > { %p9_p10 = scmp.ge.s32.totalorder %s1450_s13, 4   ;;  %s1829_s9 = smov %s1411_s10 }
 0x17a   : > { %s1830_s10 = smov %s1461_s16  ;;  %s1831_s11 = smov %s1450_s13 }
 0x17b   :  { %11 = sbr.rel (!%p9_p10) target bundleno = 2 (0x2), region = 109 }

// kernel: _lambda_.21
= control target key start
LH: loop header
LB: loop body
LE: loop exit
PB: predicated region body
PF: predicated region fallthrough
CT: control target
= control target key end

     0   :  { %v2406_v36 = vmov 1966171168   ;;  %v240_v38 = vlaneseq  ;;  %vm1404_vm0 = vcmask 1040384   ;;  %vm1405_vm1 = vcmask 1041408   ;;  %s3158_s0 = inlined_call_operand.vmem [shape: bf16[883,512], index: 0, kind: input, shape index: {}]   ;;  %s3159_s1 = inlined_call_operand.vmem [shape: bf16[1,883], index: 1, kind: input, shape index: {}]   ;;  %s3160_s2 = inlined_call_operand.vmem [shape: f32[1,512], index: 2, kind: output, shape index: {}]  }
   0x1   :  { %v2055_v0 = vld [vmem:[%s3158_s0 + $0xe4] ss:$16 sps:$4 sm:$0xff]   ;;  %v2059_v2 = vld [vmem:[%s3158_s0 + $0xe0] ss:$16 sps:$4 sm:$0xff]   ;;  %v238_v37 = vunpack.c.l.s4 %v2406_v36  ;;  %vm1400_vm2 = vcmask 941056  }
   0x2   :  { %v2057_v1 = vld [vmem:[%s3158_s0 + $0x2e4] ss:$16 sps:$4 sm:$0xff]   ;;  %1420 = vmatprep.subr.bf16.mxu0 %v2055_v0  ;;  %v2060_v3 = vld [vmem:[%s3158_s0 + $0x2e0] ss:$16 sps:$4 sm:$0xff]   ;;  %v241_v43 = vshrl.u32 %v240_v38, 7  ;;  %vm1819_vm7 = vcmp.lt.s32.totalorder %v240_v38, 512 }
   0x3   :  { %1461 = vmatprep.subr.bf16.mxu1 %v2057_v1  ;;  %v2061_v4 = vld [vmem:[%s3158_s0 + $0xc4] ss:$16 sps:$4 sm:$0xff]   ;;  %1421 = vmatpush1.bf16.msra.mxu0 %v2059_v2  ;;  %v2065_v6 = vld [vmem:[%s3158_s0 + $0xc0] ss:$16 sps:$4 sm:$0xff]   ;;  %v239_v42 = vunpack.c.0.s8 %v238_v37 }
   0x4   :  { %1462 = vmatpush1.bf16.msra.mxu1 %v2060_v3  ;;  %v2063_v5 = vld [vmem:[%s3158_s0 + $0x2c4] ss:$16 sps:$4 sm:$0xff]   ;;  %1422 = vmatprep.subr.bf16.mxu0 %v2061_v4  ;;  %v2066_v7 = vld [vmem:[%s3158_s0 + $0x2c0] ss:$16 sps:$4 sm:$0xff]  }
   0x5   :  { %1463 = vmatprep.subr.bf16.mxu1 %v2063_v5  ;;  %v2067_v8 = vld [vmem:[%s3158_s0 + $0xa4] ss:$16 sps:$4 sm:$0xff]   ;;  %v2071_v10 = vld [vmem:[%s3158_s0 + $0xa0] ss:$16 sps:$4 sm:$0xff]   ;;  %v2557_v49 = vsub.s32 %v239_v42, %v241_v43 }
   0x6   :  { %v2069_v9 = vld [vmem:[%s3158_s0 + $0x2a4] ss:$16 sps:$4 sm:$0xff]   ;;  %v2072_v11 = vld [vmem:[%s3158_s0 + $0x2a0] ss:$16 sps:$4 sm:$0xff]  }
   0x7   :  { %1423 = vmatpush1.bf16.msra.mxu0 %v2065_v6  ;;  %v2073_v12 = vld [vmem:[%s3158_s0 + $0x84] ss:$16 sps:$4 sm:$0xff]   ;;  %v2077_v14 = vld [vmem:[%s3158_s0 + $0x80] ss:$16 sps:$4 sm:$0xff]   ;;  %v2407_v6 = vmov 65535  }
   0x8   :  { %1464 = vmatpush1.bf16.msra.mxu1 %v2066_v7  ;;  %1424 = vmatprep.subr.bf16.mxu0 %v2067_v8  ;;  %v2075_v13 = vld [vmem:[%s3158_s0 + $0x284] ss:$16 sps:$4 sm:$0xff]   ;;  %v2078_v15 = vld [vmem:[%s3158_s0 + $0x280] ss:$16 sps:$4 sm:$0xff]   ;;  %v1406_v7 = vsel %vm1404_vm0, 4294967295, %v2407_v6 }
   0x9   :  { %1465 = vmatprep.subr.bf16.mxu1 %v2069_v9  ;;  %v2079_v16 = vld [vmem:[%s3158_s0 + $0x64] ss:$16 sps:$4 sm:$0xff]   ;;  %v2083_v18 = vld [vmem:[%s3158_s0 + $0x60] ss:$16 sps:$4 sm:$0xff]  }
   0xa   :  { %v2081_v17 = vld [vmem:[%s3158_s0 + $0x264] ss:$16 sps:$4 sm:$0xff]   ;;  %v2084_v19 = vld [vmem:[%s3158_s0 + $0x260] ss:$16 sps:$4 sm:$0xff]  }
   0xb   :  { %1425 = vmatpush1.bf16.msra.mxu0 %v2071_v10  ;;  %v2085_v20 = vld [vmem:[%s3158_s0 + $0x44] ss:$16 sps:$4 sm:$0xff]   ;;  %v2089_v22 = vld [vmem:[%s3158_s0 + $0x40] ss:$16 sps:$4 sm:$0xff]  }
   0xc   :  { %1466 = vmatpush1.bf16.msra.mxu1 %v2072_v11  ;;  %1426 = vmatprep.subr.bf16.mxu0 %v2073_v12  ;;  %v2087_v21 = vld [vmem:[%s3158_s0 + $0x244] ss:$16 sps:$4 sm:$0xff]   ;;  %v2090_v23 = vld [vmem:[%s3158_s0 + $0x240] ss:$16 sps:$4 sm:$0xff]  }
   0xd   :  { %1467 = vmatprep.subr.bf16.mxu1 %v2075_v13  ;;  %v2091_v24 = vld [vmem:[%s3158_s0 + $0x24] ss:$16 sps:$4 sm:$0xff]   ;;  %v2095_v26 = vld [vmem:[%s3158_s0 + $0x20] ss:$16 sps:$4 sm:$0xff]  }
   0xe   :  { %v2093_v25 = vld [vmem:[%s3158_s0 + $0x224] ss:$16 sps:$4 sm:$0xff]   ;;  %v2096_v27 = vld [vmem:[%s3158_s0 + $0x220] ss:$16 sps:$4 sm:$0xff]  }
   0xf   :  { %1427 = vmatpush1.bf16.msra.mxu0 %v2077_v14  ;;  %v2097_v28 = vld [vmem:[%s3158_s0 + $0x4] ss:$16 sps:$4 sm:$0xff]   ;;  %v2101_v30 = vld [vmem:[%s3158_s0] ss:$16 sps:$4 sm:$0xff]   ;;  %v2629_v14 = vsel %vm1405_vm1, %v1406_v7, 0 }
  0x10   :  { %1468 = vmatpush1.bf16.msra.mxu1 %v2078_v15  ;;  %1428 = vmatprep.subr.bf16.mxu0 %v2079_v16  ;;  %v2099_v29 = vld [vmem:[%s3158_s0 + $0x204] ss:$16 sps:$4 sm:$0xff]   ;;  %v2102_v31 = vld [vmem:[%s3158_s0 + $0x200] ss:$16 sps:$4 sm:$0xff]   ;;  %v2216_v7 = vld [vmem:[%s3158_s0 + $0xac] ss:$16 sps:$4 sm:$0xff]  }
  0x11   :  { %1469 = vmatprep.subr.bf16.mxu1 %v2081_v17  ;;  %v2103_v32 = vld [vmem:[%s3158_s0 + $0x1e4] ss:$16 sps:$4 sm:$0xff]   ;;  %v2107_v34 = vld [vmem:[%s3158_s0 + $0x1e0] ss:$16 sps:$4 sm:$0xff]  }
  0x12   :  { %v2105_v33 = vld [vmem:[%s3158_s0 + $0x3e4] ss:$16 sps:$4 sm:$0xff]   ;;  %v2108_v35 = vld [vmem:[%s3158_s0 + $0x3e0] ss:$16 sps:$4 sm:$0xff]  }
  0x13   :  { %1429 = vmatpush1.bf16.msra.mxu0 %v2083_v18  ;;  %v2109_v39 = vld [vmem:[%s3158_s0 + $0x1c4] ss:$16 sps:$4 sm:$0xff]   ;;  %v2113_v41 = vld [vmem:[%s3158_s0 + $0x1c0] ss:$16 sps:$4 sm:$0xff]  }
  0x14   :  { %1470 = vmatpush1.bf16.msra.mxu1 %v2084_v19  ;;  %1430 = vmatprep.subr.bf16.mxu0 %v2085_v20  ;;  %v2111_v40 = vld [vmem:[%s3158_s0 + $0x3c4] ss:$16 sps:$4 sm:$0xff]   ;;  %v2114_v44 = vld [vmem:[%s3158_s0 + $0x3c0] ss:$16 sps:$4 sm:$0xff]  }
  0x15   :  { %1471 = vmatprep.subr.bf16.mxu1 %v2087_v21  ;;  %v2115_v45 = vld [vmem:[%s3158_s0 + $0x1a4] ss:$16 sps:$4 sm:$0xff]   ;;  %v2119_v47 = vld [vmem:[%s3158_s0 + $0x1a0] ss:$16 sps:$4 sm:$0xff]  }
  0x16   :  { %v2117_v46 = vld [vmem:[%s3158_s0 + $0x3a4] ss:$16 sps:$4 sm:$0xff]   ;;  %v2120_v48 = vld [vmem:[%s3158_s0 + $0x3a0] ss:$16 sps:$4 sm:$0xff]  }
  0x17   :  { %1431 = vmatpush1.bf16.msra.mxu0 %v2089_v22  ;;  %v2121_v50 = vld [vmem:[%s3158_s0 + $0x184] ss:$16 sps:$4 sm:$0xff]   ;;  %v2125_v54 = vld [vmem:[%s3158_s0 + $0x180] ss:$16 sps:$4 sm:$0xff]  }
  0x18   :  { %1472 = vmatpush1.bf16.msra.mxu1 %v2090_v23  ;;  %1432 = vmatprep.subr.bf16.mxu0 %v2091_v24  ;;  %v2123_v51 = vld [vmem:[%s3158_s0 + $0x384] ss:$16 sps:$4 sm:$0xff]   ;;  %v2126_v55 = vld [vmem:[%s3158_s0 + $0x380] ss:$16 sps:$4 sm:$0xff]  }
  0x19   :  { %1473 = vmatprep.subr.bf16.mxu1 %v2093_v25  ;;  %v12_v52 = vld [vmem:[%s3159_s1] sm:$0x7f] }
  0x1a   :  { %v243_v53 = vrot.slane %v12_v52, %v2557_v49  ;;  %v2127_v56 = vld [vmem:[%s3158_s0 + $0x164] ss:$16 sps:$4 sm:$0xff]   ;;  %v2131_v60 = vld [vmem:[%s3158_s0 + $0x160] ss:$16 sps:$4 sm:$0xff]   ;;  %v236_v10 = vcombine.high %v12_v52, %v12_v52 }
  0x1b   :  { %1433 = vmatpush1.bf16.msra.mxu0 %v2095_v26  ;;  %v2129_v57 = vld [vmem:[%s3158_s0 + $0x364] ss:$16 sps:$4 sm:$0xff]   ;;  %v2132_v61 = vld [vmem:[%s3158_s0 + $0x360] ss:$16 sps:$4 sm:$0xff]  }
  0x1c   :  { %1474 = vmatpush1.bf16.msra.mxu1 %v2096_v27  ;;  %1434 = vmatprep.subr.bf16.mxu0 %v2097_v28  ;;  %v251_v58 = vcombine.high %v243_v53, %v243_v53  ;;  %v2133_v62 = vld [vmem:[%s3158_s0 + $0x144] ss:$16 sps:$4 sm:$0xff]   ;;  %v2137_v1 = vld [vmem:[%s3158_s0 + $0x140] ss:$16 sps:$4 sm:$0xff]   ;;  %v2632_v15 = vrot.slane %v243_v53, %v2557_v49  ;;  %v2641_v18 = vrot.slane %v236_v10, %v2557_v49 }
  0x1d   :  { %1475 = vmatprep.subr.bf16.mxu1 %v2099_v29  ;;  %v2135_v63 = vld [vmem:[%s3158_s0 + $0x344] ss:$16 sps:$4 sm:$0xff]   ;;  %v2138_v2 = vld [vmem:[%s3158_s0 + $0x340] ss:$16 sps:$4 sm:$0xff]  }
  0x1e   :  { %v2582_v59 = vrot.slane %v251_v58, %v2557_v49  ;;  %v2139_v3 = vld [vmem:[%s3158_s0 + $0x124] ss:$16 sps:$4 sm:$0xff]   ;;  %v2143_v8 = vld [vmem:[%s3158_s0 + $0x120] ss:$16 sps:$4 sm:$0xff]   ;;  %v252_v22 = vcombine.high %v2641_v18, %v2641_v18  ;;  %v2651_v23 = vcombine.high %v2632_v15, %v2632_v15 }
  0x1f   :  { %1435 = vmatpush1.bf16.msra.mxu0 %v2101_v30  ;;  %v2141_v4 = vld [vmem:[%s3158_s0 + $0x324] ss:$16 sps:$4 sm:$0xff]   ;;  %v2144_v9 = vld [vmem:[%s3158_s0 + $0x320] ss:$16 sps:$4 sm:$0xff]  }
  0x20   :  { %1476 = vmatpush1.bf16.msra.mxu1 %v2102_v31  ;;  %1436 = vmatprep.subr.bf16.mxu0 %v2103_v32  ;;  %v2598_v0 = vcombine.high %v2582_v59, %v2582_v59  ;;  %v233_v5 = vld [vmem:[%s3158_s0 + $0x6e0] sm:$0x33]  ;;  %v2664_v28 = vrot.slane %v252_v22, %v2557_v49  ;;  %v2232_v22 = vld [vmem:[%s3158_s0 + $0x48] ss:$16 sps:$4 sm:$0xff]  }
  0x21   :  { %1477 = vmatprep.subr.bf16.mxu1 %v2105_v33  ;;  %1452 = vmatprep.mubr.bf16.mxu0 %v2582_v59  ;;  %v2145_v11 = vld [vmem:[%s3158_s0 + $0x104] ss:$16 sps:$4 sm:$0xff]   ;;  %v2047_v13 = vcombine.high %v233_v5, %v233_v5  ;;  %v2149_v16 = vld [vmem:[%s3158_s0 + $0x100] ss:$16 sps:$4 sm:$0xff]   ;;  %v2046_v19 = vcombine.low %v233_v5, %v233_v5  ;;  %v2408_v33 = vmov 0  }
  0x22   :  { %1493 = vmatprep.mubr.bf16.mxu1 %v2598_v0  ;;  %v2147_v12 = vld [vmem:[%s3158_s0 + $0x304] ss:$16 sps:$4 sm:$0xff]   ;;  %v2150_v17 = vld [vmem:[%s3158_s0 + $0x300] ss:$16 sps:$4 sm:$0xff]   ;;  %v2208_v5 = vld [vmem:[%s3158_s0 + $0xc8] ss:$16 sps:$4 sm:$0xff]  }
  0x23   :  { %1437 = vmatpush2.bf16.msra.mxu0 %v2107_v34  ;;  %v2154_v20 = vld [vmem:[%s3158_s0 + $0x4e4] ss:$16 sps:$4 sm:$0xff]   ;;  %v1412_v21 = vand.u32 %v2047_v13, %v2629_v14  ;;  %v2152_v24 = vld [vmem:[%s3158_s0 + $0x4e0] ss:$16 sps:$4 sm:$0xff]   ;;  %v1409_v25 = vand.u32 %v2046_v19, %v2629_v14 }
  0x24   :  { %1478 = vmatpush2.bf16.msra.mxu1 %v2108_v35  ;;  %1438 = vmatprep.subr.bf16.mxu0 %v2109_v39  ;;  %v2159_v26 = vld [vmem:[%s3158_s0 + $0x4c4] ss:$16 sps:$4 sm:$0xff]   ;;  %v2157_v29 = vld [vmem:[%s3158_s0 + $0x4c0] ss:$16 sps:$4 sm:$0xff]  }
  0x25   :  { %1479 = vmatprep.subr.bf16.mxu1 %v2111_v40  ;;  %v2162_v27 = vld [vmem:[%s3158_s0 + $0x6c4] ss:$16 sps:$4 sm:$0xff]   ;;  %v2160_v30 = vld [vmem:[%s3158_s0 + $0x6c0] ss:$16 sps:$4 sm:$0xff]  }
  0x26   :  { %v2165_v31 = vld [vmem:[%s3158_s0 + $0x4a4] ss:$16 sps:$4 sm:$0xff]   ;;  %v2163_v34 = vld [vmem:[%s3158_s0 + $0x4a0] ss:$16 sps:$4 sm:$0xff]  }
  0x27   :  { %1439 = vmatpush2.bf16.msra.mxu0 %v2113_v41  ;;  %v2168_v32 = vld [vmem:[%s3158_s0 + $0x6a4] ss:$16 sps:$4 sm:$0xff]   ;;  %v2166_v35 = vld [vmem:[%s3158_s0 + $0x6a0] ss:$16 sps:$4 sm:$0xff]  }
  0x28   :  { %1480 = vmatpush2.bf16.msra.mxu1 %v2114_v44  ;;  %1440 = vmatprep.subr.bf16.mxu0 %v2115_v45  ;;  %v2171_v36 = vld [vmem:[%s3158_s0 + $0x484] ss:$16 sps:$4 sm:$0xff]   ;;  %v2169_v39 = vld [vmem:[%s3158_s0 + $0x480] ss:$16 sps:$4 sm:$0xff]  }
  0x29   :  { %1481 = vmatprep.subr.bf16.mxu1 %v2117_v46  ;;  %v2174_v37 = vld [vmem:[%s3158_s0 + $0x684] ss:$16 sps:$4 sm:$0xff]   ;;  %v2172_v40 = vld [vmem:[%s3158_s0 + $0x680] ss:$16 sps:$4 sm:$0xff]  }
  0x2a   :  { %v2177_v41 = vld [vmem:[%s3158_s0 + $0x464] ss:$16 sps:$4 sm:$0xff]   ;;  %v2175_v43 = vld [vmem:[%s3158_s0 + $0x460] ss:$16 sps:$4 sm:$0xff]  }
  0x2b   :  { %1441 = vmatpush2.bf16.msra.mxu0 %v2119_v47  ;;  %v2180_v42 = vld [vmem:[%s3158_s0 + $0x664] ss:$16 sps:$4 sm:$0xff]   ;;  %v2178_v44 = vld [vmem:[%s3158_s0 + $0x660] ss:$16 sps:$4 sm:$0xff]  }
  0x2c   :  { %1482 = vmatpush2.bf16.msra.mxu1 %v2120_v48  ;;  %1442 = vmatprep.subr.bf16.mxu0 %v2121_v50  ;;  %v2183_v45 = vld [vmem:[%s3158_s0 + $0x444] ss:$16 sps:$4 sm:$0xff]   ;;  %v2181_v47 = vld [vmem:[%s3158_s0 + $0x440] ss:$16 sps:$4 sm:$0xff]  }
  0x2d   :  { %1483 = vmatprep.subr.bf16.mxu1 %v2123_v51  ;;  %v2186_v46 = vld [vmem:[%s3158_s0 + $0x644] ss:$16 sps:$4 sm:$0xff]   ;;  %v2184_v48 = vld [vmem:[%s3158_s0 + $0x640] ss:$16 sps:$4 sm:$0xff]  }
  0x2e   :  { %v2189_v50 = vld [vmem:[%s3158_s0 + $0x424] ss:$16 sps:$4 sm:$0xff]   ;;  %v2187_v52 = vld [vmem:[%s3158_s0 + $0x420] ss:$16 sps:$4 sm:$0xff]  }
  0x2f   :  { %1443 = vmatpush2.bf16.msra.mxu0 %v2125_v54  ;;  %v2192_v51 = vld [vmem:[%s3158_s0 + $0x624] ss:$16 sps:$4 sm:$0xff]   ;;  %v2190_v53 = vld [vmem:[%s3158_s0 + $0x620] ss:$16 sps:$4 sm:$0xff]  }
  0x30   :  { %1484 = vmatpush2.bf16.msra.mxu1 %v2126_v55  ;;  %1444 = vmatprep.subr.bf16.mxu0 %v2127_v56  ;;  %v2195_v54 = vld [vmem:[%s3158_s0 + $0x404] ss:$16 sps:$4 sm:$0xff]   ;;  %v2744_v56 = vrot.slane %v2641_v18, %v2557_v49  ;;  %v2196_v58 = vld [vmem:[%s3158_s0 + $0x600] ss:$16 sps:$4 sm:$0xff]   ;;  %v2226_v18 = vld [vmem:[%s3158_s0 + $0x68] ss:$16 sps:$4 sm:$0xff]  }
  0x31   :  { %1485 = vmatprep.subr.bf16.mxu1 %v2129_v57  ;;  %v2198_v55 = vld [vmem:[%s3158_s0 + $0x604] ss:$16 sps:$4 sm:$0xff]   ;;  %v2193_v57 = vld [vmem:[%s3158_s0 + $0x400] ss:$16 sps:$4 sm:$0xff]  }
  0x32   :  { %v2213_v6 = vld [vmem:[%s3158_s0 + $0x5a4] ss:$16 sps:$4 sm:$0xff]  }
  0x33   :  { %1445 = vmatpush2.bf16.msra.mxu0 %v2131_v60  ;;  %v2201_v60 = vld [vmem:[%s3158_s0 + $0x5e4] ss:$16 sps:$4 sm:$0xff]  }
  0x34   :  { %1486 = vmatpush2.bf16.msra.mxu1 %v2132_v61  ;;  %1446 = vmatprep.subr.bf16.mxu0 %v2133_v62  ;;  %v2204_v61 = vld [vmem:[%s3158_s0 + $0xec] ss:$16 sps:$4 sm:$0xff]   ;;  %v2760_v62 = vcombine.high %v2744_v56, %v2744_v56  ;;  %v2219_v10 = vld [vmem:[%s3158_s0 + $0x584] ss:$16 sps:$4 sm:$0xff]  }
  0x35   :  { %1487 = vmatprep.subr.bf16.mxu1 %v2135_v63  ;;  %v2199_v63 = vld [vmem:[%s3158_s0 + $0x5e0] ss:$16 sps:$4 sm:$0xff]   ;;  %v2225_v13 = vld [vmem:[%s3158_s0 + $0x564] ss:$16 sps:$4 sm:$0xff]  }
  0x36   :  { %v2231_v19 = vld [vmem:[%s3158_s0 + $0x544] ss:$16 sps:$4 sm:$0xff]  }
  0x37   :  { %1447 = vmatpush2.bf16.msra.mxu0 %v2137_v1  ;;  %v2202_v1 = vld [vmem:[%s3158_s0 + $0xe8] ss:$16 sps:$4 sm:$0xff]  }
  0x38   :  { %1488 = vmatpush2.bf16.msra.mxu1 %v2138_v2  ;;  %1448 = vmatprep.subr.bf16.mxu0 %v2139_v3  ;;  %v2207_v2 = vld [vmem:[%s3158_s0 + $0x5c4] ss:$16 sps:$4 sm:$0xff]   ;;  %v2210_v3 = vld [vmem:[%s3158_s0 + $0xcc] ss:$16 sps:$4 sm:$0xff]  }
  0x39   :  { %1489 = vmatprep.subr.bf16.mxu1 %v2141_v4  ;;  %v2205_v4 = vld [vmem:[%s3158_s0 + $0x5c0] ss:$16 sps:$4 sm:$0xff]  }
  0x3b   :  { %1449 = vmatpush2.bf16.msra.mxu0 %v2143_v8  ;;  %v2211_v8 = vld [vmem:[%s3158_s0 + $0x5a0] ss:$16 sps:$4 sm:$0xff]  }
  0x3c   :  { %1490 = vmatpush2.bf16.msra.mxu1 %v2144_v9  ;;  %1450 = vmatprep.subr.bf16.mxu0 %v2145_v11  ;;  %v2214_v9 = vld [vmem:[%s3158_s0 + $0xa8] ss:$16 sps:$4 sm:$0xff]   ;;  %v2217_v11 = vld [vmem:[%s3158_s0 + $0x580] ss:$16 sps:$4 sm:$0xff]  }
  0x3d   :  { %1491 = vmatprep.subr.bf16.mxu1 %v2147_v12  ;;  %v2220_v12 = vld [vmem:[%s3158_s0 + $0x88] ss:$16 sps:$4 sm:$0xff]  }
  0x3f   :  { %1451 = vmatpush2.bf16.msra.mxu0 %v2149_v16  ;;  %v2228_v16 = vld [vmem:[%s3158_s0 + $0x6c] ss:$16 sps:$4 sm:$0xff]  }
  0x40   :  { %1492 = vmatpush2.bf16.msra.mxu1 %v2150_v17  ;;  %1502 = vmatprep.subr.bf16.mxu0 %v2154_v20  ;;  %v2223_v17 = vld [vmem:[%s3158_s0 + $0x560] ss:$16 sps:$4 sm:$0xff]   ;;  %v2234_v20 = vld [vmem:[%s3158_s0 + $0x4c] ss:$16 sps:$4 sm:$0xff]  }
  0x41   :  { %1543 = vmatprep.subr.bf16.mxu1 %v1412_v21  ;;  %v2229_v21 = vld [vmem:[%s3158_s0 + $0x540] ss:$16 sps:$4 sm:$0xff]  }
  0x42   :  { %1453 = vmatmul.mubr.bf16.vlgmr.msra.gmra.mxu0 %v2632_v15 }
  0x43   :  { %1494 = vmatmul.mubr.bf16.vlgmr.msra.gmra.mxu1 %v2651_v23  ;;  %1503 = vmatpush1.bf16.msra.mxu0 %v2152_v24  ;;  %v2237_v24 = vld [vmem:[%s3158_s0 + $0x524] ss:$16 sps:$4 sm:$0xff]  }
  0x44   :  { %1544 = vmatpush1.bf16.msra.mxu1 %v1409_v25  ;;  %1504 = vmatprep.subr.bf16.mxu0 %v2159_v26  ;;  %v2240_v25 = vld [vmem:[%s3158_s0 + $0x2c] ss:$16 sps:$4 sm:$0xff]   ;;  %v2235_v26 = vld [vmem:[%s3158_s0 + $0x520] ss:$16 sps:$4 sm:$0xff]  }
  0x45   :  { %1545 = vmatprep.subr.bf16.mxu1 %v2162_v27  ;;  %1575 = vmatprep.mubr.bf16.mxu1 %v2408_v33  ;;  %v2238_v27 = vld [vmem:[%s3158_s0 + $0x28] ss:$16 sps:$4 sm:$0xff]  }
  0x46   :  { %1534 = vmatprep.mubr.bf16.mxu0 %v2664_v28 }
  0x47   :  { %1505 = vmatpush1.bf16.msra.mxu0 %v2157_v29  ;;  %v2243_v29 = vld [vmem:[%s3158_s0 + $0x504] ss:$16 sps:$4 sm:$0xff]  }
  0x48   :  { %1546 = vmatpush1.bf16.msra.mxu1 %v2160_v30  ;;  %1506 = vmatprep.subr.bf16.mxu0 %v2165_v31  ;;  %v2246_v30 = vld [vmem:[%s3158_s0 + $0xc] ss:$16 sps:$4 sm:$0xff]   ;;  %v2241_v31 = vld [vmem:[%s3158_s0 + $0x500] ss:$16 sps:$4 sm:$0xff]  }
  0x49   :  { %1547 = vmatprep.subr.bf16.mxu1 %v2168_v32  ;;  %v2244_v32 = vld [vmem:[%s3158_s0 + $0x8] ss:$16 sps:$4 sm:$0xff]  }
  0x4b   :  { %1507 = vmatpush1.bf16.msra.mxu0 %v2163_v34  ;;  %v2249_v34 = vld [vmem:[%s3158_s0 + $0x1ec] ss:$16 sps:$4 sm:$0xff]  }
  0x4c   :  { %1548 = vmatpush1.bf16.msra.mxu1 %v2166_v35  ;;  %1508 = vmatprep.subr.bf16.mxu0 %v2171_v36  ;;  %v2252_v35 = vld [vmem:[%s3158_s0 + $0x2ec] ss:$16 sps:$4 sm:$0xff]   ;;  %v2247_v36 = vld [vmem:[%s3158_s0 + $0x1e8] ss:$16 sps:$4 sm:$0xff]  }
  0x4d   :  { %1549 = vmatprep.subr.bf16.mxu1 %v2174_v37  ;;  %v2250_v37 = vld [vmem:[%s3158_s0 + $0x2e8] ss:$16 sps:$4 sm:$0xff]  }
  0x4f   :  { %1509 = vmatpush1.bf16.msra.mxu0 %v2169_v39  ;;  %v2255_v39 = vld [vmem:[%s3158_s0 + $0x1cc] ss:$16 sps:$4 sm:$0xff]  }
  0x50   :  { %1550 = vmatpush1.bf16.msra.mxu1 %v2172_v40  ;;  %1510 = vmatprep.subr.bf16.mxu0 %v2177_v41  ;;  %v2258_v40 = vld [vmem:[%s3158_s0 + $0x2cc] ss:$16 sps:$4 sm:$0xff]   ;;  %v2253_v41 = vld [vmem:[%s3158_s0 + $0x1c8] ss:$16 sps:$4 sm:$0xff]  }
  0x51   :  { %1551 = vmatprep.subr.bf16.mxu1 %v2180_v42  ;;  %v2256_v42 = vld [vmem:[%s3158_s0 + $0x2c8] ss:$16 sps:$4 sm:$0xff]  }
  0x53   :  { %1511 = vmatpush1.bf16.msra.mxu0 %v2175_v43  ;;  %v2261_v43 = vld [vmem:[%s3158_s0 + $0x1ac] ss:$16 sps:$4 sm:$0xff]  }
  0x54   :  { %1552 = vmatpush1.bf16.msra.mxu1 %v2178_v44  ;;  %1512 = vmatprep.subr.bf16.mxu0 %v2183_v45  ;;  %v2264_v44 = vld [vmem:[%s3158_s0 + $0x2ac] ss:$16 sps:$4 sm:$0xff]   ;;  %v2259_v45 = vld [vmem:[%s3158_s0 + $0x1a8] ss:$16 sps:$4 sm:$0xff]  }
  0x55   :  { %1553 = vmatprep.subr.bf16.mxu1 %v2186_v46  ;;  %v2262_v46 = vld [vmem:[%s3158_s0 + $0x2a8] ss:$16 sps:$4 sm:$0xff]  }
  0x57   :  { %1513 = vmatpush1.bf16.msra.mxu0 %v2181_v47  ;;  %v2267_v47 = vld [vmem:[%s3158_s0 + $0x18c] ss:$16 sps:$4 sm:$0xff]  }
  0x58   :  { %1554 = vmatpush1.bf16.msra.mxu1 %v2184_v48  ;;  %1514 = vmatprep.subr.bf16.mxu0 %v2189_v50  ;;  %v2265_v48 = vld [vmem:[%s3158_s0 + $0x188] ss:$16 sps:$4 sm:$0xff]  }
  0x59   :  { %1555 = vmatprep.subr.bf16.mxu1 %v2192_v51  ;;  %v2268_v50 = vld [vmem:[%s3158_s0 + $0x288] ss:$16 sps:$4 sm:$0xff]   ;;  %v2273_v51 = vld [vmem:[%s3158_s0 + $0x16c] ss:$16 sps:$4 sm:$0xff]  }
  0x5b   :  { %1515 = vmatpush1.bf16.msra.mxu0 %v2187_v52  ;;  %v2276_v52 = vld [vmem:[%s3158_s0 + $0x26c] ss:$16 sps:$4 sm:$0xff]  }
  0x5c   :  { %1556 = vmatpush1.bf16.msra.mxu1 %v2190_v53  ;;  %1516 = vmatprep.subr.bf16.mxu0 %v2195_v54  ;;  %v2271_v53 = vld [vmem:[%s3158_s0 + $0x168] ss:$16 sps:$4 sm:$0xff]  }
  0x5d   :  { %1557 = vmatprep.subr.bf16.mxu1 %v2198_v55  ;;  %v2274_v54 = vld [vmem:[%s3158_s0 + $0x268] ss:$16 sps:$4 sm:$0xff]   ;;  %v2279_v55 = vld [vmem:[%s3158_s0 + $0x14c] ss:$16 sps:$4 sm:$0xff]  }
  0x5f   :  { %1517 = vmatpush1.bf16.msra.mxu0 %v2193_v57  ;;  %v2282_v57 = vld [vmem:[%s3158_s0 + $0x24c] ss:$16 sps:$4 sm:$0xff]  }
  0x60   :  { %1558 = vmatpush1.bf16.msra.mxu1 %v2196_v58  ;;  %1518 = vmatprep.subr.bf16.mxu0 %v2201_v60  ;;  %v2277_v58 = vld [vmem:[%s3158_s0 + $0x148] ss:$16 sps:$4 sm:$0xff]  }
  0x61   :  { %1584 = vmatprep.subr.bf16.mxu1 %v2204_v61  ;;  %v2280_v60 = vld [vmem:[%s3158_s0 + $0x248] ss:$16 sps:$4 sm:$0xff]   ;;  %v2285_v61 = vld [vmem:[%s3158_s0 + $0x12c] ss:$16 sps:$4 sm:$0xff]  }
  0x63   :  { %2050 = vmatmul.mubr.msk.bf16.vlgmr.msra.gmra.mxu1 %vm1400_vm2, %v2760_v62  ;;  %1519 = vmatpush2.bf16.msra.mxu0 %v2199_v63  ;;  %v2288_v63 = vld [vmem:[%s3158_s0 + $0x22c] ss:$16 sps:$4 sm:$0xff]  }
  0x64   :  { %1585 = vmatpush1.bf16.msra.mxu1 %v2202_v1  ;;  %1520 = vmatprep.subr.bf16.mxu0 %v2207_v2  ;;  %v2283_v1 = vld [vmem:[%s3158_s0 + $0x128] ss:$16 sps:$4 sm:$0xff]  }
  0x65   :  { %1586 = vmatprep.subr.bf16.mxu1 %v2210_v3  ;;  %1616 = vmatprep.mubr.bf16.mxu1 %v2582_v59  ;;  %v2222_v59 = vld [vmem:[%s3158_s0 + $0x8c] ss:$16 sps:$4 sm:$0xff]   ;;  %v2286_v2 = vld [vmem:[%s3158_s0 + $0x228] ss:$16 sps:$4 sm:$0xff]  }
  0x66   :  { %v2291_v3 = vld [vmem:[%s3158_s0 + $0x10c] ss:$16 sps:$4 sm:$0xff]  }
  0x67   :  { %1521 = vmatpush2.bf16.msra.mxu0 %v2205_v4  ;;  %v2294_v4 = vld [vmem:[%s3158_s0 + $0x20c] ss:$16 sps:$4 sm:$0xff]  }
  0x68   :  { %1587 = vmatpush1.bf16.msra.mxu1 %v2208_v5  ;;  %1522 = vmatprep.subr.bf16.mxu0 %v2213_v6  ;;  %v2289_v5 = vld [vmem:[%s3158_s0 + $0x108] ss:$16 sps:$4 sm:$0xff]  }
  0x69   :  { %1588 = vmatprep.subr.bf16.mxu1 %v2216_v7  ;;  %v2292_v6 = vld [vmem:[%s3158_s0 + $0x208] ss:$16 sps:$4 sm:$0xff]   ;;  %v2297_v7 = vld [vmem:[%s3158_s0 + $0x3ec] ss:$16 sps:$4 sm:$0xff]  }
  0x6b   :  { %1523 = vmatpush2.bf16.msra.mxu0 %v2211_v8  ;;  %v2300_v8 = vld [vmem:[%s3158_s0 + $0x4ec] ss:$16 sps:$4 sm:$0xff]  }
  0x6c   :  { %1589 = vmatpush1.bf16.msra.mxu1 %v2214_v9  ;;  %1524 = vmatprep.subr.bf16.mxu0 %v2219_v10  ;;  %v2295_v9 = vld [vmem:[%s3158_s0 + $0x3e8] ss:$16 sps:$4 sm:$0xff]  }
  0x6d   :  { %1590 = vmatprep.subr.bf16.mxu1 %v2222_v59  ;;  %v2298_v10 = vld [vmem:[%s3158_s0 + $0x4e8] ss:$16 sps:$4 sm:$0xff]   ;;  %v2303_v59 = vld [vmem:[%s3158_s0 + $0x3cc] ss:$16 sps:$4 sm:$0xff]  }
  0x6f   :  { %1525 = vmatpush2.bf16.msra.mxu0 %v2217_v11  ;;  %v2306_v11 = vld [vmem:[%s3158_s0 + $0x4cc] ss:$16 sps:$4 sm:$0xff]  }
  0x70   :  { %1591 = vmatpush1.bf16.msra.mxu1 %v2220_v12  ;;  %1526 = vmatprep.subr.bf16.mxu0 %v2225_v13  ;;  %v2301_v12 = vld [vmem:[%s3158_s0 + $0x3c8] ss:$16 sps:$4 sm:$0xff]  }
  0x71   :  { %1592 = vmatprep.subr.bf16.mxu1 %v2228_v16  ;;  %v2304_v13 = vld [vmem:[%s3158_s0 + $0x4c8] ss:$16 sps:$4 sm:$0xff]   ;;  %v2309_v16 = vld [vmem:[%s3158_s0 + $0x3ac] ss:$16 sps:$4 sm:$0xff]  }
  0x73   :  { %1527 = vmatpush2.bf16.msra.mxu0 %v2223_v17  ;;  %v2307_v17 = vld [vmem:[%s3158_s0 + $0x3a8] ss:$16 sps:$4 sm:$0xff]  }
  0x74   :  { %1593 = vmatpush1.bf16.msra.mxu1 %v2226_v18  ;;  %1528 = vmatprep.subr.bf16.mxu0 %v2231_v19  ;;  %v2310_v18 = vld [vmem:[%s3158_s0 + $0x4a8] ss:$16 sps:$4 sm:$0xff]   ;;  %v2315_v19 = vld [vmem:[%s3158_s0 + $0x38c] ss:$16 sps:$4 sm:$0xff]  }
  0x75   :  { %1594 = vmatprep.subr.bf16.mxu1 %v2234_v20  ;;  %v2313_v20 = vld [vmem:[%s3158_s0 + $0x388] ss:$16 sps:$4 sm:$0xff]  }
  0x77   :  { %1529 = vmatpush2.bf16.msra.mxu0 %v2229_v21  ;;  %v2316_v21 = vld [vmem:[%s3158_s0 + $0x488] ss:$16 sps:$4 sm:$0xff]  }
  0x78   :  { %1595 = vmatpush1.bf16.msra.mxu1 %v2232_v22  ;;  %1530 = vmatprep.subr.bf16.mxu0 %v2237_v24  ;;  %v2321_v22 = vld [vmem:[%s3158_s0 + $0x36c] ss:$16 sps:$4 sm:$0xff]  }
  0x79   :  { %1596 = vmatprep.subr.bf16.mxu1 %v2240_v25  ;;  %v2324_v24 = vld [vmem:[%s3158_s0 + $0x46c] ss:$16 sps:$4 sm:$0xff]   ;;  %v2319_v25 = vld [vmem:[%s3158_s0 + $0x368] ss:$16 sps:$4 sm:$0xff]  }
  0x7b   :  { %1531 = vmatpush2.bf16.msra.mxu0 %v2235_v26  ;;  %v2322_v26 = vld [vmem:[%s3158_s0 + $0x468] ss:$16 sps:$4 sm:$0xff]  }
  0x7c   :  { %1597 = vmatpush1.bf16.msra.mxu1 %v2238_v27  ;;  %1532 = vmatprep.subr.bf16.mxu0 %v2243_v29  ;;  %v2327_v27 = vld [vmem:[%s3158_s0 + $0x34c] ss:$16 sps:$4 sm:$0xff]  }
  0x7d   :  { %1598 = vmatprep.subr.bf16.mxu1 %v2246_v30  ;;  %v2330_v29 = vld [vmem:[%s3158_s0 + $0x44c] ss:$16 sps:$4 sm:$0xff]   ;;  %v2325_v30 = vld [vmem:[%s3158_s0 + $0x348] ss:$16 sps:$4 sm:$0xff]  }
  0x7f   :  { %1533 = vmatpush2.bf16.msra.mxu0 %v2241_v31  ;;  %v2328_v31 = vld [vmem:[%s3158_s0 + $0x448] ss:$16 sps:$4 sm:$0xff]  }
  0x80   :  { %1599 = vmatpush1.bf16.msra.mxu1 %v2244_v32  ;;  %1625 = vmatprep.subr.bf16.mxu0 %v2252_v35  ;;  %v2333_v32 = vld [vmem:[%s3158_s0 + $0x32c] ss:$16 sps:$4 sm:$0xff]  }
  0x81   :  { %1600 = vmatprep.subr.bf16.mxu1 %v2249_v34  ;;  %v2336_v34 = vld [vmem:[%s3158_s0 + $0x42c] ss:$16 sps:$4 sm:$0xff]  }
  0x82   :  { %1535 = vmatmul.mubr.bf16.vlgmr.msra.gmra.mxu0 %v2744_v56  ;;  %v234_v35 = vld [vmem:[%s3158_s0 + $0x6e8] sm:$0x33] }
  0x83   :  { %1626 = vmatpush1.bf16.msra.mxu0 %v2250_v37  ;;  %1657 = vmatprep.mubr.bf16.mxu0 %v2598_v0  ;;  %v2270_v0 = vld [vmem:[%s3158_s0 + $0x28c] ss:$16 sps:$4 sm:$0xff]   ;;  %v2334_v37 = vld [vmem:[%s3158_s0 + $0x428] ss:$16 sps:$4 sm:$0xff]  }
  0x84   :  { %1601 = vmatpush2.bf16.msra.mxu1 %v2247_v36  ;;  %1627 = vmatprep.subr.bf16.mxu0 %v2258_v40  ;;  %v2331_v36 = vld [vmem:[%s3158_s0 + $0x328] ss:$16 sps:$4 sm:$0xff]   ;;  %v2342_v40 = vld [vmem:[%s3158_s0 + $0x40c] ss:$16 sps:$4 sm:$0xff]  }
  0x85   :  { %1602 = vmatprep.subr.bf16.mxu1 %v2255_v39  ;;  %v2339_v39 = vld [vmem:[%s3158_s0 + $0x30c] ss:$16 sps:$4 sm:$0xff]  }
  0x87   :  { %1628 = vmatpush1.bf16.msra.mxu0 %v2256_v42  ;;  %v2337_v42 = vld [vmem:[%s3158_s0 + $0x308] ss:$16 sps:$4 sm:$0xff]  }
  0x88   :  { %1603 = vmatpush2.bf16.msra.mxu1 %v2253_v41  ;;  %1629 = vmatprep.subr.bf16.mxu0 %v2264_v44  ;;  %v2049_v41 = vcombine.high %v234_v35, %v234_v35  ;;  %v2048_v44 = vcombine.low %v234_v35, %v234_v35 }
  0x89   :  { %1604 = vmatprep.subr.bf16.mxu1 %v2261_v43  ;;  %v2340_v43 = vld [vmem:[%s3158_s0 + $0x408] ss:$16 sps:$4 sm:$0xff]  }
  0x8b   :  { %1630 = vmatpush1.bf16.msra.mxu0 %v2262_v46  ;;  %v1418_v46 = vand.u32 %v2049_v41, %v2629_v14 }
  0x8c   :  { %1605 = vmatpush2.bf16.msra.mxu1 %v2259_v45  ;;  %1631 = vmatprep.subr.bf16.mxu0 %v2270_v0  ;;  %v2345_v45 = vld [vmem:[%s3158_s0 + $0x5ec] ss:$16 sps:$4 sm:$0xff]   ;;  %v1415_v0 = vand.u32 %v2048_v44, %v2629_v14  ;;  %v2351_v14 = vld [vmem:[%s3158_s0 + $0x6c8] ss:$16 sps:$4 sm:$0xff]  }
  0x8d   :  { %1606 = vmatprep.subr.bf16.mxu1 %v2267_v47  ;;  %v2343_v47 = vld [vmem:[%s3158_s0 + $0x5e8] ss:$16 sps:$4 sm:$0xff]  }
  0x8f   :  { %1632 = vmatpush1.bf16.msra.mxu0 %v2268_v50  ;;  %v2353_v50 = vld [vmem:[%s3158_s0 + $0x6cc] ss:$16 sps:$4 sm:$0xff]  }
  0x90   :  { %1607 = vmatpush2.bf16.msra.mxu1 %v2265_v48  ;;  %1633 = vmatprep.subr.bf16.mxu0 %v2276_v52  ;;  %v2350_v48 = vld [vmem:[%s3158_s0 + $0x5cc] ss:$16 sps:$4 sm:$0xff]  }
  0x91   :  { %1608 = vmatprep.subr.bf16.mxu1 %v2273_v51  ;;  %v2348_v51 = vld [vmem:[%s3158_s0 + $0x5c8] ss:$16 sps:$4 sm:$0xff]   ;;  %v2356_v52 = vld [vmem:[%s3158_s0 + $0x5ac] ss:$16 sps:$4 sm:$0xff]  }
  0x93   :  { %1634 = vmatpush1.bf16.msra.mxu0 %v2274_v54  ;;  %v2357_v54 = vld [vmem:[%s3158_s0 + $0x6a8] ss:$16 sps:$4 sm:$0xff]  }
  0x94   :  { %1609 = vmatpush2.bf16.msra.mxu1 %v2271_v53  ;;  %1635 = vmatprep.subr.bf16.mxu0 %v2282_v57  ;;  %v2354_v53 = vld [vmem:[%s3158_s0 + $0x5a8] ss:$16 sps:$4 sm:$0xff]  }
  0x95   :  { %1610 = vmatprep.subr.bf16.mxu1 %v2279_v55  ;;  %v2362_v55 = vld [vmem:[%s3158_s0 + $0x58c] ss:$16 sps:$4 sm:$0xff]   ;;  %v2360_v57 = vld [vmem:[%s3158_s0 + $0x588] ss:$16 sps:$4 sm:$0xff]  }
  0x97   :  { %1636 = vmatpush1.bf16.msra.mxu0 %v2280_v60  ;;  %v2368_v60 = vld [vmem:[%s3158_s0 + $0x56c] ss:$16 sps:$4 sm:$0xff]  }
  0x98   :  { %1611 = vmatpush2.bf16.msra.mxu1 %v2277_v58  ;;  %1637 = vmatprep.subr.bf16.mxu0 %v2288_v63  ;;  %v2363_v58 = vld [vmem:[%s3158_s0 + $0x688] ss:$16 sps:$4 sm:$0xff]  }
  0x99   :  { %1612 = vmatprep.subr.bf16.mxu1 %v2285_v61  ;;  %v2371_v61 = vld [vmem:[%s3158_s0 + $0x66c] ss:$16 sps:$4 sm:$0xff]   ;;  %v2366_v63 = vld [vmem:[%s3158_s0 + $0x568] ss:$16 sps:$4 sm:$0xff]  }
  0x9b   :  { %1638 = vmatpush1.bf16.msra.mxu0 %v2286_v2  ;;  %v2374_v2 = vld [vmem:[%s3158_s0 + $0x54c] ss:$16 sps:$4 sm:$0xff]  }
  0x9c   :  { %1613 = vmatpush2.bf16.msra.mxu1 %v2283_v1  ;;  %1639 = vmatprep.subr.bf16.mxu0 %v2294_v4  ;;  %v2369_v1 = vld [vmem:[%s3158_s0 + $0x668] ss:$16 sps:$4 sm:$0xff]  }
  0x9d   :  { %1614 = vmatprep.subr.bf16.mxu1 %v2291_v3  ;;  %v2377_v3 = vld [vmem:[%s3158_s0 + $0x64c] ss:$16 sps:$4 sm:$0xff]   ;;  %v2372_v4 = vld [vmem:[%s3158_s0 + $0x548] ss:$16 sps:$4 sm:$0xff]  }
  0x9f   :  { %1640 = vmatpush1.bf16.msra.mxu0 %v2292_v6  ;;  %v2380_v6 = vld [vmem:[%s3158_s0 + $0x52c] ss:$16 sps:$4 sm:$0xff]  }
  0xa0   :  { %1615 = vmatpush2.bf16.msra.mxu1 %v2289_v5  ;;  %1641 = vmatprep.subr.bf16.mxu0 %v2297_v7  ;;  %v2375_v5 = vld [vmem:[%s3158_s0 + $0x648] ss:$16 sps:$4 sm:$0xff]   ;;  %v2383_v7 = vld [vmem:[%s3158_s0 + $0x62c] ss:$16 sps:$4 sm:$0xff]  }
  0xa1   :  { %1666 = vmatprep.subr.bf16.mxu1 %v2300_v8  ;;  %v2378_v8 = vld [vmem:[%s3158_s0 + $0x528] ss:$16 sps:$4 sm:$0xff]  }
  0xa3   :  { %1617 = vmatmul.mubr.bf16.vlgmr.msra.gmra.mxu1 %v2632_v15  ;;  %1642 = vmatpush2.bf16.msra.mxu0 %v2295_v9  ;;  %v2312_v15 = vld [vmem:[%s3158_s0 + $0x4ac] ss:$16 sps:$4 sm:$0xff]   ;;  %v2381_v9 = vld [vmem:[%s3158_s0 + $0x628] ss:$16 sps:$4 sm:$0xff]  }
  0xa4   :  { %1667 = vmatpush1.bf16.msra.mxu1 %v2298_v10  ;;  %1643 = vmatprep.subr.bf16.mxu0 %v2303_v59  ;;  %v2386_v10 = vld [vmem:[%s3158_s0 + $0x50c] ss:$16 sps:$4 sm:$0xff]  }
  0xa5   :  { %1668 = vmatprep.subr.bf16.mxu1 %v2306_v11  ;;  %1698 = vmatprep.mubr.bf16.mxu1 %v2664_v28  ;;  %v2318_v28 = vld [vmem:[%s3158_s0 + $0x48c] ss:$16 sps:$4 sm:$0xff]   ;;  %v2384_v11 = vld [vmem:[%s3158_s0 + $0x508] ss:$16 sps:$4 sm:$0xff]  }
  0xa6   :  { %v2389_v59 = vld [vmem:[%s3158_s0 + $0x60c] ss:$16 sps:$4 sm:$0xff]  }
  0xa7   :  { %1644 = vmatpush2.bf16.msra.mxu0 %v2301_v12  ;;  %v2387_v12 = vld [vmem:[%s3158_s0 + $0x608] ss:$16 sps:$4 sm:$0xff]  }
  0xa8   :  { %1669 = vmatpush1.bf16.msra.mxu1 %v2304_v13  ;;  %1645 = vmatprep.subr.bf16.mxu0 %v2309_v16 }
  0xa9   :  { %1670 = vmatprep.subr.bf16.mxu1 %v2312_v15 }
  0xab   :  { %1646 = vmatpush2.bf16.msra.mxu0 %v2307_v17 }
  0xac   :  { %1671 = vmatpush1.bf16.msra.mxu1 %v2310_v18  ;;  %1647 = vmatprep.subr.bf16.mxu0 %v2315_v19 }
  0xad   :  { %1672 = vmatprep.subr.bf16.mxu1 %v2318_v28 }
  0xaf   :  { %1648 = vmatpush2.bf16.msra.mxu0 %v2313_v20 }
  0xb0   :  { %1673 = vmatpush1.bf16.msra.mxu1 %v2316_v21  ;;  %1649 = vmatprep.subr.bf16.mxu0 %v2321_v22 }
  0xb1   :  { %1674 = vmatprep.subr.bf16.mxu1 %v2324_v24 }
  0xb3   :  { %1650 = vmatpush2.bf16.msra.mxu0 %v2319_v25 }
  0xb4   :  { %1675 = vmatpush1.bf16.msra.mxu1 %v2322_v26  ;;  %1651 = vmatprep.subr.bf16.mxu0 %v2327_v27 }
  0xb5   :  { %1676 = vmatprep.subr.bf16.mxu1 %v2330_v29 }
  0xb7   :  { %1652 = vmatpush2.bf16.msra.mxu0 %v2325_v30 }
  0xb8   :  { %1677 = vmatpush1.bf16.msra.mxu1 %v2328_v31  ;;  %1653 = vmatprep.subr.bf16.mxu0 %v2333_v32 }
  0xb9   :  { %1678 = vmatprep.subr.bf16.mxu1 %v2336_v34 }
  0xbb   :  { %1654 = vmatpush2.bf16.msra.mxu0 %v2331_v36 }
  0xbc   :  { %1679 = vmatpush1.bf16.msra.mxu1 %v2334_v37  ;;  %1655 = vmatprep.subr.bf16.mxu0 %v2339_v39 }
  0xbd   :  { %1680 = vmatprep.subr.bf16.mxu1 %v2342_v40 }
  0xbf   :  { %1656 = vmatpush2.bf16.msra.mxu0 %v2337_v42 }
  0xc0   :  { %1681 = vmatpush1.bf16.msra.mxu1 %v2340_v43  ;;  %1707 = vmatprep.subr.bf16.mxu0 %v1418_v46 }
  0xc1   :  { %1682 = vmatprep.subr.bf16.mxu1 %v2345_v45 }
  0xc2   :  { %1658 = vmatmul.mubr.bf16.vlgmr.msra.gmra.mxu0 %v2651_v23  ;;  %v2359_v23 = vld [vmem:[%s3158_s0 + $0x6ac] ss:$16 sps:$4 sm:$0xff]  }
  0xc3   :  { %1708 = vmatpush1.bf16.msra.mxu0 %v1415_v0  ;;  %1739 = vmatprep.mubr.bf16.mxu0 %v2408_v33  ;;  %v2365_v33 = vld [vmem:[%s3158_s0 + $0x68c] ss:$16 sps:$4 sm:$0xff]  }
  0xc4   :  { %1683 = vmatpush2.bf16.msra.mxu1 %v2343_v47  ;;  %1709 = vmatprep.subr.bf16.mxu0 %v2353_v50 }
  0xc5   :  { %1684 = vmatprep.subr.bf16.mxu1 %v2350_v48 }
  0xc7   :  { %1710 = vmatpush1.bf16.msra.mxu0 %v2351_v14 }
  0xc8   :  { %1685 = vmatpush2.bf16.msra.mxu1 %v2348_v51  ;;  %1711 = vmatprep.subr.bf16.mxu0 %v2359_v23 }
  0xc9   :  { %1686 = vmatprep.subr.bf16.mxu1 %v2356_v52 }
  0xcb   :  { %1712 = vmatpush1.bf16.msra.mxu0 %v2357_v54 }
  0xcc   :  { %1687 = vmatpush2.bf16.msra.mxu1 %v2354_v53  ;;  %1713 = vmatprep.subr.bf16.mxu0 %v2365_v33 }
  0xcd   :  { %1688 = vmatprep.subr.bf16.mxu1 %v2362_v55 }
  0xcf   :  { %1714 = vmatpush1.bf16.msra.mxu0 %v2363_v58 }
  0xd0   :  { %1689 = vmatpush2.bf16.msra.mxu1 %v2360_v57  ;;  %1715 = vmatprep.subr.bf16.mxu0 %v2371_v61 }
  0xd1   :  { %1690 = vmatprep.subr.bf16.mxu1 %v2368_v60 }
  0xd3   :  { %1716 = vmatpush1.bf16.msra.mxu0 %v2369_v1 }
  0xd4   :  { %1691 = vmatpush2.bf16.msra.mxu1 %v2366_v63  ;;  %1717 = vmatprep.subr.bf16.mxu0 %v2377_v3 }
  0xd5   :  { %1692 = vmatprep.subr.bf16.mxu1 %v2374_v2 }
  0xd7   :  { %1718 = vmatpush1.bf16.msra.mxu0 %v2375_v5 }
  0xd8   :  { %1693 = vmatpush2.bf16.msra.mxu1 %v2372_v4  ;;  %1719 = vmatprep.subr.bf16.mxu0 %v2383_v7 }
  0xd9   :  { %1694 = vmatprep.subr.bf16.mxu1 %v2380_v6 }
  0xdb   :  { %1720 = vmatpush1.bf16.msra.mxu0 %v2381_v9 }
  0xdc   :  { %1695 = vmatpush2.bf16.msra.mxu1 %v2378_v8  ;;  %1721 = vmatprep.subr.bf16.mxu0 %v2389_v59 }
  0xdd   :  { %1696 = vmatprep.subr.bf16.mxu1 %v2386_v10 }
  0xdf   :  { %1722 = vmatpush1.bf16.msra.mxu0 %v2387_v12 }
  0xe0   :  { %1697 = vmatpush2.bf16.msra.mxu1 %v2384_v11 }
  0xe2   :  { %2051 = vmatmul.mubr.msk.bf16.vlgmr.msra.gmra.mxu0 %vm1400_vm2, %v2760_v62 }
  0xe3   :  { %1699 = vmatmul.mubr.bf16.vlgmr.msra.gmra.mxu1 %v2744_v56 }
 0x102   :  { %v1454_v13 = vpop.f32.mrf.mxu0 }
 0x103   :  { %v1495_v16 = vpop.f32.mrf.mxu1 }
 0x104   :  { %v1496_v15 = vadd.f32 %v1495_v16, %v1454_v13  ;;  %v1456_v17 = vpop.f32.mrf.mxu0 }
 0x105   :  { %v1497_v18 = vpop.f32.mrf.mxu1 }
 0x106   :  { %v1498_v19 = vadd.f32 %v1497_v18, %v1456_v17  ;;  %v1458_v28 = vpop.f32.mrf.mxu0 }
 0x107   :  { %v1499_v20 = vpop.f32.mrf.mxu1 }
 0x108   :  { %v1459_v21 = vpop.f32.mrf.mxu0 }
 0x109   :  { %v1500_v22 = vpop.f32.mrf.mxu1 }
 0x123   :  { %v1577_v24 = vpop.f32.mrf.mxu1 }
 0x125   :  { %v1579_v25 = vpop.f32.mrf.mxu1 }
 0x127   :  { %v1581_v26 = vpop.f32.mrf.mxu1 }
 0x129   :  { %v1582_v27 = vpop.f32.mrf.mxu1 }
 0x142   :  { %v1536_v29 = vpop.f32.mrf.mxu0 }
 0x143   :  { %v1537_v30 = vadd.f32 %v1536_v29, %v1496_v15 }
 0x144   :  { %v1538_v56 = vpop.f32.mrf.mxu0 }
 0x145   :  { %v1578_v31 = vadd.f32 %v1577_v24, %v1537_v30  ;;  %v1539_v32 = vadd.f32 %v1538_v56, %v1498_v19 }
 0x146   :  { %v1540_v62 = vpop.f32.mrf.mxu0 }
 0x147   :  { %v1748_v34 = vand.u32 2147483647, %v1578_v31  ;;  %v1580_v35 = vadd.f32 %v1579_v25, %v1539_v32  ;;  %vm1764_vm3 = vcmp.ge.f32.partialorder %v1578_v31, 0.0 }
 0x148   :  { %v1541_v36 = vpop.f32.mrf.mxu0 }
 0x149   :  { %v1752_v37 = vsub.f32 0.0, %v1748_v34  ;;  %v1749_v39 = vand.u32 2147483647, %v1580_v35  ;;  %vm1765_vm4 = vcmp.ge.f32.partialorder %v1580_v35, 0.0 }
 0x14b   :  { %v1756_v40 = vmul.f32 1.442695, %v1752_v37  ;;  %v1753_v41 = vsub.f32 0.0, %v1749_v39 }
 0x14d   :  { %2390 = vpow2.f32 %v1756_v40  ;;  %v1758_v42 = vmul.f32 1.442695, %v1753_v41 }
 0x14f   :  { %2392 = vpow2.f32 %v1758_v42 }
 0x15a   :  { %v2391_v43 = vpop.eup %2390 }
 0x15b   :  { %v1768_v44 = vadd.f32 1.0, %v2391_v43 }
 0x15c   :  { %v2393_v45 = vpop.eup %2392 }
 0x15d   :  { %2394 = vrcp.f32 %v1768_v44  ;;  %v1769_v46 = vadd.f32 1.0, %v2393_v45 }
 0x15f   :  { %2396 = vrcp.f32 %v1769_v46 }
 0x163   :  { %v1618_v47 = vpop.f32.mrf.mxu1 }
 0x165   :  { %v1620_v0 = vpop.f32.mrf.mxu1 }
 0x167   :  { %v1622_v48 = vpop.f32.mrf.mxu1 }
 0x169   :  { %v1623_v50 = vpop.f32.mrf.mxu1 }
 0x16a   :  { %v2395_v51 = vpop.eup %2394 }
 0x16b   :  { %v1780_v14 = vmul.f32 %v2395_v51, %v2391_v43 }
 0x16c   :  { %v2397_v52 = vpop.eup %2396 }
 0x16d   :  { %v1781_v23 = vmul.f32 %v2397_v52, %v2393_v45  ;;  %v1784_v53 = vsel %vm1764_vm3, %v2395_v51, %v1780_v14 }
 0x16f   :  { %v1785_v54 = vsel %vm1765_vm4, %v2397_v52, %v1781_v23 }
 0x170   :  { %v1792_v55 = vcombine.low %v1784_v53, %v1785_v54 }
 0x172   :  { %v1800_v56 = vrot.slane %v1792_v55, %v2557_v49 }
 0x182   :  { %v1659_v33 = vpop.f32.mrf.mxu0 }
 0x183   :  { %v1660_v61 = vadd.f32 %v1659_v33, %v1618_v47 }
 0x184   :  { %v1661_v57 = vpop.f32.mrf.mxu0 }
 0x185   :  { %v1662_v2 = vadd.f32 %v1661_v57, %v1620_v0 }
 0x186   :  { %v1663_v58 = vpop.f32.mrf.mxu0 }
 0x188   :  { %v1664_v60 = vpop.f32.mrf.mxu0 }
 0x1a2   :  { %v1741_v1 = vpop.f32.mrf.mxu0 }
 0x1a3   :  { %v1700_v63 = vpop.f32.mrf.mxu1 }
 0x1a4   :  { %v1701_v3 = vadd.f32 %v1700_v63, %v1660_v61  ;;  %v1743_v5 = vpop.f32.mrf.mxu0 }
 0x1a5   :  { %v1702_v4 = vpop.f32.mrf.mxu1 }
 0x1a6   :  { %v1742_v6 = vadd.f32 %v1741_v1, %v1701_v3  ;;  %v1703_v7 = vadd.f32 %v1702_v4, %v1662_v2  ;;  %v1745_v9 = vpop.f32.mrf.mxu0 }
 0x1a7   :  { %v1704_v8 = vpop.f32.mrf.mxu1 }
 0x1a8   :  { %v1750_v10 = vand.u32 2147483647, %v1742_v6  ;;  %v1744_v59 = vadd.f32 %v1743_v5, %v1703_v7  ;;  %v1746_v12 = vpop.f32.mrf.mxu0  ;;  %vm1766_vm5 = vcmp.ge.f32.partialorder %v1742_v6, 0.0 }
 0x1a9   :  { %v1705_v11 = vpop.f32.mrf.mxu1 }
 0x1aa   :  { %v1754_v13 = vsub.f32 0.0, %v1750_v10  ;;  %v1751_v16 = vand.u32 2147483647, %v1744_v59  ;;  %vm1767_vm6 = vcmp.ge.f32.partialorder %v1744_v59, 0.0 }
 0x1ac   :  { %v1760_v15 = vmul.f32 1.442695, %v1754_v13  ;;  %v1755_v17 = vsub.f32 0.0, %v1751_v16 }
 0x1ae   :  { %2398 = vpow2.f32 %v1760_v15  ;;  %v1762_v18 = vmul.f32 1.442695, %v1755_v17 }
 0x1b0   :  { %2400 = vpow2.f32 %v1762_v18 }
 0x1bb   :  { %v2399_v19 = vpop.eup %2398 }
 0x1bc   :  { %v1770_v28 = vadd.f32 1.0, %v2399_v19 }
 0x1bd   :  { %v2401_v20 = vpop.eup %2400 }
 0x1be   :  { %2402 = vrcp.f32 %v1770_v28  ;;  %v1771_v21 = vadd.f32 1.0, %v2401_v20 }
 0x1c0   :  { %2404 = vrcp.f32 %v1771_v21 }
 0x1cb   :  { %v2403_v22 = vpop.eup %2402 }
 0x1cc   :  { %v1782_v24 = vmul.f32 %v2403_v22, %v2399_v19 }
 0x1cd   :  { %v2405_v25 = vpop.eup %2404 }
 0x1ce   :  { %v1783_v26 = vmul.f32 %v2405_v25, %v2401_v20  ;;  %v1786_v27 = vsel %vm1766_vm5, %v2403_v22, %v1782_v24 }
 0x1d0   :  { %v1787_v29 = vsel %vm1767_vm6, %v2405_v25, %v1783_v26 }
 0x1d1   :  { %v1793_v30 = vcombine.low %v1786_v27, %v1787_v29 }
 0x1d3   :  { %v1807_v31 = vrot.slane %v1793_v30, %v2557_v49 }
 0x1d5   :  { %v1808_v32 = vcombine.low %v1800_v56, %v1807_v31 }
 0x1d7   :  { %v1815_v62 = vrot.slane %v1808_v32, %v2557_v49 }
 0x1d9   :  { %1821 = vst.msk [vmem:[%s3160_s2] sm:$0xf] %vm1819_vm7, %v1815_v62 }

// kernel: _lambda_.23
= control target key start
LH: loop header
LB: loop body
LE: loop exit
PB: predicated region body
PF: predicated region fallthrough
CT: control target
= control target key end

     0   :  { %s2871_s9 = smov 0   ;;  %s2873_s10 = smov 0   ;;  %s3668_s0 = inlined_call_operand.vmem [shape: bf16[442,2048], index: 0, kind: input, shape index: {}]   ;;  %s3669_s1 = inlined_call_operand.vmem [shape: bf16[1,442], index: 1, kind: input, shape index: {}]   ;;  %s3670_s2 = inlined_call_operand.vmem [shape: f32[1,2048], index: 2, kind: output, shape index: {}]  }
   0x1   :  { %s2875_s11 = smov 0  }
   0x2 LB: > { %s2528_s12 = sadd.s32 4294967295, %s2853_s11   ;;  %s2888_s13 = sadd.s32 1, %s2853_s11   ;;  %s2853_s11 = sphi %s2875_s11, %s3673_s11   ;;  %s2849_s10 = sphi %s2873_s10, %s3672_s10   ;;  %s2845_s9 = sphi %s2871_s9, %s3671_s9  }
   0x3   : > { %s16_s14 = ssub.s32 %s2853_s11, %s2888_s13  ;;  %s19_s15 = sadd.s32 1, %s2849_s10 }
   0x4   : > { %p17_p0 = scmp.eq.s32.totalorder %s16_s14, 0  ;;  %p26_p1 = scmp.ne.s32.totalorder %s2849_s10, %s2845_s9 }
   0x5   : > { %p27_p2 = scmp.eq.s32.totalorder %s2853_s11, 0  ;;  %p2531_p4 = scmp.ge.s32.totalorder %s2853_s11, 2 }
   0x6   : > { %s2897_s16 = scalar_select %p17_p0, %s2849_s10, %s19_s15  }
   0x7   : > { %p28_p3 = por %p27_p2, %p26_p1  ;;  %102 = sbr.rel (%p2531_p4) target bundleno = 129 (0x81), region = 20 }
   0xc   : > { %105 = sbr.rel (!%p28_p3) target bundleno = 129 (0x81), region = 24  ;;  %s107_s17 = sand.u32 (%p28_p3), 1, %s2849_s10  }
   0xd   : > { %s2771_s18 = sshll.u32 (%p28_p3), %s2853_s11, 5  ;;  %s2772_s19 = smul.u32 (%p28_p3), 1792, %s107_s17 }
   0xe   : > { %s2905_s22 = scalar_lea.vmem (%p28_p3), %s3668_s0, %s2771_s18 }
   0xf   : > { %v125_v0 = vld [vmem:[%s2905_s22] sm:$0xff] (%p28_p3)  ;;  %v127_v1 = vld [vmem:[%s2905_s22 + $0x8] sm:$0xff] (%p28_p3)  ;;  %v129_v2 = vld [vmem:[%s2905_s22 + $0x10] sm:$0xff] (%p28_p3)  ;;  %s2913_s23 = scalar_lea.vmem (%p28_p3), [#allocation2], %s2772_s19 }
  0x10   : > { %v131_v3 = vld [vmem:[%s2905_s22 + $0x18] sm:$0xff] (%p28_p3)  ;;  %v133_v4 = vld [vmem:[%s2905_s22 + $0x40] sm:$0xff] (%p28_p3)  ;;  %v135_v5 = vld [vmem:[%s2905_s22 + $0x48] sm:$0xff] (%p28_p3)  ;;  %126 = vst [vmem:[%s2913_s23] sm:$0xff] (%p28_p3), %v125_v0 }
  0x11   : > { %128 = vst [vmem:[%s2913_s23 + $0x8] sm:$0xff] %v127_v1  ;;  %130 = vst [vmem:[%s2913_s23 + $0x10] sm:$0xff] %v129_v2  ;;  %v137_v6 = vld [vmem:[%s2905_s22 + $0x50] sm:$0xff]  ;;  %v139_v7 = vld [vmem:[%s2905_s22 + $0x58] sm:$0xff] }
  0x12   : > { %132 = vst [vmem:[%s2913_s23 + $0x18] sm:$0xff] %v131_v3  ;;  %134 = vst [vmem:[%s2913_s23 + $0x20] sm:$0xff] %v133_v4  ;;  %v141_v8 = vld [vmem:[%s2905_s22 + $0x80] sm:$0xff]  ;;  %v143_v9 = vld [vmem:[%s2905_s22 + $0x88] sm:$0xff] }
  0x13   : > { %136 = vst [vmem:[%s2913_s23 + $0x28] sm:$0xff] %v135_v5  ;;  %138 = vst [vmem:[%s2913_s23 + $0x30] sm:$0xff] %v137_v6  ;;  %v145_v10 = vld [vmem:[%s2905_s22 + $0x90] sm:$0xff]  ;;  %v147_v11 = vld [vmem:[%s2905_s22 + $0x98] sm:$0xff] }
  0x14   : > { %140 = vst [vmem:[%s2913_s23 + $0x38] sm:$0xff] %v139_v7  ;;  %142 = vst [vmem:[%s2913_s23 + $0x40] sm:$0xff] %v141_v8  ;;  %v149_v12 = vld [vmem:[%s2905_s22 + $0xc0] sm:$0xff]  ;;  %v151_v13 = vld [vmem:[%s2905_s22 + $0xc8] sm:$0xff] }
  0x15   : > { %144 = vst [vmem:[%s2913_s23 + $0x48] sm:$0xff] %v143_v9  ;;  %146 = vst [vmem:[%s2913_s23 + $0x50] sm:$0xff] %v145_v10  ;;  %v153_v14 = vld [vmem:[%s2905_s22 + $0xd0] sm:$0xff]  ;;  %v155_v15 = vld [vmem:[%s2905_s22 + $0xd8] sm:$0xff] }
  0x16   : > { %148 = vst [vmem:[%s2913_s23 + $0x58] sm:$0xff] %v147_v11  ;;  %150 = vst [vmem:[%s2913_s23 + $0x60] sm:$0xff] %v149_v12  ;;  %v157_v16 = vld [vmem:[%s2905_s22 + $0x100] sm:$0xff]  ;;  %v159_v17 = vld [vmem:[%s2905_s22 + $0x108] sm:$0xff] }
  0x17   : > { %152 = vst [vmem:[%s2913_s23 + $0x68] sm:$0xff] %v151_v13  ;;  %154 = vst [vmem:[%s2913_s23 + $0x70] sm:$0xff] %v153_v14  ;;  %v161_v18 = vld [vmem:[%s2905_s22 + $0x110] sm:$0xff]  ;;  %v163_v19 = vld [vmem:[%s2905_s22 + $0x118] sm:$0xff] }
  0x18   : > { %156 = vst [vmem:[%s2913_s23 + $0x78] sm:$0xff] %v155_v15  ;;  %158 = vst [vmem:[%s2913_s23 + $0x80] sm:$0xff] %v157_v16  ;;  %v165_v20 = vld [vmem:[%s2905_s22 + $0x140] sm:$0xff]  ;;  %v167_v21 = vld [vmem:[%s2905_s22 + $0x148] sm:$0xff] }
  0x19   : > { %160 = vst [vmem:[%s2913_s23 + $0x88] sm:$0xff] %v159_v17  ;;  %162 = vst [vmem:[%s2913_s23 + $0x90] sm:$0xff] %v161_v18  ;;  %v169_v22 = vld [vmem:[%s2905_s22 + $0x150] sm:$0xff]  ;;  %v171_v23 = vld [vmem:[%s2905_s22 + $0x158] sm:$0xff] }
  0x1a   : > { %164 = vst [vmem:[%s2913_s23 + $0x98] sm:$0xff] %v163_v19  ;;  %166 = vst [vmem:[%s2913_s23 + $0xa0] sm:$0xff] %v165_v20  ;;  %v173_v24 = vld [vmem:[%s2905_s22 + $0x180] sm:$0xff]  ;;  %v175_v25 = vld [vmem:[%s2905_s22 + $0x188] sm:$0xff] }
  0x1b   : > { %168 = vst [vmem:[%s2913_s23 + $0xa8] sm:$0xff] %v167_v21  ;;  %170 = vst [vmem:[%s2913_s23 + $0xb0] sm:$0xff] %v169_v22  ;;  %v177_v26 = vld [vmem:[%s2905_s22 + $0x190] sm:$0xff]  ;;  %v179_v27 = vld [vmem:[%s2905_s22 + $0x198] sm:$0xff] }
  0x1c   : > { %172 = vst [vmem:[%s2913_s23 + $0xb8] sm:$0xff] %v171_v23  ;;  %174 = vst [vmem:[%s2913_s23 + $0xc0] sm:$0xff] %v173_v24  ;;  %v181_v28 = vld [vmem:[%s2905_s22 + $0x1c0] sm:$0xff]  ;;  %v183_v29 = vld [vmem:[%s2905_s22 + $0x1c8] sm:$0xff] }
  0x1d   : > { %176 = vst [vmem:[%s2913_s23 + $0xc8] sm:$0xff] %v175_v25  ;;  %178 = vst [vmem:[%s2913_s23 + $0xd0] sm:$0xff] %v177_v26  ;;  %v185_v30 = vld [vmem:[%s2905_s22 + $0x1d0] sm:$0xff]  ;;  %v187_v31 = vld [vmem:[%s2905_s22 + $0x1d8] sm:$0xff] }
  0x1e   : > { %180 = vst [vmem:[%s2913_s23 + $0xd8] sm:$0xff] %v179_v27  ;;  %182 = vst [vmem:[%s2913_s23 + $0xe0] sm:$0xff] %v181_v28  ;;  %v189_v32 = vld [vmem:[%s2905_s22 + $0x200] sm:$0xff]  ;;  %v191_v33 = vld [vmem:[%s2905_s22 + $0x208] sm:$0xff] }
  0x1f   : > { %184 = vst [vmem:[%s2913_s23 + $0xe8] sm:$0xff] %v183_v29  ;;  %186 = vst [vmem:[%s2913_s23 + $0xf0] sm:$0xff] %v185_v30  ;;  %v193_v34 = vld [vmem:[%s2905_s22 + $0x210] sm:$0xff]  ;;  %v195_v35 = vld [vmem:[%s2905_s22 + $0x218] sm:$0xff] }
  0x20   : > { %188 = vst [vmem:[%s2913_s23 + $0xf8] sm:$0xff] %v187_v31  ;;  %190 = vst [vmem:[%s2913_s23 + $0x100] sm:$0xff] %v189_v32  ;;  %v197_v36 = vld [vmem:[%s2905_s22 + $0x240] sm:$0xff]  ;;  %v199_v37 = vld [vmem:[%s2905_s22 + $0x248] sm:$0xff] }
  0x21   : > { %192 = vst [vmem:[%s2913_s23 + $0x108] sm:$0xff] %v191_v33  ;;  %194 = vst [vmem:[%s2913_s23 + $0x110] sm:$0xff] %v193_v34  ;;  %v201_v38 = vld [vmem:[%s2905_s22 + $0x250] sm:$0xff]  ;;  %v203_v39 = vld [vmem:[%s2905_s22 + $0x258] sm:$0xff] }
  0x22   : > { %196 = vst [vmem:[%s2913_s23 + $0x118] sm:$0xff] %v195_v35  ;;  %198 = vst [vmem:[%s2913_s23 + $0x120] sm:$0xff] %v197_v36  ;;  %v205_v40 = vld [vmem:[%s2905_s22 + $0x280] sm:$0xff]  ;;  %v207_v41 = vld [vmem:[%s2905_s22 + $0x288] sm:$0xff] }
  0x23   : > { %200 = vst [vmem:[%s2913_s23 + $0x128] sm:$0xff] %v199_v37  ;;  %202 = vst [vmem:[%s2913_s23 + $0x130] sm:$0xff] %v201_v38  ;;  %v209_v42 = vld [vmem:[%s2905_s22 + $0x290] sm:$0xff]  ;;  %v211_v43 = vld [vmem:[%s2905_s22 + $0x298] sm:$0xff] }
  0x24   : > { %204 = vst [vmem:[%s2913_s23 + $0x138] sm:$0xff] %v203_v39  ;;  %206 = vst [vmem:[%s2913_s23 + $0x140] sm:$0xff] %v205_v40  ;;  %v213_v44 = vld [vmem:[%s2905_s22 + $0x2c0] sm:$0xff]  ;;  %v215_v45 = vld [vmem:[%s2905_s22 + $0x2c8] sm:$0xff] }
  0x25   : > { %208 = vst [vmem:[%s2913_s23 + $0x148] sm:$0xff] %v207_v41  ;;  %210 = vst [vmem:[%s2913_s23 + $0x150] sm:$0xff] %v209_v42  ;;  %v217_v46 = vld [vmem:[%s2905_s22 + $0x2d0] sm:$0xff]  ;;  %v219_v47 = vld [vmem:[%s2905_s22 + $0x2d8] sm:$0xff] }
  0x26   : > { %212 = vst [vmem:[%s2913_s23 + $0x158] sm:$0xff] %v211_v43  ;;  %214 = vst [vmem:[%s2913_s23 + $0x160] sm:$0xff] %v213_v44  ;;  %v221_v48 = vld [vmem:[%s2905_s22 + $0x300] sm:$0xff]  ;;  %v223_v49 = vld [vmem:[%s2905_s22 + $0x308] sm:$0xff] }
  0x27   : > { %216 = vst [vmem:[%s2913_s23 + $0x168] sm:$0xff] %v215_v45  ;;  %218 = vst [vmem:[%s2913_s23 + $0x170] sm:$0xff] %v217_v46  ;;  %v225_v50 = vld [vmem:[%s2905_s22 + $0x310] sm:$0xff]  ;;  %v227_v51 = vld [vmem:[%s2905_s22 + $0x318] sm:$0xff] }
  0x28   : > { %220 = vst [vmem:[%s2913_s23 + $0x178] sm:$0xff] %v219_v47  ;;  %222 = vst [vmem:[%s2913_s23 + $0x180] sm:$0xff] %v221_v48  ;;  %v229_v52 = vld [vmem:[%s2905_s22 + $0x340] sm:$0xff]  ;;  %v231_v53 = vld [vmem:[%s2905_s22 + $0x348] sm:$0xff] }
  0x29   : > { %224 = vst [vmem:[%s2913_s23 + $0x188] sm:$0xff] %v223_v49  ;;  %226 = vst [vmem:[%s2913_s23 + $0x190] sm:$0xff] %v225_v50  ;;  %v233_v54 = vld [vmem:[%s2905_s22 + $0x350] sm:$0xff]  ;;  %v235_v55 = vld [vmem:[%s2905_s22 + $0x358] sm:$0xff] }
  0x2a   : > { %228 = vst [vmem:[%s2913_s23 + $0x198] sm:$0xff] %v227_v51  ;;  %230 = vst [vmem:[%s2913_s23 + $0x1a0] sm:$0xff] %v229_v52  ;;  %v237_v56 = vld [vmem:[%s2905_s22 + $0x380] sm:$0xff]  ;;  %v239_v57 = vld [vmem:[%s2905_s22 + $0x388] sm:$0xff] }
  0x2b   : > { %232 = vst [vmem:[%s2913_s23 + $0x1a8] sm:$0xff] %v231_v53  ;;  %234 = vst [vmem:[%s2913_s23 + $0x1b0] sm:$0xff] %v233_v54  ;;  %v241_v58 = vld [vmem:[%s2905_s22 + $0x390] sm:$0xff]  ;;  %v243_v59 = vld [vmem:[%s2905_s22 + $0x398] sm:$0xff] }
  0x2c   : > { %236 = vst [vmem:[%s2913_s23 + $0x1b8] sm:$0xff] %v235_v55  ;;  %238 = vst [vmem:[%s2913_s23 + $0x1c0] sm:$0xff] %v237_v56  ;;  %v245_v60 = vld [vmem:[%s2905_s22 + $0x3c0] sm:$0xff]  ;;  %v247_v61 = vld [vmem:[%s2905_s22 + $0x3c8] sm:$0xff] }
  0x2d   : > { %240 = vst [vmem:[%s2913_s23 + $0x1c8] sm:$0xff] %v239_v57  ;;  %242 = vst [vmem:[%s2913_s23 + $0x1d0] sm:$0xff] %v241_v58  ;;  %v249_v62 = vld [vmem:[%s2905_s22 + $0x3d0] sm:$0xff]  ;;  %v251_v63 = vld [vmem:[%s2905_s22 + $0x3d8] sm:$0xff] }
  0x2e   : > { %244 = vst [vmem:[%s2913_s23 + $0x1d8] sm:$0xff] %v243_v59  ;;  %246 = vst [vmem:[%s2913_s23 + $0x1e0] sm:$0xff] %v245_v60  ;;  %v253_v0 = vld [vmem:[%s2905_s22 + $0x400] sm:$0xff]  ;;  %v255_v1 = vld [vmem:[%s2905_s22 + $0x408] sm:$0xff] }
  0x2f   : > { %248 = vst [vmem:[%s2913_s23 + $0x1e8] sm:$0xff] %v247_v61  ;;  %250 = vst [vmem:[%s2913_s23 + $0x1f0] sm:$0xff] %v249_v62  ;;  %v257_v2 = vld [vmem:[%s2905_s22 + $0x410] sm:$0xff]  ;;  %v259_v3 = vld [vmem:[%s2905_s22 + $0x418] sm:$0xff] }
  0x30   : > { %252 = vst [vmem:[%s2913_s23 + $0x1f8] sm:$0xff] %v251_v63  ;;  %254 = vst [vmem:[%s2913_s23 + $0x200] sm:$0xff] %v253_v0  ;;  %v261_v4 = vld [vmem:[%s2905_s22 + $0x440] sm:$0xff]  ;;  %v263_v5 = vld [vmem:[%s2905_s22 + $0x448] sm:$0xff] }
  0x31   : > { %256 = vst [vmem:[%s2913_s23 + $0x208] sm:$0xff] %v255_v1  ;;  %258 = vst [vmem:[%s2913_s23 + $0x210] sm:$0xff] %v257_v2  ;;  %v265_v6 = vld [vmem:[%s2905_s22 + $0x450] sm:$0xff]  ;;  %v267_v7 = vld [vmem:[%s2905_s22 + $0x458] sm:$0xff] }
  0x32   : > { %260 = vst [vmem:[%s2913_s23 + $0x218] sm:$0xff] %v259_v3  ;;  %262 = vst [vmem:[%s2913_s23 + $0x220] sm:$0xff] %v261_v4  ;;  %v269_v8 = vld [vmem:[%s2905_s22 + $0x480] sm:$0xff]  ;;  %v271_v9 = vld [vmem:[%s2905_s22 + $0x488] sm:$0xff] }
  0x33   : > { %264 = vst [vmem:[%s2913_s23 + $0x228] sm:$0xff] %v263_v5  ;;  %266 = vst [vmem:[%s2913_s23 + $0x230] sm:$0xff] %v265_v6  ;;  %v273_v10 = vld [vmem:[%s2905_s22 + $0x490] sm:$0xff]  ;;  %v275_v11 = vld [vmem:[%s2905_s22 + $0x498] sm:$0xff] }
  0x34   : > { %268 = vst [vmem:[%s2913_s23 + $0x238] sm:$0xff] %v267_v7  ;;  %270 = vst [vmem:[%s2913_s23 + $0x240] sm:$0xff] %v269_v8  ;;  %v277_v12 = vld [vmem:[%s2905_s22 + $0x4c0] sm:$0xff]  ;;  %v279_v13 = vld [vmem:[%s2905_s22 + $0x4c8] sm:$0xff] }
  0x35   : > { %272 = vst [vmem:[%s2913_s23 + $0x248] sm:$0xff] %v271_v9  ;;  %274 = vst [vmem:[%s2913_s23 + $0x250] sm:$0xff] %v273_v10  ;;  %v281_v14 = vld [vmem:[%s2905_s22 + $0x4d0] sm:$0xff]  ;;  %v283_v15 = vld [vmem:[%s2905_s22 + $0x4d8] sm:$0xff] }
  0x36   : > { %276 = vst [vmem:[%s2913_s23 + $0x258] sm:$0xff] %v275_v11  ;;  %278 = vst [vmem:[%s2913_s23 + $0x260] sm:$0xff] %v277_v12  ;;  %v285_v16 = vld [vmem:[%s2905_s22 + $0x500] sm:$0xff]  ;;  %v287_v17 = vld [vmem:[%s2905_s22 + $0x508] sm:$0xff] }
  0x37   : > { %280 = vst [vmem:[%s2913_s23 + $0x268] sm:$0xff] %v279_v13  ;;  %282 = vst [vmem:[%s2913_s23 + $0x270] sm:$0xff] %v281_v14  ;;  %v289_v18 = vld [vmem:[%s2905_s22 + $0x510] sm:$0xff]  ;;  %v291_v19 = vld [vmem:[%s2905_s22 + $0x518] sm:$0xff] }
  0x38   : > { %284 = vst [vmem:[%s2913_s23 + $0x278] sm:$0xff] %v283_v15  ;;  %286 = vst [vmem:[%s2913_s23 + $0x280] sm:$0xff] %v285_v16  ;;  %v293_v20 = vld [vmem:[%s2905_s22 + $0x540] sm:$0xff]  ;;  %v295_v21 = vld [vmem:[%s2905_s22 + $0x548] sm:$0xff] }
  0x39   : > { %288 = vst [vmem:[%s2913_s23 + $0x288] sm:$0xff] %v287_v17  ;;  %290 = vst [vmem:[%s2913_s23 + $0x290] sm:$0xff] %v289_v18  ;;  %v297_v22 = vld [vmem:[%s2905_s22 + $0x550] sm:$0xff]  ;;  %v299_v23 = vld [vmem:[%s2905_s22 + $0x558] sm:$0xff] }
  0x3a   : > { %292 = vst [vmem:[%s2913_s23 + $0x298] sm:$0xff] %v291_v19  ;;  %294 = vst [vmem:[%s2913_s23 + $0x2a0] sm:$0xff] %v293_v20  ;;  %v301_v24 = vld [vmem:[%s2905_s22 + $0x580] sm:$0xff]  ;;  %v303_v25 = vld [vmem:[%s2905_s22 + $0x588] sm:$0xff] }
  0x3b   : > { %296 = vst [vmem:[%s2913_s23 + $0x2a8] sm:$0xff] %v295_v21  ;;  %298 = vst [vmem:[%s2913_s23 + $0x2b0] sm:$0xff] %v297_v22  ;;  %v305_v26 = vld [vmem:[%s2905_s22 + $0x590] sm:$0xff]  ;;  %v307_v27 = vld [vmem:[%s2905_s22 + $0x598] sm:$0xff] }
  0x3c   : > { %300 = vst [vmem:[%s2913_s23 + $0x2b8] sm:$0xff] %v299_v23  ;;  %302 = vst [vmem:[%s2913_s23 + $0x2c0] sm:$0xff] %v301_v24  ;;  %v309_v28 = vld [vmem:[%s2905_s22 + $0x5c0] sm:$0xff]  ;;  %v311_v29 = vld [vmem:[%s2905_s22 + $0x5c8] sm:$0xff] }
  0x3d   : > { %304 = vst [vmem:[%s2913_s23 + $0x2c8] sm:$0xff] %v303_v25  ;;  %306 = vst [vmem:[%s2913_s23 + $0x2d0] sm:$0xff] %v305_v26  ;;  %v313_v30 = vld [vmem:[%s2905_s22 + $0x5d0] sm:$0xff]  ;;  %v315_v31 = vld [vmem:[%s2905_s22 + $0x5d8] sm:$0xff] }
  0x3e   : > { %308 = vst [vmem:[%s2913_s23 + $0x2d8] sm:$0xff] %v307_v27  ;;  %310 = vst [vmem:[%s2913_s23 + $0x2e0] sm:$0xff] %v309_v28  ;;  %v317_v32 = vld [vmem:[%s2905_s22 + $0x600] sm:$0xff]  ;;  %v319_v33 = vld [vmem:[%s2905_s22 + $0x608] sm:$0xff] }
  0x3f   : > { %312 = vst [vmem:[%s2913_s23 + $0x2e8] sm:$0xff] %v311_v29  ;;  %314 = vst [vmem:[%s2913_s23 + $0x2f0] sm:$0xff] %v313_v30  ;;  %v321_v34 = vld [vmem:[%s2905_s22 + $0x610] sm:$0xff]  ;;  %v323_v35 = vld [vmem:[%s2905_s22 + $0x618] sm:$0xff] }
  0x40   : > { %316 = vst [vmem:[%s2913_s23 + $0x2f8] sm:$0xff] %v315_v31  ;;  %318 = vst [vmem:[%s2913_s23 + $0x300] sm:$0xff] %v317_v32  ;;  %v325_v36 = vld [vmem:[%s2905_s22 + $0x640] sm:$0xff]  ;;  %v327_v37 = vld [vmem:[%s2905_s22 + $0x648] sm:$0xff] }
  0x41   : > { %320 = vst [vmem:[%s2913_s23 + $0x308] sm:$0xff] %v319_v33  ;;  %322 = vst [vmem:[%s2913_s23 + $0x310] sm:$0xff] %v321_v34  ;;  %v329_v38 = vld [vmem:[%s2905_s22 + $0x650] sm:$0xff]  ;;  %v331_v39 = vld [vmem:[%s2905_s22 + $0x658] sm:$0xff] }
  0x42   : > { %324 = vst [vmem:[%s2913_s23 + $0x318] sm:$0xff] %v323_v35  ;;  %326 = vst [vmem:[%s2913_s23 + $0x320] sm:$0xff] %v325_v36  ;;  %v333_v40 = vld [vmem:[%s2905_s22 + $0x680] sm:$0xff]  ;;  %v335_v41 = vld [vmem:[%s2905_s22 + $0x688] sm:$0xff] }
  0x43   : > { %328 = vst [vmem:[%s2913_s23 + $0x328] sm:$0xff] %v327_v37  ;;  %330 = vst [vmem:[%s2913_s23 + $0x330] sm:$0xff] %v329_v38  ;;  %v337_v42 = vld [vmem:[%s2905_s22 + $0x690] sm:$0xff]  ;;  %v339_v43 = vld [vmem:[%s2905_s22 + $0x698] sm:$0xff] }
  0x44   : > { %332 = vst [vmem:[%s2913_s23 + $0x338] sm:$0xff] %v331_v39  ;;  %334 = vst [vmem:[%s2913_s23 + $0x340] sm:$0xff] %v333_v40  ;;  %v341_v44 = vld [vmem:[%s2905_s22 + $0x6c0] sm:$0xff]  ;;  %v343_v45 = vld [vmem:[%s2905_s22 + $0x6c8] sm:$0xff] }
  0x45   : > { %336 = vst [vmem:[%s2913_s23 + $0x348] sm:$0xff] %v335_v41  ;;  %338 = vst [vmem:[%s2913_s23 + $0x350] sm:$0xff] %v337_v42  ;;  %v345_v46 = vld [vmem:[%s2905_s22 + $0x6d0] sm:$0xff]  ;;  %v347_v47 = vld [vmem:[%s2905_s22 + $0x6d8] sm:$0xff] }
  0x46   : > { %340 = vst [vmem:[%s2913_s23 + $0x358] sm:$0xff] %v339_v43  ;;  %342 = vst [vmem:[%s2913_s23 + $0x360] sm:$0xff] %v341_v44  ;;  %v349_v48 = vld [vmem:[%s2905_s22 + $0x700] sm:$0xff]  ;;  %v351_v49 = vld [vmem:[%s2905_s22 + $0x708] sm:$0xff] }
  0x47   : > { %344 = vst [vmem:[%s2913_s23 + $0x368] sm:$0xff] %v343_v45  ;;  %346 = vst [vmem:[%s2913_s23 + $0x370] sm:$0xff] %v345_v46  ;;  %v353_v50 = vld [vmem:[%s2905_s22 + $0x710] sm:$0xff]  ;;  %v355_v51 = vld [vmem:[%s2905_s22 + $0x718] sm:$0xff] }
  0x48   : > { %348 = vst [vmem:[%s2913_s23 + $0x378] sm:$0xff] %v347_v47  ;;  %350 = vst [vmem:[%s2913_s23 + $0x380] sm:$0xff] %v349_v48  ;;  %v357_v52 = vld [vmem:[%s2905_s22 + $0x740] sm:$0xff]  ;;  %v359_v53 = vld [vmem:[%s2905_s22 + $0x748] sm:$0xff] }
  0x49   : > { %352 = vst [vmem:[%s2913_s23 + $0x388] sm:$0xff] %v351_v49  ;;  %354 = vst [vmem:[%s2913_s23 + $0x390] sm:$0xff] %v353_v50  ;;  %v361_v54 = vld [vmem:[%s2905_s22 + $0x750] sm:$0xff]  ;;  %v363_v55 = vld [vmem:[%s2905_s22 + $0x758] sm:$0xff] }
  0x4a   : > { %356 = vst [vmem:[%s2913_s23 + $0x398] sm:$0xff] %v355_v51  ;;  %358 = vst [vmem:[%s2913_s23 + $0x3a0] sm:$0xff] %v357_v52  ;;  %v365_v56 = vld [vmem:[%s2905_s22 + $0x780] sm:$0xff]  ;;  %v367_v57 = vld [vmem:[%s2905_s22 + $0x788] sm:$0xff] }
  0x4b   : > { %360 = vst [vmem:[%s2913_s23 + $0x3a8] sm:$0xff] %v359_v53  ;;  %362 = vst [vmem:[%s2913_s23 + $0x3b0] sm:$0xff] %v361_v54  ;;  %v369_v58 = vld [vmem:[%s2905_s22 + $0x790] sm:$0xff]  ;;  %v371_v59 = vld [vmem:[%s2905_s22 + $0x798] sm:$0xff] }
  0x4c   : > { %364 = vst [vmem:[%s2913_s23 + $0x3b8] sm:$0xff] %v363_v55  ;;  %366 = vst [vmem:[%s2913_s23 + $0x3c0] sm:$0xff] %v365_v56  ;;  %v373_v60 = vld [vmem:[%s2905_s22 + $0x7c0] sm:$0xff]  ;;  %v375_v61 = vld [vmem:[%s2905_s22 + $0x7c8] sm:$0xff] }
  0x4d   : > { %368 = vst [vmem:[%s2913_s23 + $0x3c8] sm:$0xff] %v367_v57  ;;  %370 = vst [vmem:[%s2913_s23 + $0x3d0] sm:$0xff] %v369_v58  ;;  %v377_v62 = vld [vmem:[%s2905_s22 + $0x7d0] sm:$0xff]  ;;  %v379_v63 = vld [vmem:[%s2905_s22 + $0x7d8] sm:$0xff] }
  0x4e   : > { %372 = vst [vmem:[%s2913_s23 + $0x3d8] sm:$0xff] %v371_v59  ;;  %374 = vst [vmem:[%s2913_s23 + $0x3e0] sm:$0xff] %v373_v60  ;;  %v381_v0 = vld [vmem:[%s2905_s22 + $0x800] sm:$0xff]  ;;  %v383_v1 = vld [vmem:[%s2905_s22 + $0x808] sm:$0xff] }
  0x4f   : > { %376 = vst [vmem:[%s2913_s23 + $0x3e8] sm:$0xff] %v375_v61  ;;  %378 = vst [vmem:[%s2913_s23 + $0x3f0] sm:$0xff] %v377_v62  ;;  %v385_v2 = vld [vmem:[%s2905_s22 + $0x810] sm:$0xff]  ;;  %v387_v3 = vld [vmem:[%s2905_s22 + $0x818] sm:$0xff] }
  0x50   : > { %380 = vst [vmem:[%s2913_s23 + $0x3f8] sm:$0xff] %v379_v63  ;;  %382 = vst [vmem:[%s2913_s23 + $0x400] sm:$0xff] %v381_v0  ;;  %v389_v4 = vld [vmem:[%s2905_s22 + $0x840] sm:$0xff]  ;;  %v391_v5 = vld [vmem:[%s2905_s22 + $0x848] sm:$0xff] }
  0x51   : > { %384 = vst [vmem:[%s2913_s23 + $0x408] sm:$0xff] %v383_v1  ;;  %386 = vst [vmem:[%s2913_s23 + $0x410] sm:$0xff] %v385_v2  ;;  %v393_v6 = vld [vmem:[%s2905_s22 + $0x850] sm:$0xff]  ;;  %v395_v7 = vld [vmem:[%s2905_s22 + $0x858] sm:$0xff] }
  0x52   : > { %388 = vst [vmem:[%s2913_s23 + $0x418] sm:$0xff] %v387_v3  ;;  %390 = vst [vmem:[%s2913_s23 + $0x420] sm:$0xff] %v389_v4  ;;  %v397_v8 = vld [vmem:[%s2905_s22 + $0x880] sm:$0xff]  ;;  %v399_v9 = vld [vmem:[%s2905_s22 + $0x888] sm:$0xff] }
  0x53   : > { %392 = vst [vmem:[%s2913_s23 + $0x428] sm:$0xff] %v391_v5  ;;  %394 = vst [vmem:[%s2913_s23 + $0x430] sm:$0xff] %v393_v6  ;;  %v401_v10 = vld [vmem:[%s2905_s22 + $0x890] sm:$0xff]  ;;  %v403_v11 = vld [vmem:[%s2905_s22 + $0x898] sm:$0xff] }
  0x54   : > { %396 = vst [vmem:[%s2913_s23 + $0x438] sm:$0xff] %v395_v7  ;;  %398 = vst [vmem:[%s2913_s23 + $0x440] sm:$0xff] %v397_v8  ;;  %v405_v12 = vld [vmem:[%s2905_s22 + $0x8c0] sm:$0xff]  ;;  %v407_v13 = vld [vmem:[%s2905_s22 + $0x8c8] sm:$0xff] }
  0x55   : > { %400 = vst [vmem:[%s2913_s23 + $0x448] sm:$0xff] %v399_v9  ;;  %402 = vst [vmem:[%s2913_s23 + $0x450] sm:$0xff] %v401_v10  ;;  %v409_v14 = vld [vmem:[%s2905_s22 + $0x8d0] sm:$0xff]  ;;  %v411_v15 = vld [vmem:[%s2905_s22 + $0x8d8] sm:$0xff] }
  0x56   : > { %404 = vst [vmem:[%s2913_s23 + $0x458] sm:$0xff] %v403_v11  ;;  %406 = vst [vmem:[%s2913_s23 + $0x460] sm:$0xff] %v405_v12  ;;  %v413_v16 = vld [vmem:[%s2905_s22 + $0x900] sm:$0xff]  ;;  %v415_v17 = vld [vmem:[%s2905_s22 + $0x908] sm:$0xff] }
  0x57   : > { %408 = vst [vmem:[%s2913_s23 + $0x468] sm:$0xff] %v407_v13  ;;  %410 = vst [vmem:[%s2913_s23 + $0x470] sm:$0xff] %v409_v14  ;;  %v417_v18 = vld [vmem:[%s2905_s22 + $0x910] sm:$0xff]  ;;  %v419_v19 = vld [vmem:[%s2905_s22 + $0x918] sm:$0xff] }
  0x58   : > { %412 = vst [vmem:[%s2913_s23 + $0x478] sm:$0xff] %v411_v15  ;;  %414 = vst [vmem:[%s2913_s23 + $0x480] sm:$0xff] %v413_v16  ;;  %v421_v20 = vld [vmem:[%s2905_s22 + $0x940] sm:$0xff]  ;;  %v423_v21 = vld [vmem:[%s2905_s22 + $0x948] sm:$0xff] }
  0x59   : > { %416 = vst [vmem:[%s2913_s23 + $0x488] sm:$0xff] %v415_v17  ;;  %418 = vst [vmem:[%s2913_s23 + $0x490] sm:$0xff] %v417_v18  ;;  %v425_v22 = vld [vmem:[%s2905_s22 + $0x950] sm:$0xff]  ;;  %v427_v23 = vld [vmem:[%s2905_s22 + $0x958] sm:$0xff] }
  0x5a   : > { %420 = vst [vmem:[%s2913_s23 + $0x498] sm:$0xff] %v419_v19  ;;  %422 = vst [vmem:[%s2913_s23 + $0x4a0] sm:$0xff] %v421_v20  ;;  %v429_v24 = vld [vmem:[%s2905_s22 + $0x980] sm:$0xff]  ;;  %v431_v25 = vld [vmem:[%s2905_s22 + $0x988] sm:$0xff] }
  0x5b   : > { %424 = vst [vmem:[%s2913_s23 + $0x4a8] sm:$0xff] %v423_v21  ;;  %426 = vst [vmem:[%s2913_s23 + $0x4b0] sm:$0xff] %v425_v22  ;;  %v433_v26 = vld [vmem:[%s2905_s22 + $0x990] sm:$0xff]  ;;  %v435_v27 = vld [vmem:[%s2905_s22 + $0x998] sm:$0xff] }
  0x5c   : > { %428 = vst [vmem:[%s2913_s23 + $0x4b8] sm:$0xff] %v427_v23  ;;  %430 = vst [vmem:[%s2913_s23 + $0x4c0] sm:$0xff] %v429_v24  ;;  %v437_v28 = vld [vmem:[%s2905_s22 + $0x9c0] sm:$0xff]  ;;  %v439_v29 = vld [vmem:[%s2905_s22 + $0x9c8] sm:$0xff] }
  0x5d   : > { %432 = vst [vmem:[%s2913_s23 + $0x4c8] sm:$0xff] %v431_v25  ;;  %434 = vst [vmem:[%s2913_s23 + $0x4d0] sm:$0xff] %v433_v26  ;;  %v441_v30 = vld [vmem:[%s2905_s22 + $0x9d0] sm:$0xff]  ;;  %v443_v31 = vld [vmem:[%s2905_s22 + $0x9d8] sm:$0xff] }
  0x5e   : > { %436 = vst [vmem:[%s2913_s23 + $0x4d8] sm:$0xff] %v435_v27  ;;  %438 = vst [vmem:[%s2913_s23 + $0x4e0] sm:$0xff] %v437_v28  ;;  %v445_v32 = vld [vmem:[%s2905_s22 + $0xa00] sm:$0xff]  ;;  %v447_v33 = vld [vmem:[%s2905_s22 + $0xa08] sm:$0xff] }
  0x5f   : > { %440 = vst [vmem:[%s2913_s23 + $0x4e8] sm:$0xff] %v439_v29  ;;  %442 = vst [vmem:[%s2913_s23 + $0x4f0] sm:$0xff] %v441_v30  ;;  %v449_v34 = vld [vmem:[%s2905_s22 + $0xa10] sm:$0xff]  ;;  %v451_v35 = vld [vmem:[%s2905_s22 + $0xa18] sm:$0xff] }
  0x60   : > { %444 = vst [vmem:[%s2913_s23 + $0x4f8] sm:$0xff] %v443_v31  ;;  %446 = vst [vmem:[%s2913_s23 + $0x500] sm:$0xff] %v445_v32  ;;  %v453_v36 = vld [vmem:[%s2905_s22 + $0xa40] sm:$0xff]  ;;  %v455_v37 = vld [vmem:[%s2905_s22 + $0xa48] sm:$0xff] }
  0x61   : > { %448 = vst [vmem:[%s2913_s23 + $0x508] sm:$0xff] %v447_v33  ;;  %450 = vst [vmem:[%s2913_s23 + $0x510] sm:$0xff] %v449_v34  ;;  %v457_v38 = vld [vmem:[%s2905_s22 + $0xa50] sm:$0xff]  ;;  %v459_v39 = vld [vmem:[%s2905_s22 + $0xa58] sm:$0xff] }
  0x62   : > { %452 = vst [vmem:[%s2913_s23 + $0x518] sm:$0xff] %v451_v35  ;;  %454 = vst [vmem:[%s2913_s23 + $0x520] sm:$0xff] %v453_v36  ;;  %v461_v40 = vld [vmem:[%s2905_s22 + $0xa80] sm:$0xff]  ;;  %v463_v41 = vld [vmem:[%s2905_s22 + $0xa88] sm:$0xff] }
  0x63   : > { %456 = vst [vmem:[%s2913_s23 + $0x528] sm:$0xff] %v455_v37  ;;  %458 = vst [vmem:[%s2913_s23 + $0x530] sm:$0xff] %v457_v38  ;;  %v465_v42 = vld [vmem:[%s2905_s22 + $0xa90] sm:$0xff]  ;;  %v467_v43 = vld [vmem:[%s2905_s22 + $0xa98] sm:$0xff] }
  0x64   : > { %460 = vst [vmem:[%s2913_s23 + $0x538] sm:$0xff] %v459_v39  ;;  %462 = vst [vmem:[%s2913_s23 + $0x540] sm:$0xff] %v461_v40  ;;  %v469_v44 = vld [vmem:[%s2905_s22 + $0xac0] sm:$0xff]  ;;  %v471_v45 = vld [vmem:[%s2905_s22 + $0xac8] sm:$0xff] }
  0x65   : > { %464 = vst [vmem:[%s2913_s23 + $0x548] sm:$0xff] %v463_v41  ;;  %466 = vst [vmem:[%s2913_s23 + $0x550] sm:$0xff] %v465_v42  ;;  %v473_v46 = vld [vmem:[%s2905_s22 + $0xad0] sm:$0xff]  ;;  %v475_v47 = vld [vmem:[%s2905_s22 + $0xad8] sm:$0xff] }
  0x66   : > { %468 = vst [vmem:[%s2913_s23 + $0x558] sm:$0xff] %v467_v43  ;;  %470 = vst [vmem:[%s2913_s23 + $0x560] sm:$0xff] %v469_v44  ;;  %v477_v48 = vld [vmem:[%s2905_s22 + $0xb00] sm:$0xff]  ;;  %v479_v49 = vld [vmem:[%s2905_s22 + $0xb08] sm:$0xff] }
  0x67   : > { %472 = vst [vmem:[%s2913_s23 + $0x568] sm:$0xff] %v471_v45  ;;  %474 = vst [vmem:[%s2913_s23 + $0x570] sm:$0xff] %v473_v46  ;;  %v481_v50 = vld [vmem:[%s2905_s22 + $0xb10] sm:$0xff]  ;;  %v483_v51 = vld [vmem:[%s2905_s22 + $0xb18] sm:$0xff] }
  0x68   : > { %476 = vst [vmem:[%s2913_s23 + $0x578] sm:$0xff] %v475_v47  ;;  %478 = vst [vmem:[%s2913_s23 + $0x580] sm:$0xff] %v477_v48  ;;  %v485_v52 = vld [vmem:[%s2905_s22 + $0xb40] sm:$0xff]  ;;  %v487_v53 = vld [vmem:[%s2905_s22 + $0xb48] sm:$0xff] }
  0x69   : > { %480 = vst [vmem:[%s2913_s23 + $0x588] sm:$0xff] %v479_v49  ;;  %482 = vst [vmem:[%s2913_s23 + $0x590] sm:$0xff] %v481_v50  ;;  %v489_v54 = vld [vmem:[%s2905_s22 + $0xb50] sm:$0xff]  ;;  %v491_v55 = vld [vmem:[%s2905_s22 + $0xb58] sm:$0xff] }
  0x6a   : > { %484 = vst [vmem:[%s2913_s23 + $0x598] sm:$0xff] %v483_v51  ;;  %486 = vst [vmem:[%s2913_s23 + $0x5a0] sm:$0xff] %v485_v52  ;;  %v493_v56 = vld [vmem:[%s2905_s22 + $0xb80] sm:$0xff]  ;;  %v495_v57 = vld [vmem:[%s2905_s22 + $0xb88] sm:$0xff] }
  0x6b   : > { %488 = vst [vmem:[%s2913_s23 + $0x5a8] sm:$0xff] %v487_v53  ;;  %490 = vst [vmem:[%s2913_s23 + $0x5b0] sm:$0xff] %v489_v54  ;;  %v497_v58 = vld [vmem:[%s2905_s22 + $0xb90] sm:$0xff]  ;;  %v499_v59 = vld [vmem:[%s2905_s22 + $0xb98] sm:$0xff] }
  0x6c   : > { %492 = vst [vmem:[%s2913_s23 + $0x5b8] sm:$0xff] %v491_v55  ;;  %494 = vst [vmem:[%s2913_s23 + $0x5c0] sm:$0xff] %v493_v56  ;;  %v501_v60 = vld [vmem:[%s2905_s22 + $0xbc0] sm:$0xff]  ;;  %v503_v61 = vld [vmem:[%s2905_s22 + $0xbc8] sm:$0xff] }
  0x6d   : > { %496 = vst [vmem:[%s2913_s23 + $0x5c8] sm:$0xff] %v495_v57  ;;  %498 = vst [vmem:[%s2913_s23 + $0x5d0] sm:$0xff] %v497_v58  ;;  %v505_v62 = vld [vmem:[%s2905_s22 + $0xbd0] sm:$0xff]  ;;  %v507_v63 = vld [vmem:[%s2905_s22 + $0xbd8] sm:$0xff] }
  0x6e   : > { %500 = vst [vmem:[%s2913_s23 + $0x5d8] sm:$0xff] %v499_v59  ;;  %502 = vst [vmem:[%s2913_s23 + $0x5e0] sm:$0xff] %v501_v60  ;;  %v509_v0 = vld [vmem:[%s2905_s22 + $0xc00] sm:$0xff]  ;;  %v511_v1 = vld [vmem:[%s2905_s22 + $0xc08] sm:$0xff] }
  0x6f   : > { %504 = vst [vmem:[%s2913_s23 + $0x5e8] sm:$0xff] %v503_v61  ;;  %506 = vst [vmem:[%s2913_s23 + $0x5f0] sm:$0xff] %v505_v62  ;;  %v513_v2 = vld [vmem:[%s2905_s22 + $0xc10] sm:$0xff]  ;;  %v515_v3 = vld [vmem:[%s2905_s22 + $0xc18] sm:$0xff] }
  0x70   : > { %508 = vst [vmem:[%s2913_s23 + $0x5f8] sm:$0xff] %v507_v63  ;;  %510 = vst [vmem:[%s2913_s23 + $0x600] sm:$0xff] %v509_v0  ;;  %v517_v4 = vld [vmem:[%s2905_s22 + $0xc40] sm:$0xff]  ;;  %v519_v5 = vld [vmem:[%s2905_s22 + $0xc48] sm:$0xff] }
  0x71   : > { %512 = vst [vmem:[%s2913_s23 + $0x608] sm:$0xff] %v511_v1  ;;  %514 = vst [vmem:[%s2913_s23 + $0x610] sm:$0xff] %v513_v2  ;;  %v521_v6 = vld [vmem:[%s2905_s22 + $0xc50] sm:$0xff]  ;;  %v523_v7 = vld [vmem:[%s2905_s22 + $0xc58] sm:$0xff] }
  0x72   : > { %516 = vst [vmem:[%s2913_s23 + $0x618] sm:$0xff] %v515_v3  ;;  %518 = vst [vmem:[%s2913_s23 + $0x620] sm:$0xff] %v517_v4  ;;  %v525_v8 = vld [vmem:[%s2905_s22 + $0xc80] sm:$0xff]  ;;  %v527_v9 = vld [vmem:[%s2905_s22 + $0xc88] sm:$0xff] }
  0x73   : > { %520 = vst [vmem:[%s2913_s23 + $0x628] sm:$0xff] %v519_v5  ;;  %522 = vst [vmem:[%s2913_s23 + $0x630] sm:$0xff] %v521_v6  ;;  %v529_v10 = vld [vmem:[%s2905_s22 + $0xc90] sm:$0xff]  ;;  %v531_v11 = vld [vmem:[%s2905_s22 + $0xc98] sm:$0xff] }
  0x74   : > { %524 = vst [vmem:[%s2913_s23 + $0x638] sm:$0xff] %v523_v7  ;;  %526 = vst [vmem:[%s2913_s23 + $0x640] sm:$0xff] %v525_v8  ;;  %v533_v12 = vld [vmem:[%s2905_s22 + $0xcc0] sm:$0xff]  ;;  %v535_v13 = vld [vmem:[%s2905_s22 + $0xcc8] sm:$0xff] }
  0x75   : > { %528 = vst [vmem:[%s2913_s23 + $0x648] sm:$0xff] %v527_v9  ;;  %530 = vst [vmem:[%s2913_s23 + $0x650] sm:$0xff] %v529_v10  ;;  %v537_v14 = vld [vmem:[%s2905_s22 + $0xcd0] sm:$0xff]  ;;  %v539_v15 = vld [vmem:[%s2905_s22 + $0xcd8] sm:$0xff] }
  0x76   : > { %532 = vst [vmem:[%s2913_s23 + $0x658] sm:$0xff] %v531_v11  ;;  %534 = vst [vmem:[%s2913_s23 + $0x660] sm:$0xff] %v533_v12  ;;  %v541_v16 = vld [vmem:[%s2905_s22 + $0xd00] sm:$0xff]  ;;  %v543_v17 = vld [vmem:[%s2905_s22 + $0xd08] sm:$0xff] }
  0x77   : > { %536 = vst [vmem:[%s2913_s23 + $0x668] sm:$0xff] %v535_v13  ;;  %538 = vst [vmem:[%s2913_s23 + $0x670] sm:$0xff] %v537_v14  ;;  %v545_v18 = vld [vmem:[%s2905_s22 + $0xd10] sm:$0xff]  ;;  %v547_v19 = vld [vmem:[%s2905_s22 + $0xd18] sm:$0xff] }
  0x78   : > { %540 = vst [vmem:[%s2913_s23 + $0x678] sm:$0xff] %v539_v15  ;;  %542 = vst [vmem:[%s2913_s23 + $0x680] sm:$0xff] %v541_v16  ;;  %v549_v20 = vld [vmem:[%s2905_s22 + $0xd40] sm:$0xff]  ;;  %v551_v21 = vld [vmem:[%s2905_s22 + $0xd48] sm:$0xff] }
  0x79   : > { %544 = vst [vmem:[%s2913_s23 + $0x688] sm:$0xff] %v543_v17  ;;  %546 = vst [vmem:[%s2913_s23 + $0x690] sm:$0xff] %v545_v18  ;;  %v553_v22 = vld [vmem:[%s2905_s22 + $0xd50] sm:$0xff]  ;;  %v555_v23 = vld [vmem:[%s2905_s22 + $0xd58] sm:$0xff] }
  0x7a   : > { %548 = vst [vmem:[%s2913_s23 + $0x698] sm:$0xff] %v547_v19  ;;  %550 = vst [vmem:[%s2913_s23 + $0x6a0] sm:$0xff] %v549_v20  ;;  %v557_v24 = vld [vmem:[%s2905_s22 + $0xd80] sm:$0xff]  ;;  %v559_v25 = vld [vmem:[%s2905_s22 + $0xd88] sm:$0xff] }
  0x7b   : > { %552 = vst [vmem:[%s2913_s23 + $0x6a8] sm:$0xff] %v551_v21  ;;  %554 = vst [vmem:[%s2913_s23 + $0x6b0] sm:$0xff] %v553_v22  ;;  %v561_v26 = vld [vmem:[%s2905_s22 + $0xd90] sm:$0xff]  ;;  %v563_v27 = vld [vmem:[%s2905_s22 + $0xd98] sm:$0xff] }
  0x7c   : > { %556 = vst [vmem:[%s2913_s23 + $0x6b8] sm:$0xff] %v555_v23  ;;  %558 = vst [vmem:[%s2913_s23 + $0x6c0] sm:$0xff] %v557_v24  ;;  %v565_v28 = vld [vmem:[%s2905_s22 + $0xdc0] sm:$0xff]  ;;  %v567_v29 = vld [vmem:[%s2905_s22 + $0xdc8] sm:$0xff] }
  0x7d   : > { %560 = vst [vmem:[%s2913_s23 + $0x6c8] sm:$0xff] %v559_v25  ;;  %562 = vst [vmem:[%s2913_s23 + $0x6d0] sm:$0xff] %v561_v26  ;;  %v569_v30 = vld [vmem:[%s2905_s22 + $0xdd0] sm:$0xff]  ;;  %v571_v31 = vld [vmem:[%s2905_s22 + $0xdd8] sm:$0xff] }
  0x7e   : > { %564 = vst [vmem:[%s2913_s23 + $0x6d8] sm:$0xff] %v563_v27  ;;  %566 = vst [vmem:[%s2913_s23 + $0x6e0] sm:$0xff] %v565_v28 }
  0x7f   : > { %568 = vst [vmem:[%s2913_s23 + $0x6e8] sm:$0xff] %v567_v29  ;;  %570 = vst [vmem:[%s2913_s23 + $0x6f0] sm:$0xff] %v569_v30 }
  0x80   : > { %572 = vst [vmem:[%s2913_s23 + $0x6f8] sm:$0xff] %v571_v31 }
  0x81 PF: > { %p2534_p5 = scmp.ge.s32.totalorder %s2853_s11, 1  ;;  %p577_p6 = scmp.lt.s32.totalorder %s2853_s11, 3 }
  0x83   : > { %p578_p7 = pnand %p2534_p5, %p577_p6 }
  0x84   : > { %s584_s24 = sand.u32 (!%p578_p7), 1, %s2845_s9   ;;  %s2535_s29 = sshll.u32 (!%p578_p7), %s2528_s12, 3 }
  0x85   : > { %581 = sbr.rel (%p578_p7) target bundleno = 616 (0x268), region = 47  ;;  %p606_p8 = scmp.lt.s32.totalorder (!%p578_p7), %s2535_s29, 15 }
  0x86   : > { %s2773_s25 = smul.u32 (!%p578_p7), 1792, %s584_s24 }
  0x88   : > { %s3365_s28 = scalar_lea.vmem (!%p578_p7), [#allocation2], %s2773_s25 }
  0x8a   : > { %v848_v32 = vlaneseq  ;;  %v2855_v33 = vmov 1966171168   ;;  %v3363_v35 = vld.sshfl [vmem:[%s3669_s1] sm:$0x33 pattern:$0x75316420] }
  0x8b   : > { %v846_v34 = vunpack.c.l.s4 %v2855_v33  ;;  %v668_v37 = vld [vmem:[%s3365_s28 + $0x1c0] sm:$0xff]  ;;  %v844_v56 = vcombine.high %v3363_v35, %v3363_v35  ;;  %vm1976_vm0 = vcmask 474112   ;;  %vm1980_vm1 = vcmask 1044480   ;;  %s3675_s29 = smov (!%p606_p8, %s2535_s29), 15 }
  0x8c   : > { %v849_v36 = vshrl.u32 %v848_v32, 7  ;;  %v672_v38 = vld [vmem:[%s3365_s28 + $0x1e0] sm:$0xff]  ;;  %s608_s4 = scalar_lea.vmem %s3670_s2, %s3675_s29 }
  0x8d   : > { %v796_v39 = vld [vmem:[%s3365_s28 + $0x5c0] sm:$0xff]  ;;  %v847_v40 = vunpack.c.0.s8 %v846_v34  ;;  %v2594_v41 = vcombine.high %v668_v37, %v672_v38  ;;  %v2593_v43 = vcombine.low %v668_v37, %v672_v38 }
  0x8e   : > { %v800_v42 = vld [vmem:[%s3365_s28 + $0x5e0] sm:$0xff] }
  0x8f   : > { %v660_v44 = vld [vmem:[%s3365_s28 + $0x180] sm:$0xff]  ;;  %v2722_v46 = vcombine.high %v796_v39, %v800_v42  ;;  %v2721_v47 = vcombine.low %v796_v39, %v800_v42  ;;  %2005 = vmatprep.subr.bf16.mxu0 %v2594_v41  ;;  %v3381_v57 = vsub.s32 %v847_v40, %v849_v36 }
  0x90   : > { %v664_v45 = vld [vmem:[%s3365_s28 + $0x1a0] sm:$0xff]  ;;  %2006 = vmatpush1.bf16.msra.mxu0 %v2593_v43 }
  0x91   : > { %v2586_v48 = vcombine.high %v660_v44, %v664_v45  ;;  %v788_v49 = vld [vmem:[%s3365_s28 + $0x580] sm:$0xff]  ;;  %2046 = vmatprep.subr.bf16.mxu1 %v2722_v46  ;;  %v2585_v58 = vcombine.low %v660_v44, %v664_v45  ;;  %v3388_v2 = vrot.slane %v844_v56, %v3381_v57 }
  0x92   : > { %v792_v50 = vld [vmem:[%s3365_s28 + $0x5a0] sm:$0xff]  ;;  %2047 = vmatpush1.bf16.msra.mxu1 %v2721_v47 }
  0x93   : > { %v652_v51 = vld [vmem:[%s3365_s28 + $0x140] sm:$0xff]  ;;  %v2714_v52 = vcombine.high %v788_v49, %v792_v50  ;;  %2007 = vmatprep.subr.bf16.mxu0 %v2586_v48  ;;  %v2713_v59 = vcombine.low %v788_v49, %v792_v50  ;;  %v3392_v6 = vcombine.high %v3388_v2, %v3388_v2  ;;  %2037 = vmatprep.mubr.bf16.mxu0 %v3388_v2 }
  0x94   : > { %v656_v53 = vld [vmem:[%s3365_s28 + $0x160] sm:$0xff]  ;;  %2008 = vmatpush1.bf16.msra.mxu0 %v2585_v58 }
  0x95   : > { %v780_v54 = vld [vmem:[%s3365_s28 + $0x540] sm:$0xff]  ;;  %v2578_v60 = vcombine.high %v652_v51, %v656_v53  ;;  %2048 = vmatprep.subr.bf16.mxu1 %v2714_v52  ;;  %v2577_v3 = vcombine.low %v652_v51, %v656_v53  ;;  %2762 = vmatprep.mubr.msk.bf16.mxu1 %vm1976_vm0, %v3392_v6 }
  0x96   : > { %v784_v55 = vld [vmem:[%s3365_s28 + $0x560] sm:$0xff]  ;;  %2049 = vmatpush1.bf16.msra.mxu1 %v2713_v59 }
  0x97   : > { %v2706_v61 = vcombine.high %v780_v54, %v784_v55  ;;  %v644_v62 = vld [vmem:[%s3365_s28 + $0x100] sm:$0xff]  ;;  %2009 = vmatprep.subr.bf16.mxu0 %v2578_v60  ;;  %v2705_v4 = vcombine.low %v780_v54, %v784_v55 }
  0x98   : > { %v648_v63 = vld [vmem:[%s3365_s28 + $0x120] sm:$0xff]  ;;  %2010 = vmatpush1.bf16.msra.mxu0 %v2577_v3 }
  0x99   : > { %v772_v0 = vld [vmem:[%s3365_s28 + $0x500] sm:$0xff]  ;;  %v2570_v5 = vcombine.high %v644_v62, %v648_v63  ;;  %2050 = vmatprep.subr.bf16.mxu1 %v2706_v61  ;;  %v2569_v12 = vcombine.low %v644_v62, %v648_v63 }
  0x9a   : > { %v776_v1 = vld [vmem:[%s3365_s28 + $0x520] sm:$0xff]  ;;  %2051 = vmatpush1.bf16.msra.mxu1 %v2705_v4 }
  0x9b   : > { %v2698_v7 = vcombine.high %v772_v0, %v776_v1  ;;  %v636_v8 = vld [vmem:[%s3365_s28 + $0xc0] sm:$0xff]  ;;  %2011 = vmatprep.subr.bf16.mxu0 %v2570_v5  ;;  %v2697_v13 = vcombine.low %v772_v0, %v776_v1 }
  0x9c   : > { %v640_v9 = vld [vmem:[%s3365_s28 + $0xe0] sm:$0xff]  ;;  %2012 = vmatpush1.bf16.msra.mxu0 %v2569_v12 }
  0x9d   : > { %v764_v10 = vld [vmem:[%s3365_s28 + $0x4c0] sm:$0xff]  ;;  %v2562_v14 = vcombine.high %v636_v8, %v640_v9  ;;  %2052 = vmatprep.subr.bf16.mxu1 %v2698_v7  ;;  %v2561_v20 = vcombine.low %v636_v8, %v640_v9 }
  0x9e   : > { %v768_v11 = vld [vmem:[%s3365_s28 + $0x4e0] sm:$0xff]  ;;  %2053 = vmatpush1.bf16.msra.mxu1 %v2697_v13 }
  0x9f   : > { %v2690_v15 = vcombine.high %v764_v10, %v768_v11  ;;  %v628_v16 = vld [vmem:[%s3365_s28 + $0x80] sm:$0xff]  ;;  %2013 = vmatprep.subr.bf16.mxu0 %v2562_v14  ;;  %v2689_v21 = vcombine.low %v764_v10, %v768_v11 }
  0xa0   : > { %v632_v17 = vld [vmem:[%s3365_s28 + $0xa0] sm:$0xff]  ;;  %2014 = vmatpush1.bf16.msra.mxu0 %v2561_v20 }
  0xa1   : > { %v756_v18 = vld [vmem:[%s3365_s28 + $0x480] sm:$0xff]  ;;  %v2554_v22 = vcombine.high %v628_v16, %v632_v17  ;;  %2054 = vmatprep.subr.bf16.mxu1 %v2690_v15  ;;  %v2553_v28 = vcombine.low %v628_v16, %v632_v17  ;;  %v669_v15 = vld [vmem:[%s3365_s28 + $0x1c8] sm:$0xff] }
  0xa2   : > { %v760_v19 = vld [vmem:[%s3365_s28 + $0x4a0] sm:$0xff]  ;;  %2055 = vmatpush1.bf16.msra.mxu1 %v2689_v21  ;;  %v673_v16 = vld [vmem:[%s3365_s28 + $0x1e8] sm:$0xff] }
  0xa3   : > { %v2682_v23 = vcombine.high %v756_v18, %v760_v19  ;;  %v620_v24 = vld [vmem:[%s3365_s28 + $0x40] sm:$0xff]  ;;  %2015 = vmatprep.subr.bf16.mxu0 %v2554_v22  ;;  %v2681_v29 = vcombine.low %v756_v18, %v760_v19  ;;  %v3437_v18 = vrot.slane %v3363_v35, %v3381_v57  ;;  %v2596_v21 = vcombine.high %v669_v15, %v673_v16 }
  0xa4   : > { %v624_v25 = vld [vmem:[%s3365_s28 + $0x60] sm:$0xff]  ;;  %2016 = vmatpush1.bf16.msra.mxu0 %v2553_v28 }
  0xa5   : > { %v748_v26 = vld [vmem:[%s3365_s28 + $0x440] sm:$0xff]  ;;  %v2546_v30 = vcombine.high %v620_v24, %v624_v25  ;;  %2056 = vmatprep.subr.bf16.mxu1 %v2682_v23  ;;  %v2545_v37 = vcombine.low %v620_v24, %v624_v25  ;;  %v661_v24 = vld [vmem:[%s3365_s28 + $0x188] sm:$0xff] }
  0xa6   : > { %v752_v27 = vld [vmem:[%s3365_s28 + $0x460] sm:$0xff]  ;;  %2057 = vmatpush1.bf16.msra.mxu1 %v2681_v29  ;;  %v665_v25 = vld [vmem:[%s3365_s28 + $0x1a8] sm:$0xff] }
  0xa7   : > { %v2674_v31 = vcombine.high %v748_v26, %v752_v27  ;;  %v612_v32 = vld [vmem:[%s3365_s28] sm:$0xff]  ;;  %2017 = vmatprep.subr.bf16.mxu0 %v2546_v30  ;;  %v2673_v38 = vcombine.low %v748_v26, %v752_v27  ;;  %v3445_v26 = vcombine.high %v3437_v18, %v3437_v18  ;;  %v2595_v27 = vcombine.low %v669_v15, %v673_v16 }
  0xa8   : > { %v616_v33 = vld [vmem:[%s3365_s28 + $0x20] sm:$0xff]  ;;  %2018 = vmatpush1.bf16.msra.mxu0 %v2545_v37  ;;  %v2588_v29 = vcombine.high %v661_v24, %v665_v25 }
  0xa9   : > { %v740_v34 = vld [vmem:[%s3365_s28 + $0x400] sm:$0xff]  ;;  %v2538_v39 = vcombine.high %v612_v32, %v616_v33  ;;  %2058 = vmatprep.subr.bf16.mxu1 %v2674_v31  ;;  %v2537_v45 = vcombine.low %v612_v32, %v616_v33  ;;  %v653_v32 = vld [vmem:[%s3365_s28 + $0x148] sm:$0xff] }
  0xaa   : > { %v744_v36 = vld [vmem:[%s3365_s28 + $0x420] sm:$0xff]  ;;  %2059 = vmatpush1.bf16.msra.mxu1 %v2673_v38  ;;  %v657_v33 = vld [vmem:[%s3365_s28 + $0x168] sm:$0xff] }
  0xab   : > { %v2666_v40 = vcombine.high %v740_v34, %v744_v36  ;;  %v732_v41 = vld [vmem:[%s3365_s28 + $0x3c0] sm:$0xff]  ;;  %2019 = vmatprep.subr.bf16.mxu0 %v2538_v39  ;;  %v2665_v46 = vcombine.low %v740_v34, %v744_v36  ;;  %v2587_v36 = vcombine.low %v661_v24, %v665_v25  ;;  %v2580_v38 = vcombine.high %v653_v32, %v657_v33 }
  0xac   : > { %v736_v42 = vld [vmem:[%s3365_s28 + $0x3e0] sm:$0xff]  ;;  %2020 = vmatpush1.bf16.msra.mxu0 %v2537_v45 }
  0xad   : > { %v828_v43 = vld [vmem:[%s3365_s28 + $0x6c0] sm:$0xff]  ;;  %v2658_v47 = vcombine.high %v732_v41, %v736_v42  ;;  %2060 = vmatprep.subr.bf16.mxu1 %v2666_v40  ;;  %v2657_v54 = vcombine.low %v732_v41, %v736_v42  ;;  %v645_v41 = vld [vmem:[%s3365_s28 + $0x108] sm:$0xff] }
  0xae   : > { %v832_v44 = vld [vmem:[%s3365_s28 + $0x6e0] sm:$0x11]  ;;  %2061 = vmatpush1.bf16.msra.mxu1 %v2665_v46  ;;  %v649_v42 = vld [vmem:[%s3365_s28 + $0x128] sm:$0xff] }
  0xaf   : > { %v2754_v48 = vcombine.high %v828_v43, %v832_v44  ;;  %v2753_v49 = vcombine.low %v828_v43, %v832_v44  ;;  %v724_v50 = vld [vmem:[%s3365_s28 + $0x380] sm:$0xff]  ;;  %2021 = vmatprep.subr.bf16.mxu0 %v2658_v47  ;;  %v2579_v44 = vcombine.low %v653_v32, %v657_v33  ;;  %v2572_v46 = vcombine.high %v645_v41, %v649_v42  ;;  %v797_v47 = vld [vmem:[%s3365_s28 + $0x5c8] sm:$0xff] }
  0xb0   : > { %v728_v51 = vld [vmem:[%s3365_s28 + $0x3a0] sm:$0xff]  ;;  %2022 = vmatpush2.bf16.msra.mxu0 %v2657_v54 }
  0xb1   : > { %v820_v52 = vld [vmem:[%s3365_s28 + $0x680] sm:$0xff]  ;;  %v2650_v55 = vcombine.high %v724_v50, %v728_v51  ;;  %2761 = vmatprep.subr.msk.bf16.mxu1 %vm1980_vm1, %v2754_v48  ;;  %v1982_v56 = vsel %vm1980_vm1, %v2753_v49, 0  ;;  %v2649_v63 = vcombine.low %v724_v50, %v728_v51  ;;  %v801_v48 = vld [vmem:[%s3365_s28 + $0x5e8] sm:$0xff] }
  0xb2   : > { %v824_v53 = vld [vmem:[%s3365_s28 + $0x6a0] sm:$0xff]  ;;  %2071 = vmatpush2.bf16.msra.mxu1 %v1982_v56  ;;  %v637_v49 = vld [vmem:[%s3365_s28 + $0xc8] sm:$0xff] }
  0xb3   : > { %v2746_v58 = vcombine.high %v820_v52, %v824_v53  ;;  %v716_v59 = vld [vmem:[%s3365_s28 + $0x340] sm:$0xff]  ;;  %2023 = vmatprep.subr.bf16.mxu0 %v2650_v55  ;;  %v2745_v0 = vcombine.low %v820_v52, %v824_v53  ;;  %v641_v50 = vld [vmem:[%s3365_s28 + $0xe8] sm:$0xff]  ;;  %v2571_v52 = vcombine.low %v645_v41, %v649_v42  ;;  %v2724_v53 = vcombine.high %v797_v47, %v801_v48 }
  0xb4   : > { %v720_v60 = vld [vmem:[%s3365_s28 + $0x360] sm:$0xff]  ;;  %2024 = vmatpush2.bf16.msra.mxu0 %v2649_v63  ;;  %v2564_v54 = vcombine.high %v637_v49, %v641_v50  ;;  %v789_v55 = vld [vmem:[%s3365_s28 + $0x588] sm:$0xff] }
  0xb5   : > { %v812_v61 = vld [vmem:[%s3365_s28 + $0x640] sm:$0xff]  ;;  %v2642_v1 = vcombine.high %v716_v59, %v720_v60  ;;  %2072 = vmatprep.subr.bf16.mxu1 %v2746_v58  ;;  %v2641_v9 = vcombine.low %v716_v59, %v720_v60  ;;  %v793_v56 = vld [vmem:[%s3365_s28 + $0x5a8] sm:$0xff]  ;;  %v2723_v60 = vcombine.low %v797_v47, %v801_v48 }
  0xb6   : > { %v816_v62 = vld [vmem:[%s3365_s28 + $0x660] sm:$0xff]  ;;  %2073 = vmatpush2.bf16.msra.mxu1 %v2745_v0  ;;  %v629_v58 = vld [vmem:[%s3365_s28 + $0x88] sm:$0xff] }
  0xb7   : > { %v2738_v3 = vcombine.high %v812_v61, %v816_v62  ;;  %v708_v4 = vld [vmem:[%s3365_s28 + $0x300] sm:$0xff]  ;;  %2025 = vmatprep.subr.bf16.mxu0 %v2642_v1  ;;  %v2737_v10 = vcombine.low %v812_v61, %v816_v62  ;;  %v633_v59 = vld [vmem:[%s3365_s28 + $0xa8] sm:$0xff]  ;;  %v2563_v61 = vcombine.low %v637_v49, %v641_v50  ;;  %v2716_v62 = vcombine.high %v789_v55, %v793_v56 }
  0xb8   : > { %v712_v5 = vld [vmem:[%s3365_s28 + $0x320] sm:$0xff]  ;;  %2026 = vmatpush2.bf16.msra.mxu0 %v2641_v9  ;;  %v2556_v63 = vcombine.high %v629_v58, %v633_v59  ;;  %v781_v0 = vld [vmem:[%s3365_s28 + $0x548] sm:$0xff] }
  0xb9   : > { %v804_v7 = vld [vmem:[%s3365_s28 + $0x600] sm:$0xff]  ;;  %v2634_v11 = vcombine.high %v708_v4, %v712_v5  ;;  %2074 = vmatprep.subr.bf16.mxu1 %v2738_v3  ;;  %v2633_v17 = vcombine.low %v708_v4, %v712_v5  ;;  %v785_v1 = vld [vmem:[%s3365_s28 + $0x568] sm:$0xff]  ;;  %v2715_v5 = vcombine.low %v789_v55, %v793_v56 }
  0xba   : > { %v808_v8 = vld [vmem:[%s3365_s28 + $0x620] sm:$0xff]  ;;  %2075 = vmatpush2.bf16.msra.mxu1 %v2737_v10  ;;  %v621_v3 = vld [vmem:[%s3365_s28 + $0x48] sm:$0xff] }
  0xbb   : > { %v2730_v12 = vcombine.high %v804_v7, %v808_v8  ;;  %v700_v13 = vld [vmem:[%s3365_s28 + $0x2c0] sm:$0xff]  ;;  %2027 = vmatprep.subr.bf16.mxu0 %v2634_v11  ;;  %v2729_v19 = vcombine.low %v804_v7, %v808_v8  ;;  %v625_v4 = vld [vmem:[%s3365_s28 + $0x68] sm:$0xff]  ;;  %v2555_v7 = vcombine.low %v629_v58, %v633_v59  ;;  %v2708_v8 = vcombine.high %v781_v0, %v785_v1 }
  0xbc   : > { %v704_v14 = vld [vmem:[%s3365_s28 + $0x2e0] sm:$0xff]  ;;  %2028 = vmatpush2.bf16.msra.mxu0 %v2633_v17  ;;  %v2548_v9 = vcombine.high %v621_v3, %v625_v4  ;;  %v773_v10 = vld [vmem:[%s3365_s28 + $0x508] sm:$0xff]  ;;  %v2547_v15 = vcombine.low %v621_v3, %v625_v4 }
  0xbd   : > { %v2626_v20 = vcombine.high %v700_v13, %v704_v14  ;;  %2076 = vmatprep.subr.bf16.mxu1 %v2730_v12  ;;  %v692_v22 = vld [vmem:[%s3365_s28 + $0x280] sm:$0xff]  ;;  %v2625_v35 = vcombine.low %v700_v13, %v704_v14  ;;  %v777_v11 = vld [vmem:[%s3365_s28 + $0x528] sm:$0xff]  ;;  %v2707_v14 = vcombine.low %v781_v0, %v785_v1 }
  0xbe   : > { %v696_v23 = vld [vmem:[%s3365_s28 + $0x2a0] sm:$0xff]  ;;  %2077 = vmatpush2.bf16.msra.mxu1 %v2729_v19  ;;  %v613_v12 = vld [vmem:[%s3365_s28 + $0x8] sm:$0xff]  ;;  %v2700_v16 = vcombine.high %v773_v10, %v777_v11 }
  0xbf   : > { %2029 = vmatprep.subr.bf16.mxu0 %v2626_v20  ;;  %v2618_v28 = vcombine.high %v692_v22, %v696_v23  ;;  %2087 = vmatprep.subr.bf16.mxu1 %v2596_v21  ;;  %v684_v30 = vld [vmem:[%s3365_s28 + $0x240] sm:$0xff]  ;;  %v2617_v34 = vcombine.low %v692_v22, %v696_v23  ;;  %v617_v13 = vld [vmem:[%s3365_s28 + $0x28] sm:$0xff]  ;;  %v2699_v23 = vcombine.low %v773_v10, %v777_v11 }
  0xc0   : > { %v688_v31 = vld [vmem:[%s3365_s28 + $0x260] sm:$0xff]  ;;  %2030 = vmatpush2.bf16.msra.mxu0 %v2625_v35  ;;  %v2540_v17 = vcombine.high %v613_v12, %v617_v13  ;;  %v765_v19 = vld [vmem:[%s3365_s28 + $0x4c8] sm:$0xff]  ;;  %v2539_v24 = vcombine.low %v613_v12, %v617_v13 }
  0xc1   : > { %2079 = vmatmul.mubr.bf16.vlgmr.msra.gmra.mxu1 %v3445_v26  ;;  %2031 = vmatprep.subr.bf16.mxu0 %v2618_v28  ;;  %v2610_v37 = vcombine.high %v684_v30, %v688_v31  ;;  %v676_v39 = vld [vmem:[%s3365_s28 + $0x200] sm:$0xff]  ;;  %v2609_v43 = vcombine.low %v684_v30, %v688_v31  ;;  %v769_v20 = vld [vmem:[%s3365_s28 + $0x4e8] sm:$0xff] }
  0xc2   : > { %2088 = vmatpush1.bf16.msra.mxu1 %v2595_v27  ;;  %v680_v40 = vld [vmem:[%s3365_s28 + $0x220] sm:$0xff]  ;;  %2119 = vmatprep.mubr.bf16.mxu1 %v3388_v2  ;;  %v733_v21 = vld [vmem:[%s3365_s28 + $0x3c8] sm:$0xff]  ;;  %v2692_v25 = vcombine.high %v765_v19, %v769_v20  ;;  %v2691_v31 = vcombine.low %v765_v19, %v769_v20 }
  0xc3   : > { %2089 = vmatprep.subr.bf16.mxu1 %v2588_v29  ;;  %v2602_v45 = vcombine.high %v676_v39, %v680_v40  ;;  %v2601_v51 = vcombine.low %v676_v39, %v680_v40  ;;  %v737_v22 = vld [vmem:[%s3365_s28 + $0x3e8] sm:$0xff] }
  0xc4   : > { %2032 = vmatpush2.bf16.msra.mxu0 %v2617_v34  ;;  %v2660_v35 = vcombine.high %v733_v21, %v737_v22  ;;  %v757_v27 = vld [vmem:[%s3365_s28 + $0x488] sm:$0xff]  ;;  %v2659_v32 = vcombine.low %v733_v21, %v737_v22 }
  0xc5   : > { %2033 = vmatprep.subr.bf16.mxu0 %v2610_v37  ;;  %v761_v28 = vld [vmem:[%s3365_s28 + $0x4a8] sm:$0xff] }
  0xc6   : > { %2090 = vmatpush1.bf16.msra.mxu1 %v2587_v36  ;;  %v725_v29 = vld [vmem:[%s3365_s28 + $0x388] sm:$0xff]  ;;  %v2684_v33 = vcombine.high %v757_v27, %v761_v28  ;;  %v2683_v40 = vcombine.low %v757_v27, %v761_v28  ;;  %v798_v27 = vld [vmem:[%s3365_s28 + $0x5d0] sm:$0xff] }
  0xc7   : > { %2091 = vmatprep.subr.bf16.mxu1 %v2580_v38  ;;  %v729_v30 = vld [vmem:[%s3365_s28 + $0x3a8] sm:$0xff]  ;;  %v802_v28 = vld [vmem:[%s3365_s28 + $0x5f0] sm:$0xff] }
  0xc8   : > { %2034 = vmatpush2.bf16.msra.mxu0 %v2609_v43  ;;  %v2652_v34 = vcombine.high %v725_v29, %v729_v30  ;;  %v749_v36 = vld [vmem:[%s3365_s28 + $0x448] sm:$0xff]  ;;  %v2651_v41 = vcombine.low %v725_v29, %v729_v30 }
  0xc9   : > { %2035 = vmatprep.subr.bf16.mxu0 %v2602_v45  ;;  %v753_v37 = vld [vmem:[%s3365_s28 + $0x468] sm:$0xff] }
  0xca   : > { %2092 = vmatpush1.bf16.msra.mxu1 %v2579_v44  ;;  %v717_v38 = vld [vmem:[%s3365_s28 + $0x348] sm:$0xff]  ;;  %v2676_v42 = vcombine.high %v749_v36, %v753_v37  ;;  %v2675_v48 = vcombine.low %v749_v36, %v753_v37  ;;  %v790_v36 = vld [vmem:[%s3365_s28 + $0x590] sm:$0xff] }
  0xcb   : > { %2093 = vmatprep.subr.bf16.mxu1 %v2572_v46  ;;  %v721_v39 = vld [vmem:[%s3365_s28 + $0x368] sm:$0xff]  ;;  %v794_v37 = vld [vmem:[%s3365_s28 + $0x5b0] sm:$0xff] }
  0xcc   : > { %2036 = vmatpush2.bf16.msra.mxu0 %v2601_v51  ;;  %v2644_v43 = vcombine.high %v717_v38, %v721_v39  ;;  %v741_v44 = vld [vmem:[%s3365_s28 + $0x408] sm:$0xff]  ;;  %v2643_v49 = vcombine.low %v717_v38, %v721_v39  ;;  %v2725_v39 = vcombine.low %v798_v27, %v802_v28 }
  0xcd   : > { %2128 = vmatprep.subr.bf16.mxu0 %v2724_v53  ;;  %v745_v45 = vld [vmem:[%s3365_s28 + $0x428] sm:$0xff] }
  0xce   : > { %2094 = vmatpush1.bf16.msra.mxu1 %v2571_v52  ;;  %v709_v46 = vld [vmem:[%s3365_s28 + $0x308] sm:$0xff]  ;;  %v2668_v50 = vcombine.high %v741_v44, %v745_v45  ;;  %v2667_v56 = vcombine.low %v741_v44, %v745_v45  ;;  %v782_v44 = vld [vmem:[%s3365_s28 + $0x550] sm:$0xff] }
  0xcf   : > { %2095 = vmatprep.subr.bf16.mxu1 %v2564_v54  ;;  %2038 = vmatmul.mubr.bf16.vlgmr.msra.gmra.mxu0 %v3437_v18  ;;  %v713_v47 = vld [vmem:[%s3365_s28 + $0x328] sm:$0xff]  ;;  %v786_v45 = vld [vmem:[%s3365_s28 + $0x570] sm:$0xff] }
  0xd0   : > { %2129 = vmatpush1.bf16.msra.mxu0 %v2723_v60  ;;  %2764 = vmatprep.mubr.msk.bf16.mxu0 %vm1976_vm0, %v3392_v6  ;;  %v2636_v51 = vcombine.high %v709_v46, %v713_v47  ;;  %v829_v52 = vld [vmem:[%s3365_s28 + $0x6c8] sm:$0xff]  ;;  %v2635_v58 = vcombine.low %v709_v46, %v713_v47  ;;  %v2717_v47 = vcombine.low %v790_v36, %v794_v37 }
  0xd1   : > { %2130 = vmatprep.subr.bf16.mxu0 %v2716_v62  ;;  %v833_v53 = vld [vmem:[%s3365_s28 + $0x6e8] sm:$0x11] }
  0xd2   : > { %2096 = vmatpush1.bf16.msra.mxu1 %v2563_v61  ;;  %v701_v54 = vld [vmem:[%s3365_s28 + $0x2c8] sm:$0xff]  ;;  %v2756_v59 = vcombine.high %v829_v52, %v833_v53  ;;  %v2755_v60 = vcombine.low %v829_v52, %v833_v53  ;;  %v774_v52 = vld [vmem:[%s3365_s28 + $0x510] sm:$0xff] }
  0xd3   : > { %2097 = vmatprep.subr.bf16.mxu1 %v2556_v63  ;;  %v705_v55 = vld [vmem:[%s3365_s28 + $0x2e8] sm:$0xff]  ;;  %v778_v53 = vld [vmem:[%s3365_s28 + $0x530] sm:$0xff] }
  0xd4   : > { %2131 = vmatpush1.bf16.msra.mxu0 %v2715_v5  ;;  %v2628_v61 = vcombine.high %v701_v54, %v705_v55  ;;  %v821_v62 = vld [vmem:[%s3365_s28 + $0x688] sm:$0xff]  ;;  %v2627_v3 = vcombine.low %v701_v54, %v705_v55  ;;  %v1988_v4 = vsel %vm1980_vm1, %v2755_v60, 0  ;;  %v2709_v55 = vcombine.low %v782_v44, %v786_v45  ;;  %v642_v60 = vld [vmem:[%s3365_s28 + $0xf0] sm:$0xff] }
  0xd5   : > { %2132 = vmatprep.subr.bf16.mxu0 %v2708_v8  ;;  %v825_v63 = vld [vmem:[%s3365_s28 + $0x6a8] sm:$0xff] }
  0xd6   : > { %2098 = vmatpush1.bf16.msra.mxu1 %v2555_v7  ;;  %v693_v0 = vld [vmem:[%s3365_s28 + $0x288] sm:$0xff]  ;;  %v2748_v5 = vcombine.high %v821_v62, %v825_v63  ;;  %v2747_v12 = vcombine.low %v821_v62, %v825_v63  ;;  %v770_v62 = vld [vmem:[%s3365_s28 + $0x4f0] sm:$0xff] }
  0xd7   : > { %2099 = vmatprep.subr.bf16.mxu1 %v2548_v9  ;;  %v697_v1 = vld [vmem:[%s3365_s28 + $0x2a8] sm:$0xff] }
  0xd8   : > { %2133 = vmatpush1.bf16.msra.mxu0 %v2707_v14  ;;  %v2620_v7 = vcombine.high %v693_v0, %v697_v1  ;;  %v813_v8 = vld [vmem:[%s3365_s28 + $0x648] sm:$0xff]  ;;  %v2619_v13 = vcombine.low %v693_v0, %v697_v1  ;;  %v2701_v0 = vcombine.low %v774_v52, %v778_v53 }
  0xd9   : > { %2134 = vmatprep.subr.bf16.mxu0 %v2700_v16  ;;  %v817_v9 = vld [vmem:[%s3365_s28 + $0x668] sm:$0xff] }
  0xda   : > { %2100 = vmatpush1.bf16.msra.mxu1 %v2547_v15  ;;  %v685_v10 = vld [vmem:[%s3365_s28 + $0x248] sm:$0xff]  ;;  %v2740_v14 = vcombine.high %v813_v8, %v817_v9  ;;  %v2739_v21 = vcombine.low %v813_v8, %v817_v9  ;;  %v762_v8 = vld [vmem:[%s3365_s28 + $0x4b0] sm:$0xff] }
  0xdb   : > { %2101 = vmatprep.subr.bf16.mxu1 %v2540_v17  ;;  %v689_v11 = vld [vmem:[%s3365_s28 + $0x268] sm:$0xff] }
  0xdc   : > { %2135 = vmatpush1.bf16.msra.mxu0 %v2699_v23  ;;  %v2612_v15 = vcombine.high %v685_v10, %v689_v11  ;;  %v805_v16 = vld [vmem:[%s3365_s28 + $0x608] sm:$0xff]  ;;  %v2611_v22 = vcombine.low %v685_v10, %v689_v11 }
  0xdd   : > { %2136 = vmatprep.subr.bf16.mxu0 %v2692_v25  ;;  %v809_v17 = vld [vmem:[%s3365_s28 + $0x628] sm:$0xff]  ;;  %v670_v25 = vld [vmem:[%s3365_s28 + $0x1d0] sm:$0xff] }
  0xde   : > { %2102 = vmatpush1.bf16.msra.mxu1 %v2539_v24  ;;  %v677_v19 = vld [vmem:[%s3365_s28 + $0x208] sm:$0xff]  ;;  %v2732_v23 = vcombine.high %v805_v16, %v809_v17  ;;  %v2731_v29 = vcombine.low %v805_v16, %v809_v17  ;;  %v754_v16 = vld [vmem:[%s3365_s28 + $0x470] sm:$0xff] }
  0xdf   : > { %2103 = vmatprep.subr.bf16.mxu1 %v2660_v35  ;;  %v681_v20 = vld [vmem:[%s3365_s28 + $0x228] sm:$0xff]  ;;  %v674_v35 = vld [vmem:[%s3365_s28 + $0x1f0] sm:$0xff] }
  0xe0   : > { %2137 = vmatpush1.bf16.msra.mxu0 %v2691_v31  ;;  %v2604_v24 = vcombine.high %v677_v19, %v681_v20  ;;  %v2603_v30 = vcombine.low %v677_v19, %v681_v20  ;;  %v2598_v31 = vcombine.high %v670_v25, %v674_v35  ;;  %v2597_v38 = vcombine.low %v670_v25, %v674_v35  ;;  %v746_v25 = vld [vmem:[%s3365_s28 + $0x430] sm:$0xff] }
  0xe1   : > { %2138 = vmatprep.subr.bf16.mxu0 %v2684_v33  ;;  %v662_v33 = vld [vmem:[%s3365_s28 + $0x190] sm:$0xff] }
  0xe2   : > { %2104 = vmatpush2.bf16.msra.mxu1 %v2659_v32  ;;  %v2726_v32 = vcombine.high %v798_v27, %v802_v28 }
  0xe3   : > { %2105 = vmatprep.subr.bf16.mxu1 %v2652_v34  ;;  %v666_v34 = vld [vmem:[%s3365_s28 + $0x1b0] sm:$0xff] }
  0xe4   : > { %2139 = vmatpush1.bf16.msra.mxu0 %v2683_v40  ;;  %v2590_v40 = vcombine.high %v662_v33, %v666_v34  ;;  %v2589_v46 = vcombine.low %v662_v33, %v666_v34  ;;  %v834_v33 = vld [vmem:[%s3365_s28 + $0x6f0] sm:$0x11] }
  0xe5   : > { %2140 = vmatprep.subr.bf16.mxu0 %v2676_v42  ;;  %v654_v42 = vld [vmem:[%s3365_s28 + $0x150] sm:$0xff] }
  0xe6   : > { %2106 = vmatpush2.bf16.msra.mxu1 %v2651_v41  ;;  %v2718_v41 = vcombine.high %v790_v36, %v794_v37 }
  0xe7   : > { %2107 = vmatprep.subr.bf16.mxu1 %v2644_v43  ;;  %v658_v43 = vld [vmem:[%s3365_s28 + $0x170] sm:$0xff] }
  0xe8   : > { %2141 = vmatpush1.bf16.msra.mxu0 %v2675_v48  ;;  %v2582_v48 = vcombine.high %v654_v42, %v658_v43  ;;  %v2581_v54 = vcombine.low %v654_v42, %v658_v43  ;;  %v822_v42 = vld [vmem:[%s3365_s28 + $0x690] sm:$0xff] }
  0xe9   : > { %2142 = vmatprep.subr.bf16.mxu0 %v2668_v50  ;;  %v646_v50 = vld [vmem:[%s3365_s28 + $0x110] sm:$0xff] }
  0xea   : > { %2108 = vmatpush2.bf16.msra.mxu1 %v2643_v49  ;;  %v2710_v49 = vcombine.high %v782_v44, %v786_v45  ;;  %v826_v43 = vld [vmem:[%s3365_s28 + $0x6b0] sm:$0xff] }
  0xeb   : > { %2109 = vmatprep.subr.bf16.mxu1 %v2636_v51  ;;  %v650_v51 = vld [vmem:[%s3365_s28 + $0x130] sm:$0xff] }
  0xec   : > { %2143 = vmatpush1.bf16.msra.mxu0 %v2667_v56  ;;  %v2574_v56 = vcombine.high %v646_v50, %v650_v51  ;;  %v2573_v63 = vcombine.low %v646_v50, %v650_v51  ;;  %v814_v50 = vld [vmem:[%s3365_s28 + $0x650] sm:$0xff] }
  0xed   : > { %2763 = vmatprep.subr.msk.bf16.mxu0 %vm1980_vm1, %v2756_v59  ;;  %v638_v59 = vld [vmem:[%s3365_s28 + $0xd0] sm:$0xff] }
  0xee   : > { %2110 = vmatpush2.bf16.msra.mxu1 %v2635_v58  ;;  %v2702_v58 = vcombine.high %v774_v52, %v778_v53  ;;  %v2566_v1 = vcombine.high %v638_v59, %v642_v60  ;;  %v2565_v9 = vcombine.low %v638_v59, %v642_v60  ;;  %v818_v51 = vld [vmem:[%s3365_s28 + $0x670] sm:$0xff]  ;;  %v2749_v53 = vcombine.low %v822_v42, %v826_v43 }
  0xef   : > { %2111 = vmatprep.subr.bf16.mxu1 %v2628_v61  ;;  %v766_v61 = vld [vmem:[%s3365_s28 + $0x4d0] sm:$0xff] }
  0xf0   : > { %2153 = vmatpush2.bf16.msra.mxu0 %v1988_v4  ;;  %v630_v4 = vld [vmem:[%s3365_s28 + $0x90] sm:$0xff]  ;;  %v2693_v10 = vcombine.low %v766_v61, %v770_v62 }
  0xf1   : > { %2154 = vmatprep.subr.bf16.mxu0 %v2748_v5  ;;  %v634_v5 = vld [vmem:[%s3365_s28 + $0xb0] sm:$0xff] }
  0xf2   : > { %2112 = vmatpush2.bf16.msra.mxu1 %v2627_v3  ;;  %v2694_v3 = vcombine.high %v766_v61, %v770_v62  ;;  %v2558_v11 = vcombine.high %v630_v4, %v634_v5  ;;  %v2557_v17 = vcombine.low %v630_v4, %v634_v5  ;;  %v806_v59 = vld [vmem:[%s3365_s28 + $0x610] sm:$0xff]  ;;  %v2741_v62 = vcombine.low %v814_v50, %v818_v51  ;;  %v671_v4 = vld [vmem:[%s3365_s28 + $0x1d8] sm:$0xff] }
  0xf3   : > { %2113 = vmatprep.subr.bf16.mxu1 %v2620_v7  ;;  %v758_v7 = vld [vmem:[%s3365_s28 + $0x490] sm:$0xff]  ;;  %v675_v5 = vld [vmem:[%s3365_s28 + $0x1f8] sm:$0xff] }
  0xf4   : > { %2155 = vmatpush2.bf16.msra.mxu0 %v2747_v12  ;;  %v2686_v12 = vcombine.high %v758_v7, %v762_v8  ;;  %v2685_v19 = vcombine.low %v758_v7, %v762_v8  ;;  %v810_v60 = vld [vmem:[%s3365_s28 + $0x630] sm:$0xff] }
  0xf5   : > { %2156 = vmatprep.subr.bf16.mxu0 %v2740_v14  ;;  %v626_v14 = vld [vmem:[%s3365_s28 + $0x70] sm:$0xff]  ;;  %v2733_v8 = vcombine.low %v806_v59, %v810_v60 }
  0xf6   : > { %2114 = vmatpush2.bf16.msra.mxu1 %v2619_v13  ;;  %v622_v13 = vld [vmem:[%s3365_s28 + $0x50] sm:$0xff] }
  0xf7   : > { %2115 = vmatprep.subr.bf16.mxu1 %v2612_v15  ;;  %v750_v15 = vld [vmem:[%s3365_s28 + $0x450] sm:$0xff]  ;;  %v2550_v20 = vcombine.high %v622_v13, %v626_v14  ;;  %v2549_v35 = vcombine.low %v622_v13, %v626_v14  ;;  %v663_v13 = vld [vmem:[%s3365_s28 + $0x198] sm:$0xff] }
  0xf8   : > { %2157 = vmatpush2.bf16.msra.mxu0 %v2739_v21  ;;  %v2678_v21 = vcombine.high %v750_v15, %v754_v16  ;;  %v2677_v27 = vcombine.low %v750_v15, %v754_v16  ;;  %v667_v14 = vld [vmem:[%s3365_s28 + $0x1b8] sm:$0xff]  ;;  %v2599_v16 = vcombine.low %v671_v4, %v675_v5 }
  0xf9   : > { %2158 = vmatprep.subr.bf16.mxu0 %v2732_v23  ;;  %v618_v23 = vld [vmem:[%s3365_s28 + $0x30] sm:$0xff] }
  0xfa   : > { %2116 = vmatpush2.bf16.msra.mxu1 %v2611_v22  ;;  %v614_v22 = vld [vmem:[%s3365_s28 + $0x10] sm:$0xff] }
  0xfb   : > { %2117 = vmatprep.subr.bf16.mxu1 %v2604_v24  ;;  %v742_v24 = vld [vmem:[%s3365_s28 + $0x410] sm:$0xff]  ;;  %v2542_v28 = vcombine.high %v614_v22, %v618_v23  ;;  %v2541_v34 = vcombine.low %v614_v22, %v618_v23  ;;  %v655_v22 = vld [vmem:[%s3365_s28 + $0x158] sm:$0xff] }
  0xfc   : > { %2159 = vmatpush2.bf16.msra.mxu0 %v2731_v29  ;;  %v2670_v29 = vcombine.high %v742_v24, %v746_v25  ;;  %v2669_v36 = vcombine.low %v742_v24, %v746_v25  ;;  %v659_v23 = vld [vmem:[%s3365_s28 + $0x178] sm:$0xff]  ;;  %v2591_v25 = vcombine.low %v663_v13, %v667_v14 }
  0xfd   : > { %2169 = vmatprep.subr.bf16.mxu0 %v2598_v31  ;;  %v738_v31 = vld [vmem:[%s3365_s28 + $0x3f0] sm:$0xff] }
  0xfe   : > { %2118 = vmatpush2.bf16.msra.mxu1 %v2603_v30  ;;  %v734_v30 = vld [vmem:[%s3365_s28 + $0x3d0] sm:$0xff] }
  0xff   : > { %2210 = vmatprep.subr.bf16.mxu1 %v2726_v32  ;;  %2161 = vmatmul.mubr.bf16.vlgmr.msra.gmra.mxu0 %v3445_v26  ;;  %v830_v32 = vld [vmem:[%s3365_s28 + $0x6d0] sm:$0xff]  ;;  %v2662_v37 = vcombine.high %v734_v30, %v738_v31  ;;  %v2661_v44 = vcombine.low %v734_v30, %v738_v31  ;;  %v647_v30 = vld [vmem:[%s3365_s28 + $0x118] sm:$0xff] }
 0x100   : > { %2170 = vmatpush1.bf16.msra.mxu0 %v2597_v38  ;;  %2201 = vmatprep.mubr.bf16.mxu0 %v3388_v2  ;;  %v2758_v38 = vcombine.high %v830_v32, %v834_v33  ;;  %v651_v31 = vld [vmem:[%s3365_s28 + $0x138] sm:$0xff] }
 0x101   : > { %2120 = vmatmul.mubr.bf16.vlgmr.msra.gmra.mxu1 %v3437_v18  ;;  %2171 = vmatprep.subr.bf16.mxu0 %v2590_v40  ;;  %v726_v40 = vld [vmem:[%s3365_s28 + $0x390] sm:$0xff] }
 0x102   : > { %2211 = vmatpush1.bf16.msra.mxu1 %v2725_v39  ;;  %2766 = vmatprep.mubr.msk.bf16.mxu1 %vm1976_vm0, %v3392_v6  ;;  %v2757_v39 = vcombine.low %v830_v32, %v834_v33  ;;  %v2583_v33 = vcombine.low %v655_v22, %v659_v23 }
 0x103   : > { %2212 = vmatprep.subr.bf16.mxu1 %v2718_v41  ;;  %v730_v41 = vld [vmem:[%s3365_s28 + $0x3b0] sm:$0xff] }
 0x104   : > { %2172 = vmatpush1.bf16.msra.mxu0 %v2589_v46  ;;  %v2654_v45 = vcombine.high %v726_v40, %v730_v41  ;;  %v1994_v46 = vsel %vm1980_vm1, %v2757_v39, 0  ;;  %v2653_v52 = vcombine.low %v726_v40, %v730_v41  ;;  %v639_v39 = vld [vmem:[%s3365_s28 + $0xd8] sm:$0xff]  ;;  %v2575_v41 = vcombine.low %v647_v30, %v651_v31 }
 0x105   : > { %2173 = vmatprep.subr.bf16.mxu0 %v2582_v48  ;;  %v718_v48 = vld [vmem:[%s3365_s28 + $0x350] sm:$0xff]  ;;  %v643_v40 = vld [vmem:[%s3365_s28 + $0xf8] sm:$0xff] }
 0x106   : > { %2213 = vmatpush1.bf16.msra.mxu1 %v2717_v47  ;;  %v2750_v47 = vcombine.high %v822_v42, %v826_v43  ;;  %v2568_v43 = vcombine.high %v639_v39, %v643_v40 }
 0x107   : > { %2214 = vmatprep.subr.bf16.mxu1 %v2710_v49  ;;  %v722_v49 = vld [vmem:[%s3365_s28 + $0x370] sm:$0xff] }
 0x108   : > { %2174 = vmatpush1.bf16.msra.mxu0 %v2581_v54  ;;  %v2646_v54 = vcombine.high %v718_v48, %v722_v49  ;;  %v2645_v61 = vcombine.low %v718_v48, %v722_v49  ;;  %v2567_v49 = vcombine.low %v639_v39, %v643_v40  ;;  %v831_v40 = vld [vmem:[%s3365_s28 + $0x6d8] sm:$0xff] }
 0x109   : > { %2175 = vmatprep.subr.bf16.mxu0 %v2574_v56  ;;  %v710_v56 = vld [vmem:[%s3365_s28 + $0x310] sm:$0xff] }
 0x10a   : > { %2215 = vmatpush1.bf16.msra.mxu1 %v2709_v55  ;;  %v2742_v55 = vcombine.high %v814_v50, %v818_v51 }
 0x10b   : > { %2216 = vmatprep.subr.bf16.mxu1 %v2702_v58  ;;  %v714_v58 = vld [vmem:[%s3365_s28 + $0x330] sm:$0xff] }
 0x10c   : > { %2176 = vmatpush1.bf16.msra.mxu0 %v2573_v63  ;;  %v2638_v63 = vcombine.high %v710_v56, %v714_v58  ;;  %v2637_v7 = vcombine.low %v710_v56, %v714_v58 }
 0x10d   : > { %2177 = vmatprep.subr.bf16.mxu0 %v2566_v1  ;;  %v702_v1 = vld [vmem:[%s3365_s28 + $0x2d0] sm:$0xff] }
 0x10e   : > { %2217 = vmatpush1.bf16.msra.mxu1 %v2701_v0  ;;  %v2734_v0 = vcombine.high %v806_v59, %v810_v60 }
 0x10f   : > { %2218 = vmatprep.subr.bf16.mxu1 %v2694_v3  ;;  %v706_v3 = vld [vmem:[%s3365_s28 + $0x2f0] sm:$0xff] }
 0x110   : > { %2178 = vmatpush1.bf16.msra.mxu0 %v2565_v9  ;;  %v2630_v9 = vcombine.high %v702_v1, %v706_v3  ;;  %v2629_v15 = vcombine.low %v702_v1, %v706_v3 }
 0x111   : > { %2179 = vmatprep.subr.bf16.mxu0 %v2558_v11  ;;  %v694_v11 = vld [vmem:[%s3365_s28 + $0x290] sm:$0xff] }
 0x112   : > { %2219 = vmatpush1.bf16.msra.mxu1 %v2693_v10  ;;  %v2600_v10 = vcombine.high %v671_v4, %v675_v5  ;;  %v767_v5 = vld [vmem:[%s3365_s28 + $0x4d8] sm:$0xff] }
 0x113   : > { %2220 = vmatprep.subr.bf16.mxu1 %v2686_v12  ;;  %v698_v12 = vld [vmem:[%s3365_s28 + $0x2b0] sm:$0xff] }
 0x114   : > { %2180 = vmatpush1.bf16.msra.mxu0 %v2557_v17  ;;  %v2622_v17 = vcombine.high %v694_v11, %v698_v12  ;;  %v2621_v24 = vcombine.low %v694_v11, %v698_v12 }
 0x115   : > { %2181 = vmatprep.subr.bf16.mxu0 %v2550_v20  ;;  %v686_v20 = vld [vmem:[%s3365_s28 + $0x250] sm:$0xff] }
 0x116   : > { %2221 = vmatpush1.bf16.msra.mxu1 %v2685_v19  ;;  %v2592_v19 = vcombine.high %v663_v13, %v667_v14  ;;  %v759_v14 = vld [vmem:[%s3365_s28 + $0x498] sm:$0xff] }
 0x117   : > { %2222 = vmatprep.subr.bf16.mxu1 %v2678_v21  ;;  %v690_v21 = vld [vmem:[%s3365_s28 + $0x270] sm:$0xff] }
 0x118   : > { %2182 = vmatpush1.bf16.msra.mxu0 %v2549_v35  ;;  %v2614_v35 = vcombine.high %v686_v20, %v690_v21  ;;  %v2613_v32 = vcombine.low %v686_v20, %v690_v21 }
 0x119   : > { %2183 = vmatprep.subr.bf16.mxu0 %v2542_v28  ;;  %v678_v28 = vld [vmem:[%s3365_s28 + $0x210] sm:$0xff] }
 0x11a   : > { %2223 = vmatpush1.bf16.msra.mxu1 %v2677_v27  ;;  %v2584_v27 = vcombine.high %v655_v22, %v659_v23  ;;  %v751_v23 = vld [vmem:[%s3365_s28 + $0x458] sm:$0xff] }
 0x11b   : > { %2224 = vmatprep.subr.bf16.mxu1 %v2670_v29  ;;  %v682_v29 = vld [vmem:[%s3365_s28 + $0x230] sm:$0xff] }
 0x11c   : > { %2184 = vmatpush1.bf16.msra.mxu0 %v2541_v34  ;;  %v2606_v34 = vcombine.high %v678_v28, %v682_v29 }
 0x11d   : > { %2185 = vmatprep.subr.bf16.mxu0 %v2662_v37  ;;  %v799_v37 = vld [vmem:[%s3365_s28 + $0x5d8] sm:$0xff] }
 0x11e   : > { %2225 = vmatpush1.bf16.msra.mxu1 %v2669_v36  ;;  %v2576_v36 = vcombine.high %v647_v30, %v651_v31  ;;  %v743_v31 = vld [vmem:[%s3365_s28 + $0x418] sm:$0xff] }
 0x11f   : > { %2765 = vmatprep.subr.msk.bf16.mxu1 %vm1980_vm1, %v2758_v38  ;;  %v803_v38 = vld [vmem:[%s3365_s28 + $0x5f8] sm:$0xff] }
 0x120   : > { %2186 = vmatpush2.bf16.msra.mxu0 %v2661_v44  ;;  %v2728_v42 = vcombine.high %v799_v37, %v803_v38  ;;  %v791_v44 = vld [vmem:[%s3365_s28 + $0x598] sm:$0xff]  ;;  %v2727_v48 = vcombine.low %v799_v37, %v803_v38 }
 0x121   : > { %2187 = vmatprep.subr.bf16.mxu0 %v2654_v45  ;;  %v795_v45 = vld [vmem:[%s3365_s28 + $0x5b8] sm:$0xff] }
 0x122   : > { %2235 = vmatpush2.bf16.msra.mxu1 %v1994_v46  ;;  %v631_v46 = vld [vmem:[%s3365_s28 + $0x98] sm:$0xff]  ;;  %v2720_v50 = vcombine.high %v791_v44, %v795_v45  ;;  %v2719_v56 = vcombine.low %v791_v44, %v795_v45 }
 0x123   : > { %2236 = vmatprep.subr.bf16.mxu1 %v2750_v47  ;;  %v635_v47 = vld [vmem:[%s3365_s28 + $0xb8] sm:$0xff] }
 0x124   : > { %2188 = vmatpush2.bf16.msra.mxu0 %v2653_v52  ;;  %v2560_v51 = vcombine.high %v631_v46, %v635_v47  ;;  %v783_v52 = vld [vmem:[%s3365_s28 + $0x558] sm:$0xff]  ;;  %v2559_v58 = vcombine.low %v631_v46, %v635_v47 }
 0x125   : > { %2189 = vmatprep.subr.bf16.mxu0 %v2646_v54  ;;  %v623_v54 = vld [vmem:[%s3365_s28 + $0x58] sm:$0xff] }
 0x126   : > { %2237 = vmatpush2.bf16.msra.mxu1 %v2749_v53  ;;  %v787_v53 = vld [vmem:[%s3365_s28 + $0x578] sm:$0xff] }
 0x127   : > { %2238 = vmatprep.subr.bf16.mxu1 %v2742_v55  ;;  %v627_v55 = vld [vmem:[%s3365_s28 + $0x78] sm:$0xff]  ;;  %v2712_v59 = vcombine.high %v783_v52, %v787_v53  ;;  %v2711_v1 = vcombine.low %v783_v52, %v787_v53 }
 0x128   : > { %2190 = vmatpush2.bf16.msra.mxu0 %v2645_v61  ;;  %v2552_v60 = vcombine.high %v623_v54, %v627_v55  ;;  %v775_v61 = vld [vmem:[%s3365_s28 + $0x518] sm:$0xff]  ;;  %v2551_v3 = vcombine.low %v623_v54, %v627_v55 }
 0x129   : > { %2191 = vmatprep.subr.bf16.mxu0 %v2638_v63  ;;  %v615_v63 = vld [vmem:[%s3365_s28 + $0x18] sm:$0xff] }
 0x12a   : > { %2239 = vmatpush2.bf16.msra.mxu1 %v2741_v62  ;;  %v779_v62 = vld [vmem:[%s3365_s28 + $0x538] sm:$0xff] }
 0x12b   : > { %2240 = vmatprep.subr.bf16.mxu1 %v2734_v0  ;;  %v619_v0 = vld [vmem:[%s3365_s28 + $0x38] sm:$0xff] }
 0x12c   : > { %2192 = vmatpush2.bf16.msra.mxu0 %v2637_v7  ;;  %v2544_v4 = vcombine.high %v615_v63, %v619_v0  ;;  %v771_v7 = vld [vmem:[%s3365_s28 + $0x4f8] sm:$0xff]  ;;  %v2543_v11 = vcombine.low %v615_v63, %v619_v0 }
 0x12d   : > { %2193 = vmatprep.subr.bf16.mxu0 %v2630_v9  ;;  %v739_v9 = vld [vmem:[%s3365_s28 + $0x3f8] sm:$0xff]  ;;  %v2696_v12 = vcombine.high %v767_v5, %v771_v7 }
 0x12e   : > { %2241 = vmatpush2.bf16.msra.mxu1 %v2733_v8  ;;  %v735_v8 = vld [vmem:[%s3365_s28 + $0x3d8] sm:$0xff] }
 0x12f   : > { %2251 = vmatprep.subr.bf16.mxu1 %v2600_v10  ;;  %v2703_v10 = vcombine.low %v775_v61, %v779_v62  ;;  %v2664_v13 = vcombine.high %v735_v8, %v739_v9  ;;  %v2663_v20 = vcombine.low %v735_v8, %v739_v9 }
 0x130   : > { %2194 = vmatpush2.bf16.msra.mxu0 %v2629_v15  ;;  %v763_v15 = vld [vmem:[%s3365_s28 + $0x4b8] sm:$0xff] }
 0x131   : > { %2243 = vmatmul.mubr.bf16.vlgmr.msra.gmra.mxu1 %v3445_v26  ;;  %2195 = vmatprep.subr.bf16.mxu0 %v2622_v17  ;;  %v731_v17 = vld [vmem:[%s3365_s28 + $0x3b8] sm:$0xff]  ;;  %v2688_v21 = vcombine.high %v759_v14, %v763_v15 }
 0x132   : > { %2252 = vmatpush1.bf16.msra.mxu1 %v2599_v16  ;;  %2283 = vmatprep.mubr.bf16.mxu1 %v3388_v2  ;;  %v2605_v2 = vcombine.low %v678_v28, %v682_v29  ;;  %v727_v16 = vld [vmem:[%s3365_s28 + $0x398] sm:$0xff] }
 0x133   : > { %2253 = vmatprep.subr.bf16.mxu1 %v2592_v19  ;;  %v2695_v19 = vcombine.low %v767_v5, %v771_v7  ;;  %v2656_v22 = vcombine.high %v727_v16, %v731_v17  ;;  %v2655_v28 = vcombine.low %v727_v16, %v731_v17 }
 0x134   : > { %2196 = vmatpush2.bf16.msra.mxu0 %v2621_v24  ;;  %v755_v24 = vld [vmem:[%s3365_s28 + $0x478] sm:$0xff] }
 0x135   : > { %2197 = vmatprep.subr.bf16.mxu0 %v2614_v35  ;;  %v723_v35 = vld [vmem:[%s3365_s28 + $0x378] sm:$0xff]  ;;  %v2680_v29 = vcombine.high %v751_v23, %v755_v24 }
 0x136   : > { %2254 = vmatpush1.bf16.msra.mxu1 %v2591_v25  ;;  %v719_v25 = vld [vmem:[%s3365_s28 + $0x358] sm:$0xff] }
 0x137   : > { %2255 = vmatprep.subr.bf16.mxu1 %v2584_v27  ;;  %v2687_v27 = vcombine.low %v759_v14, %v763_v15  ;;  %v2648_v30 = vcombine.high %v719_v25, %v723_v35  ;;  %v2647_v37 = vcombine.low %v719_v25, %v723_v35 }
 0x138   : > { %2198 = vmatpush2.bf16.msra.mxu0 %v2613_v32  ;;  %v747_v32 = vld [vmem:[%s3365_s28 + $0x438] sm:$0xff] }
 0x139   : > { %2199 = vmatprep.subr.bf16.mxu0 %v2606_v34  ;;  %v715_v34 = vld [vmem:[%s3365_s28 + $0x338] sm:$0xff]  ;;  %v2672_v38 = vcombine.high %v743_v31, %v747_v32 }
 0x13a   : > { %2256 = vmatpush1.bf16.msra.mxu1 %v2583_v33  ;;  %v711_v33 = vld [vmem:[%s3365_s28 + $0x318] sm:$0xff] }
 0x13b   : > { %2257 = vmatprep.subr.bf16.mxu1 %v2576_v36  ;;  %v2679_v36 = vcombine.low %v751_v23, %v755_v24  ;;  %v2640_v39 = vcombine.high %v711_v33, %v715_v34  ;;  %v2639_v44 = vcombine.low %v711_v33, %v715_v34 }
 0x13c   : > { %2200 = vmatpush2.bf16.msra.mxu0 %v2605_v2  ;;  %v835_v2 = vld [vmem:[%s3365_s28 + $0x6f8] sm:$0x11] }
 0x13d   : > { %2292 = vmatprep.subr.bf16.mxu0 %v2728_v42  ;;  %v707_v42 = vld [vmem:[%s3365_s28 + $0x2f8] sm:$0xff]  ;;  %v2760_v45 = vcombine.high %v831_v40, %v835_v2  ;;  %v2759_v46 = vcombine.low %v831_v40, %v835_v2 }
 0x13e   : > { %2258 = vmatpush1.bf16.msra.mxu1 %v2575_v41  ;;  %v703_v41 = vld [vmem:[%s3365_s28 + $0x2d8] sm:$0xff] }
 0x13f   : > { %2259 = vmatprep.subr.bf16.mxu1 %v2568_v43  ;;  %2202 = vmatmul.mubr.bf16.vlgmr.msra.gmra.mxu0 %v3437_v18  ;;  %v2671_v43 = vcombine.low %v743_v31, %v747_v32  ;;  %v2632_v47 = vcombine.high %v703_v41, %v707_v42  ;;  %v2631_v52 = vcombine.low %v703_v41, %v707_v42  ;;  %v2000_v53 = vsel %vm1980_vm1, %v2759_v46, 0 }
 0x140   : > { %2293 = vmatpush1.bf16.msra.mxu0 %v2727_v48  ;;  %2768 = vmatprep.mubr.msk.bf16.mxu0 %vm1976_vm0, %v3392_v6  ;;  %v2704_v6 = vcombine.high %v775_v61, %v779_v62  ;;  %v823_v48 = vld [vmem:[%s3365_s28 + $0x698] sm:$0xff] }
 0x141   : > { %2294 = vmatprep.subr.bf16.mxu0 %v2720_v50  ;;  %v695_v50 = vld [vmem:[%s3365_s28 + $0x298] sm:$0xff] }
 0x142   : > { %2260 = vmatpush1.bf16.msra.mxu1 %v2567_v49  ;;  %v827_v49 = vld [vmem:[%s3365_s28 + $0x6b8] sm:$0xff] }
 0x143   : > { %2261 = vmatprep.subr.bf16.mxu1 %v2560_v51  ;;  %v699_v51 = vld [vmem:[%s3365_s28 + $0x2b8] sm:$0xff]  ;;  %v2752_v54 = vcombine.high %v823_v48, %v827_v49  ;;  %v2751_v61 = vcombine.low %v823_v48, %v827_v49 }
 0x144   : > { %2295 = vmatpush1.bf16.msra.mxu0 %v2719_v56  ;;  %v2624_v55 = vcombine.high %v695_v50, %v699_v51  ;;  %v815_v56 = vld [vmem:[%s3365_s28 + $0x658] sm:$0xff]  ;;  %v2623_v62 = vcombine.low %v695_v50, %v699_v51 }
 0x145   : > { %2296 = vmatprep.subr.bf16.mxu0 %v2712_v59  ;;  %v687_v59 = vld [vmem:[%s3365_s28 + $0x258] sm:$0xff] }
 0x146   : > { %2262 = vmatpush1.bf16.msra.mxu1 %v2559_v58  ;;  %v819_v58 = vld [vmem:[%s3365_s28 + $0x678] sm:$0xff] }
 0x147   : > { %2263 = vmatprep.subr.bf16.mxu1 %v2552_v60  ;;  %v691_v60 = vld [vmem:[%s3365_s28 + $0x278] sm:$0xff]  ;;  %v2744_v63 = vcombine.high %v815_v56, %v819_v58  ;;  %v2743_v5 = vcombine.low %v815_v56, %v819_v58 }
 0x148   : > { %2297 = vmatpush1.bf16.msra.mxu0 %v2711_v1  ;;  %v2616_v0 = vcombine.high %v687_v59, %v691_v60  ;;  %v807_v1 = vld [vmem:[%s3365_s28 + $0x618] sm:$0xff]  ;;  %v2615_v7 = vcombine.low %v687_v59, %v691_v60 }
 0x149   : > { %2298 = vmatprep.subr.bf16.mxu0 %v2704_v6  ;;  %v679_v6 = vld [vmem:[%s3365_s28 + $0x218] sm:$0xff] }
 0x14a   : > { %2264 = vmatpush1.bf16.msra.mxu1 %v2551_v3  ;;  %v811_v3 = vld [vmem:[%s3365_s28 + $0x638] sm:$0xff] }
 0x14b   : > { %2265 = vmatprep.subr.bf16.mxu1 %v2544_v4  ;;  %v683_v4 = vld [vmem:[%s3365_s28 + $0x238] sm:$0xff]  ;;  %v2736_v8 = vcombine.high %v807_v1, %v811_v3 }
 0x14c   : > { %2299 = vmatpush1.bf16.msra.mxu0 %v2703_v10  ;;  %v2608_v9 = vcombine.high %v679_v6, %v683_v4  ;;  %v2735_v10 = vcombine.low %v807_v1, %v811_v3 }
 0x14d   : > { %2300 = vmatprep.subr.bf16.mxu0 %v2696_v12 }
 0x14e   : > { %2266 = vmatpush1.bf16.msra.mxu1 %v2543_v11  ;;  %v2607_v11 = vcombine.low %v679_v6, %v683_v4 }
 0x14f   : > { %2267 = vmatprep.subr.bf16.mxu1 %v2664_v13 }
 0x150   : > { %2301 = vmatpush1.bf16.msra.mxu0 %v2695_v19 }
 0x151   : > { %2302 = vmatprep.subr.bf16.mxu0 %v2688_v21 }
 0x152   : > { %2268 = vmatpush2.bf16.msra.mxu1 %v2663_v20 }
 0x153   : > { %2269 = vmatprep.subr.bf16.mxu1 %v2656_v22 }
 0x154   : > { %2303 = vmatpush1.bf16.msra.mxu0 %v2687_v27 }
 0x155   : > { %2304 = vmatprep.subr.bf16.mxu0 %v2680_v29 }
 0x156   : > { %2270 = vmatpush2.bf16.msra.mxu1 %v2655_v28 }
 0x157   : > { %2271 = vmatprep.subr.bf16.mxu1 %v2648_v30 }
 0x158   : > { %2305 = vmatpush1.bf16.msra.mxu0 %v2679_v36 }
 0x159   : > { %2306 = vmatprep.subr.bf16.mxu0 %v2672_v38 }
 0x15a   : > { %2272 = vmatpush2.bf16.msra.mxu1 %v2647_v37 }
 0x15b   : > { %2273 = vmatprep.subr.bf16.mxu1 %v2640_v39 }
 0x15c   : > { %2307 = vmatpush1.bf16.msra.mxu0 %v2671_v43 }
 0x15d   : > { %2767 = vmatprep.subr.msk.bf16.mxu0 %vm1980_vm1, %v2760_v45 }
 0x15e   : > { %2274 = vmatpush2.bf16.msra.mxu1 %v2639_v44 }
 0x15f   : > { %2275 = vmatprep.subr.bf16.mxu1 %v2632_v47 }
 0x160   : > { %2317 = vmatpush2.bf16.msra.mxu0 %v2000_v53 }
 0x161   : > { %2318 = vmatprep.subr.bf16.mxu0 %v2752_v54 }
 0x162   : > { %2276 = vmatpush2.bf16.msra.mxu1 %v2631_v52 }
 0x163   : > { %2277 = vmatprep.subr.bf16.mxu1 %v2624_v55 }
 0x164   : > { %2319 = vmatpush2.bf16.msra.mxu0 %v2751_v61 }
 0x165   : > { %2320 = vmatprep.subr.bf16.mxu0 %v2744_v63 }
 0x166   : > { %2278 = vmatpush2.bf16.msra.mxu1 %v2623_v62 }
 0x167   : > { %2279 = vmatprep.subr.bf16.mxu1 %v2616_v0 }
 0x168   : > { %2321 = vmatpush2.bf16.msra.mxu0 %v2743_v5 }
 0x169   : > { %2322 = vmatprep.subr.bf16.mxu0 %v2736_v8 }
 0x16a   : > { %2280 = vmatpush2.bf16.msra.mxu1 %v2615_v7 }
 0x16b   : > { %2281 = vmatprep.subr.bf16.mxu1 %v2608_v9 }
 0x16c   : > { %2323 = vmatpush2.bf16.msra.mxu0 %v2735_v10 }
 0x16e   : > { %2282 = vmatpush2.bf16.msra.mxu1 %v2607_v11 }
 0x16f   : > { %2325 = vmatmul.mubr.bf16.vlgmr.msra.gmra.mxu0 %v3445_v26 }
 0x171   : > { %2284 = vmatmul.mubr.bf16.vlgmr.msra.gmra.mxu1 %v3437_v18 }
 0x181   : > { %v2080_v12 = vpop.f32.mrf.mxu1 }
 0x183   : > { %v2082_v13 = vpop.f32.mrf.mxu1 }
 0x185   : > { %v2084_v14 = vpop.f32.mrf.mxu1 }
 0x187   : > { %v2085_v15 = vpop.f32.mrf.mxu1 }
 0x18f   : > { %v2039_v16 = vpop.f32.mrf.mxu0 }
 0x190   : > { %v2081_v17 = vadd.f32 %v2080_v12, %v2039_v16 }
 0x191   : > { %v2041_v19 = vpop.f32.mrf.mxu0 }
 0x192   : > { %v2333_v20 = vand.u32 2147483647, %v2081_v17  ;;  %v2083_v21 = vadd.f32 %v2082_v13, %v2041_v19  ;;  %vm2365_vm2 = vcmp.ge.f32.partialorder %v2081_v17, 0.0 }
 0x193   : > { %v2043_v22 = vpop.f32.mrf.mxu0 }
 0x194   : > { %v2341_v23 = vsub.f32 0.0, %v2333_v20  ;;  %v2334_v24 = vand.u32 2147483647, %v2083_v21  ;;  %vm2366_vm3 = vcmp.ge.f32.partialorder %v2083_v21, 0.0 }
 0x195   : > { %v2044_v25 = vpop.f32.mrf.mxu0 }
 0x196   : > { %v2349_v35 = vmul.f32 1.442695, %v2341_v23  ;;  %v2342_v27 = vsub.f32 0.0, %v2334_v24 }
 0x198   : > { %2799 = vpow2.f32 %v2349_v35  ;;  %v2351_v28 = vmul.f32 1.442695, %v2342_v27 }
 0x19a   : > { %2801 = vpow2.f32 %v2351_v28 }
 0x1a5   : > { %v2800_v26 = vpop.eup %2799 }
 0x1a6   : > { %v2373_v18 = vadd.f32 1.0, %v2800_v26 }
 0x1a7   : > { %v2802_v29 = vpop.eup %2801 }
 0x1a8   : > { %2803 = vrcp.f32 %v2373_v18  ;;  %v2374_v30 = vadd.f32 1.0, %v2802_v29 }
 0x1aa   : > { %2805 = vrcp.f32 %v2374_v30 }
 0x1b5   : > { %v2804_v31 = vpop.eup %2803 }
 0x1b6   : > { %v2397_v32 = vmul.f32 %v2804_v31, %v2800_v26 }
 0x1b7   : > { %v2806_v33 = vpop.eup %2805 }
 0x1b8   : > { %v2398_v34 = vmul.f32 %v2806_v33, %v2802_v29  ;;  %v2405_v36 = vsel %vm2365_vm2, %v2804_v31, %v2397_v32 }
 0x1ba   : > { %v2406_v37 = vsel %vm2366_vm3, %v2806_v33, %v2398_v34 }
 0x1bb   : > { %v2421_v38 = vcombine.low %v2405_v36, %v2406_v37 }
 0x1bd   : > { %v3639_v3 = vrot.slane %v2421_v38, %v3381_v57 }
 0x1bf   : > { %v2162_v39 = vpop.f32.mrf.mxu0 }
 0x1c1   : > { %v2121_v40 = vpop.f32.mrf.mxu1  ;;  %v2164_v41 = vpop.f32.mrf.mxu0 }
 0x1c2   : > { %v2163_v2 = vadd.f32 %v2162_v39, %v2121_v40 }
 0x1c3   : > { %v2123_v42 = vpop.f32.mrf.mxu1  ;;  %v2166_v45 = vpop.f32.mrf.mxu0 }
 0x1c4   : > { %v2335_v43 = vand.u32 2147483647, %v2163_v2  ;;  %v2165_v44 = vadd.f32 %v2164_v41, %v2123_v42  ;;  %vm2367_vm4 = vcmp.ge.f32.partialorder %v2163_v2, 0.0 }
 0x1c5   : > { %v2125_v46 = vpop.f32.mrf.mxu1  ;;  %v2167_v49 = vpop.f32.mrf.mxu0 }
 0x1c6   : > { %v2343_v47 = vsub.f32 0.0, %v2335_v43  ;;  %v2336_v48 = vand.u32 2147483647, %v2165_v44  ;;  %vm2368_vm5 = vcmp.ge.f32.partialorder %v2165_v44, 0.0 }
 0x1c7   : > { %v2126_v50 = vpop.f32.mrf.mxu1 }
 0x1c8   : > { %v2353_v51 = vmul.f32 1.442695, %v2343_v47  ;;  %v2344_v52 = vsub.f32 0.0, %v2336_v48 }
 0x1ca   : > { %2807 = vpow2.f32 %v2353_v51  ;;  %v2355_v53 = vmul.f32 1.442695, %v2344_v52 }
 0x1cc   : > { %2809 = vpow2.f32 %v2355_v53 }
 0x1d7   : > { %v2808_v54 = vpop.eup %2807 }
 0x1d8   : > { %v2375_v55 = vadd.f32 1.0, %v2808_v54 }
 0x1d9   : > { %v2810_v56 = vpop.eup %2809 }
 0x1da   : > { %2811 = vrcp.f32 %v2375_v55  ;;  %v2376_v58 = vadd.f32 1.0, %v2810_v56 }
 0x1dc   : > { %2813 = vrcp.f32 %v2376_v58 }
 0x1e7   : > { %v2812_v59 = vpop.eup %2811 }
 0x1e8   : > { %v2399_v60 = vmul.f32 %v2812_v59, %v2808_v54 }
 0x1e9   : > { %v2814_v61 = vpop.eup %2813 }
 0x1ea   : > { %v2400_v62 = vmul.f32 %v2814_v61, %v2810_v56  ;;  %v2407_v63 = vsel %vm2367_vm4, %v2812_v59, %v2399_v60 }
 0x1ec   : > { %v2408_v0 = vsel %vm2368_vm5, %v2814_v61, %v2400_v62 }
 0x1ed   : > { %v2422_v1 = vcombine.low %v2407_v63, %v2408_v0 }
 0x1ef   : > { %v3642_v6 = vrot.slane %v2422_v1, %v3381_v57 }
 0x1f1   : > { %v2453_v4 = vcombine.low %v3639_v3, %v3642_v6  ;;  %v2244_v5 = vpop.f32.mrf.mxu1 }
 0x1f3   : > { %v2246_v7 = vpop.f32.mrf.mxu1  ;;  %v2461_v63 = vrot.slane %v2453_v4, %v3381_v57 }
 0x1f5   : > { %v2248_v8 = vpop.f32.mrf.mxu1 }
 0x1f7   : > { %v2249_v9 = vpop.f32.mrf.mxu1 }
 0x1ff   : > { %v2203_v10 = vpop.f32.mrf.mxu0 }
 0x200   : > { %v2245_v11 = vadd.f32 %v2244_v5, %v2203_v10 }
 0x201   : > { %v2205_v12 = vpop.f32.mrf.mxu0 }
 0x202   : > { %v2337_v13 = vand.u32 2147483647, %v2245_v11  ;;  %v2247_v14 = vadd.f32 %v2246_v7, %v2205_v12  ;;  %vm2369_vm6 = vcmp.ge.f32.partialorder %v2245_v11, 0.0 }
 0x203   : > { %v2207_v15 = vpop.f32.mrf.mxu0 }
 0x204   : > { %v2345_v16 = vsub.f32 0.0, %v2337_v13  ;;  %v2338_v17 = vand.u32 2147483647, %v2247_v14  ;;  %vm2370_vm7 = vcmp.ge.f32.partialorder %v2247_v14, 0.0 }
 0x205   : > { %v2208_v19 = vpop.f32.mrf.mxu0 }
 0x206   : > { %v2357_v20 = vmul.f32 1.442695, %v2345_v16  ;;  %v2346_v21 = vsub.f32 0.0, %v2338_v17 }
 0x208   : > { %2815 = vpow2.f32 %v2357_v20  ;;  %v2359_v22 = vmul.f32 1.442695, %v2346_v21 }
 0x20a   : > { %2817 = vpow2.f32 %v2359_v22 }
 0x215   : > { %v2816_v23 = vpop.eup %2815 }
 0x216   : > { %v2377_v24 = vadd.f32 1.0, %v2816_v23 }
 0x217   : > { %v2818_v25 = vpop.eup %2817 }
 0x218   : > { %2819 = vrcp.f32 %v2377_v24  ;;  %v2378_v35 = vadd.f32 1.0, %v2818_v25 }
 0x21a   : > { %2821 = vrcp.f32 %v2378_v35 }
 0x225   : > { %v2820_v27 = vpop.eup %2819 }
 0x226   : > { %v2401_v28 = vmul.f32 %v2820_v27, %v2816_v23 }
 0x227   : > { %v2822_v26 = vpop.eup %2821 }
 0x228   : > { %v2402_v18 = vmul.f32 %v2822_v26, %v2818_v25  ;;  %v2409_v29 = vsel %vm2369_vm6, %v2820_v27, %v2401_v28 }
 0x22a   : > { %v2410_v30 = vsel %vm2370_vm7, %v2822_v26, %v2402_v18 }
 0x22b   : > { %v2423_v31 = vcombine.low %v2409_v29, %v2410_v30 }
 0x22d   : > { %v2445_v60 = vrot.slane %v2423_v31, %v3381_v57 }
 0x22f   : > { %v2326_v32 = vpop.f32.mrf.mxu0 }
 0x231   : > { %v2285_v33 = vpop.f32.mrf.mxu1  ;;  %v2328_v36 = vpop.f32.mrf.mxu0 }
 0x232   : > { %v2327_v34 = vadd.f32 %v2326_v32, %v2285_v33 }
 0x233   : > { %v2287_v37 = vpop.f32.mrf.mxu1  ;;  %v2330_v40 = vpop.f32.mrf.mxu0 }
 0x234   : > { %v2339_v38 = vand.u32 2147483647, %v2327_v34  ;;  %v2329_v39 = vadd.f32 %v2328_v36, %v2287_v37  ;;  %vm2371_vm8 = vcmp.ge.f32.partialorder %v2327_v34, 0.0 }
 0x235   : > { %v2289_v2 = vpop.f32.mrf.mxu1  ;;  %v2331_v43 = vpop.f32.mrf.mxu0 }
 0x236   : > { %v2347_v41 = vsub.f32 0.0, %v2339_v38  ;;  %v2340_v42 = vand.u32 2147483647, %v2329_v39  ;;  %vm2372_vm9 = vcmp.ge.f32.partialorder %v2329_v39, 0.0 }
 0x237   : > { %v2290_v44 = vpop.f32.mrf.mxu1 }
 0x238   : > { %v2361_v45 = vmul.f32 1.442695, %v2347_v41  ;;  %v2348_v46 = vsub.f32 0.0, %v2340_v42 }
 0x23a   : > { %2823 = vpow2.f32 %v2361_v45  ;;  %v2363_v47 = vmul.f32 1.442695, %v2348_v46 }
 0x23c   : > { %2825 = vpow2.f32 %v2363_v47 }
 0x247   : > { %v2824_v48 = vpop.eup %2823 }
 0x248   : > { %v2379_v49 = vadd.f32 1.0, %v2824_v48 }
 0x249   : > { %v2826_v50 = vpop.eup %2825 }
 0x24a   : > { %2827 = vrcp.f32 %v2379_v49  ;;  %v2380_v51 = vadd.f32 1.0, %v2826_v50 }
 0x24c   : > { %2829 = vrcp.f32 %v2380_v51 }
 0x257   : > { %v2828_v52 = vpop.eup %2827 }
 0x258   : > { %v2403_v53 = vmul.f32 %v2828_v52, %v2824_v48 }
 0x259   : > { %v2830_v54 = vpop.eup %2829 }
 0x25a   : > { %v2404_v55 = vmul.f32 %v2830_v54, %v2826_v50  ;;  %v2411_v56 = vsel %vm2371_vm8, %v2828_v52, %v2403_v53 }
 0x25c   : > { %v2412_v58 = vsel %vm2372_vm9, %v2830_v54, %v2404_v55 }
 0x25d   : > { %v2424_v59 = vcombine.low %v2411_v56, %v2412_v58 }
 0x25f   : > { %v2452_v61 = vrot.slane %v2424_v59, %v3381_v57 }
 0x261   : > { %v2454_v62 = vcombine.low %v2445_v60, %v2452_v61 }
 0x263   : > { %v2468_v0 = vrot.slane %v2454_v62, %v3381_v57 }
 0x265   : > { %v2469_v1 = vcombine.low %v2461_v63, %v2468_v0 }
 0x267   : > { %2471 = vst [vmem:[%s608_s4] sm:$0xff] %v2469_v1 }
 0x268 PF: > { %p9_p9 = scmp.ge.s32.totalorder %s2888_s13, 4   ;;  %s3671_s9 = smov %s2849_s10 }
 0x269   : > { %s3672_s10 = smov %s2897_s16  ;;  %s3673_s11 = smov %s2888_s13 }
 0x26a   :  { %11 = sbr.rel (!%p9_p9) target bundleno = 2 (0x2), region = 86 }

</bundles_post_ra>
